<compile_context>
chip_gen: v7x
topology: tpu7x:2x2x1
jax: 0.10.0
libtpu: 0.0.40
codegen_flags: <defaults>
</compile_context>

<pallas_src>
from functools import partial

import jax
import jax.numpy as jnp
from jax import lax
from jax.experimental import pallas as pl
from jax.experimental.pallas import tpu as pltpu


def _lstmnet_kernel(x_ref, wih_ref, whh_ref, bias_ref,
                    bn_scale_ref, bn_shift_ref,
                    w1_ref, b1_ref, w2_ref, b2_ref,
                    out_ref, xw_ref):
    """Whole forward pass, single invocation, all operands VMEM/SMEM resident.

    x_ref:        (S*B, In)  bf16   time-major, flattened (row = t*B + b)
    wih_ref:      (In, 4H)   bf16   LSTM input weights, gate order (i,f,o,g)
    whh_ref:      (H, 4H)    bf16   LSTM recurrent weights, gate order (i,f,o,g)
    bias_ref:     (1, 4H)    f32    b_ih + b_hh, gate order (i,f,o,g)
    bn_scale_ref: (S,)       f32    SMEM  gamma * rsqrt(var+eps)   (channel = timestep)
    bn_shift_ref: (S,)       f32    SMEM  beta  - mean * scale
    w1_ref:(H,H) b1:(1,H)           fc1 (pre-transposed, bf16 / f32 bias)
    w2_ref:(H,128) b2:(1,128)       fc2 (pre-transposed, output padded to 128 lanes)
    out_ref:      (S*B, 128) f32    lane-dense output slab
    xw_ref:       (S*B, 4H)  f32    scratch: hoisted input projection
    """
    S = bn_scale_ref.shape[0]
    SB = x_ref.shape[0]
    B = SB // S
    H = whh_ref.shape[0]

    # --- hoisted input projection: one big MXU matmul for the whole sequence ---
    xw_ref[...] = (jnp.dot(x_ref[...], wih_ref[...],
                           preferred_element_type=jnp.float32)
                   + bias_ref[...])

    # loop-invariant weights, loaded once
    whh = whh_ref[...]                                   # (H, 4H) bf16
    w1 = w1_ref[...]                                     # (H, H)  bf16
    b1 = b1_ref[...]                                     # (1, H)  f32
    w2 = w2_ref[...]                                     # (H, 128) bf16
    b2 = b2_ref[...]                                     # (1, 128) f32

    def step(t, carry):
        h, c = carry
        row = pl.multiple_of(t * B, B)
        gates = xw_ref[pl.ds(row, B), :] + jnp.dot(
            h.astype(whh.dtype), whh, preferred_element_type=jnp.float32)  # (B, 4H)
        # gate layout (pre-permuted in prepare_params): [i, f, o, g]
        # sigmoid(x) == 0.5*tanh(0.5*x)+0.5: single EUP op on the serial chain
        sig = 0.5 * jnp.tanh(0.5 * gates[:, :3 * H]) + 0.5
        g_g = jnp.tanh(gates[:, 3 * H:])
        i_g = sig[:, 0 * H:1 * H]
        f_g = sig[:, 1 * H:2 * H]
        o_g = sig[:, 2 * H:3 * H]
        c_new = f_g * c + i_g * g_g
        h_new = o_g * jnp.tanh(c_new)

        # fused eval-mode BatchNorm1d (channel == timestep -> SMEM scalars)
        bn_h = h_new * bn_scale_ref[t] + bn_shift_ref[t]                   # (B, H) f32
        # fused fc1 -> ReLU -> fc2; MXU/store slots are idle during the recurrence
        z = jnp.maximum(jnp.dot(bn_h.astype(w1.dtype), w1,
                                preferred_element_type=jnp.float32) + b1, 0.0)
        y = jnp.dot(z.astype(w2.dtype), w2,
                    preferred_element_type=jnp.float32) + b2               # (B, 128)
        out_ref[pl.ds(row, B), :] = y                    # lane-dense unmasked store
        return (h_new, c_new)

    h0 = jnp.zeros((B, H), jnp.float32)
    c0 = jnp.zeros((B, H), jnp.float32)
    lax.fori_loop(0, S, step, (h0, c0), unroll=True)     # short fixed trip count


OUT_PAD = 128                                            # lane-dense output width


def prepare_params(params):
    """One-time weight prep: gate permute, transposes, bf16 casts, BN fold, fc2 pad.

    Hoisted out of the steady-state call path (the kernel is microsecond-scale, so
    ~10 small XLA ops per call would be a real fraction of wall-clock otherwise).
    """
    H = params["w_hh"].shape[1]
    Out = params["fc2_w"].shape[0]

    def permute_gates(w4h):
        # PyTorch gate column order (i, f, g, o) -> (i, f, o, g): sigmoids contiguous.
        return jnp.concatenate(
            [w4h[..., :2 * H], w4h[..., 3 * H:4 * H], w4h[..., 2 * H:3 * H]], axis=-1)

    bn_scale = params["bn_gamma"] * lax.rsqrt(params["bn_var"] + 1e-5)     # (S,)
    bn_shift = params["bn_beta"] - params["bn_mean"] * bn_scale            # (S,)

    prepped = {
        "wih": permute_gates(params["w_ih"].T).astype(jnp.bfloat16),       # (In, 4H)
        "whh": permute_gates(params["w_hh"].T).astype(jnp.bfloat16),       # (H, 4H)
        "bias": permute_gates((params["b_ih"] + params["b_hh"])
                              .reshape(1, -1)).astype(jnp.float32),        # (1, 4H)
        "bn_scale": bn_scale.astype(jnp.float32),
        "bn_shift": bn_shift.astype(jnp.float32),
        "w1": params["fc1_w"].T.astype(jnp.bfloat16),                      # (H, H)
        "b1": params["fc1_b"].reshape(1, -1).astype(jnp.float32),          # (1, H)
        "w2": jnp.zeros((H, OUT_PAD), jnp.bfloat16).at[:, :Out].set(
            params["fc2_w"].T.astype(jnp.bfloat16)),                       # (H, 128)
        "b2": jnp.zeros((1, OUT_PAD), jnp.float32).at[:, :Out].set(
            params["fc2_b"]),                                              # (1, 128)
    }
    return jax.tree_util.tree_map(jnp.asarray, prepped)


@partial(jax.jit, static_argnames=("out_dim",))
def lstmnet_forward(x, prepped, out_dim):
    """x: (batch, seq, input_dim) float32, batch_first (like nn.LSTM(batch_first=True))."""
    B, S, In = x.shape
    H = prepped["whh"].shape[0]
    # PyTorch BatchNorm1d(hidden) on (B, S, H) requires S == H (channel dim check).
    assert S == prepped["bn_scale"].shape[0]

    # time-major, flattened: row index = t*B + b (only per-call data prep left)
    x2d = jnp.transpose(x, (1, 0, 2)).reshape(S * B, In).astype(jnp.bfloat16)

    vmem = pl.BlockSpec(memory_space=pltpu.MemorySpace.VMEM)
    smem = pl.BlockSpec(memory_space=pltpu.MemorySpace.SMEM)

    out2d = pl.pallas_call(
        _lstmnet_kernel,
        out_shape=jax.ShapeDtypeStruct((S * B, OUT_PAD), jnp.float32),
        in_specs=[vmem, vmem, vmem, vmem, smem, smem, vmem, vmem, vmem, vmem],
        out_specs=vmem,
        scratch_shapes=[pltpu.VMEM((S * B, 4 * H), jnp.float32)],  # hoisted x-projection
    )(x2d, prepped["wih"], prepped["whh"], prepped["bias"],
      prepped["bn_scale"], prepped["bn_shift"],
      prepped["w1"], prepped["b1"], prepped["w2"], prepped["b2"])

    out = out2d[:, :out_dim].reshape(S, B, out_dim)                # strip lane padding
    return jnp.transpose(out, (1, 0, 2))                          # (B, S, Out)


def init_params(key, input_dim, hidden_dim, output_dim):
    """Deterministic synthetic parameters (shapes match nn.LSTM / BatchNorm1d / Linear)."""
    ks = jax.random.split(key, 12)
    H, s = hidden_dim, 0.1
    return {
        "w_ih": jax.random.normal(ks[0], (4 * H, input_dim), jnp.float32) * s,
        "w_hh": jax.random.normal(ks[1], (4 * H, H), jnp.float32) * s,
        "b_ih": jax.random.normal(ks[2], (4 * H,), jnp.float32) * s,
        "b_hh": jax.random.normal(ks[3], (4 * H,), jnp.float32) * s,
        "bn_gamma": 1.0 + jax.random.normal(ks[4], (H,), jnp.float32) * s,
        "bn_beta": jax.random.normal(ks[5], (H,), jnp.float32) * s,
        "bn_mean": jax.random.normal(ks[6], (H,), jnp.float32) * s,
        "bn_var": jax.random.uniform(ks[7], (H,), jnp.float32, 0.5, 1.5),
        "fc1_w": jax.random.normal(ks[8], (H, H), jnp.float32) * s,
        "fc1_b": jax.random.normal(ks[9], (H,), jnp.float32) * s,
        "fc2_w": jax.random.normal(ks[10], (output_dim, H), jnp.float32) * s,
        "fc2_b": jax.random.normal(ks[11], (output_dim,), jnp.float32) * s,
    }


def reference_forward(x, params):
    """Pure-JAX f32 reference mirroring the PyTorch eval-mode forward."""
    B, S, In = x.shape
    H = params["w_hh"].shape[1]
    wih_t = params["w_ih"].T
    whh_t = params["w_hh"].T
    bias = params["b_ih"] + params["b_hh"]
    h = jnp.zeros((B, H), jnp.float32)
    c = jnp.zeros((B, H), jnp.float32)
    hs = []
    for t in range(S):
        gates = x[:, t, :] @ wih_t + h @ whh_t + bias
        i_g = jax.nn.sigmoid(gates[:, 0 * H:1 * H])     # PyTorch order: i, f, g, o
        f_g = jax.nn.sigmoid(gates[:, 1 * H:2 * H])
        g_g = jnp.tanh(gates[:, 2 * H:3 * H])
        o_g = jax.nn.sigmoid(gates[:, 3 * H:4 * H])
        c = f_g * c + i_g * g_g
        h = o_g * jnp.tanh(c)
        hs.append(h)
    lstm_out = jnp.stack(hs, axis=1)                              # (B, S, H)
    inv = lax.rsqrt(params["bn_var"] + 1e-5)
    bn = ((lstm_out - params["bn_mean"][None, :, None]) * inv[None, :, None]
          * params["bn_gamma"][None, :, None] + params["bn_beta"][None, :, None])
    z = jnp.maximum(bn @ params["fc1_w"].T + params["fc1_b"], 0.0)
    return z @ params["fc2_w"].T + params["fc2_b"]


if __name__ == "__main__":
    # num_layers=1, bidirectional=False; seq_len == hidden_dim so BatchNorm1d is valid.
    B, S, In, H, Out = 8, 32, 16, 32, 8
    key = jax.random.PRNGKey(0)
    kx, kp = jax.random.split(key)
    x = jax.random.normal(kx, (B, S, In), jnp.float32)
    params = init_params(kp, In, H, Out)

    prepped = jax.block_until_ready(prepare_params(params))       # one-time weight prep

    out = jax.block_until_ready(lstmnet_forward(x, prepped, out_dim=Out))
    assert out.shape == (B, S, Out)

    ref = reference_forward(x, params)
    # bf16 MXU inputs in the kernel vs f32 reference -> allow a few e-3 of drift.
    if not jnp.allclose(out, ref, atol=2e-2, rtol=2e-2):
        raise AssertionError("Pallas kernel output does not match JAX reference")

    print("KERNEL_OK")
</pallas_src>

<mosaic_0001>
module attributes {stable_mosaic.version = 11 : i64} {
  func.func @_lstmnet_kernel(%arg0: memref<256x16xbf16, #tpu.memory_space<vmem>>, %arg1: memref<16x128xbf16, #tpu.memory_space<vmem>>, %arg2: memref<32x128xbf16, #tpu.memory_space<vmem>>, %arg3: memref<1x128xf32, #tpu.memory_space<vmem>>, %arg4: memref<32xf32, #tpu.memory_space<smem>>, %arg5: memref<32xf32, #tpu.memory_space<smem>>, %arg6: memref<32x32xbf16, #tpu.memory_space<vmem>>, %arg7: memref<1x32xf32, #tpu.memory_space<vmem>>, %arg8: memref<32x128xbf16, #tpu.memory_space<vmem>>, %arg9: memref<1x128xf32, #tpu.memory_space<vmem>>, %arg10: memref<256x128xf32, #tpu.memory_space<vmem>>, %arg11: memref<256x128xf32, #tpu.memory_space<vmem>>) attributes {dimension_semantics = [], scalar_prefetch = 0 : i64, scratch_operands = 1 : i64, tpu.core_type = #tpu.core_type<tc>} {
    %c0 = arith.constant 0 : index
    %c0_0 = arith.constant 0 : index
    %0 = vector.load %arg0[%c0, %c0_0] : memref<256x16xbf16, #tpu.memory_space<vmem>>, vector<256x16xbf16>
    %c0_1 = arith.constant 0 : index
    %c0_2 = arith.constant 0 : index
    %1 = vector.load %arg1[%c0_1, %c0_2] : memref<16x128xbf16, #tpu.memory_space<vmem>>, vector<16x128xbf16>
    %cst = arith.constant dense<0.000000e+00> : vector<256x128xf32>
    %2 = tpu.matmul %0, %1, %cst {dimension_numbers = #tpu.dot_dimension_numbers<[1], [0], [0], [1], [0, 0, 1, 1], [], []>} : vector<256x16xbf16>, vector<16x128xbf16>, vector<256x128xf32> -> vector<256x128xf32>
    %c0_3 = arith.constant 0 : index
    %c0_4 = arith.constant 0 : index
    %3 = vector.load %arg3[%c0_3, %c0_4] : memref<1x128xf32, #tpu.memory_space<vmem>>, vector<1x128xf32>
    %4 = vector.broadcast %3 : vector<1x128xf32> to vector<256x128xf32>
    %5 = arith.addf %2, %4 : vector<256x128xf32>
    %c0_5 = arith.constant 0 : index
    %c0_6 = arith.constant 0 : index
    %6 = vector.load %arg11[%c0_5, %c0_6] : memref<256x128xf32, #tpu.memory_space<vmem>>, vector<256x128xf32>
    tpu.vector_store %arg11[%c0_5, %c0_6], %5 {strides = array<i32>} : memref<256x128xf32, #tpu.memory_space<vmem>>, vector<256x128xf32>,
    %c0_7 = arith.constant 0 : index
    %c0_8 = arith.constant 0 : index
    %7 = vector.load %arg2[%c0_7, %c0_8] : memref<32x128xbf16, #tpu.memory_space<vmem>>, vector<32x128xbf16>
    %c0_9 = arith.constant 0 : index
    %c0_10 = arith.constant 0 : index
    %8 = vector.load %arg6[%c0_9, %c0_10] : memref<32x32xbf16, #tpu.memory_space<vmem>>, vector<32x32xbf16>
    %c0_11 = arith.constant 0 : index
    %c0_12 = arith.constant 0 : index
    %9 = vector.load %arg7[%c0_11, %c0_12] : memref<1x32xf32, #tpu.memory_space<vmem>>, vector<1x32xf32>
    %c0_13 = arith.constant 0 : index
    %c0_14 = arith.constant 0 : index
    %10 = vector.load %arg8[%c0_13, %c0_14] : memref<32x128xbf16, #tpu.memory_space<vmem>>, vector<32x128xbf16>
    %c0_15 = arith.constant 0 : index
    %c0_16 = arith.constant 0 : index
    %11 = vector.load %arg9[%c0_15, %c0_16] : memref<1x128xf32, #tpu.memory_space<vmem>>, vector<1x128xf32>
    %cst_17 = arith.constant 0.000000e+00 : f32
    %12 = vector.broadcast %cst_17 : f32 to vector<8x32xf32>
    %cst_18 = arith.constant 0.000000e+00 : f32
    %13 = vector.broadcast %cst_18 : f32 to vector<8x32xf32>
    %c0_i32 = arith.constant 0 : i32
    %c8_i32 = arith.constant 8 : i32
    %14 = arith.muli %c0_i32, %c8_i32 : i32
    %15 = tpu.assume_multiple %14, 8 : i32
    %16 = arith.index_cast %15 : i32 to index
    %c0_19 = arith.constant 0 : index
    %17 = vector.load %arg11[%16, %c0_19] : memref<256x128xf32, #tpu.memory_space<vmem>>, vector<8x128xf32>
    %18 = arith.truncf %12 : vector<8x32xf32> to vector<8x32xbf16>
    %cst_20 = arith.constant dense<0.000000e+00> : vector<8x128xf32>
    %19 = tpu.matmul %18, %7, %cst_20 {dimension_numbers = #tpu.dot_dimension_numbers<[1], [0], [0], [1], [0, 0, 1, 1], [], []>} : vector<8x32xbf16>, vector<32x128xbf16>, vector<8x128xf32> -> vector<8x128xf32>
    %20 = arith.addf %17, %19 : vector<8x128xf32>
    %21 = vector.extract_strided_slice %20 {offsets = [0, 0], sizes = [8, 96], strides = [1, 1]} : vector<8x128xf32> to vector<8x96xf32>
    %cst_21 = arith.constant 5.000000e-01 : f32
    %22 = vector.broadcast %cst_21 : f32 to vector<8x96xf32>
    %23 = arith.mulf %22, %21 : vector<8x96xf32>
    %24 = math.tanh %23 : vector<8x96xf32>
    %cst_22 = arith.constant 5.000000e-01 : f32
    %25 = vector.broadcast %cst_22 : f32 to vector<8x96xf32>
    %26 = arith.mulf %25, %24 : vector<8x96xf32>
    %cst_23 = arith.constant 5.000000e-01 : f32
    %27 = vector.broadcast %cst_23 : f32 to vector<8x96xf32>
    %28 = arith.addf %26, %27 : vector<8x96xf32>
    %29 = vector.extract_strided_slice %20 {offsets = [0, 96], sizes = [8, 32], strides = [1, 1]} : vector<8x128xf32> to vector<8x32xf32>
    %30 = math.tanh %29 : vector<8x32xf32>
    %31 = vector.extract_strided_slice %28 {offsets = [0, 0], sizes = [8, 32], strides = [1, 1]} : vector<8x96xf32> to vector<8x32xf32>
    %32 = vector.extract_strided_slice %28 {offsets = [0, 32], sizes = [8, 32], strides = [1, 1]} : vector<8x96xf32> to vector<8x32xf32>
    %33 = vector.extract_strided_slice %28 {offsets = [0, 64], sizes = [8, 32], strides = [1, 1]} : vector<8x96xf32> to vector<8x32xf32>
    %34 = arith.mulf %32, %13 : vector<8x32xf32>
    %35 = arith.mulf %31, %30 : vector<8x32xf32>
    %36 = arith.addf %34, %35 : vector<8x32xf32>
    %37 = math.tanh %36 : vector<8x32xf32>
    %38 = arith.mulf %33, %37 : vector<8x32xf32>
    %39 = arith.index_cast %c0_i32 : i32 to index
    %40 = memref.load %arg4[%39] : memref<32xf32, #tpu.memory_space<smem>>
    %41 = vector.broadcast %40 : f32 to vector<8x32xf32>
    %42 = arith.mulf %38, %41 : vector<8x32xf32>
    %43 = arith.index_cast %c0_i32 : i32 to index
    %44 = memref.load %arg5[%43] : memref<32xf32, #tpu.memory_space<smem>>
    %45 = vector.broadcast %44 : f32 to vector<8x32xf32>
    %46 = arith.addf %42, %45 : vector<8x32xf32>
    %47 = arith.truncf %46 : vector<8x32xf32> to vector<8x32xbf16>
    %cst_24 = arith.constant dense<0.000000e+00> : vector<8x32xf32>
    %48 = tpu.matmul %47, %8, %cst_24 {dimension_numbers = #tpu.dot_dimension_numbers<[1], [0], [0], [1], [0, 0, 1, 1], [], []>} : vector<8x32xbf16>, vector<32x32xbf16>, vector<8x32xf32> -> vector<8x32xf32>
    %49 = vector.broadcast %9 : vector<1x32xf32> to vector<8x32xf32>
    %50 = arith.addf %48, %49 : vector<8x32xf32>
    %cst_25 = arith.constant 0.000000e+00 : f32
    %51 = vector.broadcast %cst_25 : f32 to vector<8x32xf32>
    %52 = arith.maximumf %50, %51 : vector<8x32xf32>
    %53 = arith.truncf %52 : vector<8x32xf32> to vector<8x32xbf16>
    %cst_26 = arith.constant dense<0.000000e+00> : vector<8x128xf32>
    %54 = tpu.matmul %53, %10, %cst_26 {dimension_numbers = #tpu.dot_dimension_numbers<[1], [0], [0], [1], [0, 0, 1, 1], [], []>} : vector<8x32xbf16>, vector<32x128xbf16>, vector<8x128xf32> -> vector<8x128xf32>
    %55 = vector.broadcast %11 : vector<1x128xf32> to vector<8x128xf32>
    %56 = arith.addf %54, %55 : vector<8x128xf32>
    %57 = arith.index_cast %15 : i32 to index
    %c0_27 = arith.constant 0 : index
    %58 = vector.load %arg10[%57, %c0_27] : memref<256x128xf32, #tpu.memory_space<vmem>>, vector<8x128xf32>
    tpu.vector_store %arg10[%57, %c0_27], %56 {strides = array<i32>} : memref<256x128xf32, #tpu.memory_space<vmem>>, vector<8x128xf32>,
    %c1_i32 = arith.constant 1 : i32
    %c8_i32_28 = arith.constant 8 : i32
    %59 = arith.muli %c1_i32, %c8_i32_28 : i32
    %60 = tpu.assume_multiple %59, 8 : i32
    %61 = arith.index_cast %60 : i32 to index
    %c0_29 = arith.constant 0 : index
    %62 = vector.load %arg11[%61, %c0_29] : memref<256x128xf32, #tpu.memory_space<vmem>>, vector<8x128xf32>
    %63 = arith.truncf %38 : vector<8x32xf32> to vector<8x32xbf16>
    %cst_30 = arith.constant dense<0.000000e+00> : vector<8x128xf32>
    %64 = tpu.matmul %63, %7, %cst_30 {dimension_numbers = #tpu.dot_dimension_numbers<[1], [0], [0], [1], [0, 0, 1, 1], [], []>} : vector<8x32xbf16>, vector<32x128xbf16>, vector<8x128xf32> -> vector<8x128xf32>
    %65 = arith.addf %62, %64 : vector<8x128xf32>
    %66 = vector.extract_strided_slice %65 {offsets = [0, 0], sizes = [8, 96], strides = [1, 1]} : vector<8x128xf32> to vector<8x96xf32>
    %cst_31 = arith.constant 5.000000e-01 : f32
    %67 = vector.broadcast %cst_31 : f32 to vector<8x96xf32>
    %68 = arith.mulf %67, %66 : vector<8x96xf32>
    %69 = math.tanh %68 : vector<8x96xf32>
    %cst_32 = arith.constant 5.000000e-01 : f32
    %70 = vector.broadcast %cst_32 : f32 to vector<8x96xf32>
    %71 = arith.mulf %70, %69 : vector<8x96xf32>
    %cst_33 = arith.constant 5.000000e-01 : f32
    %72 = vector.broadcast %cst_33 : f32 to vector<8x96xf32>
    %73 = arith.addf %71, %72 : vector<8x96xf32>
    %74 = vector.extract_strided_slice %65 {offsets = [0, 96], sizes = [8, 32], strides = [1, 1]} : vector<8x128xf32> to vector<8x32xf32>
    %75 = math.tanh %74 : vector<8x32xf32>
    %76 = vector.extract_strided_slice %73 {offsets = [0, 0], sizes = [8, 32], strides = [1, 1]} : vector<8x96xf32> to vector<8x32xf32>
    %77 = vector.extract_strided_slice %73 {offsets = [0, 32], sizes = [8, 32], strides = [1, 1]} : vector<8x96xf32> to vector<8x32xf32>
    %78 = vector.extract_strided_slice %73 {offsets = [0, 64], sizes = [8, 32], strides = [1, 1]} : vector<8x96xf32> to vector<8x32xf32>
    %79 = arith.mulf %77, %36 : vector<8x32xf32>
    %80 = arith.mulf %76, %75 : vector<8x32xf32>
    %81 = arith.addf %79, %80 : vector<8x32xf32>
    %82 = math.tanh %81 : vector<8x32xf32>
    %83 = arith.mulf %78, %82 : vector<8x32xf32>
    %84 = arith.index_cast %c1_i32 : i32 to index
    %85 = memref.load %arg4[%84] : memref<32xf32, #tpu.memory_space<smem>>
    %86 = vector.broadcast %85 : f32 to vector<8x32xf32>
    %87 = arith.mulf %83, %86 : vector<8x32xf32>
    %88 = arith.index_cast %c1_i32 : i32 to index
    %89 = memref.load %arg5[%88] : memref<32xf32, #tpu.memory_space<smem>>
    %90 = vector.broadcast %89 : f32 to vector<8x32xf32>
    %91 = arith.addf %87, %90 : vector<8x32xf32>
    %92 = arith.truncf %91 : vector<8x32xf32> to vector<8x32xbf16>
    %cst_34 = arith.constant dense<0.000000e+00> : vector<8x32xf32>
    %93 = tpu.matmul %92, %8, %cst_34 {dimension_numbers = #tpu.dot_dimension_numbers<[1], [0], [0], [1], [0, 0, 1, 1], [], []>} : vector<8x32xbf16>, vector<32x32xbf16>, vector<8x32xf32> -> vector<8x32xf32>
    %94 = vector.broadcast %9 : vector<1x32xf32> to vector<8x32xf32>
    %95 = arith.addf %93, %94 : vector<8x32xf32>
    %cst_35 = arith.constant 0.000000e+00 : f32
    %96 = vector.broadcast %cst_35 : f32 to vector<8x32xf32>
    %97 = arith.maximumf %95, %96 : vector<8x32xf32>
    %98 = arith.truncf %97 : vector<8x32xf32> to vector<8x32xbf16>
    %cst_36 = arith.constant dense<0.000000e+00> : vector<8x128xf32>
    %99 = tpu.matmul %98, %10, %cst_36 {dimension_numbers = #tpu.dot_dimension_numbers<[1], [0], [0], [1], [0, 0, 1, 1], [], []>} : vector<8x32xbf16>, vector<32x128xbf16>, vector<8x128xf32> -> vector<8x128xf32>
    %100 = vector.broadcast %11 : vector<1x128xf32> to vector<8x128xf32>
    %101 = arith.addf %99, %100 : vector<8x128xf32>
    %102 = arith.index_cast %60 : i32 to index
    %c0_37 = arith.constant 0 : index
    %103 = vector.load %arg10[%102, %c0_37] : memref<256x128xf32, #tpu.memory_space<vmem>>, vector<8x128xf32>
    tpu.vector_store %arg10[%102, %c0_37], %101 {strides = array<i32>} : memref<256x128xf32, #tpu.memory_space<vmem>>, vector<8x128xf32>,
    %c2_i32 = arith.constant 2 : i32
    %c8_i32_38 = arith.constant 8 : i32
    %104 = arith.muli %c2_i32, %c8_i32_38 : i32
    %105 = tpu.assume_multiple %104, 8 : i32
    %106 = arith.index_cast %105 : i32 to index
    %c0_39 = arith.constant 0 : index
    %107 = vector.load %arg11[%106, %c0_39] : memref<256x128xf32, #tpu.memory_space<vmem>>, vector<8x128xf32>
    %108 = arith.truncf %83 : vector<8x32xf32> to vector<8x32xbf16>
    %cst_40 = arith.constant dense<0.000000e+00> : vector<8x128xf32>
    %109 = tpu.matmul %108, %7, %cst_40 {dimension_numbers = #tpu.dot_dimension_numbers<[1], [0], [0], [1], [0, 0, 1, 1], [], []>} : vector<8x32xbf16>, vector<32x128xbf16>, vector<8x128xf32> -> vector<8x128xf32>
    %110 = arith.addf %107, %109 : vector<8x128xf32>
    %111 = vector.extract_strided_slice %110 {offsets = [0, 0], sizes = [8, 96], strides = [1, 1]} : vector<8x128xf32> to vector<8x96xf32>
    %cst_41 = arith.constant 5.000000e-01 : f32
    %112 = vector.broadcast %cst_41 : f32 to vector<8x96xf32>
    %113 = arith.mulf %112, %111 : vector<8x96xf32>
    %114 = math.tanh %113 : vector<8x96xf32>
    %cst_42 = arith.constant 5.000000e-01 : f32
    %115 = vector.broadcast %cst_42 : f32 to vector<8x96xf32>
    %116 = arith.mulf %115, %114 : vector<8x96xf32>
    %cst_43 = arith.constant 5.000000e-01 : f32
    %117 = vector.broadcast %cst_43 : f32 to vector<8x96xf32>
    %118 = arith.addf %116, %117 : vector<8x96xf32>
    %119 = vector.extract_strided_slice %110 {offsets = [0, 96], sizes = [8, 32], strides = [1, 1]} : vector<8x128xf32> to vector<8x32xf32>
    %120 = math.tanh %119 : vector<8x32xf32>
    %121 = vector.extract_strided_slice %118 {offsets = [0, 0], sizes = [8, 32], strides = [1, 1]} : vector<8x96xf32> to vector<8x32xf32>
    %122 = vector.extract_strided_slice %118 {offsets = [0, 32], sizes = [8, 32], strides = [1, 1]} : vector<8x96xf32> to vector<8x32xf32>
    %123 = vector.extract_strided_slice %118 {offsets = [0, 64], sizes = [8, 32], strides = [1, 1]} : vector<8x96xf32> to vector<8x32xf32>
    %124 = arith.mulf %122, %81 : vector<8x32xf32>
    %125 = arith.mulf %121, %120 : vector<8x32xf32>
    %126 = arith.addf %124, %125 : vector<8x32xf32>
    %127 = math.tanh %126 : vector<8x32xf32>
    %128 = arith.mulf %123, %127 : vector<8x32xf32>
    %129 = arith.index_cast %c2_i32 : i32 to index
    %130 = memref.load %arg4[%129] : memref<32xf32, #tpu.memory_space<smem>>
    %131 = vector.broadcast %130 : f32 to vector<8x32xf32>
    %132 = arith.mulf %128, %131 : vector<8x32xf32>
    %133 = arith.index_cast %c2_i32 : i32 to index
    %134 = memref.load %arg5[%133] : memref<32xf32, #tpu.memory_space<smem>>
    %135 = vector.broadcast %134 : f32 to vector<8x32xf32>
    %136 = arith.addf %132, %135 : vector<8x32xf32>
    %137 = arith.truncf %136 : vector<8x32xf32> to vector<8x32xbf16>
    %cst_44 = arith.constant dense<0.000000e+00> : vector<8x32xf32>
    %138 = tpu.matmul %137, %8, %cst_44 {dimension_numbers = #tpu.dot_dimension_numbers<[1], [0], [0], [1], [0, 0, 1, 1], [], []>} : vector<8x32xbf16>, vector<32x32xbf16>, vector<8x32xf32> -> vector<8x32xf32>
    %139 = vector.broadcast %9 : vector<1x32xf32> to vector<8x32xf32>
    %140 = arith.addf %138, %139 : vector<8x32xf32>
    %cst_45 = arith.constant 0.000000e+00 : f32
    %141 = vector.broadcast %cst_45 : f32 to vector<8x32xf32>
    %142 = arith.maximumf %140, %141 : vector<8x32xf32>
    %143 = arith.truncf %142 : vector<8x32xf32> to vector<8x32xbf16>
    %cst_46 = arith.constant dense<0.000000e+00> : vector<8x128xf32>
    %144 = tpu.matmul %143, %10, %cst_46 {dimension_numbers = #tpu.dot_dimension_numbers<[1], [0], [0], [1], [0, 0, 1, 1], [], []>} : vector<8x32xbf16>, vector<32x128xbf16>, vector<8x128xf32> -> vector<8x128xf32>
    %145 = vector.broadcast %11 : vector<1x128xf32> to vector<8x128xf32>
    %146 = arith.addf %144, %145 : vector<8x128xf32>
    %147 = arith.index_cast %105 : i32 to index
    %c0_47 = arith.constant 0 : index
    %148 = vector.load %arg10[%147, %c0_47] : memref<256x128xf32, #tpu.memory_space<vmem>>, vector<8x128xf32>
    tpu.vector_store %arg10[%147, %c0_47], %146 {strides = array<i32>} : memref<256x128xf32, #tpu.memory_space<vmem>>, vector<8x128xf32>,
    %c3_i32 = arith.constant 3 : i32
    %c8_i32_48 = arith.constant 8 : i32
    %149 = arith.muli %c3_i32, %c8_i32_48 : i32
    %150 = tpu.assume_multiple %149, 8 : i32
    %151 = arith.index_cast %150 : i32 to index
    %c0_49 = arith.constant 0 : index
    %152 = vector.load %arg11[%151, %c0_49] : memref<256x128xf32, #tpu.memory_space<vmem>>, vector<8x128xf32>
    %153 = arith.truncf %128 : vector<8x32xf32> to vector<8x32xbf16>
    %cst_50 = arith.constant dense<0.000000e+00> : vector<8x128xf32>
    %154 = tpu.matmul %153, %7, %cst_50 {dimension_numbers = #tpu.dot_dimension_numbers<[1], [0], [0], [1], [0, 0, 1, 1], [], []>} : vector<8x32xbf16>, vector<32x128xbf16>, vector<8x128xf32> -> vector<8x128xf32>
    %155 = arith.addf %152, %154 : vector<8x128xf32>
    %156 = vector.extract_strided_slice %155 {offsets = [0, 0], sizes = [8, 96], strides = [1, 1]} : vector<8x128xf32> to vector<8x96xf32>
    %cst_51 = arith.constant 5.000000e-01 : f32
    %157 = vector.broadcast %cst_51 : f32 to vector<8x96xf32>
    %158 = arith.mulf %157, %156 : vector<8x96xf32>
    %159 = math.tanh %158 : vector<8x96xf32>
    %cst_52 = arith.constant 5.000000e-01 : f32
    %160 = vector.broadcast %cst_52 : f32 to vector<8x96xf32>
    %161 = arith.mulf %160, %159 : vector<8x96xf32>
    %cst_53 = arith.constant 5.000000e-01 : f32
    %162 = vector.broadcast %cst_53 : f32 to vector<8x96xf32>
    %163 = arith.addf %161, %162 : vector<8x96xf32>
    %164 = vector.extract_strided_slice %155 {offsets = [0, 96], sizes = [8, 32], strides = [1, 1]} : vector<8x128xf32> to vector<8x32xf32>
    %165 = math.tanh %164 : vector<8x32xf32>
    %166 = vector.extract_strided_slice %163 {offsets = [0, 0], sizes = [8, 32], strides = [1, 1]} : vector<8x96xf32> to vector<8x32xf32>
    %167 = vector.extract_strided_slice %163 {offsets = [0, 32], sizes = [8, 32], strides = [1, 1]} : vector<8x96xf32> to vector<8x32xf32>
    %168 = vector.extract_strided_slice %163 {offsets = [0, 64], sizes = [8, 32], strides = [1, 1]} : vector<8x96xf32> to vector<8x32xf32>
    %169 = arith.mulf %167, %126 : vector<8x32xf32>
    %170 = arith.mulf %166, %165 : vector<8x32xf32>
    %171 = arith.addf %169, %170 : vector<8x32xf32>
    %172 = math.tanh %171 : vector<8x32xf32>
    %173 = arith.mulf %168, %172 : vector<8x32xf32>
    %174 = arith.index_cast %c3_i32 : i32 to index
    %175 = memref.load %arg4[%174] : memref<32xf32, #tpu.memory_space<smem>>
    %176 = vector.broadcast %175 : f32 to vector<8x32xf32>
    %177 = arith.mulf %173, %176 : vector<8x32xf32>
    %178 = arith.index_cast %c3_i32 : i32 to index
    %179 = memref.load %arg5[%178] : memref<32xf32, #tpu.memory_space<smem>>
    %180 = vector.broadcast %179 : f32 to vector<8x32xf32>
    %181 = arith.addf %177, %180 : vector<8x32xf32>
    %182 = arith.truncf %181 : vector<8x32xf32> to vector<8x32xbf16>
    %cst_54 = arith.constant dense<0.000000e+00> : vector<8x32xf32>
    %183 = tpu.matmul %182, %8, %cst_54 {dimension_numbers = #tpu.dot_dimension_numbers<[1], [0], [0], [1], [0, 0, 1, 1], [], []>} : vector<8x32xbf16>, vector<32x32xbf16>, vector<8x32xf32> -> vector<8x32xf32>
    %184 = vector.broadcast %9 : vector<1x32xf32> to vector<8x32xf32>
    %185 = arith.addf %183, %184 : vector<8x32xf32>
    %cst_55 = arith.constant 0.000000e+00 : f32
    %186 = vector.broadcast %cst_55 : f32 to vector<8x32xf32>
    %187 = arith.maximumf %185, %186 : vector<8x32xf32>
    %188 = arith.truncf %187 : vector<8x32xf32> to vector<8x32xbf16>
    %cst_56 = arith.constant dense<0.000000e+00> : vector<8x128xf32>
    %189 = tpu.matmul %188, %10, %cst_56 {dimension_numbers = #tpu.dot_dimension_numbers<[1], [0], [0], [1], [0, 0, 1, 1], [], []>} : vector<8x32xbf16>, vector<32x128xbf16>, vector<8x128xf32> -> vector<8x128xf32>
    %190 = vector.broadcast %11 : vector<1x128xf32> to vector<8x128xf32>
    %191 = arith.addf %189, %190 : vector<8x128xf32>
    %192 = arith.index_cast %150 : i32 to index
    %c0_57 = arith.constant 0 : index
    %193 = vector.load %arg10[%192, %c0_57] : memref<256x128xf32, #tpu.memory_space<vmem>>, vector<8x128xf32>
    tpu.vector_store %arg10[%192, %c0_57], %191 {strides = array<i32>} : memref<256x128xf32, #tpu.memory_space<vmem>>, vector<8x128xf32>,
    %c4_i32 = arith.constant 4 : i32
    %c8_i32_58 = arith.constant 8 : i32
    %194 = arith.muli %c4_i32, %c8_i32_58 : i32
    %195 = tpu.assume_multiple %194, 8 : i32
    %196 = arith.index_cast %195 : i32 to index
    %c0_59 = arith.constant 0 : index
    %197 = vector.load %arg11[%196, %c0_59] : memref<256x128xf32, #tpu.memory_space<vmem>>, vector<8x128xf32>
    %198 = arith.truncf %173 : vector<8x32xf32> to vector<8x32xbf16>
    %cst_60 = arith.constant dense<0.000000e+00> : vector<8x128xf32>
    %199 = tpu.matmul %198, %7, %cst_60 {dimension_numbers = #tpu.dot_dimension_numbers<[1], [0], [0], [1], [0, 0, 1, 1], [], []>} : vector<8x32xbf16>, vector<32x128xbf16>, vector<8x128xf32> -> vector<8x128xf32>
    %200 = arith.addf %197, %199 : vector<8x128xf32>
    %201 = vector.extract_strided_slice %200 {offsets = [0, 0], sizes = [8, 96], strides = [1, 1]} : vector<8x128xf32> to vector<8x96xf32>
    %cst_61 = arith.constant 5.000000e-01 : f32
    %202 = vector.broadcast %cst_61 : f32 to vector<8x96xf32>
    %203 = arith.mulf %202, %201 : vector<8x96xf32>
    %204 = math.tanh %203 : vector<8x96xf32>
    %cst_62 = arith.constant 5.000000e-01 : f32
    %205 = vector.broadcast %cst_62 : f32 to vector<8x96xf32>
    %206 = arith.mulf %205, %204 : vector<8x96xf32>
    %cst_63 = arith.constant 5.000000e-01 : f32
    %207 = vector.broadcast %cst_63 : f32 to vector<8x96xf32>
    %208 = arith.addf %206, %207 : vector<8x96xf32>
    %209 = vector.extract_strided_slice %200 {offsets = [0, 96], sizes = [8, 32], strides = [1, 1]} : vector<8x128xf32> to vector<8x32xf32>
    %210 = math.tanh %209 : vector<8x32xf32>
    %211 = vector.extract_strided_slice %208 {offsets = [0, 0], sizes = [8, 32], strides = [1, 1]} : vector<8x96xf32> to vector<8x32xf32>
    %212 = vector.extract_strided_slice %208 {offsets = [0, 32], sizes = [8, 32], strides = [1, 1]} : vector<8x96xf32> to vector<8x32xf32>
    %213 = vector.extract_strided_slice %208 {offsets = [0, 64], sizes = [8, 32], strides = [1, 1]} : vector<8x96xf32> to vector<8x32xf32>
    %214 = arith.mulf %212, %171 : vector<8x32xf32>
    %215 = arith.mulf %211, %210 : vector<8x32xf32>
    %216 = arith.addf %214, %215 : vector<8x32xf32>
    %217 = math.tanh %216 : vector<8x32xf32>
    %218 = arith.mulf %213, %217 : vector<8x32xf32>
    %219 = arith.index_cast %c4_i32 : i32 to index
    %220 = memref.load %arg4[%219] : memref<32xf32, #tpu.memory_space<smem>>
    %221 = vector.broadcast %220 : f32 to vector<8x32xf32>
    %222 = arith.mulf %218, %221 : vector<8x32xf32>
    %223 = arith.index_cast %c4_i32 : i32 to index
    %224 = memref.load %arg5[%223] : memref<32xf32, #tpu.memory_space<smem>>
    %225 = vector.broadcast %224 : f32 to vector<8x32xf32>
    %226 = arith.addf %222, %225 : vector<8x32xf32>
    %227 = arith.truncf %226 : vector<8x32xf32> to vector<8x32xbf16>
    %cst_64 = arith.constant dense<0.000000e+00> : vector<8x32xf32>
    %228 = tpu.matmul %227, %8, %cst_64 {dimension_numbers = #tpu.dot_dimension_numbers<[1], [0], [0], [1], [0, 0, 1, 1], [], []>} : vector<8x32xbf16>, vector<32x32xbf16>, vector<8x32xf32> -> vector<8x32xf32>
    %229 = vector.broadcast %9 : vector<1x32xf32> to vector<8x32xf32>
    %230 = arith.addf %228, %229 : vector<8x32xf32>
    %cst_65 = arith.constant 0.000000e+00 : f32
    %231 = vector.broadcast %cst_65 : f32 to vector<8x32xf32>
    %232 = arith.maximumf %230, %231 : vector<8x32xf32>
    %233 = arith.truncf %232 : vector<8x32xf32> to vector<8x32xbf16>
    %cst_66 = arith.constant dense<0.000000e+00> : vector<8x128xf32>
    %234 = tpu.matmul %233, %10, %cst_66 {dimension_numbers = #tpu.dot_dimension_numbers<[1], [0], [0], [1], [0, 0, 1, 1], [], []>} : vector<8x32xbf16>, vector<32x128xbf16>, vector<8x128xf32> -> vector<8x128xf32>
    %235 = vector.broadcast %11 : vector<1x128xf32> to vector<8x128xf32>
    %236 = arith.addf %234, %235 : vector<8x128xf32>
    %237 = arith.index_cast %195 : i32 to index
    %c0_67 = arith.constant 0 : index
    %238 = vector.load %arg10[%237, %c0_67] : memref<256x128xf32, #tpu.memory_space<vmem>>, vector<8x128xf32>
    tpu.vector_store %arg10[%237, %c0_67], %236 {strides = array<i32>} : memref<256x128xf32, #tpu.memory_space<vmem>>, vector<8x128xf32>,
    %c5_i32 = arith.constant 5 : i32
    %c8_i32_68 = arith.constant 8 : i32
    %239 = arith.muli %c5_i32, %c8_i32_68 : i32
    %240 = tpu.assume_multiple %239, 8 : i32
    %241 = arith.index_cast %240 : i32 to index
    %c0_69 = arith.constant 0 : index
    %242 = vector.load %arg11[%241, %c0_69] : memref<256x128xf32, #tpu.memory_space<vmem>>, vector<8x128xf32>
    %243 = arith.truncf %218 : vector<8x32xf32> to vector<8x32xbf16>
    %cst_70 = arith.constant dense<0.000000e+00> : vector<8x128xf32>
    %244 = tpu.matmul %243, %7, %cst_70 {dimension_numbers = #tpu.dot_dimension_numbers<[1], [0], [0], [1], [0, 0, 1, 1], [], []>} : vector<8x32xbf16>, vector<32x128xbf16>, vector<8x128xf32> -> vector<8x128xf32>
    %245 = arith.addf %242, %244 : vector<8x128xf32>
    %246 = vector.extract_strided_slice %245 {offsets = [0, 0], sizes = [8, 96], strides = [1, 1]} : vector<8x128xf32> to vector<8x96xf32>
    %cst_71 = arith.constant 5.000000e-01 : f32
    %247 = vector.broadcast %cst_71 : f32 to vector<8x96xf32>
    %248 = arith.mulf %247, %246 : vector<8x96xf32>
    %249 = math.tanh %248 : vector<8x96xf32>
    %cst_72 = arith.constant 5.000000e-01 : f32
    %250 = vector.broadcast %cst_72 : f32 to vector<8x96xf32>
    %251 = arith.mulf %250, %249 : vector<8x96xf32>
    %cst_73 = arith.constant 5.000000e-01 : f32
    %252 = vector.broadcast %cst_73 : f32 to vector<8x96xf32>
    %253 = arith.addf %251, %252 : vector<8x96xf32>
    %254 = vector.extract_strided_slice %245 {offsets = [0, 96], sizes = [8, 32], strides = [1, 1]} : vector<8x128xf32> to vector<8x32xf32>
    %255 = math.tanh %254 : vector<8x32xf32>
    %256 = vector.extract_strided_slice %253 {offsets = [0, 0], sizes = [8, 32], strides = [1, 1]} : vector<8x96xf32> to vector<8x32xf32>
    %257 = vector.extract_strided_slice %253 {offsets = [0, 32], sizes = [8, 32], strides = [1, 1]} : vector<8x96xf32> to vector<8x32xf32>
    %258 = vector.extract_strided_slice %253 {offsets = [0, 64], sizes = [8, 32], strides = [1, 1]} : vector<8x96xf32> to vector<8x32xf32>
    %259 = arith.mulf %257, %216 : vector<8x32xf32>
    %260 = arith.mulf %256, %255 : vector<8x32xf32>
    %261 = arith.addf %259, %260 : vector<8x32xf32>
    %262 = math.tanh %261 : vector<8x32xf32>
    %263 = arith.mulf %258, %262 : vector<8x32xf32>
    %264 = arith.index_cast %c5_i32 : i32 to index
    %265 = memref.load %arg4[%264] : memref<32xf32, #tpu.memory_space<smem>>
    %266 = vector.broadcast %265 : f32 to vector<8x32xf32>
    %267 = arith.mulf %263, %266 : vector<8x32xf32>
    %268 = arith.index_cast %c5_i32 : i32 to index
    %269 = memref.load %arg5[%268] : memref<32xf32, #tpu.memory_space<smem>>
    %270 = vector.broadcast %269 : f32 to vector<8x32xf32>
    %271 = arith.addf %267, %270 : vector<8x32xf32>
    %272 = arith.truncf %271 : vector<8x32xf32> to vector<8x32xbf16>
    %cst_74 = arith.constant dense<0.000000e+00> : vector<8x32xf32>
    %273 = tpu.matmul %272, %8, %cst_74 {dimension_numbers = #tpu.dot_dimension_numbers<[1], [0], [0], [1], [0, 0, 1, 1], [], []>} : vector<8x32xbf16>, vector<32x32xbf16>, vector<8x32xf32> -> vector<8x32xf32>
    %274 = vector.broadcast %9 : vector<1x32xf32> to vector<8x32xf32>
    %275 = arith.addf %273, %274 : vector<8x32xf32>
    %cst_75 = arith.constant 0.000000e+00 : f32
    %276 = vector.broadcast %cst_75 : f32 to vector<8x32xf32>
    %277 = arith.maximumf %275, %276 : vector<8x32xf32>
    %278 = arith.truncf %277 : vector<8x32xf32> to vector<8x32xbf16>
    %cst_76 = arith.constant dense<0.000000e+00> : vector<8x128xf32>
    %279 = tpu.matmul %278, %10, %cst_76 {dimension_numbers = #tpu.dot_dimension_numbers<[1], [0], [0], [1], [0, 0, 1, 1], [], []>} : vector<8x32xbf16>, vector<32x128xbf16>, vector<8x128xf32> -> vector<8x128xf32>
    %280 = vector.broadcast %11 : vector<1x128xf32> to vector<8x128xf32>
    %281 = arith.addf %279, %280 : vector<8x128xf32>
    %282 = arith.index_cast %240 : i32 to index
    %c0_77 = arith.constant 0 : index
    %283 = vector.load %arg10[%282, %c0_77] : memref<256x128xf32, #tpu.memory_space<vmem>>, vector<8x128xf32>
    tpu.vector_store %arg10[%282, %c0_77], %281 {strides = array<i32>} : memref<256x128xf32, #tpu.memory_space<vmem>>, vector<8x128xf32>,
    %c6_i32 = arith.constant 6 : i32
    %c8_i32_78 = arith.constant 8 : i32
    %284 = arith.muli %c6_i32, %c8_i32_78 : i32
    %285 = tpu.assume_multiple %284, 8 : i32
    %286 = arith.index_cast %285 : i32 to index
    %c0_79 = arith.constant 0 : index
    %287 = vector.load %arg11[%286, %c0_79] : memref<256x128xf32, #tpu.memory_space<vmem>>, vector<8x128xf32>
    %288 = arith.truncf %263 : vector<8x32xf32> to vector<8x32xbf16>
    %cst_80 = arith.constant dense<0.000000e+00> : vector<8x128xf32>
    %289 = tpu.matmul %288, %7, %cst_80 {dimension_numbers = #tpu.dot_dimension_numbers<[1], [0], [0], [1], [0, 0, 1, 1], [], []>} : vector<8x32xbf16>, vector<32x128xbf16>, vector<8x128xf32> -> vector<8x128xf32>
    %290 = arith.addf %287, %289 : vector<8x128xf32>
    %291 = vector.extract_strided_slice %290 {offsets = [0, 0], sizes = [8, 96], strides = [1, 1]} : vector<8x128xf32> to vector<8x96xf32>
    %cst_81 = arith.constant 5.000000e-01 : f32
    %292 = vector.broadcast %cst_81 : f32 to vector<8x96xf32>
    %293 = arith.mulf %292, %291 : vector<8x96xf32>
    %294 = math.tanh %293 : vector<8x96xf32>
    %cst_82 = arith.constant 5.000000e-01 : f32
    %295 = vector.broadcast %cst_82 : f32 to vector<8x96xf32>
    %296 = arith.mulf %295, %294 : vector<8x96xf32>
    %cst_83 = arith.constant 5.000000e-01 : f32
    %297 = vector.broadcast %cst_83 : f32 to vector<8x96xf32>
    %298 = arith.addf %296, %297 : vector<8x96xf32>
    %299 = vector.extract_strided_slice %290 {offsets = [0, 96], sizes = [8, 32], strides = [1, 1]} : vector<8x128xf32> to vector<8x32xf32>
    %300 = math.tanh %299 : vector<8x32xf32>
    %301 = vector.extract_strided_slice %298 {offsets = [0, 0], sizes = [8, 32], strides = [1, 1]} : vector<8x96xf32> to vector<8x32xf32>
    %302 = vector.extract_strided_slice %298 {offsets = [0, 32], sizes = [8, 32], strides = [1, 1]} : vector<8x96xf32> to vector<8x32xf32>
    %303 = vector.extract_strided_slice %298 {offsets = [0, 64], sizes = [8, 32], strides = [1, 1]} : vector<8x96xf32> to vector<8x32xf32>
    %304 = arith.mulf %302, %261 : vector<8x32xf32>
    %305 = arith.mulf %301, %300 : vector<8x32xf32>
    %306 = arith.addf %304, %305 : vector<8x32xf32>
    %307 = math.tanh %306 : vector<8x32xf32>
    %308 = arith.mulf %303, %307 : vector<8x32xf32>
    %309 = arith.index_cast %c6_i32 : i32 to index
    %310 = memref.load %arg4[%309] : memref<32xf32, #tpu.memory_space<smem>>
    %311 = vector.broadcast %310 : f32 to vector<8x32xf32>
    %312 = arith.mulf %308, %311 : vector<8x32xf32>
    %313 = arith.index_cast %c6_i32 : i32 to index
    %314 = memref.load %arg5[%313] : memref<32xf32, #tpu.memory_space<smem>>
    %315 = vector.broadcast %314 : f32 to vector<8x32xf32>
    %316 = arith.addf %312, %315 : vector<8x32xf32>
    %317 = arith.truncf %316 : vector<8x32xf32> to vector<8x32xbf16>
    %cst_84 = arith.constant dense<0.000000e+00> : vector<8x32xf32>
    %318 = tpu.matmul %317, %8, %cst_84 {dimension_numbers = #tpu.dot_dimension_numbers<[1], [0], [0], [1], [0, 0, 1, 1], [], []>} : vector<8x32xbf16>, vector<32x32xbf16>, vector<8x32xf32> -> vector<8x32xf32>
    %319 = vector.broadcast %9 : vector<1x32xf32> to vector<8x32xf32>
    %320 = arith.addf %318, %319 : vector<8x32xf32>
    %cst_85 = arith.constant 0.000000e+00 : f32
    %321 = vector.broadcast %cst_85 : f32 to vector<8x32xf32>
    %322 = arith.maximumf %320, %321 : vector<8x32xf32>
    %323 = arith.truncf %322 : vector<8x32xf32> to vector<8x32xbf16>
    %cst_86 = arith.constant dense<0.000000e+00> : vector<8x128xf32>
    %324 = tpu.matmul %323, %10, %cst_86 {dimension_numbers = #tpu.dot_dimension_numbers<[1], [0], [0], [1], [0, 0, 1, 1], [], []>} : vector<8x32xbf16>, vector<32x128xbf16>, vector<8x128xf32> -> vector<8x128xf32>
    %325 = vector.broadcast %11 : vector<1x128xf32> to vector<8x128xf32>
    %326 = arith.addf %324, %325 : vector<8x128xf32>
    %327 = arith.index_cast %285 : i32 to index
    %c0_87 = arith.constant 0 : index
    %328 = vector.load %arg10[%327, %c0_87] : memref<256x128xf32, #tpu.memory_space<vmem>>, vector<8x128xf32>
    tpu.vector_store %arg10[%327, %c0_87], %326 {strides = array<i32>} : memref<256x128xf32, #tpu.memory_space<vmem>>, vector<8x128xf32>,
    %c7_i32 = arith.constant 7 : i32
    %c8_i32_88 = arith.constant 8 : i32
    %329 = arith.muli %c7_i32, %c8_i32_88 : i32
    %330 = tpu.assume_multiple %329, 8 : i32
    %331 = arith.index_cast %330 : i32 to index
    %c0_89 = arith.constant 0 : index
    %332 = vector.load %arg11[%331, %c0_89] : memref<256x128xf32, #tpu.memory_space<vmem>>, vector<8x128xf32>
    %333 = arith.truncf %308 : vector<8x32xf32> to vector<8x32xbf16>
    %cst_90 = arith.constant dense<0.000000e+00> : vector<8x128xf32>
    %334 = tpu.matmul %333, %7, %cst_90 {dimension_numbers = #tpu.dot_dimension_numbers<[1], [0], [0], [1], [0, 0, 1, 1], [], []>} : vector<8x32xbf16>, vector<32x128xbf16>, vector<8x128xf32> -> vector<8x128xf32>
    %335 = arith.addf %332, %334 : vector<8x128xf32>
    %336 = vector.extract_strided_slice %335 {offsets = [0, 0], sizes = [8, 96], strides = [1, 1]} : vector<8x128xf32> to vector<8x96xf32>
    %cst_91 = arith.constant 5.000000e-01 : f32
    %337 = vector.broadcast %cst_91 : f32 to vector<8x96xf32>
    %338 = arith.mulf %337, %336 : vector<8x96xf32>
    %339 = math.tanh %338 : vector<8x96xf32>
    %cst_92 = arith.constant 5.000000e-01 : f32
    %340 = vector.broadcast %cst_92 : f32 to vector<8x96xf32>
    %341 = arith.mulf %340, %339 : vector<8x96xf32>
    %cst_93 = arith.constant 5.000000e-01 : f32
    %342 = vector.broadcast %cst_93 : f32 to vector<8x96xf32>
    %343 = arith.addf %341, %342 : vector<8x96xf32>
    %344 = vector.extract_strided_slice %335 {offsets = [0, 96], sizes = [8, 32], strides = [1, 1]} : vector<8x128xf32> to vector<8x32xf32>
    %345 = math.tanh %344 : vector<8x32xf32>
    %346 = vector.extract_strided_slice %343 {offsets = [0, 0], sizes = [8, 32], strides = [1, 1]} : vector<8x96xf32> to vector<8x32xf32>
    %347 = vector.extract_strided_slice %343 {offsets = [0, 32], sizes = [8, 32], strides = [1, 1]} : vector<8x96xf32> to vector<8x32xf32>
    %348 = vector.extract_strided_slice %343 {offsets = [0, 64], sizes = [8, 32], strides = [1, 1]} : vector<8x96xf32> to vector<8x32xf32>
    %349 = arith.mulf %347, %306 : vector<8x32xf32>
    %350 = arith.mulf %346, %345 : vector<8x32xf32>
    %351 = arith.addf %349, %350 : vector<8x32xf32>
    %352 = math.tanh %351 : vector<8x32xf32>
    %353 = arith.mulf %348, %352 : vector<8x32xf32>
    %354 = arith.index_cast %c7_i32 : i32 to index
    %355 = memref.load %arg4[%354] : memref<32xf32, #tpu.memory_space<smem>>
    %356 = vector.broadcast %355 : f32 to vector<8x32xf32>
    %357 = arith.mulf %353, %356 : vector<8x32xf32>
    %358 = arith.index_cast %c7_i32 : i32 to index
    %359 = memref.load %arg5[%358] : memref<32xf32, #tpu.memory_space<smem>>
    %360 = vector.broadcast %359 : f32 to vector<8x32xf32>
    %361 = arith.addf %357, %360 : vector<8x32xf32>
    %362 = arith.truncf %361 : vector<8x32xf32> to vector<8x32xbf16>
    %cst_94 = arith.constant dense<0.000000e+00> : vector<8x32xf32>
    %363 = tpu.matmul %362, %8, %cst_94 {dimension_numbers = #tpu.dot_dimension_numbers<[1], [0], [0], [1], [0, 0, 1, 1], [], []>} : vector<8x32xbf16>, vector<32x32xbf16>, vector<8x32xf32> -> vector<8x32xf32>
    %364 = vector.broadcast %9 : vector<1x32xf32> to vector<8x32xf32>
    %365 = arith.addf %363, %364 : vector<8x32xf32>
    %cst_95 = arith.constant 0.000000e+00 : f32
    %366 = vector.broadcast %cst_95 : f32 to vector<8x32xf32>
    %367 = arith.maximumf %365, %366 : vector<8x32xf32>
    %368 = arith.truncf %367 : vector<8x32xf32> to vector<8x32xbf16>
    %cst_96 = arith.constant dense<0.000000e+00> : vector<8x128xf32>
    %369 = tpu.matmul %368, %10, %cst_96 {dimension_numbers = #tpu.dot_dimension_numbers<[1], [0], [0], [1], [0, 0, 1, 1], [], []>} : vector<8x32xbf16>, vector<32x128xbf16>, vector<8x128xf32> -> vector<8x128xf32>
    %370 = vector.broadcast %11 : vector<1x128xf32> to vector<8x128xf32>
    %371 = arith.addf %369, %370 : vector<8x128xf32>
    %372 = arith.index_cast %330 : i32 to index
    %c0_97 = arith.constant 0 : index
    %373 = vector.load %arg10[%372, %c0_97] : memref<256x128xf32, #tpu.memory_space<vmem>>, vector<8x128xf32>
    tpu.vector_store %arg10[%372, %c0_97], %371 {strides = array<i32>} : memref<256x128xf32, #tpu.memory_space<vmem>>, vector<8x128xf32>,
    %c8_i32_98 = arith.constant 8 : i32
    %c8_i32_99 = arith.constant 8 : i32
    %374 = arith.muli %c8_i32_98, %c8_i32_99 : i32
    %375 = tpu.assume_multiple %374, 8 : i32
    %376 = arith.index_cast %375 : i32 to index
    %c0_100 = arith.constant 0 : index
    %377 = vector.load %arg11[%376, %c0_100] : memref<256x128xf32, #tpu.memory_space<vmem>>, vector<8x128xf32>
    %378 = arith.truncf %353 : vector<8x32xf32> to vector<8x32xbf16>
    %cst_101 = arith.constant dense<0.000000e+00> : vector<8x128xf32>
    %379 = tpu.matmul %378, %7, %cst_101 {dimension_numbers = #tpu.dot_dimension_numbers<[1], [0], [0], [1], [0, 0, 1, 1], [], []>} : vector<8x32xbf16>, vector<32x128xbf16>, vector<8x128xf32> -> vector<8x128xf32>
    %380 = arith.addf %377, %379 : vector<8x128xf32>
    %381 = vector.extract_strided_slice %380 {offsets = [0, 0], sizes = [8, 96], strides = [1, 1]} : vector<8x128xf32> to vector<8x96xf32>
    %cst_102 = arith.constant 5.000000e-01 : f32
    %382 = vector.broadcast %cst_102 : f32 to vector<8x96xf32>
    %383 = arith.mulf %382, %381 : vector<8x96xf32>
    %384 = math.tanh %383 : vector<8x96xf32>
    %cst_103 = arith.constant 5.000000e-01 : f32
    %385 = vector.broadcast %cst_103 : f32 to vector<8x96xf32>
    %386 = arith.mulf %385, %384 : vector<8x96xf32>
    %cst_104 = arith.constant 5.000000e-01 : f32
    %387 = vector.broadcast %cst_104 : f32 to vector<8x96xf32>
    %388 = arith.addf %386, %387 : vector<8x96xf32>
    %389 = vector.extract_strided_slice %380 {offsets = [0, 96], sizes = [8, 32], strides = [1, 1]} : vector<8x128xf32> to vector<8x32xf32>
    %390 = math.tanh %389 : vector<8x32xf32>
    %391 = vector.extract_strided_slice %388 {offsets = [0, 0], sizes = [8, 32], strides = [1, 1]} : vector<8x96xf32> to vector<8x32xf32>
    %392 = vector.extract_strided_slice %388 {offsets = [0, 32], sizes = [8, 32], strides = [1, 1]} : vector<8x96xf32> to vector<8x32xf32>
    %393 = vector.extract_strided_slice %388 {offsets = [0, 64], sizes = [8, 32], strides = [1, 1]} : vector<8x96xf32> to vector<8x32xf32>
    %394 = arith.mulf %392, %351 : vector<8x32xf32>
    %395 = arith.mulf %391, %390 : vector<8x32xf32>
    %396 = arith.addf %394, %395 : vector<8x32xf32>
    %397 = math.tanh %396 : vector<8x32xf32>
    %398 = arith.mulf %393, %397 : vector<8x32xf32>
    %399 = arith.index_cast %c8_i32_98 : i32 to index
    %400 = memref.load %arg4[%399] : memref<32xf32, #tpu.memory_space<smem>>
    %401 = vector.broadcast %400 : f32 to vector<8x32xf32>
    %402 = arith.mulf %398, %401 : vector<8x32xf32>
    %403 = arith.index_cast %c8_i32_98 : i32 to index
    %404 = memref.load %arg5[%403] : memref<32xf32, #tpu.memory_space<smem>>
    %405 = vector.broadcast %404 : f32 to vector<8x32xf32>
    %406 = arith.addf %402, %405 : vector<8x32xf32>
    %407 = arith.truncf %406 : vector<8x32xf32> to vector<8x32xbf16>
    %cst_105 = arith.constant dense<0.000000e+00> : vector<8x32xf32>
    %408 = tpu.matmul %407, %8, %cst_105 {dimension_numbers = #tpu.dot_dimension_numbers<[1], [0], [0], [1], [0, 0, 1, 1], [], []>} : vector<8x32xbf16>, vector<32x32xbf16>, vector<8x32xf32> -> vector<8x32xf32>
    %409 = vector.broadcast %9 : vector<1x32xf32> to vector<8x32xf32>
    %410 = arith.addf %408, %409 : vector<8x32xf32>
    %cst_106 = arith.constant 0.000000e+00 : f32
    %411 = vector.broadcast %cst_106 : f32 to vector<8x32xf32>
    %412 = arith.maximumf %410, %411 : vector<8x32xf32>
    %413 = arith.truncf %412 : vector<8x32xf32> to vector<8x32xbf16>
    %cst_107 = arith.constant dense<0.000000e+00> : vector<8x128xf32>
    %414 = tpu.matmul %413, %10, %cst_107 {dimension_numbers = #tpu.dot_dimension_numbers<[1], [0], [0], [1], [0, 0, 1, 1], [], []>} : vector<8x32xbf16>, vector<32x128xbf16>, vector<8x128xf32> -> vector<8x128xf32>
    %415 = vector.broadcast %11 : vector<1x128xf32> to vector<8x128xf32>
    %416 = arith.addf %414, %415 : vector<8x128xf32>
    %417 = arith.index_cast %375 : i32 to index
    %c0_108 = arith.constant 0 : index
    %418 = vector.load %arg10[%417, %c0_108] : memref<256x128xf32, #tpu.memory_space<vmem>>, vector<8x128xf32>
    tpu.vector_store %arg10[%417, %c0_108], %416 {strides = array<i32>} : memref<256x128xf32, #tpu.memory_space<vmem>>, vector<8x128xf32>,
    %c9_i32 = arith.constant 9 : i32
    %c8_i32_109 = arith.constant 8 : i32
    %419 = arith.muli %c9_i32, %c8_i32_109 : i32
    %420 = tpu.assume_multiple %419, 8 : i32
    %421 = arith.index_cast %420 : i32 to index
    %c0_110 = arith.constant 0 : index
    %422 = vector.load %arg11[%421, %c0_110] : memref<256x128xf32, #tpu.memory_space<vmem>>, vector<8x128xf32>
    %423 = arith.truncf %398 : vector<8x32xf32> to vector<8x32xbf16>
    %cst_111 = arith.constant dense<0.000000e+00> : vector<8x128xf32>
    %424 = tpu.matmul %423, %7, %cst_111 {dimension_numbers = #tpu.dot_dimension_numbers<[1], [0], [0], [1], [0, 0, 1, 1], [], []>} : vector<8x32xbf16>, vector<32x128xbf16>, vector<8x128xf32> -> vector<8x128xf32>
    %425 = arith.addf %422, %424 : vector<8x128xf32>
    %426 = vector.extract_strided_slice %425 {offsets = [0, 0], sizes = [8, 96], strides = [1, 1]} : vector<8x128xf32> to vector<8x96xf32>
    %cst_112 = arith.constant 5.000000e-01 : f32
    %427 = vector.broadcast %cst_112 : f32 to vector<8x96xf32>
    %428 = arith.mulf %427, %426 : vector<8x96xf32>
    %429 = math.tanh %428 : vector<8x96xf32>
    %cst_113 = arith.constant 5.000000e-01 : f32
    %430 = vector.broadcast %cst_113 : f32 to vector<8x96xf32>
    %431 = arith.mulf %430, %429 : vector<8x96xf32>
    %cst_114 = arith.constant 5.000000e-01 : f32
    %432 = vector.broadcast %cst_114 : f32 to vector<8x96xf32>
    %433 = arith.addf %431, %432 : vector<8x96xf32>
    %434 = vector.extract_strided_slice %425 {offsets = [0, 96], sizes = [8, 32], strides = [1, 1]} : vector<8x128xf32> to vector<8x32xf32>
    %435 = math.tanh %434 : vector<8x32xf32>
    %436 = vector.extract_strided_slice %433 {offsets = [0, 0], sizes = [8, 32], strides = [1, 1]} : vector<8x96xf32> to vector<8x32xf32>
    %437 = vector.extract_strided_slice %433 {offsets = [0, 32], sizes = [8, 32], strides = [1, 1]} : vector<8x96xf32> to vector<8x32xf32>
    %438 = vector.extract_strided_slice %433 {offsets = [0, 64], sizes = [8, 32], strides = [1, 1]} : vector<8x96xf32> to vector<8x32xf32>
    %439 = arith.mulf %437, %396 : vector<8x32xf32>
    %440 = arith.mulf %436, %435 : vector<8x32xf32>
    %441 = arith.addf %439, %440 : vector<8x32xf32>
    %442 = math.tanh %441 : vector<8x32xf32>
    %443 = arith.mulf %438, %442 : vector<8x32xf32>
    %444 = arith.index_cast %c9_i32 : i32 to index
    %445 = memref.load %arg4[%444] : memref<32xf32, #tpu.memory_space<smem>>
    %446 = vector.broadcast %445 : f32 to vector<8x32xf32>
    %447 = arith.mulf %443, %446 : vector<8x32xf32>
    %448 = arith.index_cast %c9_i32 : i32 to index
    %449 = memref.load %arg5[%448] : memref<32xf32, #tpu.memory_space<smem>>
    %450 = vector.broadcast %449 : f32 to vector<8x32xf32>
    %451 = arith.addf %447, %450 : vector<8x32xf32>
    %452 = arith.truncf %451 : vector<8x32xf32> to vector<8x32xbf16>
    %cst_115 = arith.constant dense<0.000000e+00> : vector<8x32xf32>
    %453 = tpu.matmul %452, %8, %cst_115 {dimension_numbers = #tpu.dot_dimension_numbers<[1], [0], [0], [1], [0, 0, 1, 1], [], []>} : vector<8x32xbf16>, vector<32x32xbf16>, vector<8x32xf32> -> vector<8x32xf32>
    %454 = vector.broadcast %9 : vector<1x32xf32> to vector<8x32xf32>
    %455 = arith.addf %453, %454 : vector<8x32xf32>
    %cst_116 = arith.constant 0.000000e+00 : f32
    %456 = vector.broadcast %cst_116 : f32 to vector<8x32xf32>
    %457 = arith.maximumf %455, %456 : vector<8x32xf32>
    %458 = arith.truncf %457 : vector<8x32xf32> to vector<8x32xbf16>
    %cst_117 = arith.constant dense<0.000000e+00> : vector<8x128xf32>
    %459 = tpu.matmul %458, %10, %cst_117 {dimension_numbers = #tpu.dot_dimension_numbers<[1], [0], [0], [1], [0, 0, 1, 1], [], []>} : vector<8x32xbf16>, vector<32x128xbf16>, vector<8x128xf32> -> vector<8x128xf32>
    %460 = vector.broadcast %11 : vector<1x128xf32> to vector<8x128xf32>
    %461 = arith.addf %459, %460 : vector<8x128xf32>
    %462 = arith.index_cast %420 : i32 to index
    %c0_118 = arith.constant 0 : index
    %463 = vector.load %arg10[%462, %c0_118] : memref<256x128xf32, #tpu.memory_space<vmem>>, vector<8x128xf32>
    tpu.vector_store %arg10[%462, %c0_118], %461 {strides = array<i32>} : memref<256x128xf32, #tpu.memory_space<vmem>>, vector<8x128xf32>,
    %c10_i32 = arith.constant 10 : i32
    %c8_i32_119 = arith.constant 8 : i32
    %464 = arith.muli %c10_i32, %c8_i32_119 : i32
    %465 = tpu.assume_multiple %464, 8 : i32
    %466 = arith.index_cast %465 : i32 to index
    %c0_120 = arith.constant 0 : index
    %467 = vector.load %arg11[%466, %c0_120] : memref<256x128xf32, #tpu.memory_space<vmem>>, vector<8x128xf32>
    %468 = arith.truncf %443 : vector<8x32xf32> to vector<8x32xbf16>
    %cst_121 = arith.constant dense<0.000000e+00> : vector<8x128xf32>
    %469 = tpu.matmul %468, %7, %cst_121 {dimension_numbers = #tpu.dot_dimension_numbers<[1], [0], [0], [1], [0, 0, 1, 1], [], []>} : vector<8x32xbf16>, vector<32x128xbf16>, vector<8x128xf32> -> vector<8x128xf32>
    %470 = arith.addf %467, %469 : vector<8x128xf32>
    %471 = vector.extract_strided_slice %470 {offsets = [0, 0], sizes = [8, 96], strides = [1, 1]} : vector<8x128xf32> to vector<8x96xf32>
    %cst_122 = arith.constant 5.000000e-01 : f32
    %472 = vector.broadcast %cst_122 : f32 to vector<8x96xf32>
    %473 = arith.mulf %472, %471 : vector<8x96xf32>
    %474 = math.tanh %473 : vector<8x96xf32>
    %cst_123 = arith.constant 5.000000e-01 : f32
    %475 = vector.broadcast %cst_123 : f32 to vector<8x96xf32>
    %476 = arith.mulf %475, %474 : vector<8x96xf32>
    %cst_124 = arith.constant 5.000000e-01 : f32
    %477 = vector.broadcast %cst_124 : f32 to vector<8x96xf32>
    %478 = arith.addf %476, %477 : vector<8x96xf32>
    %479 = vector.extract_strided_slice %470 {offsets = [0, 96], sizes = [8, 32], strides = [1, 1]} : vector<8x128xf32> to vector<8x32xf32>
    %480 = math.tanh %479 : vector<8x32xf32>
    %481 = vector.extract_strided_slice %478 {offsets = [0, 0], sizes = [8, 32], strides = [1, 1]} : vector<8x96xf32> to vector<8x32xf32>
    %482 = vector.extract_strided_slice %478 {offsets = [0, 32], sizes = [8, 32], strides = [1, 1]} : vector<8x96xf32> to vector<8x32xf32>
    %483 = vector.extract_strided_slice %478 {offsets = [0, 64], sizes = [8, 32], strides = [1, 1]} : vector<8x96xf32> to vector<8x32xf32>
    %484 = arith.mulf %482, %441 : vector<8x32xf32>
    %485 = arith.mulf %481, %480 : vector<8x32xf32>
    %486 = arith.addf %484, %485 : vector<8x32xf32>
    %487 = math.tanh %486 : vector<8x32xf32>
    %488 = arith.mulf %483, %487 : vector<8x32xf32>
    %489 = arith.index_cast %c10_i32 : i32 to index
    %490 = memref.load %arg4[%489] : memref<32xf32, #tpu.memory_space<smem>>
    %491 = vector.broadcast %490 : f32 to vector<8x32xf32>
    %492 = arith.mulf %488, %491 : vector<8x32xf32>
    %493 = arith.index_cast %c10_i32 : i32 to index
    %494 = memref.load %arg5[%493] : memref<32xf32, #tpu.memory_space<smem>>
    %495 = vector.broadcast %494 : f32 to vector<8x32xf32>
    %496 = arith.addf %492, %495 : vector<8x32xf32>
    %497 = arith.truncf %496 : vector<8x32xf32> to vector<8x32xbf16>
    %cst_125 = arith.constant dense<0.000000e+00> : vector<8x32xf32>
    %498 = tpu.matmul %497, %8, %cst_125 {dimension_numbers = #tpu.dot_dimension_numbers<[1], [0], [0], [1], [0, 0, 1, 1], [], []>} : vector<8x32xbf16>, vector<32x32xbf16>, vector<8x32xf32> -> vector<8x32xf32>
    %499 = vector.broadcast %9 : vector<1x32xf32> to vector<8x32xf32>
    %500 = arith.addf %498, %499 : vector<8x32xf32>
    %cst_126 = arith.constant 0.000000e+00 : f32
    %501 = vector.broadcast %cst_126 : f32 to vector<8x32xf32>
    %502 = arith.maximumf %500, %501 : vector<8x32xf32>
    %503 = arith.truncf %502 : vector<8x32xf32> to vector<8x32xbf16>
    %cst_127 = arith.constant dense<0.000000e+00> : vector<8x128xf32>
    %504 = tpu.matmul %503, %10, %cst_127 {dimension_numbers = #tpu.dot_dimension_numbers<[1], [0], [0], [1], [0, 0, 1, 1], [], []>} : vector<8x32xbf16>, vector<32x128xbf16>, vector<8x128xf32> -> vector<8x128xf32>
    %505 = vector.broadcast %11 : vector<1x128xf32> to vector<8x128xf32>
    %506 = arith.addf %504, %505 : vector<8x128xf32>
    %507 = arith.index_cast %465 : i32 to index
    %c0_128 = arith.constant 0 : index
    %508 = vector.load %arg10[%507, %c0_128] : memref<256x128xf32, #tpu.memory_space<vmem>>, vector<8x128xf32>
    tpu.vector_store %arg10[%507, %c0_128], %506 {strides = array<i32>} : memref<256x128xf32, #tpu.memory_space<vmem>>, vector<8x128xf32>,
    %c11_i32 = arith.constant 11 : i32
    %c8_i32_129 = arith.constant 8 : i32
    %509 = arith.muli %c11_i32, %c8_i32_129 : i32
    %510 = tpu.assume_multiple %509, 8 : i32
    %511 = arith.index_cast %510 : i32 to index
    %c0_130 = arith.constant 0 : index
    %512 = vector.load %arg11[%511, %c0_130] : memref<256x128xf32, #tpu.memory_space<vmem>>, vector<8x128xf32>
    %513 = arith.truncf %488 : vector<8x32xf32> to vector<8x32xbf16>
    %cst_131 = arith.constant dense<0.000000e+00> : vector<8x128xf32>
    %514 = tpu.matmul %513, %7, %cst_131 {dimension_numbers = #tpu.dot_dimension_numbers<[1], [0], [0], [1], [0, 0, 1, 1], [], []>} : vector<8x32xbf16>, vector<32x128xbf16>, vector<8x128xf32> -> vector<8x128xf32>
    %515 = arith.addf %512, %514 : vector<8x128xf32>
    %516 = vector.extract_strided_slice %515 {offsets = [0, 0], sizes = [8, 96], strides = [1, 1]} : vector<8x128xf32> to vector<8x96xf32>
    %cst_132 = arith.constant 5.000000e-01 : f32
    %517 = vector.broadcast %cst_132 : f32 to vector<8x96xf32>
    %518 = arith.mulf %517, %516 : vector<8x96xf32>
    %519 = math.tanh %518 : vector<8x96xf32>
    %cst_133 = arith.constant 5.000000e-01 : f32
    %520 = vector.broadcast %cst_133 : f32 to vector<8x96xf32>
    %521 = arith.mulf %520, %519 : vector<8x96xf32>
    %cst_134 = arith.constant 5.000000e-01 : f32
    %522 = vector.broadcast %cst_134 : f32 to vector<8x96xf32>
    %523 = arith.addf %521, %522 : vector<8x96xf32>
    %524 = vector.extract_strided_slice %515 {offsets = [0, 96], sizes = [8, 32], strides = [1, 1]} : vector<8x128xf32> to vector<8x32xf32>
    %525 = math.tanh %524 : vector<8x32xf32>
    %526 = vector.extract_strided_slice %523 {offsets = [0, 0], sizes = [8, 32], strides = [1, 1]} : vector<8x96xf32> to vector<8x32xf32>
    %527 = vector.extract_strided_slice %523 {offsets = [0, 32], sizes = [8, 32], strides = [1, 1]} : vector<8x96xf32> to vector<8x32xf32>
    %528 = vector.extract_strided_slice %523 {offsets = [0, 64], sizes = [8, 32], strides = [1, 1]} : vector<8x96xf32> to vector<8x32xf32>
    %529 = arith.mulf %527, %486 : vector<8x32xf32>
    %530 = arith.mulf %526, %525 : vector<8x32xf32>
    %531 = arith.addf %529, %530 : vector<8x32xf32>
    %532 = math.tanh %531 : vector<8x32xf32>
    %533 = arith.mulf %528, %532 : vector<8x32xf32>
    %534 = arith.index_cast %c11_i32 : i32 to index
    %535 = memref.load %arg4[%534] : memref<32xf32, #tpu.memory_space<smem>>
    %536 = vector.broadcast %535 : f32 to vector<8x32xf32>
    %537 = arith.mulf %533, %536 : vector<8x32xf32>
    %538 = arith.index_cast %c11_i32 : i32 to index
    %539 = memref.load %arg5[%538] : memref<32xf32, #tpu.memory_space<smem>>
    %540 = vector.broadcast %539 : f32 to vector<8x32xf32>
    %541 = arith.addf %537, %540 : vector<8x32xf32>
    %542 = arith.truncf %541 : vector<8x32xf32> to vector<8x32xbf16>
    %cst_135 = arith.constant dense<0.000000e+00> : vector<8x32xf32>
    %543 = tpu.matmul %542, %8, %cst_135 {dimension_numbers = #tpu.dot_dimension_numbers<[1], [0], [0], [1], [0, 0, 1, 1], [], []>} : vector<8x32xbf16>, vector<32x32xbf16>, vector<8x32xf32> -> vector<8x32xf32>
    %544 = vector.broadcast %9 : vector<1x32xf32> to vector<8x32xf32>
    %545 = arith.addf %543, %544 : vector<8x32xf32>
    %cst_136 = arith.constant 0.000000e+00 : f32
    %546 = vector.broadcast %cst_136 : f32 to vector<8x32xf32>
    %547 = arith.maximumf %545, %546 : vector<8x32xf32>
    %548 = arith.truncf %547 : vector<8x32xf32> to vector<8x32xbf16>
    %cst_137 = arith.constant dense<0.000000e+00> : vector<8x128xf32>
    %549 = tpu.matmul %548, %10, %cst_137 {dimension_numbers = #tpu.dot_dimension_numbers<[1], [0], [0], [1], [0, 0, 1, 1], [], []>} : vector<8x32xbf16>, vector<32x128xbf16>, vector<8x128xf32> -> vector<8x128xf32>
    %550 = vector.broadcast %11 : vector<1x128xf32> to vector<8x128xf32>
    %551 = arith.addf %549, %550 : vector<8x128xf32>
    %552 = arith.index_cast %510 : i32 to index
    %c0_138 = arith.constant 0 : index
    %553 = vector.load %arg10[%552, %c0_138] : memref<256x128xf32, #tpu.memory_space<vmem>>, vector<8x128xf32>
    tpu.vector_store %arg10[%552, %c0_138], %551 {strides = array<i32>} : memref<256x128xf32, #tpu.memory_space<vmem>>, vector<8x128xf32>,
    %c12_i32 = arith.constant 12 : i32
    %c8_i32_139 = arith.constant 8 : i32
    %554 = arith.muli %c12_i32, %c8_i32_139 : i32
    %555 = tpu.assume_multiple %554, 8 : i32
    %556 = arith.index_cast %555 : i32 to index
    %c0_140 = arith.constant 0 : index
    %557 = vector.load %arg11[%556, %c0_140] : memref<256x128xf32, #tpu.memory_space<vmem>>, vector<8x128xf32>
    %558 = arith.truncf %533 : vector<8x32xf32> to vector<8x32xbf16>
    %cst_141 = arith.constant dense<0.000000e+00> : vector<8x128xf32>
    %559 = tpu.matmul %558, %7, %cst_141 {dimension_numbers = #tpu.dot_dimension_numbers<[1], [0], [0], [1], [0, 0, 1, 1], [], []>} : vector<8x32xbf16>, vector<32x128xbf16>, vector<8x128xf32> -> vector<8x128xf32>
    %560 = arith.addf %557, %559 : vector<8x128xf32>
    %561 = vector.extract_strided_slice %560 {offsets = [0, 0], sizes = [8, 96], strides = [1, 1]} : vector<8x128xf32> to vector<8x96xf32>
    %cst_142 = arith.constant 5.000000e-01 : f32
    %562 = vector.broadcast %cst_142 : f32 to vector<8x96xf32>
    %563 = arith.mulf %562, %561 : vector<8x96xf32>
    %564 = math.tanh %563 : vector<8x96xf32>
    %cst_143 = arith.constant 5.000000e-01 : f32
    %565 = vector.broadcast %cst_143 : f32 to vector<8x96xf32>
    %566 = arith.mulf %565, %564 : vector<8x96xf32>
    %cst_144 = arith.constant 5.000000e-01 : f32
    %567 = vector.broadcast %cst_144 : f32 to vector<8x96xf32>
    %568 = arith.addf %566, %567 : vector<8x96xf32>
    %569 = vector.extract_strided_slice %560 {offsets = [0, 96], sizes = [8, 32], strides = [1, 1]} : vector<8x128xf32> to vector<8x32xf32>
    %570 = math.tanh %569 : vector<8x32xf32>
    %571 = vector.extract_strided_slice %568 {offsets = [0, 0], sizes = [8, 32], strides = [1, 1]} : vector<8x96xf32> to vector<8x32xf32>
    %572 = vector.extract_strided_slice %568 {offsets = [0, 32], sizes = [8, 32], strides = [1, 1]} : vector<8x96xf32> to vector<8x32xf32>
    %573 = vector.extract_strided_slice %568 {offsets = [0, 64], sizes = [8, 32], strides = [1, 1]} : vector<8x96xf32> to vector<8x32xf32>
    %574 = arith.mulf %572, %531 : vector<8x32xf32>
    %575 = arith.mulf %571, %570 : vector<8x32xf32>
    %576 = arith.addf %574, %575 : vector<8x32xf32>
    %577 = math.tanh %576 : vector<8x32xf32>
    %578 = arith.mulf %573, %577 : vector<8x32xf32>
    %579 = arith.index_cast %c12_i32 : i32 to index
    %580 = memref.load %arg4[%579] : memref<32xf32, #tpu.memory_space<smem>>
    %581 = vector.broadcast %580 : f32 to vector<8x32xf32>
    %582 = arith.mulf %578, %581 : vector<8x32xf32>
    %583 = arith.index_cast %c12_i32 : i32 to index
    %584 = memref.load %arg5[%583] : memref<32xf32, #tpu.memory_space<smem>>
    %585 = vector.broadcast %584 : f32 to vector<8x32xf32>
    %586 = arith.addf %582, %585 : vector<8x32xf32>
    %587 = arith.truncf %586 : vector<8x32xf32> to vector<8x32xbf16>
    %cst_145 = arith.constant dense<0.000000e+00> : vector<8x32xf32>
    %588 = tpu.matmul %587, %8, %cst_145 {dimension_numbers = #tpu.dot_dimension_numbers<[1], [0], [0], [1], [0, 0, 1, 1], [], []>} : vector<8x32xbf16>, vector<32x32xbf16>, vector<8x32xf32> -> vector<8x32xf32>
    %589 = vector.broadcast %9 : vector<1x32xf32> to vector<8x32xf32>
    %590 = arith.addf %588, %589 : vector<8x32xf32>
    %cst_146 = arith.constant 0.000000e+00 : f32
    %591 = vector.broadcast %cst_146 : f32 to vector<8x32xf32>
    %592 = arith.maximumf %590, %591 : vector<8x32xf32>
    %593 = arith.truncf %592 : vector<8x32xf32> to vector<8x32xbf16>
    %cst_147 = arith.constant dense<0.000000e+00> : vector<8x128xf32>
    %594 = tpu.matmul %593, %10, %cst_147 {dimension_numbers = #tpu.dot_dimension_numbers<[1], [0], [0], [1], [0, 0, 1, 1], [], []>} : vector<8x32xbf16>, vector<32x128xbf16>, vector<8x128xf32> -> vector<8x128xf32>
    %595 = vector.broadcast %11 : vector<1x128xf32> to vector<8x128xf32>
    %596 = arith.addf %594, %595 : vector<8x128xf32>
    %597 = arith.index_cast %555 : i32 to index
    %c0_148 = arith.constant 0 : index
    %598 = vector.load %arg10[%597, %c0_148] : memref<256x128xf32, #tpu.memory_space<vmem>>, vector<8x128xf32>
    tpu.vector_store %arg10[%597, %c0_148], %596 {strides = array<i32>} : memref<256x128xf32, #tpu.memory_space<vmem>>, vector<8x128xf32>,
    %c13_i32 = arith.constant 13 : i32
    %c8_i32_149 = arith.constant 8 : i32
    %599 = arith.muli %c13_i32, %c8_i32_149 : i32
    %600 = tpu.assume_multiple %599, 8 : i32
    %601 = arith.index_cast %600 : i32 to index
    %c0_150 = arith.constant 0 : index
    %602 = vector.load %arg11[%601, %c0_150] : memref<256x128xf32, #tpu.memory_space<vmem>>, vector<8x128xf32>
    %603 = arith.truncf %578 : vector<8x32xf32> to vector<8x32xbf16>
    %cst_151 = arith.constant dense<0.000000e+00> : vector<8x128xf32>
    %604 = tpu.matmul %603, %7, %cst_151 {dimension_numbers = #tpu.dot_dimension_numbers<[1], [0], [0], [1], [0, 0, 1, 1], [], []>} : vector<8x32xbf16>, vector<32x128xbf16>, vector<8x128xf32> -> vector<8x128xf32>
    %605 = arith.addf %602, %604 : vector<8x128xf32>
    %606 = vector.extract_strided_slice %605 {offsets = [0, 0], sizes = [8, 96], strides = [1, 1]} : vector<8x128xf32> to vector<8x96xf32>
    %cst_152 = arith.constant 5.000000e-01 : f32
    %607 = vector.broadcast %cst_152 : f32 to vector<8x96xf32>
    %608 = arith.mulf %607, %606 : vector<8x96xf32>
    %609 = math.tanh %608 : vector<8x96xf32>
    %cst_153 = arith.constant 5.000000e-01 : f32
    %610 = vector.broadcast %cst_153 : f32 to vector<8x96xf32>
    %611 = arith.mulf %610, %609 : vector<8x96xf32>
    %cst_154 = arith.constant 5.000000e-01 : f32
    %612 = vector.broadcast %cst_154 : f32 to vector<8x96xf32>
    %613 = arith.addf %611, %612 : vector<8x96xf32>
    %614 = vector.extract_strided_slice %605 {offsets = [0, 96], sizes = [8, 32], strides = [1, 1]} : vector<8x128xf32> to vector<8x32xf32>
    %615 = math.tanh %614 : vector<8x32xf32>
    %616 = vector.extract_strided_slice %613 {offsets = [0, 0], sizes = [8, 32], strides = [1, 1]} : vector<8x96xf32> to vector<8x32xf32>
    %617 = vector.extract_strided_slice %613 {offsets = [0, 32], sizes = [8, 32], strides = [1, 1]} : vector<8x96xf32> to vector<8x32xf32>
    %618 = vector.extract_strided_slice %613 {offsets = [0, 64], sizes = [8, 32], strides = [1, 1]} : vector<8x96xf32> to vector<8x32xf32>
    %619 = arith.mulf %617, %576 : vector<8x32xf32>
    %620 = arith.mulf %616, %615 : vector<8x32xf32>
    %621 = arith.addf %619, %620 : vector<8x32xf32>
    %622 = math.tanh %621 : vector<8x32xf32>
    %623 = arith.mulf %618, %622 : vector<8x32xf32>
    %624 = arith.index_cast %c13_i32 : i32 to index
    %625 = memref.load %arg4[%624] : memref<32xf32, #tpu.memory_space<smem>>
    %626 = vector.broadcast %625 : f32 to vector<8x32xf32>
    %627 = arith.mulf %623, %626 : vector<8x32xf32>
    %628 = arith.index_cast %c13_i32 : i32 to index
    %629 = memref.load %arg5[%628] : memref<32xf32, #tpu.memory_space<smem>>
    %630 = vector.broadcast %629 : f32 to vector<8x32xf32>
    %631 = arith.addf %627, %630 : vector<8x32xf32>
    %632 = arith.truncf %631 : vector<8x32xf32> to vector<8x32xbf16>
    %cst_155 = arith.constant dense<0.000000e+00> : vector<8x32xf32>
    %633 = tpu.matmul %632, %8, %cst_155 {dimension_numbers = #tpu.dot_dimension_numbers<[1], [0], [0], [1], [0, 0, 1, 1], [], []>} : vector<8x32xbf16>, vector<32x32xbf16>, vector<8x32xf32> -> vector<8x32xf32>
    %634 = vector.broadcast %9 : vector<1x32xf32> to vector<8x32xf32>
    %635 = arith.addf %633, %634 : vector<8x32xf32>
    %cst_156 = arith.constant 0.000000e+00 : f32
    %636 = vector.broadcast %cst_156 : f32 to vector<8x32xf32>
    %637 = arith.maximumf %635, %636 : vector<8x32xf32>
    %638 = arith.truncf %637 : vector<8x32xf32> to vector<8x32xbf16>
    %cst_157 = arith.constant dense<0.000000e+00> : vector<8x128xf32>
    %639 = tpu.matmul %638, %10, %cst_157 {dimension_numbers = #tpu.dot_dimension_numbers<[1], [0], [0], [1], [0, 0, 1, 1], [], []>} : vector<8x32xbf16>, vector<32x128xbf16>, vector<8x128xf32> -> vector<8x128xf32>
    %640 = vector.broadcast %11 : vector<1x128xf32> to vector<8x128xf32>
    %641 = arith.addf %639, %640 : vector<8x128xf32>
    %642 = arith.index_cast %600 : i32 to index
    %c0_158 = arith.constant 0 : index
    %643 = vector.load %arg10[%642, %c0_158] : memref<256x128xf32, #tpu.memory_space<vmem>>, vector<8x128xf32>
    tpu.vector_store %arg10[%642, %c0_158], %641 {strides = array<i32>} : memref<256x128xf32, #tpu.memory_space<vmem>>, vector<8x128xf32>,
    %c14_i32 = arith.constant 14 : i32
    %c8_i32_159 = arith.constant 8 : i32
    %644 = arith.muli %c14_i32, %c8_i32_159 : i32
    %645 = tpu.assume_multiple %644, 8 : i32
    %646 = arith.index_cast %645 : i32 to index
    %c0_160 = arith.constant 0 : index
    %647 = vector.load %arg11[%646, %c0_160] : memref<256x128xf32, #tpu.memory_space<vmem>>, vector<8x128xf32>
    %648 = arith.truncf %623 : vector<8x32xf32> to vector<8x32xbf16>
    %cst_161 = arith.constant dense<0.000000e+00> : vector<8x128xf32>
    %649 = tpu.matmul %648, %7, %cst_161 {dimension_numbers = #tpu.dot_dimension_numbers<[1], [0], [0], [1], [0, 0, 1, 1], [], []>} : vector<8x32xbf16>, vector<32x128xbf16>, vector<8x128xf32> -> vector<8x128xf32>
    %650 = arith.addf %647, %649 : vector<8x128xf32>
    %651 = vector.extract_strided_slice %650 {offsets = [0, 0], sizes = [8, 96], strides = [1, 1]} : vector<8x128xf32> to vector<8x96xf32>
    %cst_162 = arith.constant 5.000000e-01 : f32
    %652 = vector.broadcast %cst_162 : f32 to vector<8x96xf32>
    %653 = arith.mulf %652, %651 : vector<8x96xf32>
    %654 = math.tanh %653 : vector<8x96xf32>
    %cst_163 = arith.constant 5.000000e-01 : f32
    %655 = vector.broadcast %cst_163 : f32 to vector<8x96xf32>
    %656 = arith.mulf %655, %654 : vector<8x96xf32>
    %cst_164 = arith.constant 5.000000e-01 : f32
    %657 = vector.broadcast %cst_164 : f32 to vector<8x96xf32>
    %658 = arith.addf %656, %657 : vector<8x96xf32>
    %659 = vector.extract_strided_slice %650 {offsets = [0, 96], sizes = [8, 32], strides = [1, 1]} : vector<8x128xf32> to vector<8x32xf32>
    %660 = math.tanh %659 : vector<8x32xf32>
    %661 = vector.extract_strided_slice %658 {offsets = [0, 0], sizes = [8, 32], strides = [1, 1]} : vector<8x96xf32> to vector<8x32xf32>
    %662 = vector.extract_strided_slice %658 {offsets = [0, 32], sizes = [8, 32], strides = [1, 1]} : vector<8x96xf32> to vector<8x32xf32>
    %663 = vector.extract_strided_slice %658 {offsets = [0, 64], sizes = [8, 32], strides = [1, 1]} : vector<8x96xf32> to vector<8x32xf32>
    %664 = arith.mulf %662, %621 : vector<8x32xf32>
    %665 = arith.mulf %661, %660 : vector<8x32xf32>
    %666 = arith.addf %664, %665 : vector<8x32xf32>
    %667 = math.tanh %666 : vector<8x32xf32>
    %668 = arith.mulf %663, %667 : vector<8x32xf32>
    %669 = arith.index_cast %c14_i32 : i32 to index
    %670 = memref.load %arg4[%669] : memref<32xf32, #tpu.memory_space<smem>>
    %671 = vector.broadcast %670 : f32 to vector<8x32xf32>
    %672 = arith.mulf %668, %671 : vector<8x32xf32>
    %673 = arith.index_cast %c14_i32 : i32 to index
    %674 = memref.load %arg5[%673] : memref<32xf32, #tpu.memory_space<smem>>
    %675 = vector.broadcast %674 : f32 to vector<8x32xf32>
    %676 = arith.addf %672, %675 : vector<8x32xf32>
    %677 = arith.truncf %676 : vector<8x32xf32> to vector<8x32xbf16>
    %cst_165 = arith.constant dense<0.000000e+00> : vector<8x32xf32>
    %678 = tpu.matmul %677, %8, %cst_165 {dimension_numbers = #tpu.dot_dimension_numbers<[1], [0], [0], [1], [0, 0, 1, 1], [], []>} : vector<8x32xbf16>, vector<32x32xbf16>, vector<8x32xf32> -> vector<8x32xf32>
    %679 = vector.broadcast %9 : vector<1x32xf32> to vector<8x32xf32>
    %680 = arith.addf %678, %679 : vector<8x32xf32>
    %cst_166 = arith.constant 0.000000e+00 : f32
    %681 = vector.broadcast %cst_166 : f32 to vector<8x32xf32>
    %682 = arith.maximumf %680, %681 : vector<8x32xf32>
    %683 = arith.truncf %682 : vector<8x32xf32> to vector<8x32xbf16>
    %cst_167 = arith.constant dense<0.000000e+00> : vector<8x128xf32>
    %684 = tpu.matmul %683, %10, %cst_167 {dimension_numbers = #tpu.dot_dimension_numbers<[1], [0], [0], [1], [0, 0, 1, 1], [], []>} : vector<8x32xbf16>, vector<32x128xbf16>, vector<8x128xf32> -> vector<8x128xf32>
    %685 = vector.broadcast %11 : vector<1x128xf32> to vector<8x128xf32>
    %686 = arith.addf %684, %685 : vector<8x128xf32>
    %687 = arith.index_cast %645 : i32 to index
    %c0_168 = arith.constant 0 : index
    %688 = vector.load %arg10[%687, %c0_168] : memref<256x128xf32, #tpu.memory_space<vmem>>, vector<8x128xf32>
    tpu.vector_store %arg10[%687, %c0_168], %686 {strides = array<i32>} : memref<256x128xf32, #tpu.memory_space<vmem>>, vector<8x128xf32>,
    %c15_i32 = arith.constant 15 : i32
    %c8_i32_169 = arith.constant 8 : i32
    %689 = arith.muli %c15_i32, %c8_i32_169 : i32
    %690 = tpu.assume_multiple %689, 8 : i32
    %691 = arith.index_cast %690 : i32 to index
    %c0_170 = arith.constant 0 : index
    %692 = vector.load %arg11[%691, %c0_170] : memref<256x128xf32, #tpu.memory_space<vmem>>, vector<8x128xf32>
    %693 = arith.truncf %668 : vector<8x32xf32> to vector<8x32xbf16>
    %cst_171 = arith.constant dense<0.000000e+00> : vector<8x128xf32>
    %694 = tpu.matmul %693, %7, %cst_171 {dimension_numbers = #tpu.dot_dimension_numbers<[1], [0], [0], [1], [0, 0, 1, 1], [], []>} : vector<8x32xbf16>, vector<32x128xbf16>, vector<8x128xf32> -> vector<8x128xf32>
    %695 = arith.addf %692, %694 : vector<8x128xf32>
    %696 = vector.extract_strided_slice %695 {offsets = [0, 0], sizes = [8, 96], strides = [1, 1]} : vector<8x128xf32> to vector<8x96xf32>
    %cst_172 = arith.constant 5.000000e-01 : f32
    %697 = vector.broadcast %cst_172 : f32 to vector<8x96xf32>
    %698 = arith.mulf %697, %696 : vector<8x96xf32>
    %699 = math.tanh %698 : vector<8x96xf32>
    %cst_173 = arith.constant 5.000000e-01 : f32
    %700 = vector.broadcast %cst_173 : f32 to vector<8x96xf32>
    %701 = arith.mulf %700, %699 : vector<8x96xf32>
    %cst_174 = arith.constant 5.000000e-01 : f32
    %702 = vector.broadcast %cst_174 : f32 to vector<8x96xf32>
    %703 = arith.addf %701, %702 : vector<8x96xf32>
    %704 = vector.extract_strided_slice %695 {offsets = [0, 96], sizes = [8, 32], strides = [1, 1]} : vector<8x128xf32> to vector<8x32xf32>
    %705 = math.tanh %704 : vector<8x32xf32>
    %706 = vector.extract_strided_slice %703 {offsets = [0, 0], sizes = [8, 32], strides = [1, 1]} : vector<8x96xf32> to vector<8x32xf32>
    %707 = vector.extract_strided_slice %703 {offsets = [0, 32], sizes = [8, 32], strides = [1, 1]} : vector<8x96xf32> to vector<8x32xf32>
    %708 = vector.extract_strided_slice %703 {offsets = [0, 64], sizes = [8, 32], strides = [1, 1]} : vector<8x96xf32> to vector<8x32xf32>
    %709 = arith.mulf %707, %666 : vector<8x32xf32>
    %710 = arith.mulf %706, %705 : vector<8x32xf32>
    %711 = arith.addf %709, %710 : vector<8x32xf32>
    %712 = math.tanh %711 : vector<8x32xf32>
    %713 = arith.mulf %708, %712 : vector<8x32xf32>
    %714 = arith.index_cast %c15_i32 : i32 to index
    %715 = memref.load %arg4[%714] : memref<32xf32, #tpu.memory_space<smem>>
    %716 = vector.broadcast %715 : f32 to vector<8x32xf32>
    %717 = arith.mulf %713, %716 : vector<8x32xf32>
    %718 = arith.index_cast %c15_i32 : i32 to index
    %719 = memref.load %arg5[%718] : memref<32xf32, #tpu.memory_space<smem>>
    %720 = vector.broadcast %719 : f32 to vector<8x32xf32>
    %721 = arith.addf %717, %720 : vector<8x32xf32>
    %722 = arith.truncf %721 : vector<8x32xf32> to vector<8x32xbf16>
    %cst_175 = arith.constant dense<0.000000e+00> : vector<8x32xf32>
    %723 = tpu.matmul %722, %8, %cst_175 {dimension_numbers = #tpu.dot_dimension_numbers<[1], [0], [0], [1], [0, 0, 1, 1], [], []>} : vector<8x32xbf16>, vector<32x32xbf16>, vector<8x32xf32> -> vector<8x32xf32>
    %724 = vector.broadcast %9 : vector<1x32xf32> to vector<8x32xf32>
    %725 = arith.addf %723, %724 : vector<8x32xf32>
    %cst_176 = arith.constant 0.000000e+00 : f32
    %726 = vector.broadcast %cst_176 : f32 to vector<8x32xf32>
    %727 = arith.maximumf %725, %726 : vector<8x32xf32>
    %728 = arith.truncf %727 : vector<8x32xf32> to vector<8x32xbf16>
    %cst_177 = arith.constant dense<0.000000e+00> : vector<8x128xf32>
    %729 = tpu.matmul %728, %10, %cst_177 {dimension_numbers = #tpu.dot_dimension_numbers<[1], [0], [0], [1], [0, 0, 1, 1], [], []>} : vector<8x32xbf16>, vector<32x128xbf16>, vector<8x128xf32> -> vector<8x128xf32>
    %730 = vector.broadcast %11 : vector<1x128xf32> to vector<8x128xf32>
    %731 = arith.addf %729, %730 : vector<8x128xf32>
    %732 = arith.index_cast %690 : i32 to index
    %c0_178 = arith.constant 0 : index
    %733 = vector.load %arg10[%732, %c0_178] : memref<256x128xf32, #tpu.memory_space<vmem>>, vector<8x128xf32>
    tpu.vector_store %arg10[%732, %c0_178], %731 {strides = array<i32>} : memref<256x128xf32, #tpu.memory_space<vmem>>, vector<8x128xf32>,
    %c16_i32 = arith.constant 16 : i32
    %c8_i32_179 = arith.constant 8 : i32
    %734 = arith.muli %c16_i32, %c8_i32_179 : i32
    %735 = tpu.assume_multiple %734, 8 : i32
    %736 = arith.index_cast %735 : i32 to index
    %c0_180 = arith.constant 0 : index
    %737 = vector.load %arg11[%736, %c0_180] : memref<256x128xf32, #tpu.memory_space<vmem>>, vector<8x128xf32>
    %738 = arith.truncf %713 : vector<8x32xf32> to vector<8x32xbf16>
    %cst_181 = arith.constant dense<0.000000e+00> : vector<8x128xf32>
    %739 = tpu.matmul %738, %7, %cst_181 {dimension_numbers = #tpu.dot_dimension_numbers<[1], [0], [0], [1], [0, 0, 1, 1], [], []>} : vector<8x32xbf16>, vector<32x128xbf16>, vector<8x128xf32> -> vector<8x128xf32>
    %740 = arith.addf %737, %739 : vector<8x128xf32>
    %741 = vector.extract_strided_slice %740 {offsets = [0, 0], sizes = [8, 96], strides = [1, 1]} : vector<8x128xf32> to vector<8x96xf32>
    %cst_182 = arith.constant 5.000000e-01 : f32
    %742 = vector.broadcast %cst_182 : f32 to vector<8x96xf32>
    %743 = arith.mulf %742, %741 : vector<8x96xf32>
    %744 = math.tanh %743 : vector<8x96xf32>
    %cst_183 = arith.constant 5.000000e-01 : f32
    %745 = vector.broadcast %cst_183 : f32 to vector<8x96xf32>
    %746 = arith.mulf %745, %744 : vector<8x96xf32>
    %cst_184 = arith.constant 5.000000e-01 : f32
    %747 = vector.broadcast %cst_184 : f32 to vector<8x96xf32>
    %748 = arith.addf %746, %747 : vector<8x96xf32>
    %749 = vector.extract_strided_slice %740 {offsets = [0, 96], sizes = [8, 32], strides = [1, 1]} : vector<8x128xf32> to vector<8x32xf32>
    %750 = math.tanh %749 : vector<8x32xf32>
    %751 = vector.extract_strided_slice %748 {offsets = [0, 0], sizes = [8, 32], strides = [1, 1]} : vector<8x96xf32> to vector<8x32xf32>
    %752 = vector.extract_strided_slice %748 {offsets = [0, 32], sizes = [8, 32], strides = [1, 1]} : vector<8x96xf32> to vector<8x32xf32>
    %753 = vector.extract_strided_slice %748 {offsets = [0, 64], sizes = [8, 32], strides = [1, 1]} : vector<8x96xf32> to vector<8x32xf32>
    %754 = arith.mulf %752, %711 : vector<8x32xf32>
    %755 = arith.mulf %751, %750 : vector<8x32xf32>
    %756 = arith.addf %754, %755 : vector<8x32xf32>
    %757 = math.tanh %756 : vector<8x32xf32>
    %758 = arith.mulf %753, %757 : vector<8x32xf32>
    %759 = arith.index_cast %c16_i32 : i32 to index
    %760 = memref.load %arg4[%759] : memref<32xf32, #tpu.memory_space<smem>>
    %761 = vector.broadcast %760 : f32 to vector<8x32xf32>
    %762 = arith.mulf %758, %761 : vector<8x32xf32>
    %763 = arith.index_cast %c16_i32 : i32 to index
    %764 = memref.load %arg5[%763] : memref<32xf32, #tpu.memory_space<smem>>
    %765 = vector.broadcast %764 : f32 to vector<8x32xf32>
    %766 = arith.addf %762, %765 : vector<8x32xf32>
    %767 = arith.truncf %766 : vector<8x32xf32> to vector<8x32xbf16>
    %cst_185 = arith.constant dense<0.000000e+00> : vector<8x32xf32>
    %768 = tpu.matmul %767, %8, %cst_185 {dimension_numbers = #tpu.dot_dimension_numbers<[1], [0], [0], [1], [0, 0, 1, 1], [], []>} : vector<8x32xbf16>, vector<32x32xbf16>, vector<8x32xf32> -> vector<8x32xf32>
    %769 = vector.broadcast %9 : vector<1x32xf32> to vector<8x32xf32>
    %770 = arith.addf %768, %769 : vector<8x32xf32>
    %cst_186 = arith.constant 0.000000e+00 : f32
    %771 = vector.broadcast %cst_186 : f32 to vector<8x32xf32>
    %772 = arith.maximumf %770, %771 : vector<8x32xf32>
    %773 = arith.truncf %772 : vector<8x32xf32> to vector<8x32xbf16>
    %cst_187 = arith.constant dense<0.000000e+00> : vector<8x128xf32>
    %774 = tpu.matmul %773, %10, %cst_187 {dimension_numbers = #tpu.dot_dimension_numbers<[1], [0], [0], [1], [0, 0, 1, 1], [], []>} : vector<8x32xbf16>, vector<32x128xbf16>, vector<8x128xf32> -> vector<8x128xf32>
    %775 = vector.broadcast %11 : vector<1x128xf32> to vector<8x128xf32>
    %776 = arith.addf %774, %775 : vector<8x128xf32>
    %777 = arith.index_cast %735 : i32 to index
    %c0_188 = arith.constant 0 : index
    %778 = vector.load %arg10[%777, %c0_188] : memref<256x128xf32, #tpu.memory_space<vmem>>, vector<8x128xf32>
    tpu.vector_store %arg10[%777, %c0_188], %776 {strides = array<i32>} : memref<256x128xf32, #tpu.memory_space<vmem>>, vector<8x128xf32>,
    %c17_i32 = arith.constant 17 : i32
    %c8_i32_189 = arith.constant 8 : i32
    %779 = arith.muli %c17_i32, %c8_i32_189 : i32
    %780 = tpu.assume_multiple %779, 8 : i32
    %781 = arith.index_cast %780 : i32 to index
    %c0_190 = arith.constant 0 : index
    %782 = vector.load %arg11[%781, %c0_190] : memref<256x128xf32, #tpu.memory_space<vmem>>, vector<8x128xf32>
    %783 = arith.truncf %758 : vector<8x32xf32> to vector<8x32xbf16>
    %cst_191 = arith.constant dense<0.000000e+00> : vector<8x128xf32>
    %784 = tpu.matmul %783, %7, %cst_191 {dimension_numbers = #tpu.dot_dimension_numbers<[1], [0], [0], [1], [0, 0, 1, 1], [], []>} : vector<8x32xbf16>, vector<32x128xbf16>, vector<8x128xf32> -> vector<8x128xf32>
    %785 = arith.addf %782, %784 : vector<8x128xf32>
    %786 = vector.extract_strided_slice %785 {offsets = [0, 0], sizes = [8, 96], strides = [1, 1]} : vector<8x128xf32> to vector<8x96xf32>
    %cst_192 = arith.constant 5.000000e-01 : f32
    %787 = vector.broadcast %cst_192 : f32 to vector<8x96xf32>
    %788 = arith.mulf %787, %786 : vector<8x96xf32>
    %789 = math.tanh %788 : vector<8x96xf32>
    %cst_193 = arith.constant 5.000000e-01 : f32
    %790 = vector.broadcast %cst_193 : f32 to vector<8x96xf32>
    %791 = arith.mulf %790, %789 : vector<8x96xf32>
    %cst_194 = arith.constant 5.000000e-01 : f32
    %792 = vector.broadcast %cst_194 : f32 to vector<8x96xf32>
    %793 = arith.addf %791, %792 : vector<8x96xf32>
    %794 = vector.extract_strided_slice %785 {offsets = [0, 96], sizes = [8, 32], strides = [1, 1]} : vector<8x128xf32> to vector<8x32xf32>
    %795 = math.tanh %794 : vector<8x32xf32>
    %796 = vector.extract_strided_slice %793 {offsets = [0, 0], sizes = [8, 32], strides = [1, 1]} : vector<8x96xf32> to vector<8x32xf32>
    %797 = vector.extract_strided_slice %793 {offsets = [0, 32], sizes = [8, 32], strides = [1, 1]} : vector<8x96xf32> to vector<8x32xf32>
    %798 = vector.extract_strided_slice %793 {offsets = [0, 64], sizes = [8, 32], strides = [1, 1]} : vector<8x96xf32> to vector<8x32xf32>
    %799 = arith.mulf %797, %756 : vector<8x32xf32>
    %800 = arith.mulf %796, %795 : vector<8x32xf32>
    %801 = arith.addf %799, %800 : vector<8x32xf32>
    %802 = math.tanh %801 : vector<8x32xf32>
    %803 = arith.mulf %798, %802 : vector<8x32xf32>
    %804 = arith.index_cast %c17_i32 : i32 to index
    %805 = memref.load %arg4[%804] : memref<32xf32, #tpu.memory_space<smem>>
    %806 = vector.broadcast %805 : f32 to vector<8x32xf32>
    %807 = arith.mulf %803, %806 : vector<8x32xf32>
    %808 = arith.index_cast %c17_i32 : i32 to index
    %809 = memref.load %arg5[%808] : memref<32xf32, #tpu.memory_space<smem>>
    %810 = vector.broadcast %809 : f32 to vector<8x32xf32>
    %811 = arith.addf %807, %810 : vector<8x32xf32>
    %812 = arith.truncf %811 : vector<8x32xf32> to vector<8x32xbf16>
    %cst_195 = arith.constant dense<0.000000e+00> : vector<8x32xf32>
    %813 = tpu.matmul %812, %8, %cst_195 {dimension_numbers = #tpu.dot_dimension_numbers<[1], [0], [0], [1], [0, 0, 1, 1], [], []>} : vector<8x32xbf16>, vector<32x32xbf16>, vector<8x32xf32> -> vector<8x32xf32>
    %814 = vector.broadcast %9 : vector<1x32xf32> to vector<8x32xf32>
    %815 = arith.addf %813, %814 : vector<8x32xf32>
    %cst_196 = arith.constant 0.000000e+00 : f32
    %816 = vector.broadcast %cst_196 : f32 to vector<8x32xf32>
    %817 = arith.maximumf %815, %816 : vector<8x32xf32>
    %818 = arith.truncf %817 : vector<8x32xf32> to vector<8x32xbf16>
    %cst_197 = arith.constant dense<0.000000e+00> : vector<8x128xf32>
    %819 = tpu.matmul %818, %10, %cst_197 {dimension_numbers = #tpu.dot_dimension_numbers<[1], [0], [0], [1], [0, 0, 1, 1], [], []>} : vector<8x32xbf16>, vector<32x128xbf16>, vector<8x128xf32> -> vector<8x128xf32>
    %820 = vector.broadcast %11 : vector<1x128xf32> to vector<8x128xf32>
    %821 = arith.addf %819, %820 : vector<8x128xf32>
    %822 = arith.index_cast %780 : i32 to index
    %c0_198 = arith.constant 0 : index
    %823 = vector.load %arg10[%822, %c0_198] : memref<256x128xf32, #tpu.memory_space<vmem>>, vector<8x128xf32>
    tpu.vector_store %arg10[%822, %c0_198], %821 {strides = array<i32>} : memref<256x128xf32, #tpu.memory_space<vmem>>, vector<8x128xf32>,
    %c18_i32 = arith.constant 18 : i32
    %c8_i32_199 = arith.constant 8 : i32
    %824 = arith.muli %c18_i32, %c8_i32_199 : i32
    %825 = tpu.assume_multiple %824, 8 : i32
    %826 = arith.index_cast %825 : i32 to index
    %c0_200 = arith.constant 0 : index
    %827 = vector.load %arg11[%826, %c0_200] : memref<256x128xf32, #tpu.memory_space<vmem>>, vector<8x128xf32>
    %828 = arith.truncf %803 : vector<8x32xf32> to vector<8x32xbf16>
    %cst_201 = arith.constant dense<0.000000e+00> : vector<8x128xf32>
    %829 = tpu.matmul %828, %7, %cst_201 {dimension_numbers = #tpu.dot_dimension_numbers<[1], [0], [0], [1], [0, 0, 1, 1], [], []>} : vector<8x32xbf16>, vector<32x128xbf16>, vector<8x128xf32> -> vector<8x128xf32>
    %830 = arith.addf %827, %829 : vector<8x128xf32>
    %831 = vector.extract_strided_slice %830 {offsets = [0, 0], sizes = [8, 96], strides = [1, 1]} : vector<8x128xf32> to vector<8x96xf32>
    %cst_202 = arith.constant 5.000000e-01 : f32
    %832 = vector.broadcast %cst_202 : f32 to vector<8x96xf32>
    %833 = arith.mulf %832, %831 : vector<8x96xf32>
    %834 = math.tanh %833 : vector<8x96xf32>
    %cst_203 = arith.constant 5.000000e-01 : f32
    %835 = vector.broadcast %cst_203 : f32 to vector<8x96xf32>
    %836 = arith.mulf %835, %834 : vector<8x96xf32>
    %cst_204 = arith.constant 5.000000e-01 : f32
    %837 = vector.broadcast %cst_204 : f32 to vector<8x96xf32>
    %838 = arith.addf %836, %837 : vector<8x96xf32>
    %839 = vector.extract_strided_slice %830 {offsets = [0, 96], sizes = [8, 32], strides = [1, 1]} : vector<8x128xf32> to vector<8x32xf32>
    %840 = math.tanh %839 : vector<8x32xf32>
    %841 = vector.extract_strided_slice %838 {offsets = [0, 0], sizes = [8, 32], strides = [1, 1]} : vector<8x96xf32> to vector<8x32xf32>
    %842 = vector.extract_strided_slice %838 {offsets = [0, 32], sizes = [8, 32], strides = [1, 1]} : vector<8x96xf32> to vector<8x32xf32>
    %843 = vector.extract_strided_slice %838 {offsets = [0, 64], sizes = [8, 32], strides = [1, 1]} : vector<8x96xf32> to vector<8x32xf32>
    %844 = arith.mulf %842, %801 : vector<8x32xf32>
    %845 = arith.mulf %841, %840 : vector<8x32xf32>
    %846 = arith.addf %844, %845 : vector<8x32xf32>
    %847 = math.tanh %846 : vector<8x32xf32>
    %848 = arith.mulf %843, %847 : vector<8x32xf32>
    %849 = arith.index_cast %c18_i32 : i32 to index
    %850 = memref.load %arg4[%849] : memref<32xf32, #tpu.memory_space<smem>>
    %851 = vector.broadcast %850 : f32 to vector<8x32xf32>
    %852 = arith.mulf %848, %851 : vector<8x32xf32>
    %853 = arith.index_cast %c18_i32 : i32 to index
    %854 = memref.load %arg5[%853] : memref<32xf32, #tpu.memory_space<smem>>
    %855 = vector.broadcast %854 : f32 to vector<8x32xf32>
    %856 = arith.addf %852, %855 : vector<8x32xf32>
    %857 = arith.truncf %856 : vector<8x32xf32> to vector<8x32xbf16>
    %cst_205 = arith.constant dense<0.000000e+00> : vector<8x32xf32>
    %858 = tpu.matmul %857, %8, %cst_205 {dimension_numbers = #tpu.dot_dimension_numbers<[1], [0], [0], [1], [0, 0, 1, 1], [], []>} : vector<8x32xbf16>, vector<32x32xbf16>, vector<8x32xf32> -> vector<8x32xf32>
    %859 = vector.broadcast %9 : vector<1x32xf32> to vector<8x32xf32>
    %860 = arith.addf %858, %859 : vector<8x32xf32>
    %cst_206 = arith.constant 0.000000e+00 : f32
    %861 = vector.broadcast %cst_206 : f32 to vector<8x32xf32>
    %862 = arith.maximumf %860, %861 : vector<8x32xf32>
    %863 = arith.truncf %862 : vector<8x32xf32> to vector<8x32xbf16>
    %cst_207 = arith.constant dense<0.000000e+00> : vector<8x128xf32>
    %864 = tpu.matmul %863, %10, %cst_207 {dimension_numbers = #tpu.dot_dimension_numbers<[1], [0], [0], [1], [0, 0, 1, 1], [], []>} : vector<8x32xbf16>, vector<32x128xbf16>, vector<8x128xf32> -> vector<8x128xf32>
    %865 = vector.broadcast %11 : vector<1x128xf32> to vector<8x128xf32>
    %866 = arith.addf %864, %865 : vector<8x128xf32>
    %867 = arith.index_cast %825 : i32 to index
    %c0_208 = arith.constant 0 : index
    %868 = vector.load %arg10[%867, %c0_208] : memref<256x128xf32, #tpu.memory_space<vmem>>, vector<8x128xf32>
    tpu.vector_store %arg10[%867, %c0_208], %866 {strides = array<i32>} : memref<256x128xf32, #tpu.memory_space<vmem>>, vector<8x128xf32>,
    %c19_i32 = arith.constant 19 : i32
    %c8_i32_209 = arith.constant 8 : i32
    %869 = arith.muli %c19_i32, %c8_i32_209 : i32
    %870 = tpu.assume_multiple %869, 8 : i32
    %871 = arith.index_cast %870 : i32 to index
    %c0_210 = arith.constant 0 : index
    %872 = vector.load %arg11[%871, %c0_210] : memref<256x128xf32, #tpu.memory_space<vmem>>, vector<8x128xf32>
    %873 = arith.truncf %848 : vector<8x32xf32> to vector<8x32xbf16>
    %cst_211 = arith.constant dense<0.000000e+00> : vector<8x128xf32>
    %874 = tpu.matmul %873, %7, %cst_211 {dimension_numbers = #tpu.dot_dimension_numbers<[1], [0], [0], [1], [0, 0, 1, 1], [], []>} : vector<8x32xbf16>, vector<32x128xbf16>, vector<8x128xf32> -> vector<8x128xf32>
    %875 = arith.addf %872, %874 : vector<8x128xf32>
    %876 = vector.extract_strided_slice %875 {offsets = [0, 0], sizes = [8, 96], strides = [1, 1]} : vector<8x128xf32> to vector<8x96xf32>
    %cst_212 = arith.constant 5.000000e-01 : f32
    %877 = vector.broadcast %cst_212 : f32 to vector<8x96xf32>
    %878 = arith.mulf %877, %876 : vector<8x96xf32>
    %879 = math.tanh %878 : vector<8x96xf32>
    %cst_213 = arith.constant 5.000000e-01 : f32
    %880 = vector.broadcast %cst_213 : f32 to vector<8x96xf32>
    %881 = arith.mulf %880, %879 : vector<8x96xf32>
    %cst_214 = arith.constant 5.000000e-01 : f32
    %882 = vector.broadcast %cst_214 : f32 to vector<8x96xf32>
    %883 = arith.addf %881, %882 : vector<8x96xf32>
    %884 = vector.extract_strided_slice %875 {offsets = [0, 96], sizes = [8, 32], strides = [1, 1]} : vector<8x128xf32> to vector<8x32xf32>
    %885 = math.tanh %884 : vector<8x32xf32>
    %886 = vector.extract_strided_slice %883 {offsets = [0, 0], sizes = [8, 32], strides = [1, 1]} : vector<8x96xf32> to vector<8x32xf32>
    %887 = vector.extract_strided_slice %883 {offsets = [0, 32], sizes = [8, 32], strides = [1, 1]} : vector<8x96xf32> to vector<8x32xf32>
    %888 = vector.extract_strided_slice %883 {offsets = [0, 64], sizes = [8, 32], strides = [1, 1]} : vector<8x96xf32> to vector<8x32xf32>
    %889 = arith.mulf %887, %846 : vector<8x32xf32>
    %890 = arith.mulf %886, %885 : vector<8x32xf32>
    %891 = arith.addf %889, %890 : vector<8x32xf32>
    %892 = math.tanh %891 : vector<8x32xf32>
    %893 = arith.mulf %888, %892 : vector<8x32xf32>
    %894 = arith.index_cast %c19_i32 : i32 to index
    %895 = memref.load %arg4[%894] : memref<32xf32, #tpu.memory_space<smem>>
    %896 = vector.broadcast %895 : f32 to vector<8x32xf32>
    %897 = arith.mulf %893, %896 : vector<8x32xf32>
    %898 = arith.index_cast %c19_i32 : i32 to index
    %899 = memref.load %arg5[%898] : memref<32xf32, #tpu.memory_space<smem>>
    %900 = vector.broadcast %899 : f32 to vector<8x32xf32>
    %901 = arith.addf %897, %900 : vector<8x32xf32>
    %902 = arith.truncf %901 : vector<8x32xf32> to vector<8x32xbf16>
    %cst_215 = arith.constant dense<0.000000e+00> : vector<8x32xf32>
    %903 = tpu.matmul %902, %8, %cst_215 {dimension_numbers = #tpu.dot_dimension_numbers<[1], [0], [0], [1], [0, 0, 1, 1], [], []>} : vector<8x32xbf16>, vector<32x32xbf16>, vector<8x32xf32> -> vector<8x32xf32>
    %904 = vector.broadcast %9 : vector<1x32xf32> to vector<8x32xf32>
    %905 = arith.addf %903, %904 : vector<8x32xf32>
    %cst_216 = arith.constant 0.000000e+00 : f32
    %906 = vector.broadcast %cst_216 : f32 to vector<8x32xf32>
    %907 = arith.maximumf %905, %906 : vector<8x32xf32>
    %908 = arith.truncf %907 : vector<8x32xf32> to vector<8x32xbf16>
    %cst_217 = arith.constant dense<0.000000e+00> : vector<8x128xf32>
    %909 = tpu.matmul %908, %10, %cst_217 {dimension_numbers = #tpu.dot_dimension_numbers<[1], [0], [0], [1], [0, 0, 1, 1], [], []>} : vector<8x32xbf16>, vector<32x128xbf16>, vector<8x128xf32> -> vector<8x128xf32>
    %910 = vector.broadcast %11 : vector<1x128xf32> to vector<8x128xf32>
    %911 = arith.addf %909, %910 : vector<8x128xf32>
    %912 = arith.index_cast %870 : i32 to index
    %c0_218 = arith.constant 0 : index
    %913 = vector.load %arg10[%912, %c0_218] : memref<256x128xf32, #tpu.memory_space<vmem>>, vector<8x128xf32>
    tpu.vector_store %arg10[%912, %c0_218], %911 {strides = array<i32>} : memref<256x128xf32, #tpu.memory_space<vmem>>, vector<8x128xf32>,
    %c20_i32 = arith.constant 20 : i32
    %c8_i32_219 = arith.constant 8 : i32
    %914 = arith.muli %c20_i32, %c8_i32_219 : i32
    %915 = tpu.assume_multiple %914, 8 : i32
    %916 = arith.index_cast %915 : i32 to index
    %c0_220 = arith.constant 0 : index
    %917 = vector.load %arg11[%916, %c0_220] : memref<256x128xf32, #tpu.memory_space<vmem>>, vector<8x128xf32>
    %918 = arith.truncf %893 : vector<8x32xf32> to vector<8x32xbf16>
    %cst_221 = arith.constant dense<0.000000e+00> : vector<8x128xf32>
    %919 = tpu.matmul %918, %7, %cst_221 {dimension_numbers = #tpu.dot_dimension_numbers<[1], [0], [0], [1], [0, 0, 1, 1], [], []>} : vector<8x32xbf16>, vector<32x128xbf16>, vector<8x128xf32> -> vector<8x128xf32>
    %920 = arith.addf %917, %919 : vector<8x128xf32>
    %921 = vector.extract_strided_slice %920 {offsets = [0, 0], sizes = [8, 96], strides = [1, 1]} : vector<8x128xf32> to vector<8x96xf32>
    %cst_222 = arith.constant 5.000000e-01 : f32
    %922 = vector.broadcast %cst_222 : f32 to vector<8x96xf32>
    %923 = arith.mulf %922, %921 : vector<8x96xf32>
    %924 = math.tanh %923 : vector<8x96xf32>
    %cst_223 = arith.constant 5.000000e-01 : f32
    %925 = vector.broadcast %cst_223 : f32 to vector<8x96xf32>
    %926 = arith.mulf %925, %924 : vector<8x96xf32>
    %cst_224 = arith.constant 5.000000e-01 : f32
    %927 = vector.broadcast %cst_224 : f32 to vector<8x96xf32>
    %928 = arith.addf %926, %927 : vector<8x96xf32>
    %929 = vector.extract_strided_slice %920 {offsets = [0, 96], sizes = [8, 32], strides = [1, 1]} : vector<8x128xf32> to vector<8x32xf32>
    %930 = math.tanh %929 : vector<8x32xf32>
    %931 = vector.extract_strided_slice %928 {offsets = [0, 0], sizes = [8, 32], strides = [1, 1]} : vector<8x96xf32> to vector<8x32xf32>
    %932 = vector.extract_strided_slice %928 {offsets = [0, 32], sizes = [8, 32], strides = [1, 1]} : vector<8x96xf32> to vector<8x32xf32>
    %933 = vector.extract_strided_slice %928 {offsets = [0, 64], sizes = [8, 32], strides = [1, 1]} : vector<8x96xf32> to vector<8x32xf32>
    %934 = arith.mulf %932, %891 : vector<8x32xf32>
    %935 = arith.mulf %931, %930 : vector<8x32xf32>
    %936 = arith.addf %934, %935 : vector<8x32xf32>
    %937 = math.tanh %936 : vector<8x32xf32>
    %938 = arith.mulf %933, %937 : vector<8x32xf32>
    %939 = arith.index_cast %c20_i32 : i32 to index
    %940 = memref.load %arg4[%939] : memref<32xf32, #tpu.memory_space<smem>>
    %941 = vector.broadcast %940 : f32 to vector<8x32xf32>
    %942 = arith.mulf %938, %941 : vector<8x32xf32>
    %943 = arith.index_cast %c20_i32 : i32 to index
    %944 = memref.load %arg5[%943] : memref<32xf32, #tpu.memory_space<smem>>
    %945 = vector.broadcast %944 : f32 to vector<8x32xf32>
    %946 = arith.addf %942, %945 : vector<8x32xf32>
    %947 = arith.truncf %946 : vector<8x32xf32> to vector<8x32xbf16>
    %cst_225 = arith.constant dense<0.000000e+00> : vector<8x32xf32>
    %948 = tpu.matmul %947, %8, %cst_225 {dimension_numbers = #tpu.dot_dimension_numbers<[1], [0], [0], [1], [0, 0, 1, 1], [], []>} : vector<8x32xbf16>, vector<32x32xbf16>, vector<8x32xf32> -> vector<8x32xf32>
    %949 = vector.broadcast %9 : vector<1x32xf32> to vector<8x32xf32>
    %950 = arith.addf %948, %949 : vector<8x32xf32>
    %cst_226 = arith.constant 0.000000e+00 : f32
    %951 = vector.broadcast %cst_226 : f32 to vector<8x32xf32>
    %952 = arith.maximumf %950, %951 : vector<8x32xf32>
    %953 = arith.truncf %952 : vector<8x32xf32> to vector<8x32xbf16>
    %cst_227 = arith.constant dense<0.000000e+00> : vector<8x128xf32>
    %954 = tpu.matmul %953, %10, %cst_227 {dimension_numbers = #tpu.dot_dimension_numbers<[1], [0], [0], [1], [0, 0, 1, 1], [], []>} : vector<8x32xbf16>, vector<32x128xbf16>, vector<8x128xf32> -> vector<8x128xf32>
    %955 = vector.broadcast %11 : vector<1x128xf32> to vector<8x128xf32>
    %956 = arith.addf %954, %955 : vector<8x128xf32>
    %957 = arith.index_cast %915 : i32 to index
    %c0_228 = arith.constant 0 : index
    %958 = vector.load %arg10[%957, %c0_228] : memref<256x128xf32, #tpu.memory_space<vmem>>, vector<8x128xf32>
    tpu.vector_store %arg10[%957, %c0_228], %956 {strides = array<i32>} : memref<256x128xf32, #tpu.memory_space<vmem>>, vector<8x128xf32>,
    %c21_i32 = arith.constant 21 : i32
    %c8_i32_229 = arith.constant 8 : i32
    %959 = arith.muli %c21_i32, %c8_i32_229 : i32
    %960 = tpu.assume_multiple %959, 8 : i32
    %961 = arith.index_cast %960 : i32 to index
    %c0_230 = arith.constant 0 : index
    %962 = vector.load %arg11[%961, %c0_230] : memref<256x128xf32, #tpu.memory_space<vmem>>, vector<8x128xf32>
    %963 = arith.truncf %938 : vector<8x32xf32> to vector<8x32xbf16>
    %cst_231 = arith.constant dense<0.000000e+00> : vector<8x128xf32>
    %964 = tpu.matmul %963, %7, %cst_231 {dimension_numbers = #tpu.dot_dimension_numbers<[1], [0], [0], [1], [0, 0, 1, 1], [], []>} : vector<8x32xbf16>, vector<32x128xbf16>, vector<8x128xf32> -> vector<8x128xf32>
    %965 = arith.addf %962, %964 : vector<8x128xf32>
    %966 = vector.extract_strided_slice %965 {offsets = [0, 0], sizes = [8, 96], strides = [1, 1]} : vector<8x128xf32> to vector<8x96xf32>
    %cst_232 = arith.constant 5.000000e-01 : f32
    %967 = vector.broadcast %cst_232 : f32 to vector<8x96xf32>
    %968 = arith.mulf %967, %966 : vector<8x96xf32>
    %969 = math.tanh %968 : vector<8x96xf32>
    %cst_233 = arith.constant 5.000000e-01 : f32
    %970 = vector.broadcast %cst_233 : f32 to vector<8x96xf32>
    %971 = arith.mulf %970, %969 : vector<8x96xf32>
    %cst_234 = arith.constant 5.000000e-01 : f32
    %972 = vector.broadcast %cst_234 : f32 to vector<8x96xf32>
    %973 = arith.addf %971, %972 : vector<8x96xf32>
    %974 = vector.extract_strided_slice %965 {offsets = [0, 96], sizes = [8, 32], strides = [1, 1]} : vector<8x128xf32> to vector<8x32xf32>
    %975 = math.tanh %974 : vector<8x32xf32>
    %976 = vector.extract_strided_slice %973 {offsets = [0, 0], sizes = [8, 32], strides = [1, 1]} : vector<8x96xf32> to vector<8x32xf32>
    %977 = vector.extract_strided_slice %973 {offsets = [0, 32], sizes = [8, 32], strides = [1, 1]} : vector<8x96xf32> to vector<8x32xf32>
    %978 = vector.extract_strided_slice %973 {offsets = [0, 64], sizes = [8, 32], strides = [1, 1]} : vector<8x96xf32> to vector<8x32xf32>
    %979 = arith.mulf %977, %936 : vector<8x32xf32>
    %980 = arith.mulf %976, %975 : vector<8x32xf32>
    %981 = arith.addf %979, %980 : vector<8x32xf32>
    %982 = math.tanh %981 : vector<8x32xf32>
    %983 = arith.mulf %978, %982 : vector<8x32xf32>
    %984 = arith.index_cast %c21_i32 : i32 to index
    %985 = memref.load %arg4[%984] : memref<32xf32, #tpu.memory_space<smem>>
    %986 = vector.broadcast %985 : f32 to vector<8x32xf32>
    %987 = arith.mulf %983, %986 : vector<8x32xf32>
    %988 = arith.index_cast %c21_i32 : i32 to index
    %989 = memref.load %arg5[%988] : memref<32xf32, #tpu.memory_space<smem>>
    %990 = vector.broadcast %989 : f32 to vector<8x32xf32>
    %991 = arith.addf %987, %990 : vector<8x32xf32>
    %992 = arith.truncf %991 : vector<8x32xf32> to vector<8x32xbf16>
    %cst_235 = arith.constant dense<0.000000e+00> : vector<8x32xf32>
    %993 = tpu.matmul %992, %8, %cst_235 {dimension_numbers = #tpu.dot_dimension_numbers<[1], [0], [0], [1], [0, 0, 1, 1], [], []>} : vector<8x32xbf16>, vector<32x32xbf16>, vector<8x32xf32> -> vector<8x32xf32>
    %994 = vector.broadcast %9 : vector<1x32xf32> to vector<8x32xf32>
    %995 = arith.addf %993, %994 : vector<8x32xf32>
    %cst_236 = arith.constant 0.000000e+00 : f32
    %996 = vector.broadcast %cst_236 : f32 to vector<8x32xf32>
    %997 = arith.maximumf %995, %996 : vector<8x32xf32>
    %998 = arith.truncf %997 : vector<8x32xf32> to vector<8x32xbf16>
    %cst_237 = arith.constant dense<0.000000e+00> : vector<8x128xf32>
    %999 = tpu.matmul %998, %10, %cst_237 {dimension_numbers = #tpu.dot_dimension_numbers<[1], [0], [0], [1], [0, 0, 1, 1], [], []>} : vector<8x32xbf16>, vector<32x128xbf16>, vector<8x128xf32> -> vector<8x128xf32>
    %1000 = vector.broadcast %11 : vector<1x128xf32> to vector<8x128xf32>
    %1001 = arith.addf %999, %1000 : vector<8x128xf32>
    %1002 = arith.index_cast %960 : i32 to index
    %c0_238 = arith.constant 0 : index
    %1003 = vector.load %arg10[%1002, %c0_238] : memref<256x128xf32, #tpu.memory_space<vmem>>, vector<8x128xf32>
    tpu.vector_store %arg10[%1002, %c0_238], %1001 {strides = array<i32>} : memref<256x128xf32, #tpu.memory_space<vmem>>, vector<8x128xf32>,
    %c22_i32 = arith.constant 22 : i32
    %c8_i32_239 = arith.constant 8 : i32
    %1004 = arith.muli %c22_i32, %c8_i32_239 : i32
    %1005 = tpu.assume_multiple %1004, 8 : i32
    %1006 = arith.index_cast %1005 : i32 to index
    %c0_240 = arith.constant 0 : index
    %1007 = vector.load %arg11[%1006, %c0_240] : memref<256x128xf32, #tpu.memory_space<vmem>>, vector<8x128xf32>
    %1008 = arith.truncf %983 : vector<8x32xf32> to vector<8x32xbf16>
    %cst_241 = arith.constant dense<0.000000e+00> : vector<8x128xf32>
    %1009 = tpu.matmul %1008, %7, %cst_241 {dimension_numbers = #tpu.dot_dimension_numbers<[1], [0], [0], [1], [0, 0, 1, 1], [], []>} : vector<8x32xbf16>, vector<32x128xbf16>, vector<8x128xf32> -> vector<8x128xf32>
    %1010 = arith.addf %1007, %1009 : vector<8x128xf32>
    %1011 = vector.extract_strided_slice %1010 {offsets = [0, 0], sizes = [8, 96], strides = [1, 1]} : vector<8x128xf32> to vector<8x96xf32>
    %cst_242 = arith.constant 5.000000e-01 : f32
    %1012 = vector.broadcast %cst_242 : f32 to vector<8x96xf32>
    %1013 = arith.mulf %1012, %1011 : vector<8x96xf32>
    %1014 = math.tanh %1013 : vector<8x96xf32>
    %cst_243 = arith.constant 5.000000e-01 : f32
    %1015 = vector.broadcast %cst_243 : f32 to vector<8x96xf32>
    %1016 = arith.mulf %1015, %1014 : vector<8x96xf32>
    %cst_244 = arith.constant 5.000000e-01 : f32
    %1017 = vector.broadcast %cst_244 : f32 to vector<8x96xf32>
    %1018 = arith.addf %1016, %1017 : vector<8x96xf32>
    %1019 = vector.extract_strided_slice %1010 {offsets = [0, 96], sizes = [8, 32], strides = [1, 1]} : vector<8x128xf32> to vector<8x32xf32>
    %1020 = math.tanh %1019 : vector<8x32xf32>
    %1021 = vector.extract_strided_slice %1018 {offsets = [0, 0], sizes = [8, 32], strides = [1, 1]} : vector<8x96xf32> to vector<8x32xf32>
    %1022 = vector.extract_strided_slice %1018 {offsets = [0, 32], sizes = [8, 32], strides = [1, 1]} : vector<8x96xf32> to vector<8x32xf32>
    %1023 = vector.extract_strided_slice %1018 {offsets = [0, 64], sizes = [8, 32], strides = [1, 1]} : vector<8x96xf32> to vector<8x32xf32>
    %1024 = arith.mulf %1022, %981 : vector<8x32xf32>
    %1025 = arith.mulf %1021, %1020 : vector<8x32xf32>
    %1026 = arith.addf %1024, %1025 : vector<8x32xf32>
    %1027 = math.tanh %1026 : vector<8x32xf32>
    %1028 = arith.mulf %1023, %1027 : vector<8x32xf32>
    %1029 = arith.index_cast %c22_i32 : i32 to index
    %1030 = memref.load %arg4[%1029] : memref<32xf32, #tpu.memory_space<smem>>
    %1031 = vector.broadcast %1030 : f32 to vector<8x32xf32>
    %1032 = arith.mulf %1028, %1031 : vector<8x32xf32>
    %1033 = arith.index_cast %c22_i32 : i32 to index
    %1034 = memref.load %arg5[%1033] : memref<32xf32, #tpu.memory_space<smem>>
    %1035 = vector.broadcast %1034 : f32 to vector<8x32xf32>
    %1036 = arith.addf %1032, %1035 : vector<8x32xf32>
    %1037 = arith.truncf %1036 : vector<8x32xf32> to vector<8x32xbf16>
    %cst_245 = arith.constant dense<0.000000e+00> : vector<8x32xf32>
    %1038 = tpu.matmul %1037, %8, %cst_245 {dimension_numbers = #tpu.dot_dimension_numbers<[1], [0], [0], [1], [0, 0, 1, 1], [], []>} : vector<8x32xbf16>, vector<32x32xbf16>, vector<8x32xf32> -> vector<8x32xf32>
    %1039 = vector.broadcast %9 : vector<1x32xf32> to vector<8x32xf32>
    %1040 = arith.addf %1038, %1039 : vector<8x32xf32>
    %cst_246 = arith.constant 0.000000e+00 : f32
    %1041 = vector.broadcast %cst_246 : f32 to vector<8x32xf32>
    %1042 = arith.maximumf %1040, %1041 : vector<8x32xf32>
    %1043 = arith.truncf %1042 : vector<8x32xf32> to vector<8x32xbf16>
    %cst_247 = arith.constant dense<0.000000e+00> : vector<8x128xf32>
    %1044 = tpu.matmul %1043, %10, %cst_247 {dimension_numbers = #tpu.dot_dimension_numbers<[1], [0], [0], [1], [0, 0, 1, 1], [], []>} : vector<8x32xbf16>, vector<32x128xbf16>, vector<8x128xf32> -> vector<8x128xf32>
    %1045 = vector.broadcast %11 : vector<1x128xf32> to vector<8x128xf32>
    %1046 = arith.addf %1044, %1045 : vector<8x128xf32>
    %1047 = arith.index_cast %1005 : i32 to index
    %c0_248 = arith.constant 0 : index
    %1048 = vector.load %arg10[%1047, %c0_248] : memref<256x128xf32, #tpu.memory_space<vmem>>, vector<8x128xf32>
    tpu.vector_store %arg10[%1047, %c0_248], %1046 {strides = array<i32>} : memref<256x128xf32, #tpu.memory_space<vmem>>, vector<8x128xf32>,
    %c23_i32 = arith.constant 23 : i32
    %c8_i32_249 = arith.constant 8 : i32
    %1049 = arith.muli %c23_i32, %c8_i32_249 : i32
    %1050 = tpu.assume_multiple %1049, 8 : i32
    %1051 = arith.index_cast %1050 : i32 to index
    %c0_250 = arith.constant 0 : index
    %1052 = vector.load %arg11[%1051, %c0_250] : memref<256x128xf32, #tpu.memory_space<vmem>>, vector<8x128xf32>
    %1053 = arith.truncf %1028 : vector<8x32xf32> to vector<8x32xbf16>
    %cst_251 = arith.constant dense<0.000000e+00> : vector<8x128xf32>
    %1054 = tpu.matmul %1053, %7, %cst_251 {dimension_numbers = #tpu.dot_dimension_numbers<[1], [0], [0], [1], [0, 0, 1, 1], [], []>} : vector<8x32xbf16>, vector<32x128xbf16>, vector<8x128xf32> -> vector<8x128xf32>
    %1055 = arith.addf %1052, %1054 : vector<8x128xf32>
    %1056 = vector.extract_strided_slice %1055 {offsets = [0, 0], sizes = [8, 96], strides = [1, 1]} : vector<8x128xf32> to vector<8x96xf32>
    %cst_252 = arith.constant 5.000000e-01 : f32
    %1057 = vector.broadcast %cst_252 : f32 to vector<8x96xf32>
    %1058 = arith.mulf %1057, %1056 : vector<8x96xf32>
    %1059 = math.tanh %1058 : vector<8x96xf32>
    %cst_253 = arith.constant 5.000000e-01 : f32
    %1060 = vector.broadcast %cst_253 : f32 to vector<8x96xf32>
    %1061 = arith.mulf %1060, %1059 : vector<8x96xf32>
    %cst_254 = arith.constant 5.000000e-01 : f32
    %1062 = vector.broadcast %cst_254 : f32 to vector<8x96xf32>
    %1063 = arith.addf %1061, %1062 : vector<8x96xf32>
    %1064 = vector.extract_strided_slice %1055 {offsets = [0, 96], sizes = [8, 32], strides = [1, 1]} : vector<8x128xf32> to vector<8x32xf32>
    %1065 = math.tanh %1064 : vector<8x32xf32>
    %1066 = vector.extract_strided_slice %1063 {offsets = [0, 0], sizes = [8, 32], strides = [1, 1]} : vector<8x96xf32> to vector<8x32xf32>
    %1067 = vector.extract_strided_slice %1063 {offsets = [0, 32], sizes = [8, 32], strides = [1, 1]} : vector<8x96xf32> to vector<8x32xf32>
    %1068 = vector.extract_strided_slice %1063 {offsets = [0, 64], sizes = [8, 32], strides = [1, 1]} : vector<8x96xf32> to vector<8x32xf32>
    %1069 = arith.mulf %1067, %1026 : vector<8x32xf32>
    %1070 = arith.mulf %1066, %1065 : vector<8x32xf32>
    %1071 = arith.addf %1069, %1070 : vector<8x32xf32>
    %1072 = math.tanh %1071 : vector<8x32xf32>
    %1073 = arith.mulf %1068, %1072 : vector<8x32xf32>
    %1074 = arith.index_cast %c23_i32 : i32 to index
    %1075 = memref.load %arg4[%1074] : memref<32xf32, #tpu.memory_space<smem>>
    %1076 = vector.broadcast %1075 : f32 to vector<8x32xf32>
    %1077 = arith.mulf %1073, %1076 : vector<8x32xf32>
    %1078 = arith.index_cast %c23_i32 : i32 to index
    %1079 = memref.load %arg5[%1078] : memref<32xf32, #tpu.memory_space<smem>>
    %1080 = vector.broadcast %1079 : f32 to vector<8x32xf32>
    %1081 = arith.addf %1077, %1080 : vector<8x32xf32>
    %1082 = arith.truncf %1081 : vector<8x32xf32> to vector<8x32xbf16>
    %cst_255 = arith.constant dense<0.000000e+00> : vector<8x32xf32>
    %1083 = tpu.matmul %1082, %8, %cst_255 {dimension_numbers = #tpu.dot_dimension_numbers<[1], [0], [0], [1], [0, 0, 1, 1], [], []>} : vector<8x32xbf16>, vector<32x32xbf16>, vector<8x32xf32> -> vector<8x32xf32>
    %1084 = vector.broadcast %9 : vector<1x32xf32> to vector<8x32xf32>
    %1085 = arith.addf %1083, %1084 : vector<8x32xf32>
    %cst_256 = arith.constant 0.000000e+00 : f32
    %1086 = vector.broadcast %cst_256 : f32 to vector<8x32xf32>
    %1087 = arith.maximumf %1085, %1086 : vector<8x32xf32>
    %1088 = arith.truncf %1087 : vector<8x32xf32> to vector<8x32xbf16>
    %cst_257 = arith.constant dense<0.000000e+00> : vector<8x128xf32>
    %1089 = tpu.matmul %1088, %10, %cst_257 {dimension_numbers = #tpu.dot_dimension_numbers<[1], [0], [0], [1], [0, 0, 1, 1], [], []>} : vector<8x32xbf16>, vector<32x128xbf16>, vector<8x128xf32> -> vector<8x128xf32>
    %1090 = vector.broadcast %11 : vector<1x128xf32> to vector<8x128xf32>
    %1091 = arith.addf %1089, %1090 : vector<8x128xf32>
    %1092 = arith.index_cast %1050 : i32 to index
    %c0_258 = arith.constant 0 : index
    %1093 = vector.load %arg10[%1092, %c0_258] : memref<256x128xf32, #tpu.memory_space<vmem>>, vector<8x128xf32>
    tpu.vector_store %arg10[%1092, %c0_258], %1091 {strides = array<i32>} : memref<256x128xf32, #tpu.memory_space<vmem>>, vector<8x128xf32>,
    %c24_i32 = arith.constant 24 : i32
    %c8_i32_259 = arith.constant 8 : i32
    %1094 = arith.muli %c24_i32, %c8_i32_259 : i32
    %1095 = tpu.assume_multiple %1094, 8 : i32
    %1096 = arith.index_cast %1095 : i32 to index
    %c0_260 = arith.constant 0 : index
    %1097 = vector.load %arg11[%1096, %c0_260] : memref<256x128xf32, #tpu.memory_space<vmem>>, vector<8x128xf32>
    %1098 = arith.truncf %1073 : vector<8x32xf32> to vector<8x32xbf16>
    %cst_261 = arith.constant dense<0.000000e+00> : vector<8x128xf32>
    %1099 = tpu.matmul %1098, %7, %cst_261 {dimension_numbers = #tpu.dot_dimension_numbers<[1], [0], [0], [1], [0, 0, 1, 1], [], []>} : vector<8x32xbf16>, vector<32x128xbf16>, vector<8x128xf32> -> vector<8x128xf32>
    %1100 = arith.addf %1097, %1099 : vector<8x128xf32>
    %1101 = vector.extract_strided_slice %1100 {offsets = [0, 0], sizes = [8, 96], strides = [1, 1]} : vector<8x128xf32> to vector<8x96xf32>
    %cst_262 = arith.constant 5.000000e-01 : f32
    %1102 = vector.broadcast %cst_262 : f32 to vector<8x96xf32>
    %1103 = arith.mulf %1102, %1101 : vector<8x96xf32>
    %1104 = math.tanh %1103 : vector<8x96xf32>
    %cst_263 = arith.constant 5.000000e-01 : f32
    %1105 = vector.broadcast %cst_263 : f32 to vector<8x96xf32>
    %1106 = arith.mulf %1105, %1104 : vector<8x96xf32>
    %cst_264 = arith.constant 5.000000e-01 : f32
    %1107 = vector.broadcast %cst_264 : f32 to vector<8x96xf32>
    %1108 = arith.addf %1106, %1107 : vector<8x96xf32>
    %1109 = vector.extract_strided_slice %1100 {offsets = [0, 96], sizes = [8, 32], strides = [1, 1]} : vector<8x128xf32> to vector<8x32xf32>
    %1110 = math.tanh %1109 : vector<8x32xf32>
    %1111 = vector.extract_strided_slice %1108 {offsets = [0, 0], sizes = [8, 32], strides = [1, 1]} : vector<8x96xf32> to vector<8x32xf32>
    %1112 = vector.extract_strided_slice %1108 {offsets = [0, 32], sizes = [8, 32], strides = [1, 1]} : vector<8x96xf32> to vector<8x32xf32>
    %1113 = vector.extract_strided_slice %1108 {offsets = [0, 64], sizes = [8, 32], strides = [1, 1]} : vector<8x96xf32> to vector<8x32xf32>
    %1114 = arith.mulf %1112, %1071 : vector<8x32xf32>
    %1115 = arith.mulf %1111, %1110 : vector<8x32xf32>
    %1116 = arith.addf %1114, %1115 : vector<8x32xf32>
    %1117 = math.tanh %1116 : vector<8x32xf32>
    %1118 = arith.mulf %1113, %1117 : vector<8x32xf32>
    %1119 = arith.index_cast %c24_i32 : i32 to index
    %1120 = memref.load %arg4[%1119] : memref<32xf32, #tpu.memory_space<smem>>
    %1121 = vector.broadcast %1120 : f32 to vector<8x32xf32>
    %1122 = arith.mulf %1118, %1121 : vector<8x32xf32>
    %1123 = arith.index_cast %c24_i32 : i32 to index
    %1124 = memref.load %arg5[%1123] : memref<32xf32, #tpu.memory_space<smem>>
    %1125 = vector.broadcast %1124 : f32 to vector<8x32xf32>
    %1126 = arith.addf %1122, %1125 : vector<8x32xf32>
    %1127 = arith.truncf %1126 : vector<8x32xf32> to vector<8x32xbf16>
    %cst_265 = arith.constant dense<0.000000e+00> : vector<8x32xf32>
    %1128 = tpu.matmul %1127, %8, %cst_265 {dimension_numbers = #tpu.dot_dimension_numbers<[1], [0], [0], [1], [0, 0, 1, 1], [], []>} : vector<8x32xbf16>, vector<32x32xbf16>, vector<8x32xf32> -> vector<8x32xf32>
    %1129 = vector.broadcast %9 : vector<1x32xf32> to vector<8x32xf32>
    %1130 = arith.addf %1128, %1129 : vector<8x32xf32>
    %cst_266 = arith.constant 0.000000e+00 : f32
    %1131 = vector.broadcast %cst_266 : f32 to vector<8x32xf32>
    %1132 = arith.maximumf %1130, %1131 : vector<8x32xf32>
    %1133 = arith.truncf %1132 : vector<8x32xf32> to vector<8x32xbf16>
    %cst_267 = arith.constant dense<0.000000e+00> : vector<8x128xf32>
    %1134 = tpu.matmul %1133, %10, %cst_267 {dimension_numbers = #tpu.dot_dimension_numbers<[1], [0], [0], [1], [0, 0, 1, 1], [], []>} : vector<8x32xbf16>, vector<32x128xbf16>, vector<8x128xf32> -> vector<8x128xf32>
    %1135 = vector.broadcast %11 : vector<1x128xf32> to vector<8x128xf32>
    %1136 = arith.addf %1134, %1135 : vector<8x128xf32>
    %1137 = arith.index_cast %1095 : i32 to index
    %c0_268 = arith.constant 0 : index
    %1138 = vector.load %arg10[%1137, %c0_268] : memref<256x128xf32, #tpu.memory_space<vmem>>, vector<8x128xf32>
    tpu.vector_store %arg10[%1137, %c0_268], %1136 {strides = array<i32>} : memref<256x128xf32, #tpu.memory_space<vmem>>, vector<8x128xf32>,
    %c25_i32 = arith.constant 25 : i32
    %c8_i32_269 = arith.constant 8 : i32
    %1139 = arith.muli %c25_i32, %c8_i32_269 : i32
    %1140 = tpu.assume_multiple %1139, 8 : i32
    %1141 = arith.index_cast %1140 : i32 to index
    %c0_270 = arith.constant 0 : index
    %1142 = vector.load %arg11[%1141, %c0_270] : memref<256x128xf32, #tpu.memory_space<vmem>>, vector<8x128xf32>
    %1143 = arith.truncf %1118 : vector<8x32xf32> to vector<8x32xbf16>
    %cst_271 = arith.constant dense<0.000000e+00> : vector<8x128xf32>
    %1144 = tpu.matmul %1143, %7, %cst_271 {dimension_numbers = #tpu.dot_dimension_numbers<[1], [0], [0], [1], [0, 0, 1, 1], [], []>} : vector<8x32xbf16>, vector<32x128xbf16>, vector<8x128xf32> -> vector<8x128xf32>
    %1145 = arith.addf %1142, %1144 : vector<8x128xf32>
    %1146 = vector.extract_strided_slice %1145 {offsets = [0, 0], sizes = [8, 96], strides = [1, 1]} : vector<8x128xf32> to vector<8x96xf32>
    %cst_272 = arith.constant 5.000000e-01 : f32
    %1147 = vector.broadcast %cst_272 : f32 to vector<8x96xf32>
    %1148 = arith.mulf %1147, %1146 : vector<8x96xf32>
    %1149 = math.tanh %1148 : vector<8x96xf32>
    %cst_273 = arith.constant 5.000000e-01 : f32
    %1150 = vector.broadcast %cst_273 : f32 to vector<8x96xf32>
    %1151 = arith.mulf %1150, %1149 : vector<8x96xf32>
    %cst_274 = arith.constant 5.000000e-01 : f32
    %1152 = vector.broadcast %cst_274 : f32 to vector<8x96xf32>
    %1153 = arith.addf %1151, %1152 : vector<8x96xf32>
    %1154 = vector.extract_strided_slice %1145 {offsets = [0, 96], sizes = [8, 32], strides = [1, 1]} : vector<8x128xf32> to vector<8x32xf32>
    %1155 = math.tanh %1154 : vector<8x32xf32>
    %1156 = vector.extract_strided_slice %1153 {offsets = [0, 0], sizes = [8, 32], strides = [1, 1]} : vector<8x96xf32> to vector<8x32xf32>
    %1157 = vector.extract_strided_slice %1153 {offsets = [0, 32], sizes = [8, 32], strides = [1, 1]} : vector<8x96xf32> to vector<8x32xf32>
    %1158 = vector.extract_strided_slice %1153 {offsets = [0, 64], sizes = [8, 32], strides = [1, 1]} : vector<8x96xf32> to vector<8x32xf32>
    %1159 = arith.mulf %1157, %1116 : vector<8x32xf32>
    %1160 = arith.mulf %1156, %1155 : vector<8x32xf32>
    %1161 = arith.addf %1159, %1160 : vector<8x32xf32>
    %1162 = math.tanh %1161 : vector<8x32xf32>
    %1163 = arith.mulf %1158, %1162 : vector<8x32xf32>
    %1164 = arith.index_cast %c25_i32 : i32 to index
    %1165 = memref.load %arg4[%1164] : memref<32xf32, #tpu.memory_space<smem>>
    %1166 = vector.broadcast %1165 : f32 to vector<8x32xf32>
    %1167 = arith.mulf %1163, %1166 : vector<8x32xf32>
    %1168 = arith.index_cast %c25_i32 : i32 to index
    %1169 = memref.load %arg5[%1168] : memref<32xf32, #tpu.memory_space<smem>>
    %1170 = vector.broadcast %1169 : f32 to vector<8x32xf32>
    %1171 = arith.addf %1167, %1170 : vector<8x32xf32>
    %1172 = arith.truncf %1171 : vector<8x32xf32> to vector<8x32xbf16>
    %cst_275 = arith.constant dense<0.000000e+00> : vector<8x32xf32>
    %1173 = tpu.matmul %1172, %8, %cst_275 {dimension_numbers = #tpu.dot_dimension_numbers<[1], [0], [0], [1], [0, 0, 1, 1], [], []>} : vector<8x32xbf16>, vector<32x32xbf16>, vector<8x32xf32> -> vector<8x32xf32>
    %1174 = vector.broadcast %9 : vector<1x32xf32> to vector<8x32xf32>
    %1175 = arith.addf %1173, %1174 : vector<8x32xf32>
    %cst_276 = arith.constant 0.000000e+00 : f32
    %1176 = vector.broadcast %cst_276 : f32 to vector<8x32xf32>
    %1177 = arith.maximumf %1175, %1176 : vector<8x32xf32>
    %1178 = arith.truncf %1177 : vector<8x32xf32> to vector<8x32xbf16>
    %cst_277 = arith.constant dense<0.000000e+00> : vector<8x128xf32>
    %1179 = tpu.matmul %1178, %10, %cst_277 {dimension_numbers = #tpu.dot_dimension_numbers<[1], [0], [0], [1], [0, 0, 1, 1], [], []>} : vector<8x32xbf16>, vector<32x128xbf16>, vector<8x128xf32> -> vector<8x128xf32>
    %1180 = vector.broadcast %11 : vector<1x128xf32> to vector<8x128xf32>
    %1181 = arith.addf %1179, %1180 : vector<8x128xf32>
    %1182 = arith.index_cast %1140 : i32 to index
    %c0_278 = arith.constant 0 : index
    %1183 = vector.load %arg10[%1182, %c0_278] : memref<256x128xf32, #tpu.memory_space<vmem>>, vector<8x128xf32>
    tpu.vector_store %arg10[%1182, %c0_278], %1181 {strides = array<i32>} : memref<256x128xf32, #tpu.memory_space<vmem>>, vector<8x128xf32>,
    %c26_i32 = arith.constant 26 : i32
    %c8_i32_279 = arith.constant 8 : i32
    %1184 = arith.muli %c26_i32, %c8_i32_279 : i32
    %1185 = tpu.assume_multiple %1184, 8 : i32
    %1186 = arith.index_cast %1185 : i32 to index
    %c0_280 = arith.constant 0 : index
    %1187 = vector.load %arg11[%1186, %c0_280] : memref<256x128xf32, #tpu.memory_space<vmem>>, vector<8x128xf32>
    %1188 = arith.truncf %1163 : vector<8x32xf32> to vector<8x32xbf16>
    %cst_281 = arith.constant dense<0.000000e+00> : vector<8x128xf32>
    %1189 = tpu.matmul %1188, %7, %cst_281 {dimension_numbers = #tpu.dot_dimension_numbers<[1], [0], [0], [1], [0, 0, 1, 1], [], []>} : vector<8x32xbf16>, vector<32x128xbf16>, vector<8x128xf32> -> vector<8x128xf32>
    %1190 = arith.addf %1187, %1189 : vector<8x128xf32>
    %1191 = vector.extract_strided_slice %1190 {offsets = [0, 0], sizes = [8, 96], strides = [1, 1]} : vector<8x128xf32> to vector<8x96xf32>
    %cst_282 = arith.constant 5.000000e-01 : f32
    %1192 = vector.broadcast %cst_282 : f32 to vector<8x96xf32>
    %1193 = arith.mulf %1192, %1191 : vector<8x96xf32>
    %1194 = math.tanh %1193 : vector<8x96xf32>
    %cst_283 = arith.constant 5.000000e-01 : f32
    %1195 = vector.broadcast %cst_283 : f32 to vector<8x96xf32>
    %1196 = arith.mulf %1195, %1194 : vector<8x96xf32>
    %cst_284 = arith.constant 5.000000e-01 : f32
    %1197 = vector.broadcast %cst_284 : f32 to vector<8x96xf32>
    %1198 = arith.addf %1196, %1197 : vector<8x96xf32>
    %1199 = vector.extract_strided_slice %1190 {offsets = [0, 96], sizes = [8, 32], strides = [1, 1]} : vector<8x128xf32> to vector<8x32xf32>
    %1200 = math.tanh %1199 : vector<8x32xf32>
    %1201 = vector.extract_strided_slice %1198 {offsets = [0, 0], sizes = [8, 32], strides = [1, 1]} : vector<8x96xf32> to vector<8x32xf32>
    %1202 = vector.extract_strided_slice %1198 {offsets = [0, 32], sizes = [8, 32], strides = [1, 1]} : vector<8x96xf32> to vector<8x32xf32>
    %1203 = vector.extract_strided_slice %1198 {offsets = [0, 64], sizes = [8, 32], strides = [1, 1]} : vector<8x96xf32> to vector<8x32xf32>
    %1204 = arith.mulf %1202, %1161 : vector<8x32xf32>
    %1205 = arith.mulf %1201, %1200 : vector<8x32xf32>
    %1206 = arith.addf %1204, %1205 : vector<8x32xf32>
    %1207 = math.tanh %1206 : vector<8x32xf32>
    %1208 = arith.mulf %1203, %1207 : vector<8x32xf32>
    %1209 = arith.index_cast %c26_i32 : i32 to index
    %1210 = memref.load %arg4[%1209] : memref<32xf32, #tpu.memory_space<smem>>
    %1211 = vector.broadcast %1210 : f32 to vector<8x32xf32>
    %1212 = arith.mulf %1208, %1211 : vector<8x32xf32>
    %1213 = arith.index_cast %c26_i32 : i32 to index
    %1214 = memref.load %arg5[%1213] : memref<32xf32, #tpu.memory_space<smem>>
    %1215 = vector.broadcast %1214 : f32 to vector<8x32xf32>
    %1216 = arith.addf %1212, %1215 : vector<8x32xf32>
    %1217 = arith.truncf %1216 : vector<8x32xf32> to vector<8x32xbf16>
    %cst_285 = arith.constant dense<0.000000e+00> : vector<8x32xf32>
    %1218 = tpu.matmul %1217, %8, %cst_285 {dimension_numbers = #tpu.dot_dimension_numbers<[1], [0], [0], [1], [0, 0, 1, 1], [], []>} : vector<8x32xbf16>, vector<32x32xbf16>, vector<8x32xf32> -> vector<8x32xf32>
    %1219 = vector.broadcast %9 : vector<1x32xf32> to vector<8x32xf32>
    %1220 = arith.addf %1218, %1219 : vector<8x32xf32>
    %cst_286 = arith.constant 0.000000e+00 : f32
    %1221 = vector.broadcast %cst_286 : f32 to vector<8x32xf32>
    %1222 = arith.maximumf %1220, %1221 : vector<8x32xf32>
    %1223 = arith.truncf %1222 : vector<8x32xf32> to vector<8x32xbf16>
    %cst_287 = arith.constant dense<0.000000e+00> : vector<8x128xf32>
    %1224 = tpu.matmul %1223, %10, %cst_287 {dimension_numbers = #tpu.dot_dimension_numbers<[1], [0], [0], [1], [0, 0, 1, 1], [], []>} : vector<8x32xbf16>, vector<32x128xbf16>, vector<8x128xf32> -> vector<8x128xf32>
    %1225 = vector.broadcast %11 : vector<1x128xf32> to vector<8x128xf32>
    %1226 = arith.addf %1224, %1225 : vector<8x128xf32>
    %1227 = arith.index_cast %1185 : i32 to index
    %c0_288 = arith.constant 0 : index
    %1228 = vector.load %arg10[%1227, %c0_288] : memref<256x128xf32, #tpu.memory_space<vmem>>, vector<8x128xf32>
    tpu.vector_store %arg10[%1227, %c0_288], %1226 {strides = array<i32>} : memref<256x128xf32, #tpu.memory_space<vmem>>, vector<8x128xf32>,
    %c27_i32 = arith.constant 27 : i32
    %c8_i32_289 = arith.constant 8 : i32
    %1229 = arith.muli %c27_i32, %c8_i32_289 : i32
    %1230 = tpu.assume_multiple %1229, 8 : i32
    %1231 = arith.index_cast %1230 : i32 to index
    %c0_290 = arith.constant 0 : index
    %1232 = vector.load %arg11[%1231, %c0_290] : memref<256x128xf32, #tpu.memory_space<vmem>>, vector<8x128xf32>
    %1233 = arith.truncf %1208 : vector<8x32xf32> to vector<8x32xbf16>
    %cst_291 = arith.constant dense<0.000000e+00> : vector<8x128xf32>
    %1234 = tpu.matmul %1233, %7, %cst_291 {dimension_numbers = #tpu.dot_dimension_numbers<[1], [0], [0], [1], [0, 0, 1, 1], [], []>} : vector<8x32xbf16>, vector<32x128xbf16>, vector<8x128xf32> -> vector<8x128xf32>
    %1235 = arith.addf %1232, %1234 : vector<8x128xf32>
    %1236 = vector.extract_strided_slice %1235 {offsets = [0, 0], sizes = [8, 96], strides = [1, 1]} : vector<8x128xf32> to vector<8x96xf32>
    %cst_292 = arith.constant 5.000000e-01 : f32
    %1237 = vector.broadcast %cst_292 : f32 to vector<8x96xf32>
    %1238 = arith.mulf %1237, %1236 : vector<8x96xf32>
    %1239 = math.tanh %1238 : vector<8x96xf32>
    %cst_293 = arith.constant 5.000000e-01 : f32
    %1240 = vector.broadcast %cst_293 : f32 to vector<8x96xf32>
    %1241 = arith.mulf %1240, %1239 : vector<8x96xf32>
    %cst_294 = arith.constant 5.000000e-01 : f32
    %1242 = vector.broadcast %cst_294 : f32 to vector<8x96xf32>
    %1243 = arith.addf %1241, %1242 : vector<8x96xf32>
    %1244 = vector.extract_strided_slice %1235 {offsets = [0, 96], sizes = [8, 32], strides = [1, 1]} : vector<8x128xf32> to vector<8x32xf32>
    %1245 = math.tanh %1244 : vector<8x32xf32>
    %1246 = vector.extract_strided_slice %1243 {offsets = [0, 0], sizes = [8, 32], strides = [1, 1]} : vector<8x96xf32> to vector<8x32xf32>
    %1247 = vector.extract_strided_slice %1243 {offsets = [0, 32], sizes = [8, 32], strides = [1, 1]} : vector<8x96xf32> to vector<8x32xf32>
    %1248 = vector.extract_strided_slice %1243 {offsets = [0, 64], sizes = [8, 32], strides = [1, 1]} : vector<8x96xf32> to vector<8x32xf32>
    %1249 = arith.mulf %1247, %1206 : vector<8x32xf32>
    %1250 = arith.mulf %1246, %1245 : vector<8x32xf32>
    %1251 = arith.addf %1249, %1250 : vector<8x32xf32>
    %1252 = math.tanh %1251 : vector<8x32xf32>
    %1253 = arith.mulf %1248, %1252 : vector<8x32xf32>
    %1254 = arith.index_cast %c27_i32 : i32 to index
    %1255 = memref.load %arg4[%1254] : memref<32xf32, #tpu.memory_space<smem>>
    %1256 = vector.broadcast %1255 : f32 to vector<8x32xf32>
    %1257 = arith.mulf %1253, %1256 : vector<8x32xf32>
    %1258 = arith.index_cast %c27_i32 : i32 to index
    %1259 = memref.load %arg5[%1258] : memref<32xf32, #tpu.memory_space<smem>>
    %1260 = vector.broadcast %1259 : f32 to vector<8x32xf32>
    %1261 = arith.addf %1257, %1260 : vector<8x32xf32>
    %1262 = arith.truncf %1261 : vector<8x32xf32> to vector<8x32xbf16>
    %cst_295 = arith.constant dense<0.000000e+00> : vector<8x32xf32>
    %1263 = tpu.matmul %1262, %8, %cst_295 {dimension_numbers = #tpu.dot_dimension_numbers<[1], [0], [0], [1], [0, 0, 1, 1], [], []>} : vector<8x32xbf16>, vector<32x32xbf16>, vector<8x32xf32> -> vector<8x32xf32>
    %1264 = vector.broadcast %9 : vector<1x32xf32> to vector<8x32xf32>
    %1265 = arith.addf %1263, %1264 : vector<8x32xf32>
    %cst_296 = arith.constant 0.000000e+00 : f32
    %1266 = vector.broadcast %cst_296 : f32 to vector<8x32xf32>
    %1267 = arith.maximumf %1265, %1266 : vector<8x32xf32>
    %1268 = arith.truncf %1267 : vector<8x32xf32> to vector<8x32xbf16>
    %cst_297 = arith.constant dense<0.000000e+00> : vector<8x128xf32>
    %1269 = tpu.matmul %1268, %10, %cst_297 {dimension_numbers = #tpu.dot_dimension_numbers<[1], [0], [0], [1], [0, 0, 1, 1], [], []>} : vector<8x32xbf16>, vector<32x128xbf16>, vector<8x128xf32> -> vector<8x128xf32>
    %1270 = vector.broadcast %11 : vector<1x128xf32> to vector<8x128xf32>
    %1271 = arith.addf %1269, %1270 : vector<8x128xf32>
    %1272 = arith.index_cast %1230 : i32 to index
    %c0_298 = arith.constant 0 : index
    %1273 = vector.load %arg10[%1272, %c0_298] : memref<256x128xf32, #tpu.memory_space<vmem>>, vector<8x128xf32>
    tpu.vector_store %arg10[%1272, %c0_298], %1271 {strides = array<i32>} : memref<256x128xf32, #tpu.memory_space<vmem>>, vector<8x128xf32>,
    %c28_i32 = arith.constant 28 : i32
    %c8_i32_299 = arith.constant 8 : i32
    %1274 = arith.muli %c28_i32, %c8_i32_299 : i32
    %1275 = tpu.assume_multiple %1274, 8 : i32
    %1276 = arith.index_cast %1275 : i32 to index
    %c0_300 = arith.constant 0 : index
    %1277 = vector.load %arg11[%1276, %c0_300] : memref<256x128xf32, #tpu.memory_space<vmem>>, vector<8x128xf32>
    %1278 = arith.truncf %1253 : vector<8x32xf32> to vector<8x32xbf16>
    %cst_301 = arith.constant dense<0.000000e+00> : vector<8x128xf32>
    %1279 = tpu.matmul %1278, %7, %cst_301 {dimension_numbers = #tpu.dot_dimension_numbers<[1], [0], [0], [1], [0, 0, 1, 1], [], []>} : vector<8x32xbf16>, vector<32x128xbf16>, vector<8x128xf32> -> vector<8x128xf32>
    %1280 = arith.addf %1277, %1279 : vector<8x128xf32>
    %1281 = vector.extract_strided_slice %1280 {offsets = [0, 0], sizes = [8, 96], strides = [1, 1]} : vector<8x128xf32> to vector<8x96xf32>
    %cst_302 = arith.constant 5.000000e-01 : f32
    %1282 = vector.broadcast %cst_302 : f32 to vector<8x96xf32>
    %1283 = arith.mulf %1282, %1281 : vector<8x96xf32>
    %1284 = math.tanh %1283 : vector<8x96xf32>
    %cst_303 = arith.constant 5.000000e-01 : f32
    %1285 = vector.broadcast %cst_303 : f32 to vector<8x96xf32>
    %1286 = arith.mulf %1285, %1284 : vector<8x96xf32>
    %cst_304 = arith.constant 5.000000e-01 : f32
    %1287 = vector.broadcast %cst_304 : f32 to vector<8x96xf32>
    %1288 = arith.addf %1286, %1287 : vector<8x96xf32>
    %1289 = vector.extract_strided_slice %1280 {offsets = [0, 96], sizes = [8, 32], strides = [1, 1]} : vector<8x128xf32> to vector<8x32xf32>
    %1290 = math.tanh %1289 : vector<8x32xf32>
    %1291 = vector.extract_strided_slice %1288 {offsets = [0, 0], sizes = [8, 32], strides = [1, 1]} : vector<8x96xf32> to vector<8x32xf32>
    %1292 = vector.extract_strided_slice %1288 {offsets = [0, 32], sizes = [8, 32], strides = [1, 1]} : vector<8x96xf32> to vector<8x32xf32>
    %1293 = vector.extract_strided_slice %1288 {offsets = [0, 64], sizes = [8, 32], strides = [1, 1]} : vector<8x96xf32> to vector<8x32xf32>
    %1294 = arith.mulf %1292, %1251 : vector<8x32xf32>
    %1295 = arith.mulf %1291, %1290 : vector<8x32xf32>
    %1296 = arith.addf %1294, %1295 : vector<8x32xf32>
    %1297 = math.tanh %1296 : vector<8x32xf32>
    %1298 = arith.mulf %1293, %1297 : vector<8x32xf32>
    %1299 = arith.index_cast %c28_i32 : i32 to index
    %1300 = memref.load %arg4[%1299] : memref<32xf32, #tpu.memory_space<smem>>
    %1301 = vector.broadcast %1300 : f32 to vector<8x32xf32>
    %1302 = arith.mulf %1298, %1301 : vector<8x32xf32>
    %1303 = arith.index_cast %c28_i32 : i32 to index
    %1304 = memref.load %arg5[%1303] : memref<32xf32, #tpu.memory_space<smem>>
    %1305 = vector.broadcast %1304 : f32 to vector<8x32xf32>
    %1306 = arith.addf %1302, %1305 : vector<8x32xf32>
    %1307 = arith.truncf %1306 : vector<8x32xf32> to vector<8x32xbf16>
    %cst_305 = arith.constant dense<0.000000e+00> : vector<8x32xf32>
    %1308 = tpu.matmul %1307, %8, %cst_305 {dimension_numbers = #tpu.dot_dimension_numbers<[1], [0], [0], [1], [0, 0, 1, 1], [], []>} : vector<8x32xbf16>, vector<32x32xbf16>, vector<8x32xf32> -> vector<8x32xf32>
    %1309 = vector.broadcast %9 : vector<1x32xf32> to vector<8x32xf32>
    %1310 = arith.addf %1308, %1309 : vector<8x32xf32>
    %cst_306 = arith.constant 0.000000e+00 : f32
    %1311 = vector.broadcast %cst_306 : f32 to vector<8x32xf32>
    %1312 = arith.maximumf %1310, %1311 : vector<8x32xf32>
    %1313 = arith.truncf %1312 : vector<8x32xf32> to vector<8x32xbf16>
    %cst_307 = arith.constant dense<0.000000e+00> : vector<8x128xf32>
    %1314 = tpu.matmul %1313, %10, %cst_307 {dimension_numbers = #tpu.dot_dimension_numbers<[1], [0], [0], [1], [0, 0, 1, 1], [], []>} : vector<8x32xbf16>, vector<32x128xbf16>, vector<8x128xf32> -> vector<8x128xf32>
    %1315 = vector.broadcast %11 : vector<1x128xf32> to vector<8x128xf32>
    %1316 = arith.addf %1314, %1315 : vector<8x128xf32>
    %1317 = arith.index_cast %1275 : i32 to index
    %c0_308 = arith.constant 0 : index
    %1318 = vector.load %arg10[%1317, %c0_308] : memref<256x128xf32, #tpu.memory_space<vmem>>, vector<8x128xf32>
    tpu.vector_store %arg10[%1317, %c0_308], %1316 {strides = array<i32>} : memref<256x128xf32, #tpu.memory_space<vmem>>, vector<8x128xf32>,
    %c29_i32 = arith.constant 29 : i32
    %c8_i32_309 = arith.constant 8 : i32
    %1319 = arith.muli %c29_i32, %c8_i32_309 : i32
    %1320 = tpu.assume_multiple %1319, 8 : i32
    %1321 = arith.index_cast %1320 : i32 to index
    %c0_310 = arith.constant 0 : index
    %1322 = vector.load %arg11[%1321, %c0_310] : memref<256x128xf32, #tpu.memory_space<vmem>>, vector<8x128xf32>
    %1323 = arith.truncf %1298 : vector<8x32xf32> to vector<8x32xbf16>
    %cst_311 = arith.constant dense<0.000000e+00> : vector<8x128xf32>
    %1324 = tpu.matmul %1323, %7, %cst_311 {dimension_numbers = #tpu.dot_dimension_numbers<[1], [0], [0], [1], [0, 0, 1, 1], [], []>} : vector<8x32xbf16>, vector<32x128xbf16>, vector<8x128xf32> -> vector<8x128xf32>
    %1325 = arith.addf %1322, %1324 : vector<8x128xf32>
    %1326 = vector.extract_strided_slice %1325 {offsets = [0, 0], sizes = [8, 96], strides = [1, 1]} : vector<8x128xf32> to vector<8x96xf32>
    %cst_312 = arith.constant 5.000000e-01 : f32
    %1327 = vector.broadcast %cst_312 : f32 to vector<8x96xf32>
    %1328 = arith.mulf %1327, %1326 : vector<8x96xf32>
    %1329 = math.tanh %1328 : vector<8x96xf32>
    %cst_313 = arith.constant 5.000000e-01 : f32
    %1330 = vector.broadcast %cst_313 : f32 to vector<8x96xf32>
    %1331 = arith.mulf %1330, %1329 : vector<8x96xf32>
    %cst_314 = arith.constant 5.000000e-01 : f32
    %1332 = vector.broadcast %cst_314 : f32 to vector<8x96xf32>
    %1333 = arith.addf %1331, %1332 : vector<8x96xf32>
    %1334 = vector.extract_strided_slice %1325 {offsets = [0, 96], sizes = [8, 32], strides = [1, 1]} : vector<8x128xf32> to vector<8x32xf32>
    %1335 = math.tanh %1334 : vector<8x32xf32>
    %1336 = vector.extract_strided_slice %1333 {offsets = [0, 0], sizes = [8, 32], strides = [1, 1]} : vector<8x96xf32> to vector<8x32xf32>
    %1337 = vector.extract_strided_slice %1333 {offsets = [0, 32], sizes = [8, 32], strides = [1, 1]} : vector<8x96xf32> to vector<8x32xf32>
    %1338 = vector.extract_strided_slice %1333 {offsets = [0, 64], sizes = [8, 32], strides = [1, 1]} : vector<8x96xf32> to vector<8x32xf32>
    %1339 = arith.mulf %1337, %1296 : vector<8x32xf32>
    %1340 = arith.mulf %1336, %1335 : vector<8x32xf32>
    %1341 = arith.addf %1339, %1340 : vector<8x32xf32>
    %1342 = math.tanh %1341 : vector<8x32xf32>
    %1343 = arith.mulf %1338, %1342 : vector<8x32xf32>
    %1344 = arith.index_cast %c29_i32 : i32 to index
    %1345 = memref.load %arg4[%1344] : memref<32xf32, #tpu.memory_space<smem>>
    %1346 = vector.broadcast %1345 : f32 to vector<8x32xf32>
    %1347 = arith.mulf %1343, %1346 : vector<8x32xf32>
    %1348 = arith.index_cast %c29_i32 : i32 to index
    %1349 = memref.load %arg5[%1348] : memref<32xf32, #tpu.memory_space<smem>>
    %1350 = vector.broadcast %1349 : f32 to vector<8x32xf32>
    %1351 = arith.addf %1347, %1350 : vector<8x32xf32>
    %1352 = arith.truncf %1351 : vector<8x32xf32> to vector<8x32xbf16>
    %cst_315 = arith.constant dense<0.000000e+00> : vector<8x32xf32>
    %1353 = tpu.matmul %1352, %8, %cst_315 {dimension_numbers = #tpu.dot_dimension_numbers<[1], [0], [0], [1], [0, 0, 1, 1], [], []>} : vector<8x32xbf16>, vector<32x32xbf16>, vector<8x32xf32> -> vector<8x32xf32>
    %1354 = vector.broadcast %9 : vector<1x32xf32> to vector<8x32xf32>
    %1355 = arith.addf %1353, %1354 : vector<8x32xf32>
    %cst_316 = arith.constant 0.000000e+00 : f32
    %1356 = vector.broadcast %cst_316 : f32 to vector<8x32xf32>
    %1357 = arith.maximumf %1355, %1356 : vector<8x32xf32>
    %1358 = arith.truncf %1357 : vector<8x32xf32> to vector<8x32xbf16>
    %cst_317 = arith.constant dense<0.000000e+00> : vector<8x128xf32>
    %1359 = tpu.matmul %1358, %10, %cst_317 {dimension_numbers = #tpu.dot_dimension_numbers<[1], [0], [0], [1], [0, 0, 1, 1], [], []>} : vector<8x32xbf16>, vector<32x128xbf16>, vector<8x128xf32> -> vector<8x128xf32>
    %1360 = vector.broadcast %11 : vector<1x128xf32> to vector<8x128xf32>
    %1361 = arith.addf %1359, %1360 : vector<8x128xf32>
    %1362 = arith.index_cast %1320 : i32 to index
    %c0_318 = arith.constant 0 : index
    %1363 = vector.load %arg10[%1362, %c0_318] : memref<256x128xf32, #tpu.memory_space<vmem>>, vector<8x128xf32>
    tpu.vector_store %arg10[%1362, %c0_318], %1361 {strides = array<i32>} : memref<256x128xf32, #tpu.memory_space<vmem>>, vector<8x128xf32>,
    %c30_i32 = arith.constant 30 : i32
    %c8_i32_319 = arith.constant 8 : i32
    %1364 = arith.muli %c30_i32, %c8_i32_319 : i32
    %1365 = tpu.assume_multiple %1364, 8 : i32
    %1366 = arith.index_cast %1365 : i32 to index
    %c0_320 = arith.constant 0 : index
    %1367 = vector.load %arg11[%1366, %c0_320] : memref<256x128xf32, #tpu.memory_space<vmem>>, vector<8x128xf32>
    %1368 = arith.truncf %1343 : vector<8x32xf32> to vector<8x32xbf16>
    %cst_321 = arith.constant dense<0.000000e+00> : vector<8x128xf32>
    %1369 = tpu.matmul %1368, %7, %cst_321 {dimension_numbers = #tpu.dot_dimension_numbers<[1], [0], [0], [1], [0, 0, 1, 1], [], []>} : vector<8x32xbf16>, vector<32x128xbf16>, vector<8x128xf32> -> vector<8x128xf32>
    %1370 = arith.addf %1367, %1369 : vector<8x128xf32>
    %1371 = vector.extract_strided_slice %1370 {offsets = [0, 0], sizes = [8, 96], strides = [1, 1]} : vector<8x128xf32> to vector<8x96xf32>
    %cst_322 = arith.constant 5.000000e-01 : f32
    %1372 = vector.broadcast %cst_322 : f32 to vector<8x96xf32>
    %1373 = arith.mulf %1372, %1371 : vector<8x96xf32>
    %1374 = math.tanh %1373 : vector<8x96xf32>
    %cst_323 = arith.constant 5.000000e-01 : f32
    %1375 = vector.broadcast %cst_323 : f32 to vector<8x96xf32>
    %1376 = arith.mulf %1375, %1374 : vector<8x96xf32>
    %cst_324 = arith.constant 5.000000e-01 : f32
    %1377 = vector.broadcast %cst_324 : f32 to vector<8x96xf32>
    %1378 = arith.addf %1376, %1377 : vector<8x96xf32>
    %1379 = vector.extract_strided_slice %1370 {offsets = [0, 96], sizes = [8, 32], strides = [1, 1]} : vector<8x128xf32> to vector<8x32xf32>
    %1380 = math.tanh %1379 : vector<8x32xf32>
    %1381 = vector.extract_strided_slice %1378 {offsets = [0, 0], sizes = [8, 32], strides = [1, 1]} : vector<8x96xf32> to vector<8x32xf32>
    %1382 = vector.extract_strided_slice %1378 {offsets = [0, 32], sizes = [8, 32], strides = [1, 1]} : vector<8x96xf32> to vector<8x32xf32>
    %1383 = vector.extract_strided_slice %1378 {offsets = [0, 64], sizes = [8, 32], strides = [1, 1]} : vector<8x96xf32> to vector<8x32xf32>
    %1384 = arith.mulf %1382, %1341 : vector<8x32xf32>
    %1385 = arith.mulf %1381, %1380 : vector<8x32xf32>
    %1386 = arith.addf %1384, %1385 : vector<8x32xf32>
    %1387 = math.tanh %1386 : vector<8x32xf32>
    %1388 = arith.mulf %1383, %1387 : vector<8x32xf32>
    %1389 = arith.index_cast %c30_i32 : i32 to index
    %1390 = memref.load %arg4[%1389] : memref<32xf32, #tpu.memory_space<smem>>
    %1391 = vector.broadcast %1390 : f32 to vector<8x32xf32>
    %1392 = arith.mulf %1388, %1391 : vector<8x32xf32>
    %1393 = arith.index_cast %c30_i32 : i32 to index
    %1394 = memref.load %arg5[%1393] : memref<32xf32, #tpu.memory_space<smem>>
    %1395 = vector.broadcast %1394 : f32 to vector<8x32xf32>
    %1396 = arith.addf %1392, %1395 : vector<8x32xf32>
    %1397 = arith.truncf %1396 : vector<8x32xf32> to vector<8x32xbf16>
    %cst_325 = arith.constant dense<0.000000e+00> : vector<8x32xf32>
    %1398 = tpu.matmul %1397, %8, %cst_325 {dimension_numbers = #tpu.dot_dimension_numbers<[1], [0], [0], [1], [0, 0, 1, 1], [], []>} : vector<8x32xbf16>, vector<32x32xbf16>, vector<8x32xf32> -> vector<8x32xf32>
    %1399 = vector.broadcast %9 : vector<1x32xf32> to vector<8x32xf32>
    %1400 = arith.addf %1398, %1399 : vector<8x32xf32>
    %cst_326 = arith.constant 0.000000e+00 : f32
    %1401 = vector.broadcast %cst_326 : f32 to vector<8x32xf32>
    %1402 = arith.maximumf %1400, %1401 : vector<8x32xf32>
    %1403 = arith.truncf %1402 : vector<8x32xf32> to vector<8x32xbf16>
    %cst_327 = arith.constant dense<0.000000e+00> : vector<8x128xf32>
    %1404 = tpu.matmul %1403, %10, %cst_327 {dimension_numbers = #tpu.dot_dimension_numbers<[1], [0], [0], [1], [0, 0, 1, 1], [], []>} : vector<8x32xbf16>, vector<32x128xbf16>, vector<8x128xf32> -> vector<8x128xf32>
    %1405 = vector.broadcast %11 : vector<1x128xf32> to vector<8x128xf32>
    %1406 = arith.addf %1404, %1405 : vector<8x128xf32>
    %1407 = arith.index_cast %1365 : i32 to index
    %c0_328 = arith.constant 0 : index
    %1408 = vector.load %arg10[%1407, %c0_328] : memref<256x128xf32, #tpu.memory_space<vmem>>, vector<8x128xf32>
    tpu.vector_store %arg10[%1407, %c0_328], %1406 {strides = array<i32>} : memref<256x128xf32, #tpu.memory_space<vmem>>, vector<8x128xf32>,
    %c31_i32 = arith.constant 31 : i32
    %c8_i32_329 = arith.constant 8 : i32
    %1409 = arith.muli %c31_i32, %c8_i32_329 : i32
    %1410 = tpu.assume_multiple %1409, 8 : i32
    %1411 = arith.index_cast %1410 : i32 to index
    %c0_330 = arith.constant 0 : index
    %1412 = vector.load %arg11[%1411, %c0_330] : memref<256x128xf32, #tpu.memory_space<vmem>>, vector<8x128xf32>
    %1413 = arith.truncf %1388 : vector<8x32xf32> to vector<8x32xbf16>
    %cst_331 = arith.constant dense<0.000000e+00> : vector<8x128xf32>
    %1414 = tpu.matmul %1413, %7, %cst_331 {dimension_numbers = #tpu.dot_dimension_numbers<[1], [0], [0], [1], [0, 0, 1, 1], [], []>} : vector<8x32xbf16>, vector<32x128xbf16>, vector<8x128xf32> -> vector<8x128xf32>
    %1415 = arith.addf %1412, %1414 : vector<8x128xf32>
    %1416 = vector.extract_strided_slice %1415 {offsets = [0, 0], sizes = [8, 96], strides = [1, 1]} : vector<8x128xf32> to vector<8x96xf32>
    %cst_332 = arith.constant 5.000000e-01 : f32
    %1417 = vector.broadcast %cst_332 : f32 to vector<8x96xf32>
    %1418 = arith.mulf %1417, %1416 : vector<8x96xf32>
    %1419 = math.tanh %1418 : vector<8x96xf32>
    %cst_333 = arith.constant 5.000000e-01 : f32
    %1420 = vector.broadcast %cst_333 : f32 to vector<8x96xf32>
    %1421 = arith.mulf %1420, %1419 : vector<8x96xf32>
    %cst_334 = arith.constant 5.000000e-01 : f32
    %1422 = vector.broadcast %cst_334 : f32 to vector<8x96xf32>
    %1423 = arith.addf %1421, %1422 : vector<8x96xf32>
    %1424 = vector.extract_strided_slice %1415 {offsets = [0, 96], sizes = [8, 32], strides = [1, 1]} : vector<8x128xf32> to vector<8x32xf32>
    %1425 = math.tanh %1424 : vector<8x32xf32>
    %1426 = vector.extract_strided_slice %1423 {offsets = [0, 0], sizes = [8, 32], strides = [1, 1]} : vector<8x96xf32> to vector<8x32xf32>
    %1427 = vector.extract_strided_slice %1423 {offsets = [0, 32], sizes = [8, 32], strides = [1, 1]} : vector<8x96xf32> to vector<8x32xf32>
    %1428 = vector.extract_strided_slice %1423 {offsets = [0, 64], sizes = [8, 32], strides = [1, 1]} : vector<8x96xf32> to vector<8x32xf32>
    %1429 = arith.mulf %1427, %1386 : vector<8x32xf32>
    %1430 = arith.mulf %1426, %1425 : vector<8x32xf32>
    %1431 = arith.addf %1429, %1430 : vector<8x32xf32>
    %1432 = math.tanh %1431 : vector<8x32xf32>
    %1433 = arith.mulf %1428, %1432 : vector<8x32xf32>
    %1434 = arith.index_cast %c31_i32 : i32 to index
    %1435 = memref.load %arg4[%1434] : memref<32xf32, #tpu.memory_space<smem>>
    %1436 = vector.broadcast %1435 : f32 to vector<8x32xf32>
    %1437 = arith.mulf %1433, %1436 : vector<8x32xf32>
    %1438 = arith.index_cast %c31_i32 : i32 to index
    %1439 = memref.load %arg5[%1438] : memref<32xf32, #tpu.memory_space<smem>>
    %1440 = vector.broadcast %1439 : f32 to vector<8x32xf32>
    %1441 = arith.addf %1437, %1440 : vector<8x32xf32>
    %1442 = arith.truncf %1441 : vector<8x32xf32> to vector<8x32xbf16>
    %cst_335 = arith.constant dense<0.000000e+00> : vector<8x32xf32>
    %1443 = tpu.matmul %1442, %8, %cst_335 {dimension_numbers = #tpu.dot_dimension_numbers<[1], [0], [0], [1], [0, 0, 1, 1], [], []>} : vector<8x32xbf16>, vector<32x32xbf16>, vector<8x32xf32> -> vector<8x32xf32>
    %1444 = vector.broadcast %9 : vector<1x32xf32> to vector<8x32xf32>
    %1445 = arith.addf %1443, %1444 : vector<8x32xf32>
    %cst_336 = arith.constant 0.000000e+00 : f32
    %1446 = vector.broadcast %cst_336 : f32 to vector<8x32xf32>
    %1447 = arith.maximumf %1445, %1446 : vector<8x32xf32>
    %1448 = arith.truncf %1447 : vector<8x32xf32> to vector<8x32xbf16>
    %cst_337 = arith.constant dense<0.000000e+00> : vector<8x128xf32>
    %1449 = tpu.matmul %1448, %10, %cst_337 {dimension_numbers = #tpu.dot_dimension_numbers<[1], [0], [0], [1], [0, 0, 1, 1], [], []>} : vector<8x32xbf16>, vector<32x128xbf16>, vector<8x128xf32> -> vector<8x128xf32>
    %1450 = vector.broadcast %11 : vector<1x128xf32> to vector<8x128xf32>
    %1451 = arith.addf %1449, %1450 : vector<8x128xf32>
    %1452 = arith.index_cast %1410 : i32 to index
    %c0_338 = arith.constant 0 : index
    %1453 = vector.load %arg10[%1452, %c0_338] : memref<256x128xf32, #tpu.memory_space<vmem>>, vector<8x128xf32>
    tpu.vector_store %arg10[%1452, %c0_338], %1451 {strides = array<i32>} : memref<256x128xf32, #tpu.memory_space<vmem>>, vector<8x128xf32>,
    %c32_i32 = arith.constant 32 : i32
    return
  }
}

</mosaic_0001>

<bundles_post_ra>
// kernel: lstmnet_forward.1
= control target key start
LH: loop header
LB: loop body
LE: loop exit
PB: predicated region body
PF: predicated region fallthrough
CT: control target
= control target key end

     0   :  { %15 = vsyncpa [#allocation4], 0  ;;  %s9186_s0 = inlined_call_operand.vmem [shape: bf16[256,16], index: 0, kind: input, shape index: {}]   ;;  %s9187_s1 = inlined_call_operand.vmem [shape: bf16[16,128], index: 1, kind: input, shape index: {}]   ;;  %s9188_s2 = inlined_call_operand.vmem [shape: bf16[32,128], index: 2, kind: input, shape index: {}]   ;;  %s9189_s3 = inlined_call_operand.vmem [shape: f32[1,128], index: 3, kind: input, shape index: {}]   ;;  %s9190_s4 = inlined_call_operand.vmem [shape: f32[32], index: 4, kind: input, shape index: {}]   ;;  %s9191_s5 = inlined_call_operand.vmem [shape: f32[32], index: 5, kind: input, shape index: {}]   ;;  %s9192_s6 = inlined_call_operand.vmem [shape: bf16[32,32], index: 6, kind: input, shape index: {}]   ;;  %s9193_s7 = inlined_call_operand.vmem [shape: f32[1,32], index: 7, kind: input, shape index: {}]   ;;  %s9194_s8 = inlined_call_operand.vmem [shape: bf16[32,128], index: 8, kind: input, shape index: {}]   ;;  %s9195_s9 = inlined_call_operand.vmem [shape: f32[1,128], index: 9, kind: input, shape index: {}]   ;;  %s9196_s10 = inlined_call_operand.vmem [shape: f32[256,128], index: 10, kind: output, shape index: {}]  }
   0x1   :  { %s31_s15 = sshll.u32 %s9190_s4, 4  ;;  %s32_s15 = int_to_ptr.vmem [resolvable:$true] %s31_s15 }
   0x2   :  { %16 = vsyncpa [#allocation6], 0  ;;  %s41_s18 = sshll.u32 %s9191_s5, 4  ;;  %s7589_s19 = scalar_lea.vmem %s32_s15, 16  ;;  %s42_s18 = int_to_ptr.vmem [resolvable:$true] %s41_s18 }
   0x3   :  { %p7590_p0 = scmp.ne.s32.totalorder %s32_s15, %s7589_s19  ;;  %p7594_p1 = scmp.lt.s32.totalorder %s32_s15, %s32_s15 }
   0x4   :  { %p7595_p2 = scmp.lt.s32.totalorder %s7589_s19, %s7589_s19 }
   0x6   :  { %p7596_p3 = por %p7595_p2, %p7594_p1 }
   0x8   :  { %p7597_p4 = pnand %p7596_p3, %p7590_p0 }
   0xa   :  { %7600 = shalt.err (!%p7597_p4)
}
   0xb   :  { %s7617_s20 = smov [#allocation3]   ;;  %s7601_s21 = scalar_lea.vmem %s42_s18, 16 }
   0xc   :  { %34 = dma.vmem_to_smem %s32_s15, 16, %s7617_s20, [#allocation4]  }
   0xd   :  { %p7602_p5 = scmp.ne.s32.totalorder %s42_s18, %s7601_s21  ;;  %p7606_p6 = scmp.lt.s32.totalorder %s42_s18, %s42_s18 }
   0xe   :  { %p7607_p7 = scmp.lt.s32.totalorder %s7601_s21, %s7601_s21 }
  0x10   :  { %p7608_p8 = por %p7607_p7, %p7606_p6 }
  0x12   :  { %p7609_p9 = pnand %p7608_p8, %p7602_p5 }
  0x14   :  { %7612 = shalt.err (!%p7609_p9)
}
  0x15   :  { %s7618_s4 = smov [#allocation5]  }
  0x16   :  { %44 = dma.vmem_to_smem %s42_s18, 16, %s7618_s4, [#allocation6]  }
  0x17   :  { %7613 = dma.done.wait [#allocation4], 16  }
  0x18   :  { %7614 = vsyncadd [#allocation4], 4294967280 }
  0x19   :  { %7615 = dma.done.wait [#allocation6], 16  }
  0x1a   :  { %7616 = vsyncadd [#allocation6], 4294967280 }
  0x1b   :  { %59 = sfence }
  0x1c   :  { %v7341_v0 = vld [vmem:[%s9187_s1] sm:$0xff]   ;;  %v7619_v1 = vmov 0.0   ;;  %vm188_vm0 = vcmask 130048   ;;  %v7344_v4 = vld [vmem:[%s9186_s0 + $0x8] sm:$0xff]   ;;  %vm7620_vm1 = vmmov 0   ;;  %v7621_v6 = vmov 0  }
  0x1d   :  { %6566 = vmatprep.subr.bf16.mxu1 %v7619_v1  ;;  %v7692_v2 = vld [vmem:[%s9188_s2] sm:$0xff]   ;;  %6532 = vmatprep.subr.bf16.mxu0 %v7341_v0  ;;  %v7706_v5 = vld [vmem:[%s9188_s2 + $0x8] sm:$0xff]   ;;  %s7622_s12 = smov 32   ;;  %s524_s17 = sld [smem:[#allocation3]]  ;;  %vm457_vm2 = vcmask 261120  }
  0x1e   :  { %v7343_v3 = vld [vmem:[%s9186_s0] sm:$0xff]   ;;  %6567 = vmatpush3.bf16.msra.mxu1 %v7692_v2  ;;  %6533 = vmatpush3.bf16.msra.mxu0 %v7341_v0  ;;  %v7744_v30 = vld [vmem:[%s9192_s6 + $0x8] sm:$0xff]   ;;  %s527_s18 = sld [smem:[#allocation5]]  ;;  %s7623_s21 = smov 64  }
  0x1f   :  { %6534 = vmatprep.mubr.msk.bf16.mxu0 %vm188_vm0, %v7343_v3  ;;  %6568 = vmatprep.subr.bf16.mxu1 %v7619_v1  ;;  %v7719_v7 = vld [vmem:[%s9189_s3] ss:$0 sm:$0xff]  ;;  %v7765_v41 = vld [vmem:[%s9194_s8 + $0x8] sm:$0xff]   ;;  %s6042_s28 = sld [smem:[#allocation3 + $0x1]]  ;;  %s6048_s11 = sld [smem:[#allocation3 + $0x2]] }
  0x20   :  { %6570 = vmatprep.mubr.msk.bf16.mxu1 %vm7620_vm1, %v7619_v1  ;;  %6630 = vmatprep.subr.bf16.mxu0 %v7619_v1  ;;  %v7736_v28 = vld [vmem:[%s9192_s6] sm:$0xff]   ;;  %s6043_s1 = sld [smem:[#allocation5 + $0x1]]  ;;  %s6049_s13 = sld [smem:[#allocation5 + $0x2]] }
  0x21   :  { %6535 = vmatmul.mubr.msk.bf16.vlgmr.msra.gmra.mrb[0].mxu0 %vm188_vm0, %v7344_v4  ;;  %v7751_v31 = vld [vmem:[%s9194_s8] sm:$0xff]   ;;  %s6054_s5 = sld [smem:[#allocation3 + $0x3]]  ;;  %s6060_s25 = sld [smem:[#allocation3 + $0x4]] }
  0x22   :  { %6569 = vmatpush3.bf16.msra.mxu1 %v7706_v5  ;;  %6631 = vmatpush3.bf16.msra.mxu0 %v7751_v31  ;;  %v7774_v42 = vld [vmem:[%s9193_s7] ss:$0 sm:$0xff]  ;;  %s6055_s22 = sld [smem:[#allocation5 + $0x3]]  ;;  %s6061_s26 = sld [smem:[#allocation5 + $0x4]] }
  0x23   :  { %6574 = vmatprep.subr.bf16.mxu1 %v7619_v1  ;;  %6632 = vmatprep.subr.bf16.mxu0 %v7619_v1  ;;  %v525_v32 = vstv %s524_s17  ;;  %v7794_v51 = vld [vmem:[%s9195_s9] ss:$0 sm:$0xff]  ;;  %s6067_s29 = sld [smem:[#allocation5 + $0x5]]  ;;  %s6072_s15 = sld [smem:[#allocation3 + $0x6]] }
  0x24   :  { %v528_v35 = vstv %s527_s18  ;;  %s6073_s16 = sld [smem:[#allocation5 + $0x6]]  ;;  %s6084_s17 = sld [smem:[#allocation3 + $0x8]] }
  0x25   :  { %6571 = vmatmul.mubr.bf16.vlgmr.msra.gmra.mrb[0].mxu1 %v7621_v6  ;;  %s6085_s18 = sld [smem:[#allocation5 + $0x8]]  ;;  %s6091_s4 = sld [smem:[#allocation5 + $0x9]] }
  0x26   :  { %6578 = vmatprep.mubr.msk.bf16.mxu1 %vm7620_vm1, %v7619_v1  ;;  %6575 = vmatpush3.bf16.msra.mxu1 %v7736_v28  ;;  %s6096_s23 = sld [smem:[#allocation3 + $0xa]]  ;;  %s6102_s27 = sld [smem:[#allocation3 + $0xb]] }
  0x27   :  { %6576 = vmatprep.subr.bf16.mxu1 %v7619_v1  ;;  %6633 = vmatpush3.bf16.msra.mxu0 %v7765_v41  ;;  %s6097_s24 = sld [smem:[#allocation5 + $0xa]]  ;;  %s6108_s30 = sld [smem:[#allocation3 + $0xc]] }
  0x28   :  { %6646 = vmatprep.subr.bf16.mxu0 %v7619_v1  ;;  %s6151_s14 = sld [smem:[#allocation5 + $0x13]] }
  0x2a   :  { %6577 = vmatpush3.bf16.msra.mxu1 %v7744_v30 }
  0x2b   :  { %6582 = vmatprep.subr.bf16.mxu1 %v7619_v1 }
  0xf4   :  { %v7721_v8 = vpop.f32.mrb[0].mxu0 }
  0xf5   :  { %v271_v9 = vpop.f32.mrb[1].mxu0 }
  0xf6   :  { %v272_v10 = vadd.f32 %v7719_v7, %v271_v9  ;;  %v7724_v11 = vpop.f32.mrb[2].mxu0 }
  0xf7   :  { %v7726_v12 = vpop.f32.mrb[3].mxu0 }
  0xf8   :  { %v495_v13 = vpop.f32.mrb[0].mxu1  ;;  %v275_v57 = vadd.f32 %v7719_v7, %v7726_v12 }
  0xf9   :  { %v501_v14 = vadd.f32 %v495_v13, %v272_v10  ;;  %v6572_v15 = vpop.f32.mrb[1].mxu1 }
  0xfa   :  { %v498_v16 = vpop.f32.mrb[2].mxu1 }
  0xfb   :  { %7364 = vtanh.f32 %v501_v14  ;;  %v6573_v17 = vpop.f32.mrb[3].mxu1  ;;  %v502_v19 = vmul.f32 0.5, %v501_v14  ;;  %v732_v16 = vstv %s6042_s28  ;;  %s6103_s28 = sld [smem:[#allocation5 + $0xb]] }
  0xfd   :  { %7366 = vtanh.f32 %v502_v19  ;;  %v735_v19 = vstv %s6043_s1  ;;  %s6066_s1 = sld [smem:[#allocation3 + $0x5]] }
 0x105   :  { %v7365_v18 = vpop.eup %7364 }
 0x106   :  { %509 = vrot.lane.b32.xlu0 %v7365_v18, %s7622_s12 }
 0x107   :  { %v7367_v20 = vpop.eup %7366 }
 0x108   :  { %v504_v21 = vmul.f32 0.5, %v7367_v20 }
 0x10a   :  { %v505_v22 = vadd.f32 0.5, %v504_v21 }
 0x10c   :  { %v507_v25 = vmul.f32 0.0, %v505_v22 }
 0x178   :  { %v510_v23 = vpop.permute.xlu0 %509 }
 0x179   :  { %v512_v24 = vmul.f32 %v510_v23, %v505_v22 }
 0x17b   :  { %514 = vrot.lane.b32.xlu0 %v512_v24, %s7622_s12 }
 0x1ed   :  { %v515_v26 = vpop.permute.xlu0 %514 }
 0x1ee   :  { %v7730_v27 = vadd.f32 %v515_v26, %v507_v25 }
 0x1f0   :  { %7368 = vtanh.f32 %v7730_v27 }
 0x1fa   :  { %v7369_v29 = vpop.eup %7368 }
 0x1fb   :  { %520 = vrot.lane.b32.xlu1 %v7369_v29, %s7622_s12 }
 0x26d   :  { %v521_v33 = vpop.permute.xlu1 %520 }
 0x26e   :  { %v523_v34 = vmul.f32 %v521_v33, %v505_v22 }
 0x270   :  { %v526_v36 = vmul.f32 %v525_v32, %v523_v34  ;;  %v661_v37 = vpack.c.bf16 %v523_v34, %v523_v34 }
 0x272   :  { %663 = vrot.lane.b32.xlu0 %v661_v37, %s7623_s21  ;;  %v529_v38 = vadd.f32 %v528_v35, %v526_v36 }
 0x274   :  { %v530_v39 = vpack.c.bf16 %v529_v38, %v529_v38 }
 0x276   :  { %538 = vrot.lane.b32.xlu1 %v530_v39, %s7623_s21 }
 0x2e4   :  { %v664_v50 = vpop.permute.xlu0 %663 }
 0x2e8   :  { %v539_v40 = vpop.permute.xlu1 %538 }
 0x2e9   :  { %6579 = vmatmul.mubr.msk.bf16.vlgmr.msra.gmra.mrb[4].mxu1 %vm457_vm2, %v539_v40 }
 0x2ea   :  { %6583 = vmatpush3.bf16.msra.mxu1 %v7751_v31  ;;  %6586 = vmatprep.mubr.msk.bf16.mxu1 %vm7620_vm1, %v7619_v1 }
 0x2eb   :  { %6584 = vmatprep.subr.bf16.mxu1 %v7619_v1 }
 0x2ee   :  { %6585 = vmatpush3.bf16.msra.mxu1 %v7765_v41 }
 0x2ef   :  { %6590 = vmatprep.subr.bf16.mxu1 %v7619_v1 }
 0x3bc   :  { %v589_v43 = vpop.f32.mrb[4].mxu1 }
 0x3bd   :  { %v590_v44 = vadd.f32 %v7774_v42, %v589_v43  ;;  %v6580_v45 = vpop.f32.mrb[5].mxu1  ;;  %v280_v43 = vadd.f32 %v7721_v8, %v7719_v7 }
 0x3be   :  { %v592_v46 = vpop.f32.mrb[6].mxu1 }
 0x3bf   :  { %v595_v47 = vmax.f32 %v590_v44, 0.0  ;;  %v6581_v48 = vpop.f32.mrb[7].mxu1 }
 0x3c1   :  { %v596_v49 = vpack.c.bf16 %v595_v47, %v595_v47 }
 0x3c3   :  { %6587 = vmatmul.mubr.msk.bf16.vlgmr.msra.gmra.mrb[8].mxu1 %vm457_vm2, %v596_v49 }
 0x3c4   :  { %6591 = vmatpush3.bf16.msra.mxu1 %v7692_v2  ;;  %6594 = vmatprep.mubr.msk.bf16.mxu1 %vm7620_vm1, %v7619_v1 }
 0x3c5   :  { %6592 = vmatprep.subr.bf16.mxu1 %v7619_v1 }
 0x3c8   :  { %6593 = vmatpush3.bf16.msra.mxu1 %v7706_v5 }
 0x3c9   :  { %6598 = vmatprep.subr.bf16.mxu1 %v7619_v1 }
 0x3cb   :  { %6595 = vmatmul.mubr.msk.bf16.vlgmr.msra.gmra.mrb[12].mxu1 %vm457_vm2, %v664_v50 }
 0x3cc   :  { %6599 = vmatpush3.bf16.msra.mxu1 %v7736_v28  ;;  %6602 = vmatprep.mubr.msk.bf16.mxu1 %vm7620_vm1, %v7619_v1 }
 0x3cd   :  { %6600 = vmatprep.subr.bf16.mxu1 %v7619_v1 }
 0x3d0   :  { %6601 = vmatpush3.bf16.msra.mxu1 %v7744_v30 }
 0x3d1   :  { %6606 = vmatprep.subr.bf16.mxu1 %v7619_v1 }
 0x496   :  { %v652_v52 = vpop.f32.mrb[8].mxu1 }
 0x497   :  { %v653_v53 = vadd.f32 %v7794_v51, %v652_v52  ;;  %v6588_v54 = vpop.f32.mrb[9].mxu1 }
 0x498   :  { %v655_v55 = vpop.f32.mrb[10].mxu1 }
 0x499   :  { %658 = vst [vmem:[%s9196_s10] sm:$0xff] %v653_v53  ;;  %v6589_v56 = vpop.f32.mrb[11].mxu1 }
 0x49e   :  { %v702_v58 = vpop.f32.mrb[12].mxu1 }
 0x49f   :  { %v708_v59 = vadd.f32 %v702_v58, %v275_v57  ;;  %v6596_v60 = vpop.f32.mrb[13].mxu1 }
 0x4a0   :  { %v705_v61 = vpop.f32.mrb[14].mxu1  ;;  %v904_v60 = vstv %s6048_s11  ;;  %s6109_s11 = sld [smem:[#allocation5 + $0xc]] }
 0x4a1   :  { %7370 = vtanh.f32 %v708_v59  ;;  %v6597_v62 = vpop.f32.mrb[15].mxu1  ;;  %v709_v0 = vmul.f32 0.5, %v708_v59 }
 0x4a3   :  { %7372 = vtanh.f32 %v709_v0 }
 0x4ab   :  { %v7371_v63 = vpop.eup %7370 }
 0x4ac   :  { %716 = vrot.lane.b32.xlu1 %v7371_v63, %s7622_s12  ;;  %v907_v63 = vstv %s6049_s13  ;;  %s6150_s13 = sld [smem:[#allocation3 + $0x13]] }
 0x4ad   :  { %v7373_v3 = vpop.eup %7372 }
 0x4ae   :  { %v711_v4 = vmul.f32 0.5, %v7373_v3 }
 0x4b0   :  { %v712_v6 = vadd.f32 0.5, %v711_v4  ;;  %v7350_v4 = vld [vmem:[%s9186_s0 + $0x10] sm:$0xff]  }
 0x4b1   :  { %6538 = vmatprep.mubr.msk.bf16.mxu0 %vm188_vm0, %v7350_v4 }
 0x4b2   :  { %v714_v12 = vmul.f32 %v712_v6, %v7730_v27 }
 0x51e   :  { %v717_v9 = vpop.permute.xlu1 %716 }
 0x51f   :  { %v719_v10 = vmul.f32 %v717_v9, %v712_v6  ;;  %v7352_v9 = vld [vmem:[%s9186_s0 + $0x20] sm:$0xff]  }
 0x521   :  { %721 = vrot.lane.b32.xlu0 %v719_v10, %s7622_s12 }
 0x593   :  { %v722_v13 = vpop.permute.xlu0 %721 }
 0x594   :  { %v7805_v14 = vadd.f32 %v722_v13, %v714_v12  ;;  %v7353_v13 = vld [vmem:[%s9186_s0 + $0x28] sm:$0xff]  }
 0x596   :  { %7374 = vtanh.f32 %v7805_v14 }
 0x5a0   :  { %v7375_v15 = vpop.eup %7374 }
 0x5a1   :  { %727 = vrot.lane.b32.xlu1 %v7375_v15, %s7622_s12  ;;  %v7355_v15 = vld [vmem:[%s9186_s0 + $0x38] sm:$0xff]  }
 0x613   :  { %v728_v17 = vpop.permute.xlu1 %727 }
 0x614   :  { %v730_v18 = vmul.f32 %v728_v17, %v712_v6  ;;  %v7351_v6 = vld [vmem:[%s9186_s0 + $0x18] sm:$0xff]   ;;  %v7357_v17 = vld [vmem:[%s9186_s0 + $0x48] sm:$0xff]  }
 0x615   :  { %6539 = vmatmul.mubr.msk.bf16.gmra.mrb[4].mxu0 %vm188_vm0, %v7351_v6 }
 0x616   :  { %v733_v20 = vmul.f32 %v732_v16, %v730_v18  ;;  %v833_v21 = vpack.c.bf16 %v730_v18, %v730_v18  ;;  %6542 = vmatprep.mubr.msk.bf16.mxu0 %vm188_vm0, %v7352_v9  ;;  %v7356_v16 = vld [vmem:[%s9186_s0 + $0x40] sm:$0xff]   ;;  %v7358_v18 = vld [vmem:[%s9186_s0 + $0x50] sm:$0xff]  }
 0x618   :  { %835 = vrot.lane.b32.xlu1 %v833_v21, %s7623_s21  ;;  %v736_v22 = vadd.f32 %v735_v19, %v733_v20  ;;  %v7359_v19 = vld [vmem:[%s9186_s0 + $0x58] sm:$0xff]   ;;  %v7360_v20 = vld [vmem:[%s9186_s0 + $0x60] sm:$0xff]   ;;  %v7361_v21 = vld [vmem:[%s9186_s0 + $0x68] sm:$0xff]  }
 0x61a   :  { %v737_v23 = vpack.c.bf16 %v736_v22, %v736_v22  ;;  %v7362_v22 = vld [vmem:[%s9186_s0 + $0x70] sm:$0xff]  }
 0x61c   :  { %739 = vrot.lane.b32.xlu0 %v737_v23, %s7623_s21  ;;  %v7363_v23 = vld [vmem:[%s9186_s0 + $0x78] sm:$0xff]  }
 0x61d   :  { %6543 = vmatmul.mubr.msk.bf16.gmra.mrb[8].mxu0 %vm188_vm0, %v7353_v13 }
 0x68a   :  { %v836_v35 = vpop.permute.xlu1 %835 }
 0x68e   :  { %v740_v24 = vpop.permute.xlu0 %739 }
 0x68f   :  { %6603 = vmatmul.mubr.msk.bf16.vlgmr.msra.gmra.mrb[16].mxu1 %vm457_vm2, %v740_v24 }
 0x690   :  { %6607 = vmatpush3.bf16.msra.mxu1 %v7751_v31  ;;  %6610 = vmatprep.mubr.msk.bf16.mxu1 %vm7620_vm1, %v7619_v1 }
 0x691   :  { %6608 = vmatprep.subr.bf16.mxu1 %v7619_v1 }
 0x694   :  { %6609 = vmatpush3.bf16.msra.mxu1 %v7765_v41 }
 0x695   :  { %6614 = vmatprep.subr.bf16.mxu1 %v7619_v1 }
 0x762   :  { %v778_v25 = vpop.f32.mrb[16].mxu1 }
 0x763   :  { %v779_v26 = vadd.f32 %v7774_v42, %v778_v25  ;;  %v6604_v27 = vpop.f32.mrb[17].mxu1 }
 0x764   :  { %v781_v29 = vpop.f32.mrb[18].mxu1 }
 0x765   :  { %v784_v32 = vmax.f32 %v779_v26, 0.0  ;;  %v6605_v33 = vpop.f32.mrb[19].mxu1 }
 0x767   :  { %v785_v34 = vpack.c.bf16 %v784_v32, %v784_v32 }
 0x769   :  { %6611 = vmatmul.mubr.msk.bf16.vlgmr.msra.gmra.mrb[20].mxu1 %vm457_vm2, %v785_v34 }
 0x76a   :  { %6615 = vmatpush3.bf16.msra.mxu1 %v7692_v2  ;;  %6618 = vmatprep.mubr.msk.bf16.mxu1 %vm7620_vm1, %v7619_v1 }
 0x76b   :  { %6616 = vmatprep.subr.bf16.mxu1 %v7619_v1 }
 0x76e   :  { %6617 = vmatpush3.bf16.msra.mxu1 %v7706_v5 }
 0x76f   :  { %6622 = vmatprep.subr.bf16.mxu1 %v7619_v1 }
 0x771   :  { %6619 = vmatmul.mubr.msk.bf16.vlgmr.msra.gmra.mrb[24].mxu1 %vm457_vm2, %v836_v35 }
 0x772   :  { %6623 = vmatpush3.bf16.msra.mxu1 %v7736_v28  ;;  %6626 = vmatprep.mubr.msk.bf16.mxu1 %vm7620_vm1, %v7619_v1 }
 0x773   :  { %6624 = vmatprep.subr.bf16.mxu1 %v7619_v1 }
 0x776   :  { %6625 = vmatpush3.bf16.msra.mxu1 %v7744_v30 }
 0x777   :  { %6638 = vmatprep.subr.bf16.mxu1 %v7619_v1 }
 0x83c   :  { %v823_v36 = vpop.f32.mrb[20].mxu1 }
 0x83d   :  { %v824_v37 = vadd.f32 %v7794_v51, %v823_v36  ;;  %v6612_v38 = vpop.f32.mrb[21].mxu1  ;;  %v283_v36 = vadd.f32 %v7724_v11, %v7719_v7 }
 0x83e   :  { %v826_v39 = vpop.f32.mrb[22].mxu1 }
 0x83f   :  { %6046 = vst [vmem:[%s9196_s10 + $0x8] sm:$0xff] %v824_v37  ;;  %v6613_v40 = vpop.f32.mrb[23].mxu1 }
 0x844   :  { %v874_v44 = vpop.f32.mrb[24].mxu1 }
 0x845   :  { %v880_v45 = vadd.f32 %v874_v44, %v280_v43  ;;  %v6620_v46 = vpop.f32.mrb[25].mxu1  ;;  %v7928_v44 = vpop.f32.mrb[4].mxu0 }
 0x846   :  { %v877_v47 = vpop.f32.mrb[26].mxu1 }
 0x847   :  { %7376 = vtanh.f32 %v880_v45  ;;  %v6621_v48 = vpop.f32.mrb[27].mxu1  ;;  %v881_v50 = vmul.f32 0.5, %v880_v45  ;;  %v7930_v45 = vpop.f32.mrb[5].mxu0 }
 0x848   :  { %v7933_v11 = vpop.f32.mrb[6].mxu0 }
 0x849   :  { %7378 = vtanh.f32 %v881_v50  ;;  %v7936_v46 = vpop.f32.mrb[7].mxu0 }
 0x84a   :  { %v7938_v47 = vpop.f32.mrb[8].mxu0 }
 0x84b   :  { %v7940_v48 = vpop.f32.mrb[9].mxu0 }
 0x851   :  { %v7377_v49 = vpop.eup %7376 }
 0x852   :  { %888 = vrot.lane.b32.xlu0 %v7377_v49, %s7622_s12  ;;  %v7942_v49 = vpop.f32.mrb[10].mxu0 }
 0x853   :  { %v7379_v52 = vpop.eup %7378  ;;  %v7944_v50 = vpop.f32.mrb[11].mxu0 }
 0x854   :  { %v883_v53 = vmul.f32 0.5, %v7379_v52 }
 0x856   :  { %v884_v54 = vadd.f32 0.5, %v883_v53 }
 0x858   :  { %v886_v8 = vmul.f32 %v884_v54, %v7805_v14  ;;  %v7354_v14 = vld [vmem:[%s9186_s0 + $0x30] sm:$0xff]   ;;  %s6090_s0 = sld [smem:[#allocation3 + $0x9]] }
 0x859   :  { %6546 = vmatprep.mubr.msk.bf16.mxu0 %vm188_vm0, %v7354_v14 }
 0x85a   :  { %6547 = vmatmul.mubr.msk.bf16.gmra.mrb[12].mxu0 %vm188_vm0, %v7355_v15 }
 0x85b   :  { %6550 = vmatprep.mubr.msk.bf16.mxu0 %vm188_vm0, %v7356_v16 }
 0x862   :  { %6551 = vmatmul.mubr.msk.bf16.gmra.mrb[16].mxu0 %vm188_vm0, %v7357_v17 }
 0x863   :  { %6554 = vmatprep.mubr.msk.bf16.mxu0 %vm188_vm0, %v7358_v18 }
 0x86a   :  { %6555 = vmatmul.mubr.msk.bf16.gmra.mrb[20].mxu0 %vm188_vm0, %v7359_v19 }
 0x86b   :  { %6558 = vmatprep.mubr.msk.bf16.mxu0 %vm188_vm0, %v7360_v20 }
 0x872   :  { %6559 = vmatmul.mubr.msk.bf16.gmra.mrb[24].mxu0 %vm188_vm0, %v7361_v21 }
 0x873   :  { %6562 = vmatprep.mubr.msk.bf16.mxu0 %vm188_vm0, %v7362_v22 }
 0x87a   :  { %6563 = vmatmul.mubr.msk.bf16.gmra.mrb[28].mxu0 %vm188_vm0, %v7363_v23 }
 0x87b   :  { %6634 = vmatprep.mubr.msk.bf16.mxu0 %vm7620_vm1, %v7619_v1 }
 0x8c4   :  { %v889_v55 = vpop.permute.xlu0 %888 }
 0x8c5   :  { %v891_v56 = vmul.f32 %v889_v55, %v884_v54 }
 0x8c7   :  { %893 = vrot.lane.b32.xlu1 %v891_v56, %s7622_s12 }
 0x92d   :  { %v7946_v52 = vpop.f32.mrb[12].mxu0 }
 0x92e   :  { %v7948_v53 = vpop.f32.mrb[13].mxu0 }
 0x92f   :  { %v7950_v55 = vpop.f32.mrb[14].mxu0 }
 0x930   :  { %v7953_v56 = vpop.f32.mrb[15].mxu0 }
 0x939   :  { %v894_v57 = vpop.permute.xlu1 %893 }
 0x93a   :  { %v7842_v58 = vadd.f32 %v894_v57, %v886_v8  ;;  %v7955_v8 = vpop.f32.mrb[16].mxu0 }
 0x93b   :  { %v7957_v57 = vpop.f32.mrb[17].mxu0 }
 0x93c   :  { %7380 = vtanh.f32 %v7842_v58 }
 0x946   :  { %v7381_v59 = vpop.eup %7380 }
 0x947   :  { %899 = vrot.lane.b32.xlu0 %v7381_v59, %s7622_s12  ;;  %v7959_v59 = vpop.f32.mrb[18].mxu0 }
 0x9b9   :  { %v900_v61 = vpop.permute.xlu0 %899 }
 0x9ba   :  { %v902_v62 = vmul.f32 %v900_v61, %v884_v54 }
 0x9bc   :  { %v905_v0 = vmul.f32 %v904_v60, %v902_v62  ;;  %v1005_v3 = vpack.c.bf16 %v902_v62, %v902_v62  ;;  %v7961_v60 = vpop.f32.mrb[19].mxu0 }
 0x9bd   :  { %v7963_v61 = vpop.f32.mrb[20].mxu0 }
 0x9be   :  { %1007 = vrot.lane.b32.xlu0 %v1005_v3, %s7623_s21  ;;  %v908_v10 = vadd.f32 %v907_v63, %v905_v0  ;;  %v7965_v62 = vpop.f32.mrb[21].mxu0 }
 0x9bf   :  { %v7967_v63 = vpop.f32.mrb[22].mxu0 }
 0x9c0   :  { %v909_v12 = vpack.c.bf16 %v908_v10, %v908_v10  ;;  %v7969_v0 = vpop.f32.mrb[23].mxu0 }
 0x9c1   :  { %v7971_v3 = vpop.f32.mrb[24].mxu0 }
 0x9c2   :  { %911 = vrot.lane.b32.xlu1 %v909_v12, %s7623_s21  ;;  %v7973_v4 = vpop.f32.mrb[25].mxu0 }
 0x9c3   :  { %v7975_v6 = vpop.f32.mrb[26].mxu0 }
 0x9c4   :  { %v7977_v9 = vpop.f32.mrb[27].mxu0 }
 0x9c5   :  { %v7979_v10 = vpop.f32.mrb[28].mxu0 }
 0x9c6   :  { %v7981_v12 = vpop.f32.mrb[29].mxu0 }
 0x9c7   :  { %v7983_v13 = vpop.f32.mrb[30].mxu0 }
 0x9c8   :  { %v7985_v14 = vpop.f32.mrb[31].mxu0 }
 0xa30   :  { %v1008_v25 = vpop.permute.xlu0 %1007 }
 0xa34   :  { %v912_v24 = vpop.permute.xlu1 %911 }
 0xa35   :  { %6627 = vmatmul.mubr.msk.bf16.vlgmr.msra.gmra.mrb[28].mxu1 %vm457_vm2, %v912_v24 }
 0xa36   :  { %6639 = vmatpush3.bf16.msra.mxu1 %v7692_v2  ;;  %6642 = vmatprep.mubr.msk.bf16.mxu1 %vm7620_vm1, %v7619_v1 }
 0xa37   :  { %6640 = vmatprep.subr.bf16.mxu1 %v7619_v1 }
 0xa3a   :  { %6641 = vmatpush3.bf16.msra.mxu1 %v7706_v5 }
 0xa3b   :  { %6654 = vmatprep.subr.bf16.mxu1 %v7619_v1 }
 0xa3d   :  { %6643 = vmatmul.mubr.msk.bf16.vlgmr.msra.gmra.mrb[32].mxu1 %vm457_vm2, %v1008_v25 }
 0xa3e   :  { %6655 = vmatpush3.bf16.msra.mxu1 %v7751_v31  ;;  %6658 = vmatprep.mubr.msk.bf16.mxu1 %vm7620_vm1, %v7619_v1 }
 0xa3f   :  { %6656 = vmatprep.subr.bf16.mxu1 %v7619_v1 }
 0xa42   :  { %6657 = vmatpush3.bf16.msra.mxu1 %v7765_v41 }
 0xa43   :  { %6670 = vmatprep.subr.bf16.mxu1 %v7619_v1 }
 0xb08   :  { %v950_v26 = vpop.f32.mrb[28].mxu1 }
 0xb09   :  { %v951_v27 = vadd.f32 %v7774_v42, %v950_v26  ;;  %v6628_v29 = vpop.f32.mrb[29].mxu1 }
 0xb0a   :  { %v953_v32 = vpop.f32.mrb[30].mxu1 }
 0xb0b   :  { %v956_v33 = vmax.f32 %v951_v27, 0.0  ;;  %v6629_v34 = vpop.f32.mrb[31].mxu1 }
 0xb0d   :  { %v957_v35 = vpack.c.bf16 %v956_v33, %v956_v33  ;;  %v1076_v33 = vstv %s6054_s5  ;;  %s6132_s5 = sld [smem:[#allocation3 + $0x10]] }
 0xb0f   :  { %6635 = vmatmul.mubr.msk.bf16.vlgmr.msra.gmra.mrb[32].mxu0 %vm457_vm2, %v957_v35 }
 0xb10   :  { %v1046_v37 = vpop.f32.mrb[32].mxu1  ;;  %6647 = vmatpush3.bf16.msra.mxu0 %v7736_v28  ;;  %6650 = vmatprep.mubr.msk.bf16.mxu0 %vm7620_vm1, %v7619_v1 }
 0xb11   :  { %v1052_v38 = vadd.f32 %v1046_v37, %v283_v36  ;;  %v6644_v39 = vpop.f32.mrb[33].mxu1  ;;  %6648 = vmatprep.subr.bf16.mxu0 %v7619_v1  ;;  %v1079_v36 = vstv %s6055_s22  ;;  %s6133_s22 = sld [smem:[#allocation5 + $0x10]] }
 0xb12   :  { %v1049_v40 = vpop.f32.mrb[34].mxu1 }
 0xb13   :  { %7382 = vtanh.f32 %v1052_v38  ;;  %v6645_v43 = vpop.f32.mrb[35].mxu1  ;;  %v1053_v15 = vmul.f32 0.5, %v1052_v38 }
 0xb14   :  { %6649 = vmatpush3.bf16.msra.mxu0 %v7744_v30 }
 0xb15   :  { %6662 = vmatprep.subr.bf16.mxu0 %v7619_v1  ;;  %7384 = vtanh.f32 %v1053_v15 }
 0xb1d   :  { %v7383_v54 = vpop.eup %7382 }
 0xb1e   :  { %1060 = vrot.lane.b32.xlu1 %v7383_v54, %s7622_s12 }
 0xb1f   :  { %v7385_v16 = vpop.eup %7384 }
 0xb20   :  { %v1055_v17 = vmul.f32 0.5, %v7385_v16 }
 0xb22   :  { %v1056_v18 = vadd.f32 0.5, %v1055_v17 }
 0xb24   :  { %v1058_v26 = vmul.f32 %v1056_v18, %v7842_v58 }
 0xb90   :  { %v1061_v19 = vpop.permute.xlu1 %1060 }
 0xb91   :  { %v1063_v20 = vmul.f32 %v1061_v19, %v1056_v18 }
 0xb93   :  { %1065 = vrot.lane.b32.xlu0 %v1063_v20, %s7622_s12 }
 0xbe2   :  { %v995_v21 = vpop.f32.mrb[32].mxu0 }
 0xbe3   :  { %v996_v22 = vadd.f32 %v7794_v51, %v995_v21  ;;  %v6636_v23 = vpop.f32.mrb[33].mxu0  ;;  %v288_v21 = vadd.f32 %v7719_v7, %v7930_v45 }
 0xbe4   :  { %v998_v24 = vpop.f32.mrb[34].mxu0 }
 0xbe5   :  { %6052 = vst [vmem:[%s9196_s10 + $0x10] sm:$0xff] %v996_v22  ;;  %v6637_v25 = vpop.f32.mrb[35].mxu0 }
 0xc05   :  { %v1066_v27 = vpop.permute.xlu0 %1065 }
 0xc06   :  { %v7993_v29 = vadd.f32 %v1066_v27, %v1058_v26 }
 0xc08   :  { %7386 = vtanh.f32 %v7993_v29 }
 0xc12   :  { %v7387_v32 = vpop.eup %7386 }
 0xc13   :  { %1071 = vrot.lane.b32.xlu1 %v7387_v32, %s7622_s12 }
 0xc85   :  { %v1072_v34 = vpop.permute.xlu1 %1071 }
 0xc86   :  { %v1074_v35 = vmul.f32 %v1072_v34, %v1056_v18 }
 0xc88   :  { %v1077_v37 = vmul.f32 %v1076_v33, %v1074_v35  ;;  %v1177_v38 = vpack.c.bf16 %v1074_v35, %v1074_v35 }
 0xc8a   :  { %1179 = vrot.lane.b32.xlu1 %v1177_v38, %s7623_s21  ;;  %v1080_v39 = vadd.f32 %v1079_v36, %v1077_v37 }
 0xc8c   :  { %v1081_v58 = vpack.c.bf16 %v1080_v39, %v1080_v39 }
 0xc8e   :  { %1083 = vrot.lane.b32.xlu0 %v1081_v58, %s7623_s21 }
 0xcfc   :  { %v1180_v43 = vpop.permute.xlu1 %1179 }
 0xd00   :  { %v1084_v40 = vpop.permute.xlu0 %1083 }
 0xd01   :  { %6651 = vmatmul.mubr.msk.bf16.vlgmr.msra.gmra.mrb[36].mxu0 %vm457_vm2, %v1084_v40 }
 0xd02   :  { %6663 = vmatpush3.bf16.msra.mxu0 %v7692_v2  ;;  %6666 = vmatprep.mubr.msk.bf16.mxu0 %vm7620_vm1, %v7619_v1 }
 0xd03   :  { %6664 = vmatprep.subr.bf16.mxu0 %v7619_v1 }
 0xd06   :  { %6665 = vmatpush3.bf16.msra.mxu0 %v7706_v5 }
 0xd07   :  { %6678 = vmatprep.subr.bf16.mxu0 %v7619_v1 }
 0xd09   :  { %6667 = vmatmul.mubr.msk.bf16.vlgmr.msra.gmra.mrb[40].mxu0 %vm457_vm2, %v1180_v43 }
 0xd0a   :  { %6679 = vmatpush3.bf16.msra.mxu0 %v7751_v31  ;;  %6682 = vmatprep.mubr.msk.bf16.mxu0 %vm7620_vm1, %v7619_v1 }
 0xd0b   :  { %6680 = vmatprep.subr.bf16.mxu0 %v7619_v1 }
 0xd0e   :  { %6681 = vmatpush3.bf16.msra.mxu0 %v7765_v41 }
 0xd0f   :  { %6694 = vmatprep.subr.bf16.mxu0 %v7619_v1 }
 0xdd4   :  { %v1122_v54 = vpop.f32.mrb[36].mxu0 }
 0xdd5   :  { %v1123_v15 = vadd.f32 %v7774_v42, %v1122_v54  ;;  %v6652_v16 = vpop.f32.mrb[37].mxu0 }
 0xdd6   :  { %v1125_v17 = vpop.f32.mrb[38].mxu0 }
 0xdd7   :  { %v1128_v18 = vmax.f32 %v1123_v15, 0.0  ;;  %v6653_v19 = vpop.f32.mrb[39].mxu0  ;;  %v1248_v17 = vstv %s6060_s25  ;;  %s6078_s25 = sld [smem:[#allocation3 + $0x7]] }
 0xdd9   :  { %v1129_v20 = vpack.c.bf16 %v1128_v18, %v1128_v18 }
 0xddb   :  { %6659 = vmatmul.mubr.msk.bf16.vlgmr.msra.gmra.mrb[36].mxu1 %vm457_vm2, %v1129_v20  ;;  %v1251_v20 = vstv %s6061_s26  ;;  %s6079_s26 = sld [smem:[#allocation5 + $0x7]] }
 0xddc   :  { %v1218_v22 = vpop.f32.mrb[40].mxu0  ;;  %6671 = vmatpush3.bf16.msra.mxu1 %v7736_v28  ;;  %6674 = vmatprep.mubr.msk.bf16.mxu1 %vm7620_vm1, %v7619_v1 }
 0xddd   :  { %v1224_v23 = vadd.f32 %v1218_v22, %v288_v21  ;;  %v6668_v24 = vpop.f32.mrb[41].mxu0  ;;  %6672 = vmatprep.subr.bf16.mxu1 %v7619_v1 }
 0xdde   :  { %v1221_v25 = vpop.f32.mrb[42].mxu0 }
 0xddf   :  { %7388 = vtanh.f32 %v1224_v23  ;;  %v6669_v26 = vpop.f32.mrb[43].mxu0  ;;  %v1225_v27 = vmul.f32 0.5, %v1224_v23 }
 0xde0   :  { %6673 = vmatpush3.bf16.msra.mxu1 %v7744_v30 }
 0xde1   :  { %6686 = vmatprep.subr.bf16.mxu1 %v7619_v1  ;;  %7390 = vtanh.f32 %v1225_v27 }
 0xde9   :  { %v7389_v45 = vpop.eup %7388 }
 0xdea   :  { %1232 = vrot.lane.b32.xlu0 %v7389_v45, %s7622_s12 }
 0xdeb   :  { %v7391_v32 = vpop.eup %7390 }
 0xdec   :  { %v1227_v33 = vmul.f32 0.5, %v7391_v32 }
 0xdee   :  { %v1228_v34 = vadd.f32 0.5, %v1227_v33 }
 0xdf0   :  { %v1230_v43 = vmul.f32 %v1228_v34, %v7993_v29 }
 0xe5c   :  { %v1233_v35 = vpop.permute.xlu0 %1232 }
 0xe5d   :  { %v1235_v36 = vmul.f32 %v1233_v35, %v1228_v34  ;;  %v291_v35 = vadd.f32 %v7719_v7, %v7936_v46 }
 0xe5f   :  { %1237 = vrot.lane.b32.xlu1 %v1235_v36, %s7622_s12 }
 0xeae   :  { %v1167_v37 = vpop.f32.mrb[36].mxu1 }
 0xeaf   :  { %v1168_v38 = vadd.f32 %v7794_v51, %v1167_v37  ;;  %v6660_v39 = vpop.f32.mrb[37].mxu1 }
 0xeb0   :  { %v1170_v58 = vpop.f32.mrb[38].mxu1 }
 0xeb1   :  { %6058 = vst [vmem:[%s9196_s10 + $0x18] sm:$0xff] %v1168_v38  ;;  %v6661_v40 = vpop.f32.mrb[39].mxu1 }
 0xed1   :  { %v1238_v54 = vpop.permute.xlu1 %1237 }
 0xed2   :  { %v8030_v15 = vadd.f32 %v1238_v54, %v1230_v43 }
 0xed4   :  { %7392 = vtanh.f32 %v8030_v15 }
 0xede   :  { %v7393_v16 = vpop.eup %7392 }
 0xedf   :  { %1243 = vrot.lane.b32.xlu0 %v7393_v16, %s7622_s12 }
 0xf51   :  { %v1244_v18 = vpop.permute.xlu0 %1243 }
 0xf52   :  { %v1246_v19 = vmul.f32 %v1244_v18, %v1228_v34 }
 0xf54   :  { %v1249_v21 = vmul.f32 %v1248_v17, %v1246_v19  ;;  %v1349_v22 = vpack.c.bf16 %v1246_v19, %v1246_v19 }
 0xf56   :  { %1351 = vrot.lane.b32.xlu0 %v1349_v22, %s7623_s21  ;;  %v1252_v23 = vadd.f32 %v1251_v20, %v1249_v21 }
 0xf58   :  { %v1253_v29 = vpack.c.bf16 %v1252_v23, %v1252_v23 }
 0xf5a   :  { %1255 = vrot.lane.b32.xlu1 %v1253_v29, %s7623_s21 }
 0xfc8   :  { %v1352_v25 = vpop.permute.xlu0 %1351 }
 0xfcc   :  { %v1256_v24 = vpop.permute.xlu1 %1255 }
 0xfcd   :  { %6675 = vmatmul.mubr.msk.bf16.vlgmr.msra.gmra.mrb[40].mxu1 %vm457_vm2, %v1256_v24 }
 0xfce   :  { %6687 = vmatpush3.bf16.msra.mxu1 %v7692_v2  ;;  %6690 = vmatprep.mubr.msk.bf16.mxu1 %vm7620_vm1, %v7619_v1 }
 0xfcf   :  { %6688 = vmatprep.subr.bf16.mxu1 %v7619_v1 }
 0xfd2   :  { %6689 = vmatpush3.bf16.msra.mxu1 %v7706_v5 }
 0xfd3   :  { %6702 = vmatprep.subr.bf16.mxu1 %v7619_v1 }
 0xfd5   :  { %6691 = vmatmul.mubr.msk.bf16.vlgmr.msra.gmra.mrb[44].mxu1 %vm457_vm2, %v1352_v25 }
 0xfd6   :  { %6703 = vmatpush3.bf16.msra.mxu1 %v7751_v31  ;;  %6706 = vmatprep.mubr.msk.bf16.mxu1 %vm7620_vm1, %v7619_v1 }
 0xfd7   :  { %6704 = vmatprep.subr.bf16.mxu1 %v7619_v1 }
 0xfda   :  { %6705 = vmatpush3.bf16.msra.mxu1 %v7765_v41 }
 0xfdb   :  { %6718 = vmatprep.subr.bf16.mxu1 %v7619_v1 }
0x10a0   :  { %v1294_v2 = vpop.f32.mrb[40].mxu1 }
0x10a1   :  { %v1295_v26 = vadd.f32 %v7774_v42, %v1294_v2  ;;  %v6676_v45 = vpop.f32.mrb[41].mxu1 }
0x10a2   :  { %v1297_v27 = vpop.f32.mrb[42].mxu1 }
0x10a3   :  { %v1300_v32 = vmax.f32 %v1295_v26, 0.0  ;;  %v6677_v33 = vpop.f32.mrb[43].mxu1  ;;  %v1420_v26 = vstv %s6066_s1  ;;  %s6144_s1 = sld [smem:[#allocation3 + $0x12]] }
0x10a5   :  { %v1301_v34 = vpack.c.bf16 %v1300_v32, %v1300_v32  ;;  %v1423_v32 = vstv %s6067_s29  ;;  %s6145_s29 = sld [smem:[#allocation5 + $0x12]] }
0x10a7   :  { %6683 = vmatmul.mubr.msk.bf16.vlgmr.msra.gmra.mrb[44].mxu0 %vm457_vm2, %v1301_v34 }
0x10a8   :  { %v1390_v36 = vpop.f32.mrb[44].mxu1  ;;  %6695 = vmatpush3.bf16.msra.mxu0 %v7736_v28  ;;  %6698 = vmatprep.mubr.msk.bf16.mxu0 %vm7620_vm1, %v7619_v1 }
0x10a9   :  { %v1396_v37 = vadd.f32 %v1390_v36, %v291_v35  ;;  %v6692_v38 = vpop.f32.mrb[45].mxu1  ;;  %6696 = vmatprep.subr.bf16.mxu0 %v7619_v1 }
0x10aa   :  { %v1393_v39 = vpop.f32.mrb[46].mxu1 }
0x10ab   :  { %7394 = vtanh.f32 %v1396_v37  ;;  %v6693_v58 = vpop.f32.mrb[47].mxu1  ;;  %v1397_v40 = vmul.f32 0.5, %v1396_v37  ;;  %v8077_v37 = vld [vmem:[%s9188_s2] sm:$0xff]  }
0x10ac   :  { %6697 = vmatpush3.bf16.msra.mxu0 %v7744_v30 }
0x10ad   :  { %6710 = vmatprep.subr.bf16.mxu0 %v7619_v1  ;;  %7396 = vtanh.f32 %v1397_v40 }
0x10b5   :  { %v7395_v46 = vpop.eup %7394 }
0x10b6   :  { %1404 = vrot.lane.b32.xlu1 %v7395_v46, %s7622_s12 }
0x10b7   :  { %v7397_v43 = vpop.eup %7396 }
0x10b8   :  { %v1399_v54 = vmul.f32 0.5, %v7397_v43 }
0x10ba   :  { %v1400_v16 = vadd.f32 0.5, %v1399_v54 }
0x10bc   :  { %v1402_v29 = vmul.f32 %v1400_v16, %v8030_v15 }
0x1128   :  { %v1405_v17 = vpop.permute.xlu1 %1404 }
0x1129   :  { %v1407_v18 = vmul.f32 %v1405_v17, %v1400_v16 }
0x112b   :  { %1409 = vrot.lane.b32.xlu0 %v1407_v18, %s7622_s12 }
0x117a   :  { %v1339_v19 = vpop.f32.mrb[44].mxu0 }
0x117b   :  { %v1340_v20 = vadd.f32 %v7794_v51, %v1339_v19  ;;  %v6684_v21 = vpop.f32.mrb[45].mxu0 }
0x117c   :  { %v1342_v22 = vpop.f32.mrb[46].mxu0 }
0x117d   :  { %6064 = vst [vmem:[%s9196_s10 + $0x20] sm:$0xff] %v1340_v20  ;;  %v6685_v23 = vpop.f32.mrb[47].mxu0 }
0x119d   :  { %v1410_v24 = vpop.permute.xlu0 %1409 }
0x119e   :  { %v8067_v25 = vadd.f32 %v1410_v24, %v1402_v29 }
0x11a0   :  { %7398 = vtanh.f32 %v8067_v25 }
0x11aa   :  { %v7399_v2 = vpop.eup %7398 }
0x11ab   :  { %1415 = vrot.lane.b32.xlu1 %v7399_v2, %s7622_s12 }
0x121d   :  { %v1416_v45 = vpop.permute.xlu1 %1415 }
0x121e   :  { %v1418_v27 = vmul.f32 %v1416_v45, %v1400_v16  ;;  %v296_v16 = vadd.f32 %v7928_v44, %v7719_v7 }
0x1220   :  { %v1421_v33 = vmul.f32 %v1420_v26, %v1418_v27  ;;  %v1521_v34 = vpack.c.bf16 %v1418_v27, %v1418_v27 }
0x1222   :  { %1523 = vrot.lane.b32.xlu1 %v1521_v34, %s7623_s21  ;;  %v1424_v35 = vadd.f32 %v1423_v32, %v1421_v33 }
0x1224   :  { %v1425_v15 = vpack.c.bf16 %v1424_v35, %v1424_v35 }
0x1226   :  { %1427 = vrot.lane.b32.xlu0 %v1425_v15, %s7623_s21  ;;  %v1592_v15 = vstv %s6072_s15  ;;  %s6114_s15 = sld [smem:[#allocation3 + $0xd]] }
0x1294   :  { %v1524_v38 = vpop.permute.xlu1 %1523 }
0x1298   :  { %v1428_v36 = vpop.permute.xlu0 %1427 }
0x1299   :  { %6699 = vmatmul.mubr.msk.bf16.vlgmr.msra.gmra.mrb[48].mxu0 %vm457_vm2, %v1428_v36 }
0x129a   :  { %6711 = vmatpush3.bf16.msra.mxu0 %v8077_v37  ;;  %6714 = vmatprep.mubr.msk.bf16.mxu0 %vm7620_vm1, %v7619_v1 }
0x129b   :  { %6712 = vmatprep.subr.bf16.mxu0 %v7619_v1 }
0x129e   :  { %6713 = vmatpush3.bf16.msra.mxu0 %v7706_v5 }
0x129f   :  { %6726 = vmatprep.subr.bf16.mxu0 %v7619_v1 }
0x12a1   :  { %6715 = vmatmul.mubr.msk.bf16.vlgmr.msra.gmra.mrb[52].mxu0 %vm457_vm2, %v1524_v38 }
0x12a2   :  { %6727 = vmatpush3.bf16.msra.mxu0 %v7751_v31  ;;  %6730 = vmatprep.mubr.msk.bf16.mxu0 %vm7620_vm1, %v7619_v1 }
0x12a3   :  { %6728 = vmatprep.subr.bf16.mxu0 %v7619_v1 }
0x12a6   :  { %6729 = vmatpush3.bf16.msra.mxu0 %v7765_v41 }
0x12a7   :  { %6742 = vmatprep.subr.bf16.mxu0 %v7619_v1 }
0x136c   :  { %v1466_v39 = vpop.f32.mrb[48].mxu0 }
0x136d   :  { %v1467_v58 = vadd.f32 %v7774_v42, %v1466_v39  ;;  %v6700_v5 = vpop.f32.mrb[49].mxu0  ;;  %v1595_v39 = vstv %s6073_s16  ;;  %s6115_s16 = sld [smem:[#allocation5 + $0xd]] }
0x136e   :  { %v1469_v46 = vpop.f32.mrb[50].mxu0 }
0x136f   :  { %v1472_v40 = vmax.f32 %v1467_v58, 0.0  ;;  %v6701_v43 = vpop.f32.mrb[51].mxu0 }
0x1370   :  { %v8123_v43 = vld [vmem:[%s9188_s2 + $0x8] sm:$0xff]  }
0x1371   :  { %v1473_v54 = vpack.c.bf16 %v1472_v40, %v1472_v40 }
0x1373   :  { %6707 = vmatmul.mubr.msk.bf16.vlgmr.msra.gmra.mrb[48].mxu1 %vm457_vm2, %v1473_v54 }
0x1374   :  { %v1562_v17 = vpop.f32.mrb[52].mxu0  ;;  %6719 = vmatpush3.bf16.msra.mxu1 %v7736_v28  ;;  %6722 = vmatprep.mubr.msk.bf16.mxu1 %vm7620_vm1, %v7619_v1 }
0x1375   :  { %v1568_v18 = vadd.f32 %v1562_v17, %v296_v16  ;;  %v6716_v19 = vpop.f32.mrb[53].mxu0  ;;  %6720 = vmatprep.subr.bf16.mxu1 %v7619_v1 }
0x1376   :  { %v1565_v20 = vpop.f32.mrb[54].mxu0 }
0x1377   :  { %7400 = vtanh.f32 %v1568_v18  ;;  %v6717_v21 = vpop.f32.mrb[55].mxu0  ;;  %v1569_v44 = vmul.f32 0.5, %v1568_v18 }
0x1378   :  { %6721 = vmatpush3.bf16.msra.mxu1 %v7744_v30 }
0x1379   :  { %6734 = vmatprep.subr.bf16.mxu1 %v7619_v1  ;;  %7402 = vtanh.f32 %v1569_v44 }
0x1381   :  { %v7401_v7 = vpop.eup %7400 }
0x1382   :  { %1576 = vrot.lane.b32.xlu0 %v7401_v7, %s7622_s12 }
0x1383   :  { %v7403_v28 = vpop.eup %7402 }
0x1384   :  { %v1571_v22 = vmul.f32 0.5, %v7403_v28 }
0x1386   :  { %v1572_v23 = vadd.f32 0.5, %v1571_v22 }
0x1388   :  { %v1574_v32 = vmul.f32 %v1572_v23, %v8067_v25 }
0x13f4   :  { %v1577_v29 = vpop.permute.xlu0 %1576 }
0x13f5   :  { %v1579_v24 = vmul.f32 %v1577_v29, %v1572_v23  ;;  %v8155_v29 = vld [vmem:[%s9192_s6 + $0x8] sm:$0xff]  }
0x13f7   :  { %1581 = vrot.lane.b32.xlu1 %v1579_v24, %s7622_s12 }
0x1446   :  { %v1511_v2 = vpop.f32.mrb[48].mxu1 }
0x1447   :  { %v1512_v26 = vadd.f32 %v7794_v51, %v1511_v2  ;;  %v6708_v45 = vpop.f32.mrb[49].mxu1 }
0x1448   :  { %v1514_v27 = vpop.f32.mrb[50].mxu1 }
0x1449   :  { %6070 = vst [vmem:[%s9196_s10 + $0x28] sm:$0xff] %v1512_v26  ;;  %v6709_v30 = vpop.f32.mrb[51].mxu1 }
0x1469   :  { %v1582_v33 = vpop.permute.xlu1 %1581 }
0x146a   :  { %v8109_v34 = vadd.f32 %v1582_v33, %v1574_v32 }
0x146c   :  { %7404 = vtanh.f32 %v8109_v34 }
0x1476   :  { %v7405_v35 = vpop.eup %7404 }
0x1477   :  { %1587 = vrot.lane.b32.xlu0 %v7405_v35, %s7622_s12 }
0x14e9   :  { %v1588_v36 = vpop.permute.xlu0 %1587 }
0x14ea   :  { %v1590_v38 = vmul.f32 %v1588_v36, %v1572_v23 }
0x14ec   :  { %v1593_v58 = vmul.f32 %v1592_v15, %v1590_v38  ;;  %v1693_v5 = vpack.c.bf16 %v1590_v38, %v1590_v38 }
0x14ee   :  { %1695 = vrot.lane.b32.xlu0 %v1693_v5, %s7623_s21  ;;  %v1596_v46 = vadd.f32 %v1595_v39, %v1593_v58 }
0x14f0   :  { %v1597_v25 = vpack.c.bf16 %v1596_v46, %v1596_v46 }
0x14f2   :  { %1599 = vrot.lane.b32.xlu1 %v1597_v25, %s7623_s21 }
0x1560   :  { %v1696_v54 = vpop.permute.xlu0 %1695 }
0x1564   :  { %v1600_v40 = vpop.permute.xlu1 %1599 }
0x1565   :  { %6723 = vmatmul.mubr.msk.bf16.vlgmr.msra.gmra.mrb[52].mxu1 %vm457_vm2, %v1600_v40 }
0x1566   :  { %6735 = vmatpush3.bf16.msra.mxu1 %v8077_v37  ;;  %6738 = vmatprep.mubr.msk.bf16.mxu1 %vm7620_vm1, %v7619_v1 }
0x1567   :  { %6736 = vmatprep.subr.bf16.mxu1 %v7619_v1 }
0x156a   :  { %6737 = vmatpush3.bf16.msra.mxu1 %v8123_v43 }
0x156b   :  { %6750 = vmatprep.subr.bf16.mxu1 %v7619_v1 }
0x156d   :  { %6739 = vmatmul.mubr.msk.bf16.vlgmr.msra.gmra.mrb[56].mxu1 %vm457_vm2, %v1696_v54  ;;  %v1767_v54 = vstv %s6079_s26  ;;  %s6139_s26 = sld [smem:[#allocation5 + $0x11]] }
0x156e   :  { %6751 = vmatpush3.bf16.msra.mxu1 %v7751_v31  ;;  %6754 = vmatprep.mubr.msk.bf16.mxu1 %vm7620_vm1, %v7619_v1  ;;  %v8138_v31 = vld [vmem:[%s9189_s3] ss:$0 sm:$0xff] }
0x156f   :  { %6752 = vmatprep.subr.bf16.mxu1 %v7619_v1  ;;  %v299_v44 = vadd.f32 %v8138_v31, %v7933_v11 }
0x1572   :  { %6753 = vmatpush3.bf16.msra.mxu1 %v7765_v41 }
0x1573   :  { %6766 = vmatprep.subr.bf16.mxu1 %v7619_v1 }
0x1638   :  { %v1638_v16 = vpop.f32.mrb[52].mxu1 }
0x1639   :  { %v1639_v17 = vadd.f32 %v7774_v42, %v1638_v16  ;;  %v6724_v18 = vpop.f32.mrb[53].mxu1  ;;  %v8146_v42 = vld [vmem:[%s9192_s6] sm:$0xff]  }
0x163a   :  { %v1641_v19 = vpop.f32.mrb[54].mxu1 }
0x163b   :  { %v1644_v20 = vmax.f32 %v1639_v17, 0.0  ;;  %v6725_v21 = vpop.f32.mrb[55].mxu1 }
0x163c   :  { %v8183_v21 = vld [vmem:[%s9194_s8] sm:$0xff]  }
0x163d   :  { %v1645_v7 = vpack.c.bf16 %v1644_v20, %v1644_v20 }
0x163f   :  { %6731 = vmatmul.mubr.msk.bf16.vlgmr.msra.gmra.mrb[56].mxu0 %vm457_vm2, %v1645_v7  ;;  %v8192_v7 = vld [vmem:[%s9194_s8 + $0x8] sm:$0xff]  }
0x1640   :  { %v1734_v41 = vpop.f32.mrb[56].mxu1  ;;  %6743 = vmatpush3.bf16.msra.mxu0 %v8146_v42  ;;  %6746 = vmatprep.mubr.msk.bf16.mxu0 %vm7620_vm1, %v7619_v1 }
0x1641   :  { %v1740_v28 = vadd.f32 %v1734_v41, %v299_v44  ;;  %v6740_v22 = vpop.f32.mrb[57].mxu1  ;;  %6744 = vmatprep.subr.bf16.mxu0 %v7619_v1  ;;  %v8199_v41 = vld [vmem:[%s9193_s7] ss:$0 sm:$0xff] }
0x1642   :  { %v1737_v23 = vpop.f32.mrb[58].mxu1 }
0x1643   :  { %7406 = vtanh.f32 %v1740_v28  ;;  %v6741_v11 = vpop.f32.mrb[59].mxu1  ;;  %v1741_v2 = vmul.f32 0.5, %v1740_v28 }
0x1644   :  { %6745 = vmatpush3.bf16.msra.mxu0 %v8155_v29 }
0x1645   :  { %6758 = vmatprep.subr.bf16.mxu0 %v7619_v1  ;;  %7408 = vtanh.f32 %v1741_v2 }
0x164d   :  { %v7407_v24 = vpop.eup %7406 }
0x164e   :  { %1748 = vrot.lane.b32.xlu1 %v7407_v24, %s7622_s12 }
0x164f   :  { %v7409_v26 = vpop.eup %7408 }
0x1650   :  { %v1743_v45 = vmul.f32 0.5, %v7409_v26  ;;  %v304_v26 = vadd.f32 %v8138_v31, %v7940_v48 }
0x1652   :  { %v1744_v27 = vadd.f32 0.5, %v1743_v45 }
0x1654   :  { %v1746_v39 = vmul.f32 %v1744_v27, %v8109_v34 }
0x16c0   :  { %v1749_v30 = vpop.permute.xlu1 %1748 }
0x16c1   :  { %v1751_v32 = vmul.f32 %v1749_v30, %v1744_v27 }
0x16c3   :  { %1753 = vrot.lane.b32.xlu0 %v1751_v32, %s7622_s12 }
0x1712   :  { %v1683_v33 = vpop.f32.mrb[56].mxu0 }
0x1713   :  { %v1684_v35 = vadd.f32 %v7794_v51, %v1683_v33  ;;  %v6732_v15 = vpop.f32.mrb[57].mxu0  ;;  %v1764_v51 = vstv %s6078_s25  ;;  %s6138_s25 = sld [smem:[#allocation3 + $0x11]] }
0x1714   :  { %v1686_v36 = vpop.f32.mrb[58].mxu0 }
0x1715   :  { %6076 = vst [vmem:[%s9196_s10 + $0x30] sm:$0xff] %v1684_v35  ;;  %v6733_v38 = vpop.f32.mrb[59].mxu0 }
0x1735   :  { %v1754_v58 = vpop.permute.xlu0 %1753 }
0x1736   :  { %v8166_v5 = vadd.f32 %v1754_v58, %v1746_v39 }
0x1738   :  { %7410 = vtanh.f32 %v8166_v5 }
0x1742   :  { %v7411_v46 = vpop.eup %7410 }
0x1743   :  { %1759 = vrot.lane.b32.xlu1 %v7411_v46, %s7622_s12 }
0x17b5   :  { %v1760_v25 = vpop.permute.xlu1 %1759 }
0x17b6   :  { %v1762_v40 = vmul.f32 %v1760_v25, %v1744_v27 }
0x17b8   :  { %v1765_v16 = vmul.f32 %v1764_v51, %v1762_v40  ;;  %v1865_v17 = vpack.c.bf16 %v1762_v40, %v1762_v40  ;;  %v8216_v51 = vld [vmem:[%s9195_s9] ss:$0 sm:$0xff] }
0x17ba   :  { %1867 = vrot.lane.b32.xlu1 %v1865_v17, %s7623_s21  ;;  %v1768_v18 = vadd.f32 %v1767_v54, %v1765_v16 }
0x17bc   :  { %v1769_v34 = vpack.c.bf16 %v1768_v18, %v1768_v18 }
0x17be   :  { %1771 = vrot.lane.b32.xlu0 %v1769_v34, %s7623_s21 }
0x182c   :  { %v1868_v20 = vpop.permute.xlu1 %1867 }
0x1830   :  { %v1772_v19 = vpop.permute.xlu0 %1771 }
0x1831   :  { %6747 = vmatmul.mubr.msk.bf16.vlgmr.msra.gmra.mrb[60].mxu0 %vm457_vm2, %v1772_v19 }
0x1832   :  { %6759 = vmatpush3.bf16.msra.mxu0 %v8077_v37  ;;  %6762 = vmatprep.mubr.msk.bf16.mxu0 %vm7620_vm1, %v7619_v1 }
0x1833   :  { %6760 = vmatprep.subr.bf16.mxu0 %v7619_v1 }
0x1836   :  { %6761 = vmatpush3.bf16.msra.mxu0 %v8123_v43 }
0x1837   :  { %6774 = vmatprep.subr.bf16.mxu0 %v7619_v1 }
0x1839   :  { %6763 = vmatmul.mubr.msk.bf16.vlgmr.msra.gmra.mrb[64].mxu0 %vm457_vm2, %v1868_v20  ;;  %v1936_v20 = vstv %s6084_s17  ;;  %s6156_s17 = sld [smem:[#allocation3 + $0x14]] }
0x183a   :  { %6775 = vmatpush3.bf16.msra.mxu0 %v8183_v21  ;;  %6778 = vmatprep.mubr.msk.bf16.mxu0 %vm7620_vm1, %v7619_v1 }
0x183b   :  { %6776 = vmatprep.subr.bf16.mxu0 %v7619_v1 }
0x183e   :  { %6777 = vmatpush3.bf16.msra.mxu0 %v8192_v7 }
0x183f   :  { %6790 = vmatprep.subr.bf16.mxu0 %v7619_v1 }
0x1904   :  { %v1810_v44 = vpop.f32.mrb[60].mxu0 }
0x1905   :  { %v1811_v28 = vadd.f32 %v8199_v41, %v1810_v44  ;;  %v6748_v22 = vpop.f32.mrb[61].mxu0 }
0x1906   :  { %v1813_v23 = vpop.f32.mrb[62].mxu0  ;;  %v1939_v22 = vstv %s6085_s18  ;;  %s6157_s18 = sld [smem:[#allocation5 + $0x14]] }
0x1907   :  { %v1816_v11 = vmax.f32 %v1811_v28, 0.0  ;;  %v6749_v24 = vpop.f32.mrb[63].mxu0 }
0x1909   :  { %v1817_v2 = vpack.c.bf16 %v1816_v11, %v1816_v11 }
0x190b   :  { %6755 = vmatmul.mubr.msk.bf16.vlgmr.msra.gmra.mrb[60].mxu1 %vm457_vm2, %v1817_v2 }
0x190c   :  { %v1906_v45 = vpop.f32.mrb[64].mxu0  ;;  %6767 = vmatpush3.bf16.msra.mxu1 %v8146_v42  ;;  %6770 = vmatprep.mubr.msk.bf16.mxu1 %vm7620_vm1, %v7619_v1 }
0x190d   :  { %v1912_v27 = vadd.f32 %v1906_v45, %v304_v26  ;;  %v6764_v30 = vpop.f32.mrb[65].mxu0  ;;  %6768 = vmatprep.subr.bf16.mxu1 %v7619_v1 }
0x190e   :  { %v1909_v32 = vpop.f32.mrb[66].mxu0 }
0x190f   :  { %7412 = vtanh.f32 %v1912_v27  ;;  %v6765_v33 = vpop.f32.mrb[67].mxu0  ;;  %v1913_v35 = vmul.f32 0.5, %v1912_v27 }
0x1910   :  { %6769 = vmatpush3.bf16.msra.mxu1 %v8155_v29 }
0x1911   :  { %6782 = vmatprep.subr.bf16.mxu1 %v7619_v1  ;;  %7414 = vtanh.f32 %v1913_v35 }
0x1919   :  { %v7413_v48 = vpop.eup %7412 }
0x191a   :  { %1920 = vrot.lane.b32.xlu0 %v7413_v48, %s7622_s12 }
0x191b   :  { %v7415_v15 = vpop.eup %7414 }
0x191c   :  { %v1915_v36 = vmul.f32 0.5, %v7415_v15  ;;  %v307_v15 = vadd.f32 %v8138_v31, %v7944_v50 }
0x191e   :  { %v1916_v38 = vadd.f32 0.5, %v1915_v36 }
0x1920   :  { %v1918_v17 = vmul.f32 %v1916_v38, %v8166_v5 }
0x198c   :  { %v1921_v39 = vpop.permute.xlu0 %1920 }
0x198d   :  { %v1923_v58 = vmul.f32 %v1921_v39, %v1916_v38 }
0x198f   :  { %1925 = vrot.lane.b32.xlu1 %v1923_v58, %s7622_s12 }
0x19de   :  { %v1855_v46 = vpop.f32.mrb[60].mxu1 }
0x19df   :  { %v1856_v25 = vadd.f32 %v8216_v51, %v1855_v46  ;;  %v6756_v40 = vpop.f32.mrb[61].mxu1 }
0x19e0   :  { %v1858_v54 = vpop.f32.mrb[62].mxu1 }
0x19e1   :  { %6082 = vst [vmem:[%s9196_s10 + $0x38] sm:$0xff] %v1856_v25  ;;  %v6757_v16 = vpop.f32.mrb[63].mxu1 }
0x1a01   :  { %v1926_v18 = vpop.permute.xlu1 %1925 }
0x1a02   :  { %v8223_v34 = vadd.f32 %v1926_v18, %v1918_v17 }
0x1a04   :  { %7416 = vtanh.f32 %v8223_v34 }
0x1a0e   :  { %v7417_v19 = vpop.eup %7416 }
0x1a0f   :  { %1931 = vrot.lane.b32.xlu0 %v7417_v19, %s7622_s12 }
0x1a81   :  { %v1932_v44 = vpop.permute.xlu0 %1931 }
0x1a82   :  { %v1934_v28 = vmul.f32 %v1932_v44, %v1916_v38 }
0x1a84   :  { %v1937_v23 = vmul.f32 %v1936_v20, %v1934_v28  ;;  %v2037_v11 = vpack.c.bf16 %v1934_v28, %v1934_v28 }
0x1a86   :  { %2039 = vrot.lane.b32.xlu0 %v2037_v11, %s7623_s21  ;;  %v1940_v24 = vadd.f32 %v1939_v22, %v1937_v23 }
0x1a88   :  { %v1941_v5 = vpack.c.bf16 %v1940_v24, %v1940_v24 }
0x1a8a   :  { %1943 = vrot.lane.b32.xlu1 %v1941_v5, %s7623_s21 }
0x1af8   :  { %v2040_v26 = vpop.permute.xlu0 %2039 }
0x1afc   :  { %v1944_v2 = vpop.permute.xlu1 %1943 }
0x1afd   :  { %6771 = vmatmul.mubr.msk.bf16.vlgmr.msra.gmra.mrb[64].mxu1 %vm457_vm2, %v1944_v2  ;;  %v2108_v2 = vstv %s6090_s0  ;;  %s6120_s0 = sld [smem:[#allocation3 + $0xe]] }
0x1afe   :  { %6783 = vmatpush3.bf16.msra.mxu1 %v8077_v37  ;;  %6786 = vmatprep.mubr.msk.bf16.mxu1 %vm7620_vm1, %v7619_v1 }
0x1aff   :  { %6784 = vmatprep.subr.bf16.mxu1 %v7619_v1 }
0x1b02   :  { %6785 = vmatpush3.bf16.msra.mxu1 %v8123_v43 }
0x1b03   :  { %6798 = vmatprep.subr.bf16.mxu1 %v7619_v1 }
0x1b05   :  { %6787 = vmatmul.mubr.msk.bf16.vlgmr.msra.gmra.mrb[68].mxu1 %vm457_vm2, %v2040_v26 }
0x1b06   :  { %6799 = vmatpush3.bf16.msra.mxu1 %v8183_v21  ;;  %6802 = vmatprep.mubr.msk.bf16.mxu1 %vm7620_vm1, %v7619_v1 }
0x1b07   :  { %6800 = vmatprep.subr.bf16.mxu1 %v7619_v1 }
0x1b0a   :  { %6801 = vmatpush3.bf16.msra.mxu1 %v8192_v7 }
0x1b0b   :  { %6814 = vmatprep.subr.bf16.mxu1 %v7619_v1 }
0x1bd0   :  { %v1982_v45 = vpop.f32.mrb[64].mxu1 }
0x1bd1   :  { %v1983_v27 = vadd.f32 %v8199_v41, %v1982_v45  ;;  %v6772_v30 = vpop.f32.mrb[65].mxu1 }
0x1bd2   :  { %v1985_v32 = vpop.f32.mrb[66].mxu1 }
0x1bd3   :  { %v1988_v33 = vmax.f32 %v1983_v27, 0.0  ;;  %v6773_v48 = vpop.f32.mrb[67].mxu1  ;;  %v2111_v27 = vstv %s6091_s4  ;;  %s6121_s4 = sld [smem:[#allocation5 + $0xe]] }
0x1bd5   :  { %v1989_v35 = vpack.c.bf16 %v1988_v33, %v1988_v33 }
0x1bd7   :  { %6779 = vmatmul.mubr.msk.bf16.vlgmr.msra.gmra.mrb[68].mxu0 %vm457_vm2, %v1989_v35 }
0x1bd8   :  { %v2078_v36 = vpop.f32.mrb[68].mxu1  ;;  %6791 = vmatpush3.bf16.msra.mxu0 %v8146_v42  ;;  %6794 = vmatprep.mubr.msk.bf16.mxu0 %vm7620_vm1, %v7619_v1 }
0x1bd9   :  { %v2084_v38 = vadd.f32 %v2078_v36, %v307_v15  ;;  %v6788_v39 = vpop.f32.mrb[69].mxu1  ;;  %6792 = vmatprep.subr.bf16.mxu0 %v7619_v1 }
0x1bda   :  { %v2081_v58 = vpop.f32.mrb[70].mxu1 }
0x1bdb   :  { %7418 = vtanh.f32 %v2084_v38  ;;  %v6789_v46 = vpop.f32.mrb[71].mxu1  ;;  %v2085_v25 = vmul.f32 0.5, %v2084_v38 }
0x1bdc   :  { %6793 = vmatpush3.bf16.msra.mxu0 %v8155_v29 }
0x1bdd   :  { %6806 = vmatprep.subr.bf16.mxu0 %v7619_v1  ;;  %7420 = vtanh.f32 %v2085_v25  ;;  %v312_v25 = vadd.f32 %v8138_v31, %v7938_v47 }
0x1be5   :  { %v7419_v50 = vpop.eup %7418 }
0x1be6   :  { %2092 = vrot.lane.b32.xlu1 %v7419_v50, %s7622_s12 }
0x1be7   :  { %v7421_v40 = vpop.eup %7420 }
0x1be8   :  { %v2087_v54 = vmul.f32 0.5, %v7421_v40 }
0x1bea   :  { %v2088_v16 = vadd.f32 0.5, %v2087_v54 }
0x1bec   :  { %v2090_v23 = vmul.f32 %v2088_v16, %v8223_v34 }
0x1c58   :  { %v2093_v17 = vpop.permute.xlu1 %2092 }
0x1c59   :  { %v2095_v18 = vmul.f32 %v2093_v17, %v2088_v16 }
0x1c5b   :  { %2097 = vrot.lane.b32.xlu0 %v2095_v18, %s7622_s12 }
0x1caa   :  { %v2027_v19 = vpop.f32.mrb[68].mxu0 }
0x1cab   :  { %v2028_v20 = vadd.f32 %v8216_v51, %v2027_v19  ;;  %v6780_v44 = vpop.f32.mrb[69].mxu0 }
0x1cac   :  { %v2030_v28 = vpop.f32.mrb[70].mxu0 }
0x1cad   :  { %6088 = vst [vmem:[%s9196_s10 + $0x40] sm:$0xff] %v2028_v20  ;;  %v6781_v22 = vpop.f32.mrb[71].mxu0 }
0x1ccd   :  { %v2098_v11 = vpop.permute.xlu0 %2097 }
0x1cce   :  { %v8260_v24 = vadd.f32 %v2098_v11, %v2090_v23 }
0x1cd0   :  { %7422 = vtanh.f32 %v8260_v24 }
0x1cda   :  { %v7423_v5 = vpop.eup %7422 }
0x1cdb   :  { %2103 = vrot.lane.b32.xlu1 %v7423_v5, %s7622_s12 }
0x1d4d   :  { %v2104_v26 = vpop.permute.xlu1 %2103 }
0x1d4e   :  { %v2106_v45 = vmul.f32 %v2104_v26, %v2088_v16 }
0x1d50   :  { %v2109_v30 = vmul.f32 %v2108_v2, %v2106_v45  ;;  %v2209_v32 = vpack.c.bf16 %v2106_v45, %v2106_v45 }
0x1d52   :  { %2211 = vrot.lane.b32.xlu1 %v2209_v32, %s7623_s21  ;;  %v2112_v33 = vadd.f32 %v2111_v27, %v2109_v30 }
0x1d54   :  { %v2113_v34 = vpack.c.bf16 %v2112_v33, %v2112_v33 }
0x1d56   :  { %2115 = vrot.lane.b32.xlu0 %v2113_v34, %s7623_s21  ;;  %v2280_v34 = vstv %s6096_s23  ;;  %s6211_s23 = sld [smem:[#allocation5 + $0x1d]] }
0x1dc4   :  { %v2212_v35 = vpop.permute.xlu1 %2211 }
0x1dc8   :  { %v2116_v48 = vpop.permute.xlu0 %2115 }
0x1dc9   :  { %6795 = vmatmul.mubr.msk.bf16.vlgmr.msra.gmra.mrb[72].mxu0 %vm457_vm2, %v2116_v48 }
0x1dca   :  { %6807 = vmatpush3.bf16.msra.mxu0 %v8077_v37  ;;  %6810 = vmatprep.mubr.msk.bf16.mxu0 %vm7620_vm1, %v7619_v1 }
0x1dcb   :  { %6808 = vmatprep.subr.bf16.mxu0 %v7619_v1 }
0x1dce   :  { %6809 = vmatpush3.bf16.msra.mxu0 %v8123_v43 }
0x1dcf   :  { %6822 = vmatprep.subr.bf16.mxu0 %v7619_v1 }
0x1dd1   :  { %6811 = vmatmul.mubr.msk.bf16.vlgmr.msra.gmra.mrb[76].mxu0 %vm457_vm2, %v2212_v35 }
0x1dd2   :  { %6823 = vmatpush3.bf16.msra.mxu0 %v8183_v21  ;;  %6826 = vmatprep.mubr.msk.bf16.mxu0 %vm7620_vm1, %v7619_v1 }
0x1dd3   :  { %6824 = vmatprep.subr.bf16.mxu0 %v7619_v1 }
0x1dd6   :  { %6825 = vmatpush3.bf16.msra.mxu0 %v8192_v7 }
0x1dd7   :  { %6838 = vmatprep.subr.bf16.mxu0 %v7619_v1 }
0x1e9c   :  { %v2154_v15 = vpop.f32.mrb[72].mxu0 }
0x1e9d   :  { %v2155_v36 = vadd.f32 %v8199_v41, %v2154_v15  ;;  %v6796_v38 = vpop.f32.mrb[73].mxu0  ;;  %v2283_v15 = vstv %s6097_s24 }
0x1e9e   :  { %v2157_v39 = vpop.f32.mrb[74].mxu0 }
0x1e9f   :  { %v2160_v58 = vmax.f32 %v2155_v36, 0.0  ;;  %v6797_v46 = vpop.f32.mrb[75].mxu0 }
0x1ea1   :  { %v2161_v50 = vpack.c.bf16 %v2160_v58, %v2160_v58 }
0x1ea3   :  { %6803 = vmatmul.mubr.msk.bf16.vlgmr.msra.gmra.mrb[72].mxu1 %vm457_vm2, %v2161_v50 }
0x1ea4   :  { %v2250_v40 = vpop.f32.mrb[76].mxu0  ;;  %6815 = vmatpush3.bf16.msra.mxu1 %v8146_v42  ;;  %6818 = vmatprep.mubr.msk.bf16.mxu1 %vm7620_vm1, %v7619_v1 }
0x1ea5   :  { %v2256_v54 = vadd.f32 %v2250_v40, %v312_v25  ;;  %v6812_v16 = vpop.f32.mrb[77].mxu0  ;;  %6816 = vmatprep.subr.bf16.mxu1 %v7619_v1 }
0x1ea6   :  { %v2253_v17 = vpop.f32.mrb[78].mxu0 }
0x1ea7   :  { %7424 = vtanh.f32 %v2256_v54  ;;  %v6813_v18 = vpop.f32.mrb[79].mxu0  ;;  %v2257_v19 = vmul.f32 0.5, %v2256_v54 }
0x1ea8   :  { %6817 = vmatpush3.bf16.msra.mxu1 %v8155_v29 }
0x1ea9   :  { %6830 = vmatprep.subr.bf16.mxu1 %v7619_v1  ;;  %7426 = vtanh.f32 %v2257_v19 }
0x1eb1   :  { %v7425_v47 = vpop.eup %7424 }
0x1eb2   :  { %2264 = vrot.lane.b32.xlu0 %v7425_v47, %s7622_s12  ;;  %v315_v47 = vadd.f32 %v8138_v31, %v7942_v49 }
0x1eb3   :  { %v7427_v20 = vpop.eup %7426 }
0x1eb4   :  { %v2259_v44 = vmul.f32 0.5, %v7427_v20 }
0x1eb6   :  { %v2260_v28 = vadd.f32 0.5, %v2259_v44 }
0x1eb8   :  { %v2262_v27 = vmul.f32 %v2260_v28, %v8260_v24 }
0x1f24   :  { %v2265_v22 = vpop.permute.xlu0 %2264 }
0x1f25   :  { %v2267_v23 = vmul.f32 %v2265_v22, %v2260_v28 }
0x1f27   :  { %2269 = vrot.lane.b32.xlu1 %v2267_v23, %s7622_s12 }
0x1f76   :  { %v2199_v11 = vpop.f32.mrb[72].mxu1 }
0x1f77   :  { %v2200_v5 = vadd.f32 %v8216_v51, %v2199_v11  ;;  %v6804_v2 = vpop.f32.mrb[73].mxu1 }
0x1f78   :  { %v2202_v26 = vpop.f32.mrb[74].mxu1 }
0x1f79   :  { %6094 = vst [vmem:[%s9196_s10 + $0x48] sm:$0xff] %v2200_v5  ;;  %v6805_v45 = vpop.f32.mrb[75].mxu1 }
0x1f99   :  { %v2270_v30 = vpop.permute.xlu1 %2269 }
0x1f9a   :  { %v8297_v32 = vadd.f32 %v2270_v30, %v2262_v27 }
0x1f9c   :  { %7428 = vtanh.f32 %v8297_v32 }
0x1fa6   :  { %v7429_v33 = vpop.eup %7428 }
0x1fa7   :  { %2275 = vrot.lane.b32.xlu0 %v7429_v33, %s7622_s12 }
0x2019   :  { %v2276_v48 = vpop.permute.xlu0 %2275 }
0x201a   :  { %v2278_v35 = vmul.f32 %v2276_v48, %v2260_v28 }
0x201c   :  { %v2281_v36 = vmul.f32 %v2280_v34, %v2278_v35  ;;  %v2381_v38 = vpack.c.bf16 %v2278_v35, %v2278_v35 }
0x201e   :  { %2383 = vrot.lane.b32.xlu0 %v2381_v38, %s7623_s21  ;;  %v2284_v39 = vadd.f32 %v2283_v15, %v2281_v36 }
0x2020   :  { %v2285_v24 = vpack.c.bf16 %v2284_v39, %v2284_v39  ;;  %v2452_v39 = vstv %s6102_s27  ;;  %s6216_s27 = sld [smem:[#allocation3 + $0x1e]] }
0x2022   :  { %2287 = vrot.lane.b32.xlu1 %v2285_v24, %s7623_s21 }
0x2090   :  { %v2384_v46 = vpop.permute.xlu0 %2383 }
0x2094   :  { %v2288_v58 = vpop.permute.xlu1 %2287 }
0x2095   :  { %6819 = vmatmul.mubr.msk.bf16.vlgmr.msra.gmra.mrb[76].mxu1 %vm457_vm2, %v2288_v58 }
0x2096   :  { %6831 = vmatpush3.bf16.msra.mxu1 %v8077_v37  ;;  %6834 = vmatprep.mubr.msk.bf16.mxu1 %vm7620_vm1, %v7619_v1 }
0x2097   :  { %6832 = vmatprep.subr.bf16.mxu1 %v7619_v1 }
0x209a   :  { %6833 = vmatpush3.bf16.msra.mxu1 %v8123_v43 }
0x209b   :  { %6846 = vmatprep.subr.bf16.mxu1 %v7619_v1 }
0x209d   :  { %6835 = vmatmul.mubr.msk.bf16.vlgmr.msra.gmra.mrb[80].mxu1 %vm457_vm2, %v2384_v46  ;;  %v2455_v46 = vstv %s6103_s28  ;;  %s6217_s28 = sld [smem:[#allocation5 + $0x1e]] }
0x209e   :  { %6847 = vmatpush3.bf16.msra.mxu1 %v8183_v21  ;;  %6850 = vmatprep.mubr.msk.bf16.mxu1 %vm7620_vm1, %v7619_v1 }
0x209f   :  { %6848 = vmatprep.subr.bf16.mxu1 %v7619_v1 }
0x20a2   :  { %6849 = vmatpush3.bf16.msra.mxu1 %v8192_v7 }
0x20a3   :  { %6862 = vmatprep.subr.bf16.mxu1 %v7619_v1 }
0x2168   :  { %v2326_v50 = vpop.f32.mrb[76].mxu1 }
0x2169   :  { %v2327_v25 = vadd.f32 %v8199_v41, %v2326_v50  ;;  %v6820_v40 = vpop.f32.mrb[77].mxu1 }
0x216a   :  { %v2329_v54 = vpop.f32.mrb[78].mxu1 }
0x216b   :  { %v2332_v16 = vmax.f32 %v2327_v25, 0.0  ;;  %v6821_v17 = vpop.f32.mrb[79].mxu1 }
0x216d   :  { %v2333_v18 = vpack.c.bf16 %v2332_v16, %v2332_v16 }
0x216f   :  { %6827 = vmatmul.mubr.msk.bf16.vlgmr.msra.gmra.mrb[80].mxu0 %vm457_vm2, %v2333_v18 }
0x2170   :  { %v2422_v19 = vpop.f32.mrb[80].mxu1  ;;  %6839 = vmatpush3.bf16.msra.mxu0 %v8146_v42  ;;  %6842 = vmatprep.mubr.msk.bf16.mxu0 %vm7620_vm1, %v7619_v1 }
0x2171   :  { %v2428_v20 = vadd.f32 %v2422_v19, %v315_v47  ;;  %v6836_v44 = vpop.f32.mrb[81].mxu1  ;;  %6840 = vmatprep.subr.bf16.mxu0 %v7619_v1 }
0x2172   :  { %v2425_v28 = vpop.f32.mrb[82].mxu1 }
0x2173   :  { %7430 = vtanh.f32 %v2428_v20  ;;  %v6837_v22 = vpop.f32.mrb[83].mxu1  ;;  %v2429_v23 = vmul.f32 0.5, %v2428_v20 }
0x2174   :  { %6841 = vmatpush3.bf16.msra.mxu0 %v8155_v29  ;;  %v320_v22 = vadd.f32 %v8138_v31, %v7948_v53 }
0x2175   :  { %6854 = vmatprep.subr.bf16.mxu0 %v7619_v1  ;;  %7432 = vtanh.f32 %v2429_v23 }
0x217d   :  { %v7431_v49 = vpop.eup %7430 }
0x217e   :  { %2436 = vrot.lane.b32.xlu1 %v7431_v49, %s7622_s12 }
0x217f   :  { %v7433_v11 = vpop.eup %7432 }
0x2180   :  { %v2431_v5 = vmul.f32 0.5, %v7433_v11 }
0x2182   :  { %v2432_v2 = vadd.f32 0.5, %v2431_v5 }
0x2184   :  { %v2434_v35 = vmul.f32 %v2432_v2, %v8297_v32 }
0x21f0   :  { %v2437_v26 = vpop.permute.xlu1 %2436 }
0x21f1   :  { %v2439_v45 = vmul.f32 %v2437_v26, %v2432_v2 }
0x21f3   :  { %2441 = vrot.lane.b32.xlu0 %v2439_v45, %s7622_s12 }
0x2242   :  { %v2371_v27 = vpop.f32.mrb[80].mxu0 }
0x2243   :  { %v2372_v30 = vadd.f32 %v8216_v51, %v2371_v27  ;;  %v6828_v33 = vpop.f32.mrb[81].mxu0 }
0x2244   :  { %v2374_v34 = vpop.f32.mrb[82].mxu0 }
0x2245   :  { %6100 = vst [vmem:[%s9196_s10 + $0x50] sm:$0xff] %v2372_v30  ;;  %v6829_v48 = vpop.f32.mrb[83].mxu0 }
0x2265   :  { %v2442_v15 = vpop.permute.xlu0 %2441 }
0x2266   :  { %v8334_v36 = vadd.f32 %v2442_v15, %v2434_v35 }
0x2268   :  { %7434 = vtanh.f32 %v8334_v36 }
0x2272   :  { %v7435_v38 = vpop.eup %7434 }
0x2273   :  { %2447 = vrot.lane.b32.xlu1 %v7435_v38, %s7622_s12 }
0x22e5   :  { %v2448_v24 = vpop.permute.xlu1 %2447 }
0x22e6   :  { %v2450_v58 = vmul.f32 %v2448_v24, %v2432_v2 }
0x22e8   :  { %v2453_v50 = vmul.f32 %v2452_v39, %v2450_v58  ;;  %v2553_v25 = vpack.c.bf16 %v2450_v58, %v2450_v58 }
0x22ea   :  { %2555 = vrot.lane.b32.xlu1 %v2553_v25, %s7623_s21  ;;  %v2456_v40 = vadd.f32 %v2455_v46, %v2453_v50  ;;  %v2624_v25 = vstv %s6108_s30  ;;  %s6126_s30 = sld [smem:[#allocation3 + $0xf]] }
0x22ec   :  { %v2457_v32 = vpack.c.bf16 %v2456_v40, %v2456_v40 }
0x22ee   :  { %2459 = vrot.lane.b32.xlu0 %v2457_v32, %s7623_s21 }
0x235c   :  { %v2556_v16 = vpop.permute.xlu1 %2555 }
0x2360   :  { %v2460_v54 = vpop.permute.xlu0 %2459 }
0x2361   :  { %6843 = vmatmul.mubr.msk.bf16.vlgmr.msra.gmra.mrb[84].mxu0 %vm457_vm2, %v2460_v54  ;;  %v2627_v54 = vstv %s6109_s11  ;;  %s6127_s11 = sld [smem:[#allocation5 + $0xf]] }
0x2362   :  { %6855 = vmatpush3.bf16.msra.mxu0 %v8077_v37  ;;  %6858 = vmatprep.mubr.msk.bf16.mxu0 %vm7620_vm1, %v7619_v1 }
0x2363   :  { %6856 = vmatprep.subr.bf16.mxu0 %v7619_v1 }
0x2366   :  { %6857 = vmatpush3.bf16.msra.mxu0 %v8123_v43 }
0x2367   :  { %6870 = vmatprep.subr.bf16.mxu0 %v7619_v1 }
0x2369   :  { %6859 = vmatmul.mubr.msk.bf16.vlgmr.msra.gmra.mrb[88].mxu0 %vm457_vm2, %v2556_v16 }
0x236a   :  { %6871 = vmatpush3.bf16.msra.mxu0 %v8183_v21  ;;  %6874 = vmatprep.mubr.msk.bf16.mxu0 %vm7620_vm1, %v7619_v1 }
0x236b   :  { %6872 = vmatprep.subr.bf16.mxu0 %v7619_v1 }
0x236e   :  { %6873 = vmatpush3.bf16.msra.mxu0 %v8192_v7 }
0x236f   :  { %6886 = vmatprep.subr.bf16.mxu0 %v7619_v1 }
0x2434   :  { %v2498_v17 = vpop.f32.mrb[84].mxu0 }
0x2435   :  { %v2499_v18 = vadd.f32 %v8199_v41, %v2498_v17  ;;  %v6844_v47 = vpop.f32.mrb[85].mxu0 }
0x2436   :  { %v2501_v19 = vpop.f32.mrb[86].mxu0 }
0x2437   :  { %v2504_v20 = vmax.f32 %v2499_v18, 0.0  ;;  %v6845_v44 = vpop.f32.mrb[87].mxu0 }
0x2439   :  { %v2505_v28 = vpack.c.bf16 %v2504_v20, %v2504_v20 }
0x243b   :  { %6851 = vmatmul.mubr.msk.bf16.vlgmr.msra.gmra.mrb[84].mxu1 %vm457_vm2, %v2505_v28 }
0x243c   :  { %v2594_v49 = vpop.f32.mrb[88].mxu0  ;;  %6863 = vmatpush3.bf16.msra.mxu1 %v8146_v42  ;;  %6866 = vmatprep.mubr.msk.bf16.mxu1 %vm7620_vm1, %v7619_v1 }
0x243d   :  { %v2600_v23 = vadd.f32 %v2594_v49, %v320_v22  ;;  %v6860_v11 = vpop.f32.mrb[89].mxu0  ;;  %6864 = vmatprep.subr.bf16.mxu1 %v7619_v1 }
0x243e   :  { %v2597_v5 = vpop.f32.mrb[90].mxu0  ;;  %v323_v11 = vadd.f32 %v8138_v31, %v7953_v56 }
0x243f   :  { %7436 = vtanh.f32 %v2600_v23  ;;  %v6861_v2 = vpop.f32.mrb[91].mxu0  ;;  %v2601_v26 = vmul.f32 0.5, %v2600_v23 }
0x2440   :  { %6865 = vmatpush3.bf16.msra.mxu1 %v8155_v29 }
0x2441   :  { %6878 = vmatprep.subr.bf16.mxu1 %v7619_v1  ;;  %7438 = vtanh.f32 %v2601_v26 }
0x2449   :  { %v7437_v53 = vpop.eup %7436 }
0x244a   :  { %2608 = vrot.lane.b32.xlu0 %v7437_v53, %s7622_s12 }
0x244b   :  { %v7439_v45 = vpop.eup %7438 }
0x244c   :  { %v2603_v27 = vmul.f32 0.5, %v7439_v45 }
0x244e   :  { %v2604_v30 = vadd.f32 0.5, %v2603_v27 }
0x2450   :  { %v2606_v24 = vmul.f32 %v2604_v30, %v8334_v36 }
0x24bc   :  { %v2609_v33 = vpop.permute.xlu0 %2608 }
0x24bd   :  { %v2611_v34 = vmul.f32 %v2609_v33, %v2604_v30 }
0x24bf   :  { %2613 = vrot.lane.b32.xlu1 %v2611_v34, %s7622_s12 }
0x250e   :  { %v2543_v48 = vpop.f32.mrb[84].mxu1 }
0x250f   :  { %v2544_v35 = vadd.f32 %v8216_v51, %v2543_v48  ;;  %v6852_v15 = vpop.f32.mrb[85].mxu1 }
0x2510   :  { %v2546_v38 = vpop.f32.mrb[86].mxu1 }
0x2511   :  { %6106 = vst [vmem:[%s9196_s10 + $0x58] sm:$0xff] %v2544_v35  ;;  %v6853_v39 = vpop.f32.mrb[87].mxu1 }
0x2531   :  { %v2614_v58 = vpop.permute.xlu1 %2613 }
0x2532   :  { %v8371_v46 = vadd.f32 %v2614_v58, %v2606_v24 }
0x2534   :  { %7440 = vtanh.f32 %v8371_v46 }
0x253e   :  { %v7441_v50 = vpop.eup %7440 }
0x253f   :  { %2619 = vrot.lane.b32.xlu0 %v7441_v50, %s7622_s12 }
0x25b1   :  { %v2620_v40 = vpop.permute.xlu0 %2619 }
0x25b2   :  { %v2622_v32 = vmul.f32 %v2620_v40, %v2604_v30 }
0x25b4   :  { %v2625_v16 = vmul.f32 %v2624_v25, %v2622_v32  ;;  %v2725_v17 = vpack.c.bf16 %v2622_v32, %v2622_v32 }
0x25b6   :  { %2727 = vrot.lane.b32.xlu0 %v2725_v17, %s7623_s21  ;;  %v2628_v18 = vadd.f32 %v2627_v54, %v2625_v16  ;;  %v2796_v54 = vstv %s6114_s15 }
0x25b8   :  { %v2629_v36 = vpack.c.bf16 %v2628_v18, %v2628_v18  ;;  %v2799_v18 = vstv %s6115_s16  ;;  %s6222_s16 = sld [smem:[#allocation3 + $0x1f]] }
0x25ba   :  { %2631 = vrot.lane.b32.xlu1 %v2629_v36, %s7623_s21 }
0x2628   :  { %v2728_v19 = vpop.permute.xlu0 %2727 }
0x262c   :  { %v2632_v47 = vpop.permute.xlu1 %2631 }
0x262d   :  { %6867 = vmatmul.mubr.msk.bf16.vlgmr.msra.gmra.mrb[88].mxu1 %vm457_vm2, %v2632_v47 }
0x262e   :  { %6879 = vmatpush3.bf16.msra.mxu1 %v8077_v37  ;;  %6882 = vmatprep.mubr.msk.bf16.mxu1 %vm7620_vm1, %v7619_v1 }
0x262f   :  { %6880 = vmatprep.subr.bf16.mxu1 %v7619_v1 }
0x2632   :  { %6881 = vmatpush3.bf16.msra.mxu1 %v8123_v43 }
0x2633   :  { %6894 = vmatprep.subr.bf16.mxu1 %v7619_v1 }
0x2635   :  { %6883 = vmatmul.mubr.msk.bf16.vlgmr.msra.gmra.mrb[92].mxu1 %vm457_vm2, %v2728_v19 }
0x2636   :  { %6895 = vmatpush3.bf16.msra.mxu1 %v8183_v21  ;;  %6898 = vmatprep.mubr.msk.bf16.mxu1 %vm7620_vm1, %v7619_v1 }
0x2637   :  { %6896 = vmatprep.subr.bf16.mxu1 %v7619_v1 }
0x263a   :  { %6897 = vmatpush3.bf16.msra.mxu1 %v8192_v7 }
0x263b   :  { %6910 = vmatprep.subr.bf16.mxu1 %v7619_v1 }
0x2700   :  { %v2670_v37 = vpop.f32.mrb[88].mxu1 }
0x2701   :  { %v2671_v20 = vadd.f32 %v8199_v41, %v2670_v37  ;;  %v6868_v44 = vpop.f32.mrb[89].mxu1 }
0x2702   :  { %v2673_v28 = vpop.f32.mrb[90].mxu1 }
0x2703   :  { %v2676_v22 = vmax.f32 %v2671_v20, 0.0  ;;  %v6869_v49 = vpop.f32.mrb[91].mxu1  ;;  %v8418_v20 = vld [vmem:[%s9188_s2] sm:$0xff]  }
0x2705   :  { %v2677_v23 = vpack.c.bf16 %v2676_v22, %v2676_v22 }
0x2707   :  { %6875 = vmatmul.mubr.msk.bf16.vlgmr.msra.gmra.mrb[92].mxu0 %vm457_vm2, %v2677_v23 }
0x2708   :  { %v2766_v5 = vpop.f32.mrb[92].mxu1  ;;  %6887 = vmatpush3.bf16.msra.mxu0 %v8146_v42  ;;  %6890 = vmatprep.mubr.msk.bf16.mxu0 %vm7620_vm1, %v7619_v1 }
0x2709   :  { %v2772_v2 = vadd.f32 %v2766_v5, %v323_v11  ;;  %v6884_v53 = vpop.f32.mrb[93].mxu1  ;;  %6888 = vmatprep.subr.bf16.mxu0 %v7619_v1 }
0x270a   :  { %v2769_v26 = vpop.f32.mrb[94].mxu1 }
0x270b   :  { %7442 = vtanh.f32 %v2772_v2  ;;  %v6885_v45 = vpop.f32.mrb[95].mxu1  ;;  %v2773_v27 = vmul.f32 0.5, %v2772_v2  ;;  %v328_v2 = vadd.f32 %v8138_v31, %v7946_v52 }
0x270c   :  { %6889 = vmatpush3.bf16.msra.mxu0 %v8155_v29 }
0x270d   :  { %6902 = vmatprep.subr.bf16.mxu0 %v7619_v1  ;;  %7444 = vtanh.f32 %v2773_v27 }
0x2715   :  { %v7443_v56 = vpop.eup %7442 }
0x2716   :  { %2780 = vrot.lane.b32.xlu1 %v7443_v56, %s7622_s12 }
0x2717   :  { %v7445_v30 = vpop.eup %7444 }
0x2718   :  { %v2775_v33 = vmul.f32 0.5, %v7445_v30 }
0x271a   :  { %v2776_v34 = vadd.f32 0.5, %v2775_v33 }
0x271c   :  { %v2778_v50 = vmul.f32 %v2776_v34, %v8371_v46 }
0x2788   :  { %v2781_v48 = vpop.permute.xlu1 %2780 }
0x2789   :  { %v2783_v35 = vmul.f32 %v2781_v48, %v2776_v34 }
0x278b   :  { %2785 = vrot.lane.b32.xlu0 %v2783_v35, %s7622_s12 }
0x27da   :  { %v2715_v15 = vpop.f32.mrb[92].mxu0 }
0x27db   :  { %v2716_v38 = vadd.f32 %v8216_v51, %v2715_v15  ;;  %v6876_v39 = vpop.f32.mrb[93].mxu0 }
0x27dc   :  { %v2718_v24 = vpop.f32.mrb[94].mxu0 }
0x27dd   :  { %6112 = vst [vmem:[%s9196_s10 + $0x60] sm:$0xff] %v2716_v38  ;;  %v6877_v58 = vpop.f32.mrb[95].mxu0 }
0x27fd   :  { %v2786_v25 = vpop.permute.xlu0 %2785 }
0x27fe   :  { %v8408_v40 = vadd.f32 %v2786_v25, %v2778_v50 }
0x2800   :  { %7446 = vtanh.f32 %v8408_v40 }
0x280a   :  { %v7447_v32 = vpop.eup %7446 }
0x280b   :  { %2791 = vrot.lane.b32.xlu1 %v7447_v32, %s7622_s12  ;;  %v2968_v32 = vstv %s6120_s0  ;;  %s6162_s0 = sld [smem:[#allocation3 + $0x15]] }
0x287d   :  { %v2792_v16 = vpop.permute.xlu1 %2791 }
0x287e   :  { %v2794_v17 = vmul.f32 %v2792_v16, %v2776_v34 }
0x2880   :  { %v2797_v36 = vmul.f32 %v2796_v54, %v2794_v17  ;;  %v2897_v47 = vpack.c.bf16 %v2794_v17, %v2794_v17  ;;  %v2971_v17 = vstv %s6121_s4  ;;  %s6163_s4 = sld [smem:[#allocation5 + $0x15]] }
0x2882   :  { %2899 = vrot.lane.b32.xlu1 %v2897_v47, %s7623_s21  ;;  %v2800_v19 = vadd.f32 %v2799_v18, %v2797_v36 }
0x2884   :  { %v2801_v46 = vpack.c.bf16 %v2800_v19, %v2800_v19 }
0x2886   :  { %2803 = vrot.lane.b32.xlu0 %v2801_v46, %s7623_s21  ;;  %v8464_v46 = vld [vmem:[%s9188_s2 + $0x8] sm:$0xff]  }
0x28f4   :  { %v2900_v44 = vpop.permute.xlu1 %2899 }
0x28f8   :  { %v2804_v37 = vpop.permute.xlu0 %2803 }
0x28f9   :  { %6891 = vmatmul.mubr.msk.bf16.vlgmr.msra.gmra.mrb[96].mxu0 %vm457_vm2, %v2804_v37 }
0x28fa   :  { %6903 = vmatpush3.bf16.msra.mxu0 %v8418_v20  ;;  %6906 = vmatprep.mubr.msk.bf16.mxu0 %vm7620_vm1, %v7619_v1 }
0x28fb   :  { %6904 = vmatprep.subr.bf16.mxu0 %v7619_v1 }
0x28fe   :  { %6905 = vmatpush3.bf16.msra.mxu0 %v8123_v43 }
0x28ff   :  { %6918 = vmatprep.subr.bf16.mxu0 %v7619_v1 }
0x2901   :  { %6907 = vmatmul.mubr.msk.bf16.vlgmr.msra.gmra.mrb[100].mxu0 %vm457_vm2, %v2900_v44 }
0x2902   :  { %6919 = vmatpush3.bf16.msra.mxu0 %v8183_v21  ;;  %6922 = vmatprep.mubr.msk.bf16.mxu0 %vm7620_vm1, %v7619_v1 }
0x2903   :  { %6920 = vmatprep.subr.bf16.mxu0 %v7619_v1 }
0x2906   :  { %6921 = vmatpush3.bf16.msra.mxu0 %v8192_v7 }
0x2907   :  { %6934 = vmatprep.subr.bf16.mxu0 %v7619_v1 }
0x29cc   :  { %v2842_v28 = vpop.f32.mrb[96].mxu0 }
0x29cd   :  { %v2843_v22 = vadd.f32 %v8199_v41, %v2842_v28  ;;  %v6892_v43 = vpop.f32.mrb[97].mxu0 }
0x29ce   :  { %v2845_v49 = vpop.f32.mrb[98].mxu0 }
0x29cf   :  { %v2848_v23 = vmax.f32 %v2843_v22, 0.0  ;;  %v6893_v11 = vpop.f32.mrb[99].mxu0 }
0x29d1   :  { %v2849_v5 = vpack.c.bf16 %v2848_v23, %v2848_v23 }
0x29d3   :  { %6899 = vmatmul.mubr.msk.bf16.vlgmr.msra.gmra.mrb[96].mxu1 %vm457_vm2, %v2849_v5 }
0x29d4   :  { %v2938_v53 = vpop.f32.mrb[100].mxu0  ;;  %6911 = vmatpush3.bf16.msra.mxu1 %v8146_v42  ;;  %6914 = vmatprep.mubr.msk.bf16.mxu1 %vm7620_vm1, %v7619_v1 }
0x29d5   :  { %v2944_v26 = vadd.f32 %v2938_v53, %v328_v2  ;;  %v6908_v45 = vpop.f32.mrb[101].mxu0  ;;  %6912 = vmatprep.subr.bf16.mxu1 %v7619_v1 }
0x29d6   :  { %v2941_v56 = vpop.f32.mrb[102].mxu0  ;;  %v8496_v45 = vld [vmem:[%s9192_s6 + $0x8] sm:$0xff]  }
0x29d7   :  { %7448 = vtanh.f32 %v2944_v26  ;;  %v6909_v27 = vpop.f32.mrb[103].mxu0  ;;  %v2945_v31 = vmul.f32 0.5, %v2944_v26 }
0x29d8   :  { %6913 = vmatpush3.bf16.msra.mxu1 %v8155_v29 }
0x29d9   :  { %6926 = vmatprep.subr.bf16.mxu1 %v7619_v1  ;;  %7450 = vtanh.f32 %v2945_v31 }
0x29e1   :  { %v7449_v52 = vpop.eup %7448 }
0x29e2   :  { %2952 = vrot.lane.b32.xlu0 %v7449_v52, %s7622_s12 }
0x29e3   :  { %v7451_v42 = vpop.eup %7450 }
0x29e4   :  { %v2947_v30 = vmul.f32 0.5, %v7451_v42 }
0x29e6   :  { %v2948_v33 = vadd.f32 0.5, %v2947_v30 }
0x29e8   :  { %v2950_v24 = vmul.f32 %v2948_v33, %v8408_v40 }
0x2a54   :  { %v2953_v34 = vpop.permute.xlu0 %2952 }
0x2a55   :  { %v2955_v48 = vmul.f32 %v2953_v34, %v2948_v33 }
0x2a57   :  { %2957 = vrot.lane.b32.xlu1 %v2955_v48, %s7622_s12 }
0x2aa6   :  { %v2887_v35 = vpop.f32.mrb[96].mxu1 }
0x2aa7   :  { %v2888_v15 = vadd.f32 %v8216_v51, %v2887_v35  ;;  %v6900_v38 = vpop.f32.mrb[97].mxu1 }
0x2aa8   :  { %v2890_v39 = vpop.f32.mrb[98].mxu1 }
0x2aa9   :  { %6118 = vst [vmem:[%s9196_s10 + $0x68] sm:$0xff] %v2888_v15  ;;  %v6901_v29 = vpop.f32.mrb[99].mxu1 }
0x2ac9   :  { %v2958_v58 = vpop.permute.xlu1 %2957 }
0x2aca   :  { %v8450_v50 = vadd.f32 %v2958_v58, %v2950_v24 }
0x2acc   :  { %7452 = vtanh.f32 %v8450_v50 }
0x2ad6   :  { %v7453_v25 = vpop.eup %7452 }
0x2ad7   :  { %2963 = vrot.lane.b32.xlu0 %v7453_v25, %s7622_s12 }
0x2b49   :  { %v2964_v54 = vpop.permute.xlu0 %2963 }
0x2b4a   :  { %v2966_v16 = vmul.f32 %v2964_v54, %v2948_v33  ;;  %v3143_v54 = vstv %s6127_s11 }
0x2b4c   :  { %v2969_v18 = vmul.f32 %v2968_v32, %v2966_v16  ;;  %v3069_v36 = vpack.c.bf16 %v2966_v16, %v2966_v16 }
0x2b4e   :  { %3071 = vrot.lane.b32.xlu0 %v3069_v36, %s7623_s21  ;;  %v2972_v47 = vadd.f32 %v2971_v17, %v2969_v18 }
0x2b50   :  { %v2973_v40 = vpack.c.bf16 %v2972_v47, %v2972_v47 }
0x2b52   :  { %2975 = vrot.lane.b32.xlu1 %v2973_v40, %s7623_s21  ;;  %v8524_v40 = vld [vmem:[%s9194_s8] sm:$0xff]  }
0x2bc0   :  { %v3072_v37 = vpop.permute.xlu0 %3071 }
0x2bc4   :  { %v2976_v19 = vpop.permute.xlu1 %2975 }
0x2bc5   :  { %6915 = vmatmul.mubr.msk.bf16.vlgmr.msra.gmra.mrb[100].mxu1 %vm457_vm2, %v2976_v19  ;;  %v8533_v19 = vld [vmem:[%s9194_s8 + $0x8] sm:$0xff]  }
0x2bc6   :  { %6927 = vmatpush3.bf16.msra.mxu1 %v8418_v20  ;;  %6930 = vmatprep.mubr.msk.bf16.mxu1 %vm7620_vm1, %v7619_v1 }
0x2bc7   :  { %6928 = vmatprep.subr.bf16.mxu1 %v7619_v1 }
0x2bca   :  { %6929 = vmatpush3.bf16.msra.mxu1 %v8464_v46 }
0x2bcb   :  { %6942 = vmatprep.subr.bf16.mxu1 %v7619_v1 }
0x2bcd   :  { %6931 = vmatmul.mubr.msk.bf16.vlgmr.msra.gmra.mrb[104].mxu1 %vm457_vm2, %v3072_v37 }
0x2bce   :  { %6943 = vmatpush3.bf16.msra.mxu1 %v8183_v21  ;;  %6946 = vmatprep.mubr.msk.bf16.mxu1 %vm7620_vm1, %v7619_v1  ;;  %v8479_v21 = vld [vmem:[%s9189_s3] ss:$0 sm:$0xff] }
0x2bcf   :  { %6944 = vmatprep.subr.bf16.mxu1 %v7619_v1  ;;  %v331_v5 = vadd.f32 %v8479_v21, %v7950_v55 }
0x2bd2   :  { %6945 = vmatpush3.bf16.msra.mxu1 %v8192_v7 }
0x2bd3   :  { %6958 = vmatprep.subr.bf16.mxu1 %v7619_v1 }
0x2c98   :  { %v3014_v44 = vpop.f32.mrb[100].mxu1 }
0x2c99   :  { %v3015_v28 = vadd.f32 %v8199_v41, %v3014_v44  ;;  %v6916_v22 = vpop.f32.mrb[101].mxu1  ;;  %v8487_v41 = vld [vmem:[%s9192_s6] sm:$0xff]  }
0x2c9a   :  { %v3017_v43 = vpop.f32.mrb[102].mxu1  ;;  %v8540_v44 = vld [vmem:[%s9193_s7] ss:$0 sm:$0xff] }
0x2c9b   :  { %v3020_v49 = vmax.f32 %v3015_v28, 0.0  ;;  %v6917_v23 = vpop.f32.mrb[103].mxu1 }
0x2c9d   :  { %v3021_v11 = vpack.c.bf16 %v3020_v49, %v3020_v49 }
0x2c9f   :  { %6923 = vmatmul.mubr.msk.bf16.vlgmr.msra.gmra.mrb[104].mxu0 %vm457_vm2, %v3021_v11 }
0x2ca0   :  { %v3110_v7 = vpop.f32.mrb[104].mxu1  ;;  %6935 = vmatpush3.bf16.msra.mxu0 %v8487_v41  ;;  %6938 = vmatprep.mubr.msk.bf16.mxu0 %vm7620_vm1, %v7619_v1 }
0x2ca1   :  { %v3116_v2 = vadd.f32 %v3110_v7, %v331_v5  ;;  %v6932_v53 = vpop.f32.mrb[105].mxu1  ;;  %6936 = vmatprep.subr.bf16.mxu0 %v7619_v1  ;;  %v336_v5 = vadd.f32 %v8479_v21, %v7957_v57 }
0x2ca2   :  { %v3113_v26 = vpop.f32.mrb[106].mxu1 }
0x2ca3   :  { %7454 = vtanh.f32 %v3116_v2  ;;  %v6933_v55 = vpop.f32.mrb[107].mxu1  ;;  %v3117_v27 = vmul.f32 0.5, %v3116_v2 }
0x2ca4   :  { %6937 = vmatpush3.bf16.msra.mxu0 %v8496_v45 }
0x2ca5   :  { %6950 = vmatprep.subr.bf16.mxu0 %v7619_v1  ;;  %7456 = vtanh.f32 %v3117_v27 }
0x2cad   :  { %v7455_v56 = vpop.eup %7454 }
0x2cae   :  { %3124 = vrot.lane.b32.xlu1 %v7455_v56, %s7622_s12 }
0x2caf   :  { %v7457_v52 = vpop.eup %7456 }
0x2cb0   :  { %v3119_v31 = vmul.f32 0.5, %v7457_v52 }
0x2cb2   :  { %v3120_v42 = vadd.f32 0.5, %v3119_v31 }
0x2cb4   :  { %v3122_v39 = vmul.f32 %v3120_v42, %v8450_v50 }
0x2d20   :  { %v3125_v30 = vpop.permute.xlu1 %3124 }
0x2d21   :  { %v3127_v33 = vmul.f32 %v3125_v30, %v3120_v42 }
0x2d23   :  { %3129 = vrot.lane.b32.xlu0 %v3127_v33, %s7622_s12 }
0x2d72   :  { %v3059_v34 = vpop.f32.mrb[104].mxu0 }
0x2d73   :  { %v3060_v48 = vadd.f32 %v8216_v51, %v3059_v34  ;;  %v6924_v35 = vpop.f32.mrb[105].mxu0  ;;  %v3140_v51 = vstv %s6126_s30  ;;  %v8557_v34 = vld [vmem:[%s9195_s9] ss:$0 sm:$0xff] }
0x2d74   :  { %v3062_v15 = vpop.f32.mrb[106].mxu0 }
0x2d75   :  { %6124 = vst [vmem:[%s9196_s10 + $0x70] sm:$0xff] %v3060_v48  ;;  %v6925_v38 = vpop.f32.mrb[107].mxu0 }
0x2d95   :  { %v3130_v29 = vpop.permute.xlu0 %3129 }
0x2d96   :  { %v8507_v24 = vadd.f32 %v3130_v29, %v3122_v39 }
0x2d98   :  { %7458 = vtanh.f32 %v8507_v24 }
0x2da2   :  { %v7459_v58 = vpop.eup %7458 }
0x2da3   :  { %3135 = vrot.lane.b32.xlu1 %v7459_v58, %s7622_s12 }
0x2e15   :  { %v3136_v25 = vpop.permute.xlu1 %3135 }
0x2e16   :  { %v3138_v32 = vmul.f32 %v3136_v25, %v3120_v42  ;;  %v3312_v25 = vstv %s6132_s5 }
0x2e18   :  { %v3141_v16 = vmul.f32 %v3140_v51, %v3138_v32  ;;  %v3241_v17 = vpack.c.bf16 %v3138_v32, %v3138_v32 }
0x2e1a   :  { %3243 = vrot.lane.b32.xlu1 %v3241_v17, %s7623_s21  ;;  %v3144_v18 = vadd.f32 %v3143_v54, %v3141_v16  ;;  %v3315_v16 = vstv %s6133_s22 }
0x2e1c   :  { %v3145_v50 = vpack.c.bf16 %v3144_v18, %v3144_v18 }
0x2e1e   :  { %3147 = vrot.lane.b32.xlu0 %v3145_v50, %s7623_s21 }
0x2e8c   :  { %v3244_v47 = vpop.permute.xlu1 %3243 }
0x2e90   :  { %v3148_v36 = vpop.permute.xlu0 %3147 }
0x2e91   :  { %6939 = vmatmul.mubr.msk.bf16.vlgmr.msra.gmra.mrb[108].mxu0 %vm457_vm2, %v3148_v36 }
0x2e92   :  { %6951 = vmatpush3.bf16.msra.mxu0 %v8418_v20  ;;  %6954 = vmatprep.mubr.msk.bf16.mxu0 %vm7620_vm1, %v7619_v1 }
0x2e93   :  { %6952 = vmatprep.subr.bf16.mxu0 %v7619_v1 }
0x2e96   :  { %6953 = vmatpush3.bf16.msra.mxu0 %v8464_v46 }
0x2e97   :  { %6966 = vmatprep.subr.bf16.mxu0 %v7619_v1 }
0x2e99   :  { %6955 = vmatmul.mubr.msk.bf16.vlgmr.msra.gmra.mrb[112].mxu0 %vm457_vm2, %v3244_v47 }
0x2e9a   :  { %6967 = vmatpush3.bf16.msra.mxu0 %v8524_v40  ;;  %6970 = vmatprep.mubr.msk.bf16.mxu0 %vm7620_vm1, %v7619_v1 }
0x2e9b   :  { %6968 = vmatprep.subr.bf16.mxu0 %v7619_v1 }
0x2e9e   :  { %6969 = vmatpush3.bf16.msra.mxu0 %v8533_v19 }
0x2e9f   :  { %6982 = vmatprep.subr.bf16.mxu0 %v7619_v1 }
0x2f64   :  { %v3186_v37 = vpop.f32.mrb[108].mxu0 }
0x2f65   :  { %v3187_v28 = vadd.f32 %v8540_v44, %v3186_v37  ;;  %v6940_v22 = vpop.f32.mrb[109].mxu0 }
0x2f66   :  { %v3189_v43 = vpop.f32.mrb[110].mxu0 }
0x2f67   :  { %v3192_v49 = vmax.f32 %v3187_v28, 0.0  ;;  %v6941_v23 = vpop.f32.mrb[111].mxu0 }
0x2f69   :  { %v3193_v11 = vpack.c.bf16 %v3192_v49, %v3192_v49 }
0x2f6b   :  { %6947 = vmatmul.mubr.msk.bf16.vlgmr.msra.gmra.mrb[108].mxu1 %vm457_vm2, %v3193_v11 }
0x2f6c   :  { %v3282_v7 = vpop.f32.mrb[112].mxu0  ;;  %6959 = vmatpush3.bf16.msra.mxu1 %v8487_v41  ;;  %6962 = vmatprep.mubr.msk.bf16.mxu1 %vm7620_vm1, %v7619_v1 }
0x2f6d   :  { %v3288_v2 = vadd.f32 %v3282_v7, %v336_v5  ;;  %v6956_v53 = vpop.f32.mrb[113].mxu0  ;;  %6960 = vmatprep.subr.bf16.mxu1 %v7619_v1  ;;  %v339_v5 = vadd.f32 %v8479_v21, %v7961_v60 }
0x2f6e   :  { %v3285_v26 = vpop.f32.mrb[114].mxu0 }
0x2f6f   :  { %7460 = vtanh.f32 %v3288_v2  ;;  %v6957_v55 = vpop.f32.mrb[115].mxu0  ;;  %v3289_v56 = vmul.f32 0.5, %v3288_v2 }
0x2f70   :  { %6961 = vmatpush3.bf16.msra.mxu1 %v8496_v45 }
0x2f71   :  { %6974 = vmatprep.subr.bf16.mxu1 %v7619_v1  ;;  %7462 = vtanh.f32 %v3289_v56 }
0x2f79   :  { %v7461_v57 = vpop.eup %7460 }
0x2f7a   :  { %3296 = vrot.lane.b32.xlu0 %v7461_v57, %s7622_s12 }
0x2f7b   :  { %v7463_v27 = vpop.eup %7462 }
0x2f7c   :  { %v3291_v52 = vmul.f32 0.5, %v7463_v27 }
0x2f7e   :  { %v3292_v31 = vadd.f32 0.5, %v3291_v52 }
0x2f80   :  { %v3294_v39 = vmul.f32 %v3292_v31, %v8507_v24 }
0x2fec   :  { %v3297_v42 = vpop.permute.xlu0 %3296 }
0x2fed   :  { %v3299_v30 = vmul.f32 %v3297_v42, %v3292_v31 }
0x2fef   :  { %3301 = vrot.lane.b32.xlu1 %v3299_v30, %s7622_s12 }
0x303e   :  { %v3231_v33 = vpop.f32.mrb[108].mxu1 }
0x303f   :  { %v3232_v48 = vadd.f32 %v8557_v34, %v3231_v33  ;;  %v6948_v35 = vpop.f32.mrb[109].mxu1 }
0x3040   :  { %v3234_v15 = vpop.f32.mrb[110].mxu1 }
0x3041   :  { %6130 = vst [vmem:[%s9196_s10 + $0x78] sm:$0xff] %v3232_v48  ;;  %v6949_v38 = vpop.f32.mrb[111].mxu1 }
0x3061   :  { %v3302_v29 = vpop.permute.xlu1 %3301 }
0x3062   :  { %v8564_v58 = vadd.f32 %v3302_v29, %v3294_v39 }
0x3064   :  { %7464 = vtanh.f32 %v8564_v58 }
0x306e   :  { %v7465_v51 = vpop.eup %7464 }
0x306f   :  { %3307 = vrot.lane.b32.xlu0 %v7465_v51, %s7622_s12 }
0x30e1   :  { %v3308_v32 = vpop.permute.xlu0 %3307 }
0x30e2   :  { %v3310_v54 = vmul.f32 %v3308_v32, %v3292_v31 }
0x30e4   :  { %v3313_v17 = vmul.f32 %v3312_v25, %v3310_v54  ;;  %v3413_v18 = vpack.c.bf16 %v3310_v54, %v3310_v54  ;;  %v3484_v25 = vstv %s6138_s25  ;;  %s6168_s25 = sld [smem:[#allocation3 + $0x16]] }
0x30e6   :  { %3415 = vrot.lane.b32.xlu0 %v3413_v18, %s7623_s21  ;;  %v3316_v50 = vadd.f32 %v3315_v16, %v3313_v17  ;;  %v3487_v16 = vstv %s6139_s26  ;;  %s6169_s26 = sld [smem:[#allocation5 + $0x16]] }
0x30e8   :  { %v3317_v24 = vpack.c.bf16 %v3316_v50, %v3316_v50 }
0x30ea   :  { %3319 = vrot.lane.b32.xlu1 %v3317_v24, %s7623_s21 }
0x3158   :  { %v3416_v47 = vpop.permute.xlu0 %3415 }
0x315c   :  { %v3320_v36 = vpop.permute.xlu1 %3319 }
0x315d   :  { %6963 = vmatmul.mubr.msk.bf16.vlgmr.msra.gmra.mrb[112].mxu1 %vm457_vm2, %v3320_v36 }
0x315e   :  { %6975 = vmatpush3.bf16.msra.mxu1 %v8418_v20  ;;  %6978 = vmatprep.mubr.msk.bf16.mxu1 %vm7620_vm1, %v7619_v1 }
0x315f   :  { %6976 = vmatprep.subr.bf16.mxu1 %v7619_v1 }
0x3162   :  { %6977 = vmatpush3.bf16.msra.mxu1 %v8464_v46 }
0x3163   :  { %6990 = vmatprep.subr.bf16.mxu1 %v7619_v1 }
0x3165   :  { %6979 = vmatmul.mubr.msk.bf16.vlgmr.msra.gmra.mrb[116].mxu1 %vm457_vm2, %v3416_v47 }
0x3166   :  { %6991 = vmatpush3.bf16.msra.mxu1 %v8524_v40  ;;  %6994 = vmatprep.mubr.msk.bf16.mxu1 %vm7620_vm1, %v7619_v1 }
0x3167   :  { %6992 = vmatprep.subr.bf16.mxu1 %v7619_v1 }
0x316a   :  { %6993 = vmatpush3.bf16.msra.mxu1 %v8533_v19 }
0x316b   :  { %7006 = vmatprep.subr.bf16.mxu1 %v7619_v1 }
0x3230   :  { %v3358_v37 = vpop.f32.mrb[112].mxu1 }
0x3231   :  { %v3359_v28 = vadd.f32 %v8540_v44, %v3358_v37  ;;  %v6964_v22 = vpop.f32.mrb[113].mxu1 }
0x3232   :  { %v3361_v43 = vpop.f32.mrb[114].mxu1 }
0x3233   :  { %v3364_v49 = vmax.f32 %v3359_v28, 0.0  ;;  %v6965_v23 = vpop.f32.mrb[115].mxu1 }
0x3235   :  { %v3365_v11 = vpack.c.bf16 %v3364_v49, %v3364_v49 }
0x3237   :  { %6971 = vmatmul.mubr.msk.bf16.vlgmr.msra.gmra.mrb[116].mxu0 %vm457_vm2, %v3365_v11  ;;  %v344_v11 = vadd.f32 %v8479_v21, %v7955_v8 }
0x3238   :  { %v3454_v7 = vpop.f32.mrb[116].mxu1  ;;  %6983 = vmatpush3.bf16.msra.mxu0 %v8487_v41  ;;  %6986 = vmatprep.mubr.msk.bf16.mxu0 %vm7620_vm1, %v7619_v1 }
0x3239   :  { %v3460_v2 = vadd.f32 %v3454_v7, %v339_v5  ;;  %v6980_v53 = vpop.f32.mrb[117].mxu1  ;;  %6984 = vmatprep.subr.bf16.mxu0 %v7619_v1 }
0x323a   :  { %v3457_v26 = vpop.f32.mrb[118].mxu1 }
0x323b   :  { %7466 = vtanh.f32 %v3460_v2  ;;  %v6981_v55 = vpop.f32.mrb[119].mxu1  ;;  %v3461_v57 = vmul.f32 0.5, %v3460_v2 }
0x323c   :  { %6985 = vmatpush3.bf16.msra.mxu0 %v8496_v45 }
0x323d   :  { %6998 = vmatprep.subr.bf16.mxu0 %v7619_v1  ;;  %7468 = vtanh.f32 %v3461_v57 }
0x3245   :  { %v7467_v60 = vpop.eup %7466 }
0x3246   :  { %3468 = vrot.lane.b32.xlu1 %v7467_v60, %s7622_s12 }
0x3247   :  { %v7469_v56 = vpop.eup %7468 }
0x3248   :  { %v3463_v27 = vmul.f32 0.5, %v7469_v56 }
0x324a   :  { %v3464_v52 = vadd.f32 0.5, %v3463_v27 }
0x324c   :  { %v3466_v38 = vmul.f32 %v3464_v52, %v8564_v58 }
0x32b8   :  { %v3469_v31 = vpop.permute.xlu1 %3468 }
0x32b9   :  { %v3471_v42 = vmul.f32 %v3469_v31, %v3464_v52 }
0x32bb   :  { %3473 = vrot.lane.b32.xlu0 %v3471_v42, %s7622_s12 }
0x330a   :  { %v3403_v30 = vpop.f32.mrb[116].mxu0 }
0x330b   :  { %v3404_v33 = vadd.f32 %v8557_v34, %v3403_v30  ;;  %v6972_v48 = vpop.f32.mrb[117].mxu0 }
0x330c   :  { %v3406_v35 = vpop.f32.mrb[118].mxu0 }
0x330d   :  { %6136 = vst [vmem:[%s9196_s10 + $0x80] sm:$0xff] %v3404_v33  ;;  %v6973_v15 = vpop.f32.mrb[119].mxu0 }
0x332d   :  { %v3474_v39 = vpop.permute.xlu0 %3473 }
0x332e   :  { %v8601_v29 = vadd.f32 %v3474_v39, %v3466_v38 }
0x3330   :  { %7470 = vtanh.f32 %v8601_v29 }
0x333a   :  { %v7471_v51 = vpop.eup %7470 }
0x333b   :  { %3479 = vrot.lane.b32.xlu1 %v7471_v51, %s7622_s12  ;;  %v3656_v51 = vstv %s6144_s1  ;;  %s6186_s1 = sld [smem:[#allocation3 + $0x19]] }
0x33ad   :  { %v3480_v32 = vpop.permute.xlu1 %3479 }
0x33ae   :  { %v3482_v54 = vmul.f32 %v3480_v32, %v3464_v52 }
0x33b0   :  { %v3485_v17 = vmul.f32 %v3484_v25, %v3482_v54  ;;  %v3585_v18 = vpack.c.bf16 %v3482_v54, %v3482_v54  ;;  %v3659_v54 = vstv %s6145_s29  ;;  %s6187_s29 = sld [smem:[#allocation5 + $0x19]] }
0x33b2   :  { %3587 = vrot.lane.b32.xlu1 %v3585_v18, %s7623_s21  ;;  %v3488_v50 = vadd.f32 %v3487_v16, %v3485_v17 }
0x33b4   :  { %v3489_v58 = vpack.c.bf16 %v3488_v50, %v3488_v50 }
0x33b6   :  { %3491 = vrot.lane.b32.xlu0 %v3489_v58, %s7623_s21 }
0x3424   :  { %v3588_v36 = vpop.permute.xlu1 %3587 }
0x3428   :  { %v3492_v24 = vpop.permute.xlu0 %3491 }
0x3429   :  { %6987 = vmatmul.mubr.msk.bf16.vlgmr.msra.gmra.mrb[120].mxu0 %vm457_vm2, %v3492_v24 }
0x342a   :  { %6999 = vmatpush3.bf16.msra.mxu0 %v8418_v20  ;;  %7002 = vmatprep.mubr.msk.bf16.mxu0 %vm7620_vm1, %v7619_v1 }
0x342b   :  { %7000 = vmatprep.subr.bf16.mxu0 %v7619_v1 }
0x342e   :  { %7001 = vmatpush3.bf16.msra.mxu0 %v8464_v46 }
0x342f   :  { %7014 = vmatprep.subr.bf16.mxu0 %v7619_v1 }
0x3431   :  { %7003 = vmatmul.mubr.msk.bf16.vlgmr.msra.gmra.mrb[124].mxu0 %vm457_vm2, %v3588_v36 }
0x3432   :  { %7015 = vmatpush3.bf16.msra.mxu0 %v8524_v40  ;;  %7018 = vmatprep.mubr.msk.bf16.mxu0 %vm7620_vm1, %v7619_v1 }
0x3433   :  { %7016 = vmatprep.subr.bf16.mxu0 %v7619_v1 }
0x3436   :  { %7017 = vmatpush3.bf16.msra.mxu0 %v8533_v19 }
0x3437   :  { %7030 = vmatprep.subr.bf16.mxu0 %v7619_v1 }
0x34fc   :  { %v3530_v47 = vpop.f32.mrb[120].mxu0 }
0x34fd   :  { %v3531_v37 = vadd.f32 %v8540_v44, %v3530_v47  ;;  %v6988_v28 = vpop.f32.mrb[121].mxu0 }
0x34fe   :  { %v3533_v22 = vpop.f32.mrb[122].mxu0 }
0x34ff   :  { %v3536_v43 = vmax.f32 %v3531_v37, 0.0  ;;  %v6989_v49 = vpop.f32.mrb[123].mxu0 }
0x3500   :  { %v347_v49 = vadd.f32 %v8479_v21, %v7959_v59 }
0x3501   :  { %v3537_v23 = vpack.c.bf16 %v3536_v43, %v3536_v43 }
0x3503   :  { %6995 = vmatmul.mubr.msk.bf16.vlgmr.msra.gmra.mrb[120].mxu1 %vm457_vm2, %v3537_v23 }
0x3504   :  { %v3626_v5 = vpop.f32.mrb[124].mxu0  ;;  %7007 = vmatpush3.bf16.msra.mxu1 %v8487_v41  ;;  %7010 = vmatprep.mubr.msk.bf16.mxu1 %vm7620_vm1, %v7619_v1 }
0x3505   :  { %v3632_v7 = vadd.f32 %v3626_v5, %v344_v11  ;;  %v7004_v2 = vpop.f32.mrb[125].mxu0  ;;  %7008 = vmatprep.subr.bf16.mxu1 %v7619_v1 }
0x3506   :  { %v3629_v53 = vpop.f32.mrb[126].mxu0 }
0x3507   :  { %7472 = vtanh.f32 %v3632_v7  ;;  %v7005_v26 = vpop.f32.mrb[127].mxu0  ;;  %v3633_v55 = vmul.f32 0.5, %v3632_v7 }
0x3508   :  { %7009 = vmatpush3.bf16.msra.mxu1 %v8496_v45 }
0x3509   :  { %7022 = vmatprep.subr.bf16.mxu1 %v7619_v1  ;;  %7474 = vtanh.f32 %v3633_v55 }
0x3511   :  { %v7473_v8 = vpop.eup %7472 }
0x3512   :  { %3640 = vrot.lane.b32.xlu0 %v7473_v8, %s7622_s12 }
0x3513   :  { %v7475_v60 = vpop.eup %7474 }
0x3514   :  { %v3635_v57 = vmul.f32 0.5, %v7475_v60 }
0x3516   :  { %v3636_v56 = vadd.f32 0.5, %v3635_v57 }
0x3518   :  { %v3638_v35 = vmul.f32 %v3636_v56, %v8601_v29 }
0x3584   :  { %v3641_v27 = vpop.permute.xlu0 %3640 }
0x3585   :  { %v3643_v52 = vmul.f32 %v3641_v27, %v3636_v56 }
0x3587   :  { %3645 = vrot.lane.b32.xlu1 %v3643_v52, %s7622_s12 }
0x35d6   :  { %v3575_v31 = vpop.f32.mrb[120].mxu1 }
0x35d7   :  { %v3576_v42 = vadd.f32 %v8557_v34, %v3575_v31  ;;  %v6996_v30 = vpop.f32.mrb[121].mxu1 }
0x35d8   :  { %v3578_v33 = vpop.f32.mrb[122].mxu1 }
0x35d9   :  { %6142 = vst [vmem:[%s9196_s10 + $0x88] sm:$0xff] %v3576_v42  ;;  %v6997_v48 = vpop.f32.mrb[123].mxu1 }
0x35f9   :  { %v3646_v15 = vpop.permute.xlu1 %3645 }
0x35fa   :  { %v8638_v38 = vadd.f32 %v3646_v15, %v3638_v35  ;;  %v3828_v15 = vstv %s6150_s13  ;;  %s6192_s13 = sld [smem:[#allocation3 + $0x1a]] }
0x35fc   :  { %7476 = vtanh.f32 %v8638_v38 }
0x3606   :  { %v7477_v39 = vpop.eup %7476 }
0x3607   :  { %3651 = vrot.lane.b32.xlu0 %v7477_v39, %s7622_s12 }
0x3679   :  { %v3652_v25 = vpop.permute.xlu0 %3651 }
0x367a   :  { %v3654_v32 = vmul.f32 %v3652_v25, %v3636_v56  ;;  %v3831_v25 = vstv %s6151_s14  ;;  %s6193_s14 = sld [smem:[#allocation5 + $0x1a]] }
0x367c   :  { %v3657_v16 = vmul.f32 %v3656_v51, %v3654_v32  ;;  %v3757_v17 = vpack.c.bf16 %v3654_v32, %v3654_v32 }
0x367e   :  { %3759 = vrot.lane.b32.xlu0 %v3757_v17, %s7623_s21  ;;  %v3660_v18 = vadd.f32 %v3659_v54, %v3657_v16 }
0x3680   :  { %v3661_v29 = vpack.c.bf16 %v3660_v18, %v3660_v18 }
0x3682   :  { %3663 = vrot.lane.b32.xlu1 %v3661_v29, %s7623_s21 }
0x36f0   :  { %v3760_v58 = vpop.permute.xlu0 %3759 }
0x36f4   :  { %v3664_v50 = vpop.permute.xlu1 %3663 }
0x36f5   :  { %7011 = vmatmul.mubr.msk.bf16.vlgmr.msra.gmra.mrb[124].mxu1 %vm457_vm2, %v3664_v50 }
0x36f6   :  { %7023 = vmatpush3.bf16.msra.mxu1 %v8418_v20  ;;  %7026 = vmatprep.mubr.msk.bf16.mxu1 %vm7620_vm1, %v7619_v1 }
0x36f7   :  { %7024 = vmatprep.subr.bf16.mxu1 %v7619_v1 }
0x36fa   :  { %7025 = vmatpush3.bf16.msra.mxu1 %v8464_v46 }
0x36fb   :  { %7038 = vmatprep.subr.bf16.mxu1 %v7619_v1 }
0x36fd   :  { %7027 = vmatmul.mubr.msk.bf16.vlgmr.msra.gmra.mrb[128].mxu1 %vm457_vm2, %v3760_v58 }
0x36fe   :  { %7039 = vmatpush3.bf16.msra.mxu1 %v8524_v40  ;;  %7042 = vmatprep.mubr.msk.bf16.mxu1 %vm7620_vm1, %v7619_v1 }
0x36ff   :  { %7040 = vmatprep.subr.bf16.mxu1 %v7619_v1 }
0x3702   :  { %7041 = vmatpush3.bf16.msra.mxu1 %v8533_v19 }
0x3703   :  { %7054 = vmatprep.subr.bf16.mxu1 %v7619_v1 }
0x37c8   :  { %v3702_v24 = vpop.f32.mrb[124].mxu1 }
0x37c9   :  { %v3703_v36 = vadd.f32 %v8540_v44, %v3702_v24  ;;  %v7012_v47 = vpop.f32.mrb[125].mxu1 }
0x37ca   :  { %v3705_v37 = vpop.f32.mrb[126].mxu1 }
0x37cb   :  { %v3708_v28 = vmax.f32 %v3703_v36, 0.0  ;;  %v7013_v22 = vpop.f32.mrb[127].mxu1 }
0x37cd   :  { %v3709_v43 = vpack.c.bf16 %v3708_v28, %v3708_v28  ;;  %v352_v28 = vadd.f32 %v8479_v21, %v7965_v62 }
0x37cf   :  { %7019 = vmatmul.mubr.msk.bf16.vlgmr.msra.gmra.mrb[128].mxu0 %vm457_vm2, %v3709_v43 }
0x37d0   :  { %v3798_v23 = vpop.f32.mrb[128].mxu1  ;;  %7031 = vmatpush3.bf16.msra.mxu0 %v8487_v41  ;;  %7034 = vmatprep.mubr.msk.bf16.mxu0 %vm7620_vm1, %v7619_v1 }
0x37d1   :  { %v3804_v11 = vadd.f32 %v3798_v23, %v347_v49  ;;  %v7028_v5 = vpop.f32.mrb[129].mxu1  ;;  %7032 = vmatprep.subr.bf16.mxu0 %v7619_v1 }
0x37d2   :  { %v3801_v7 = vpop.f32.mrb[130].mxu1 }
0x37d3   :  { %7478 = vtanh.f32 %v3804_v11  ;;  %v7029_v2 = vpop.f32.mrb[131].mxu1  ;;  %v3805_v53 = vmul.f32 0.5, %v3804_v11 }
0x37d4   :  { %7033 = vmatpush3.bf16.msra.mxu0 %v8496_v45 }
0x37d5   :  { %7046 = vmatprep.subr.bf16.mxu0 %v7619_v1  ;;  %7480 = vtanh.f32 %v3805_v53 }
0x37dd   :  { %v7479_v59 = vpop.eup %7478 }
0x37de   :  { %3812 = vrot.lane.b32.xlu1 %v7479_v59, %s7622_s12 }
0x37df   :  { %v7481_v26 = vpop.eup %7480 }
0x37e0   :  { %v3807_v8 = vmul.f32 0.5, %v7481_v26 }
0x37e2   :  { %v3808_v55 = vadd.f32 0.5, %v3807_v8 }
0x37e4   :  { %v3810_v30 = vmul.f32 %v3808_v55, %v8638_v38 }
0x3850   :  { %v3813_v60 = vpop.permute.xlu1 %3812 }
0x3851   :  { %v3815_v57 = vmul.f32 %v3813_v60, %v3808_v55 }
0x3853   :  { %3817 = vrot.lane.b32.xlu0 %v3815_v57, %s7622_s12 }
0x38a2   :  { %v3747_v56 = vpop.f32.mrb[128].mxu0 }
0x38a3   :  { %v3748_v27 = vadd.f32 %v8557_v34, %v3747_v56  ;;  %v7020_v52 = vpop.f32.mrb[129].mxu0 }
0x38a4   :  { %v3750_v31 = vpop.f32.mrb[130].mxu0 }
0x38a5   :  { %6148 = vst [vmem:[%s9196_s10 + $0x90] sm:$0xff] %v3748_v27  ;;  %v7021_v42 = vpop.f32.mrb[131].mxu0 }
0x38c5   :  { %v3818_v33 = vpop.permute.xlu0 %3817 }
0x38c6   :  { %v8675_v48 = vadd.f32 %v3818_v33, %v3810_v30  ;;  %v4000_v30 = vstv %s6156_s17  ;;  %s6174_s17 = sld [smem:[#allocation3 + $0x17]] }
0x38c8   :  { %7482 = vtanh.f32 %v8675_v48 }
0x38d2   :  { %v7483_v35 = vpop.eup %7482 }
0x38d3   :  { %3823 = vrot.lane.b32.xlu1 %v7483_v35, %s7622_s12 }
0x3945   :  { %v3824_v39 = vpop.permute.xlu1 %3823 }
0x3946   :  { %v3826_v51 = vmul.f32 %v3824_v39, %v3808_v55 }
0x3948   :  { %v3829_v32 = vmul.f32 %v3828_v15, %v3826_v51  ;;  %v3929_v54 = vpack.c.bf16 %v3826_v51, %v3826_v51  ;;  %v4003_v15 = vstv %s6157_s18  ;;  %s6175_s18 = sld [smem:[#allocation5 + $0x17]] }
0x394a   :  { %v3832_v16 = vadd.f32 %v3831_v25, %v3829_v32  ;;  %3931 = vrot.lane.b32.xlu1 %v3929_v54, %s7623_s21 }
0x394c   :  { %v3833_v38 = vpack.c.bf16 %v3832_v16, %v3832_v16 }
0x394e   :  { %3835 = vrot.lane.b32.xlu0 %v3833_v38, %s7623_s21 }
0x39bc   :  { %v3932_v18 = vpop.permute.xlu1 %3931 }
0x39c0   :  { %v3836_v17 = vpop.permute.xlu0 %3835 }
0x39c1   :  { %7035 = vmatmul.mubr.msk.bf16.vlgmr.msra.gmra.mrb[132].mxu0 %vm457_vm2, %v3836_v17 }
0x39c2   :  { %7047 = vmatpush3.bf16.msra.mxu0 %v8418_v20  ;;  %7050 = vmatprep.mubr.msk.bf16.mxu0 %vm7620_vm1, %v7619_v1 }
0x39c3   :  { %7048 = vmatprep.subr.bf16.mxu0 %v7619_v1 }
0x39c6   :  { %7049 = vmatpush3.bf16.msra.mxu0 %v8464_v46 }
0x39c7   :  { %7062 = vmatprep.subr.bf16.mxu0 %v7619_v1 }
0x39c9   :  { %7051 = vmatmul.mubr.msk.bf16.vlgmr.msra.gmra.mrb[136].mxu0 %vm457_vm2, %v3932_v18 }
0x39ca   :  { %7063 = vmatpush3.bf16.msra.mxu0 %v8524_v40  ;;  %7066 = vmatprep.mubr.msk.bf16.mxu0 %vm7620_vm1, %v7619_v1 }
0x39cb   :  { %7064 = vmatprep.subr.bf16.mxu0 %v7619_v1 }
0x39ce   :  { %7065 = vmatpush3.bf16.msra.mxu0 %v8533_v19 }
0x39cf   :  { %7078 = vmatprep.subr.bf16.mxu0 %v7619_v1 }
0x3a94   :  { %v3874_v29 = vpop.f32.mrb[132].mxu0 }
0x3a95   :  { %v3875_v50 = vadd.f32 %v8540_v44, %v3874_v29  ;;  %v7036_v58 = vpop.f32.mrb[133].mxu0 }
0x3a96   :  { %v3877_v24 = vpop.f32.mrb[134].mxu0  ;;  %v355_v58 = vadd.f32 %v8479_v21, %v7969_v0 }
0x3a97   :  { %v3880_v36 = vmax.f32 %v3875_v50, 0.0  ;;  %v7037_v47 = vpop.f32.mrb[135].mxu0 }
0x3a99   :  { %v3881_v37 = vpack.c.bf16 %v3880_v36, %v3880_v36 }
0x3a9b   :  { %7043 = vmatmul.mubr.msk.bf16.vlgmr.msra.gmra.mrb[132].mxu1 %vm457_vm2, %v3881_v37 }
0x3a9c   :  { %v3970_v22 = vpop.f32.mrb[136].mxu0  ;;  %7055 = vmatpush3.bf16.msra.mxu1 %v8487_v41  ;;  %7058 = vmatprep.mubr.msk.bf16.mxu1 %vm7620_vm1, %v7619_v1 }
0x3a9d   :  { %v3976_v43 = vadd.f32 %v3970_v22, %v352_v28  ;;  %v7052_v49 = vpop.f32.mrb[137].mxu0  ;;  %7056 = vmatprep.subr.bf16.mxu1 %v7619_v1 }
0x3a9e   :  { %v3973_v23 = vpop.f32.mrb[138].mxu0 }
0x3a9f   :  { %7484 = vtanh.f32 %v3976_v43  ;;  %v7053_v11 = vpop.f32.mrb[139].mxu0  ;;  %v3977_v5 = vmul.f32 0.5, %v3976_v43 }
0x3aa0   :  { %7057 = vmatpush3.bf16.msra.mxu1 %v8496_v45 }
0x3aa1   :  { %7070 = vmatprep.subr.bf16.mxu1 %v7619_v1  ;;  %7486 = vtanh.f32 %v3977_v5 }
0x3aa9   :  { %v7485_v62 = vpop.eup %7484 }
0x3aaa   :  { %3984 = vrot.lane.b32.xlu0 %v7485_v62, %s7622_s12 }
0x3aab   :  { %v7487_v7 = vpop.eup %7486 }
0x3aac   :  { %v3979_v2 = vmul.f32 0.5, %v7487_v7 }
0x3aae   :  { %v3980_v59 = vadd.f32 0.5, %v3979_v2 }
0x3ab0   :  { %v3982_v27 = vmul.f32 %v3980_v59, %v8675_v48 }
0x3b1c   :  { %v3985_v53 = vpop.permute.xlu0 %3984 }
0x3b1d   :  { %v3987_v26 = vmul.f32 %v3985_v53, %v3980_v59 }
0x3b1f   :  { %3989 = vrot.lane.b32.xlu1 %v3987_v26, %s7622_s12 }
0x3b6e   :  { %v3919_v8 = vpop.f32.mrb[132].mxu1 }
0x3b6f   :  { %v3920_v55 = vadd.f32 %v8557_v34, %v3919_v8  ;;  %v7044_v60 = vpop.f32.mrb[133].mxu1 }
0x3b70   :  { %v3922_v57 = vpop.f32.mrb[134].mxu1 }
0x3b71   :  { %6154 = vst [vmem:[%s9196_s10 + $0x98] sm:$0xff] %v3920_v55  ;;  %v7045_v56 = vpop.f32.mrb[135].mxu1  ;;  %v4172_v57 = vstv %s6162_s0  ;;  %s6204_s0 = sld [smem:[#allocation3 + $0x1c]] }
0x3b91   :  { %v3990_v52 = vpop.permute.xlu1 %3989 }
0x3b92   :  { %v8712_v31 = vadd.f32 %v3990_v52, %v3982_v27  ;;  %v4175_v52 = vstv %s6163_s4  ;;  %s6205_s4 = sld [smem:[#allocation5 + $0x1c]] }
0x3b94   :  { %7488 = vtanh.f32 %v8712_v31 }
0x3b9e   :  { %v7489_v42 = vpop.eup %7488 }
0x3b9f   :  { %3995 = vrot.lane.b32.xlu0 %v7489_v42, %s7622_s12 }
0x3c11   :  { %v3996_v33 = vpop.permute.xlu0 %3995 }
0x3c12   :  { %v3998_v35 = vmul.f32 %v3996_v33, %v3980_v59 }
0x3c14   :  { %v4001_v39 = vmul.f32 %v4000_v30, %v3998_v35  ;;  %v4101_v51 = vpack.c.bf16 %v3998_v35, %v3998_v35 }
0x3c16   :  { %v4004_v25 = vadd.f32 %v4003_v15, %v4001_v39  ;;  %4103 = vrot.lane.b32.xlu0 %v4101_v51, %s7623_s21  ;;  %v8759_v15 = vld [vmem:[%s9188_s2] sm:$0xff]  }
0x3c18   :  { %v4005_v48 = vpack.c.bf16 %v4004_v25, %v4004_v25 }
0x3c1a   :  { %4007 = vrot.lane.b32.xlu1 %v4005_v48, %s7623_s21 }
0x3c88   :  { %v4104_v54 = vpop.permute.xlu0 %4103 }
0x3c8c   :  { %v4008_v32 = vpop.permute.xlu1 %4007 }
0x3c8d   :  { %7059 = vmatmul.mubr.msk.bf16.vlgmr.msra.gmra.mrb[136].mxu1 %vm457_vm2, %v4008_v32 }
0x3c8e   :  { %7071 = vmatpush3.bf16.msra.mxu1 %v8418_v20  ;;  %7074 = vmatprep.mubr.msk.bf16.mxu1 %vm7620_vm1, %v7619_v1 }
0x3c8f   :  { %7072 = vmatprep.subr.bf16.mxu1 %v7619_v1 }
0x3c92   :  { %7073 = vmatpush3.bf16.msra.mxu1 %v8464_v46 }
0x3c93   :  { %7086 = vmatprep.subr.bf16.mxu1 %v7619_v1 }
0x3c95   :  { %7075 = vmatmul.mubr.msk.bf16.vlgmr.msra.gmra.mrb[140].mxu1 %vm457_vm2, %v4104_v54 }
0x3c96   :  { %7087 = vmatpush3.bf16.msra.mxu1 %v8524_v40  ;;  %7090 = vmatprep.mubr.msk.bf16.mxu1 %vm7620_vm1, %v7619_v1 }
0x3c97   :  { %7088 = vmatprep.subr.bf16.mxu1 %v7619_v1 }
0x3c9a   :  { %7089 = vmatpush3.bf16.msra.mxu1 %v8533_v19 }
0x3c9b   :  { %7102 = vmatprep.subr.bf16.mxu1 %v7619_v1 }
0x3d60   :  { %v4046_v20 = vpop.f32.mrb[136].mxu1 }
0x3d61   :  { %v4047_v16 = vadd.f32 %v8540_v44, %v4046_v20  ;;  %v7060_v38 = vpop.f32.mrb[137].mxu1 }
0x3d62   :  { %v4049_v17 = vpop.f32.mrb[138].mxu1 }
0x3d63   :  { %v4052_v18 = vmax.f32 %v4047_v16, 0.0  ;;  %v7061_v29 = vpop.f32.mrb[139].mxu1  ;;  %v360_v16 = vadd.f32 %v8479_v21, %v7963_v61 }
0x3d65   :  { %v4053_v50 = vpack.c.bf16 %v4052_v18, %v4052_v18 }
0x3d67   :  { %7067 = vmatmul.mubr.msk.bf16.vlgmr.msra.gmra.mrb[140].mxu0 %vm457_vm2, %v4053_v50 }
0x3d68   :  { %v4142_v24 = vpop.f32.mrb[140].mxu1  ;;  %7079 = vmatpush3.bf16.msra.mxu0 %v8487_v41  ;;  %7082 = vmatprep.mubr.msk.bf16.mxu0 %vm7620_vm1, %v7619_v1 }
0x3d69   :  { %v4148_v36 = vadd.f32 %v4142_v24, %v355_v58  ;;  %v7076_v47 = vpop.f32.mrb[141].mxu1  ;;  %7080 = vmatprep.subr.bf16.mxu0 %v7619_v1 }
0x3d6a   :  { %v4145_v37 = vpop.f32.mrb[142].mxu1 }
0x3d6b   :  { %7490 = vtanh.f32 %v4148_v36  ;;  %v7077_v28 = vpop.f32.mrb[143].mxu1  ;;  %v4149_v22 = vmul.f32 0.5, %v4148_v36 }
0x3d6c   :  { %7081 = vmatpush3.bf16.msra.mxu0 %v8496_v45 }
0x3d6d   :  { %7094 = vmatprep.subr.bf16.mxu0 %v7619_v1  ;;  %7492 = vtanh.f32 %v4149_v22 }
0x3d75   :  { %v7491_v0 = vpop.eup %7490 }
0x3d76   :  { %4156 = vrot.lane.b32.xlu1 %v7491_v0, %s7622_s12 }
0x3d77   :  { %v7493_v43 = vpop.eup %7492 }
0x3d78   :  { %v4151_v49 = vmul.f32 0.5, %v7493_v43 }
0x3d7a   :  { %v4152_v23 = vadd.f32 0.5, %v4151_v49 }
0x3d7c   :  { %v4154_v26 = vmul.f32 %v4152_v23, %v8712_v31 }
0x3de8   :  { %v4157_v11 = vpop.permute.xlu1 %4156 }
0x3de9   :  { %v4159_v62 = vmul.f32 %v4157_v11, %v4152_v23 }
0x3deb   :  { %4161 = vrot.lane.b32.xlu0 %v4159_v62, %s7622_s12  ;;  %v4344_v62 = vstv %s6168_s25 }
0x3e3a   :  { %v4091_v5 = vpop.f32.mrb[140].mxu0 }
0x3e3b   :  { %v4092_v7 = vadd.f32 %v8557_v34, %v4091_v5  ;;  %v7068_v2 = vpop.f32.mrb[141].mxu0 }
0x3e3c   :  { %v4094_v59 = vpop.f32.mrb[142].mxu0  ;;  %v4347_v2 = vstv %s6169_s26  ;;  %s6181_s26 = sld [smem:[#allocation5 + $0x18]] }
0x3e3d   :  { %6160 = vst [vmem:[%s9196_s10 + $0xa0] sm:$0xff] %v4092_v7  ;;  %v7069_v53 = vpop.f32.mrb[143].mxu0 }
0x3e5d   :  { %v4162_v8 = vpop.permute.xlu0 %4161 }
0x3e5e   :  { %v8749_v55 = vadd.f32 %v4162_v8, %v4154_v26 }
0x3e60   :  { %7494 = vtanh.f32 %v8749_v55 }
0x3e6a   :  { %v7495_v60 = vpop.eup %7494 }
0x3e6b   :  { %4167 = vrot.lane.b32.xlu1 %v7495_v60, %s7622_s12  ;;  %v8805_v60 = vld [vmem:[%s9188_s2 + $0x8] sm:$0xff]  }
0x3edd   :  { %v4168_v56 = vpop.permute.xlu1 %4167 }
0x3ede   :  { %v4170_v27 = vmul.f32 %v4168_v56, %v4152_v23 }
0x3ee0   :  { %v4173_v42 = vmul.f32 %v4172_v57, %v4170_v27  ;;  %v4273_v30 = vpack.c.bf16 %v4170_v27, %v4170_v27 }
0x3ee2   :  { %v4176_v33 = vadd.f32 %v4175_v52, %v4173_v42  ;;  %4275 = vrot.lane.b32.xlu1 %v4273_v30, %s7623_s21 }
0x3ee4   :  { %v4177_v31 = vpack.c.bf16 %v4176_v33, %v4176_v33 }
0x3ee6   :  { %4179 = vrot.lane.b32.xlu0 %v4177_v31, %s7623_s21 }
0x3f54   :  { %v4276_v39 = vpop.permute.xlu1 %4275 }
0x3f58   :  { %v4180_v35 = vpop.permute.xlu0 %4179 }
0x3f59   :  { %7083 = vmatmul.mubr.msk.bf16.vlgmr.msra.gmra.mrb[144].mxu0 %vm457_vm2, %v4180_v35 }
0x3f5a   :  { %7095 = vmatpush3.bf16.msra.mxu0 %v8759_v15  ;;  %7098 = vmatprep.mubr.msk.bf16.mxu0 %vm7620_vm1, %v7619_v1 }
0x3f5b   :  { %7096 = vmatprep.subr.bf16.mxu0 %v7619_v1 }
0x3f5e   :  { %7097 = vmatpush3.bf16.msra.mxu0 %v8464_v46 }
0x3f5f   :  { %7110 = vmatprep.subr.bf16.mxu0 %v7619_v1 }
0x3f61   :  { %7099 = vmatmul.mubr.msk.bf16.vlgmr.msra.gmra.mrb[148].mxu0 %vm457_vm2, %v4276_v39 }
0x3f62   :  { %7111 = vmatpush3.bf16.msra.mxu0 %v8524_v40  ;;  %7114 = vmatprep.mubr.msk.bf16.mxu0 %vm7620_vm1, %v7619_v1 }
0x3f63   :  { %7112 = vmatprep.subr.bf16.mxu0 %v7619_v1 }
0x3f66   :  { %7113 = vmatpush3.bf16.msra.mxu0 %v8533_v19 }
0x3f67   :  { %7126 = vmatprep.subr.bf16.mxu0 %v7619_v1 }
0x402c   :  { %v4218_v51 = vpop.f32.mrb[144].mxu0 }
0x402d   :  { %v4219_v25 = vadd.f32 %v8540_v44, %v4218_v51  ;;  %v7084_v46 = vpop.f32.mrb[145].mxu0 }
0x402e   :  { %v4221_v48 = vpop.f32.mrb[146].mxu0  ;;  %v8837_v46 = vld [vmem:[%s9192_s6 + $0x8] sm:$0xff]  }
0x402f   :  { %v4224_v32 = vmax.f32 %v4219_v25, 0.0  ;;  %v7085_v54 = vpop.f32.mrb[147].mxu0 }
0x4031   :  { %v4225_v20 = vpack.c.bf16 %v4224_v32, %v4224_v32 }
0x4033   :  { %7091 = vmatmul.mubr.msk.bf16.vlgmr.msra.gmra.mrb[144].mxu1 %vm457_vm2, %v4225_v20 }
0x4034   :  { %v4314_v38 = vpop.f32.mrb[148].mxu0  ;;  %7103 = vmatpush3.bf16.msra.mxu1 %v8487_v41  ;;  %7106 = vmatprep.mubr.msk.bf16.mxu1 %vm7620_vm1, %v7619_v1 }
0x4035   :  { %v4320_v17 = vadd.f32 %v4314_v38, %v360_v16  ;;  %v7100_v18 = vpop.f32.mrb[149].mxu0  ;;  %7104 = vmatprep.subr.bf16.mxu1 %v7619_v1 }
0x4036   :  { %v4317_v29 = vpop.f32.mrb[150].mxu0 }
0x4037   :  { %7496 = vtanh.f32 %v4320_v17  ;;  %v7101_v50 = vpop.f32.mrb[151].mxu0  ;;  %v4321_v21 = vmul.f32 0.5, %v4320_v17 }
0x4038   :  { %7105 = vmatpush3.bf16.msra.mxu1 %v8496_v45 }
0x4039   :  { %7118 = vmatprep.subr.bf16.mxu1 %v7619_v1  ;;  %7498 = vtanh.f32 %v4321_v21 }
0x4041   :  { %v7497_v61 = vpop.eup %7496 }
0x4042   :  { %4328 = vrot.lane.b32.xlu0 %v7497_v61, %s7622_s12 }
0x4043   :  { %v7499_v41 = vpop.eup %7498 }
0x4044   :  { %v4323_v58 = vmul.f32 0.5, %v7499_v41 }
0x4046   :  { %v4324_v24 = vadd.f32 0.5, %v4323_v58 }
0x4048   :  { %v4326_v43 = vmul.f32 %v4324_v24, %v8749_v55 }
0x40b4   :  { %v4329_v36 = vpop.permute.xlu0 %4328 }
0x40b5   :  { %v4331_v47 = vmul.f32 %v4329_v36, %v4324_v24 }
0x40b7   :  { %4333 = vrot.lane.b32.xlu1 %v4331_v47, %s7622_s12 }
0x4106   :  { %v4263_v37 = vpop.f32.mrb[144].mxu1 }
0x4107   :  { %v4264_v28 = vadd.f32 %v8557_v34, %v4263_v37  ;;  %v7092_v0 = vpop.f32.mrb[145].mxu1 }
0x4108   :  { %v4266_v22 = vpop.f32.mrb[146].mxu1 }
0x4109   :  { %6166 = vst [vmem:[%s9196_s10 + $0xa8] sm:$0xff] %v4264_v28  ;;  %v7093_v45 = vpop.f32.mrb[147].mxu1  ;;  %v4519_v28 = vstv %s6175_s18  ;;  %s6199_s18 = sld [smem:[#allocation5 + $0x1b]] }
0x4129   :  { %v4334_v49 = vpop.permute.xlu1 %4333 }
0x412a   :  { %v8791_v23 = vadd.f32 %v4334_v49, %v4326_v43 }
0x412c   :  { %7500 = vtanh.f32 %v8791_v23 }
0x4136   :  { %v7501_v11 = vpop.eup %7500 }
0x4137   :  { %4339 = vrot.lane.b32.xlu0 %v7501_v11, %s7622_s12  ;;  %v8865_v11 = vld [vmem:[%s9194_s8] sm:$0xff]  }
0x41a9   :  { %v4340_v5 = vpop.permute.xlu0 %4339 }
0x41aa   :  { %v4342_v7 = vmul.f32 %v4340_v5, %v4324_v24 }
0x41ac   :  { %v4345_v59 = vmul.f32 %v4344_v62, %v4342_v7  ;;  %v4445_v53 = vpack.c.bf16 %v4342_v7, %v4342_v7  ;;  %v8874_v62 = vld [vmem:[%s9194_s8 + $0x8] sm:$0xff]   ;;  %v8881_v7 = vld [vmem:[%s9193_s7] ss:$0 sm:$0xff]  ;;  %s6210_s8 = sld [smem:[#allocation3 + $0x1d]] }
0x41ae   :  { %v4348_v26 = vadd.f32 %v4347_v2, %v4345_v59  ;;  %4447 = vrot.lane.b32.xlu0 %v4445_v53, %s7623_s21 }
0x41b0   :  { %v4349_v8 = vpack.c.bf16 %v4348_v26, %v4348_v26 }
0x41b2   :  { %4351 = vrot.lane.b32.xlu1 %v4349_v8, %s7623_s21 }
0x4220   :  { %v4448_v57 = vpop.permute.xlu0 %4447 }
0x4224   :  { %v4352_v55 = vpop.permute.xlu1 %4351 }
0x4225   :  { %7107 = vmatmul.mubr.msk.bf16.vlgmr.msra.gmra.mrb[148].mxu1 %vm457_vm2, %v4352_v55 }
0x4226   :  { %7119 = vmatpush3.bf16.msra.mxu1 %v8759_v15  ;;  %7122 = vmatprep.mubr.msk.bf16.mxu1 %vm7620_vm1, %v7619_v1 }
0x4227   :  { %7120 = vmatprep.subr.bf16.mxu1 %v7619_v1 }
0x422a   :  { %7121 = vmatpush3.bf16.msra.mxu1 %v8805_v60 }
0x422b   :  { %7134 = vmatprep.subr.bf16.mxu1 %v7619_v1 }
0x422d   :  { %7123 = vmatmul.mubr.msk.bf16.vlgmr.msra.gmra.mrb[152].mxu1 %vm457_vm2, %v4448_v57 }
0x422e   :  { %7135 = vmatpush3.bf16.msra.mxu1 %v8524_v40  ;;  %7138 = vmatprep.mubr.msk.bf16.mxu1 %vm7620_vm1, %v7619_v1  ;;  %v8820_v40 = vld [vmem:[%s9189_s3] ss:$0 sm:$0xff] }
0x422f   :  { %7136 = vmatprep.subr.bf16.mxu1 %v7619_v1  ;;  %v363_v35 = vadd.f32 %v8820_v40, %v7967_v63  ;;  %v368_v57 = vadd.f32 %v8820_v40, %v7973_v4 }
0x4232   :  { %7137 = vmatpush3.bf16.msra.mxu1 %v8533_v19 }
0x4233   :  { %7150 = vmatprep.subr.bf16.mxu1 %v7619_v1 }
0x42f8   :  { %v4390_v56 = vpop.f32.mrb[148].mxu1 }
0x42f9   :  { %v4391_v27 = vadd.f32 %v8540_v44, %v4390_v56  ;;  %v7108_v52 = vpop.f32.mrb[149].mxu1  ;;  %v8828_v44 = vld [vmem:[%s9192_s6] sm:$0xff]  }
0x42fa   :  { %v4393_v42 = vpop.f32.mrb[150].mxu1 }
0x42fb   :  { %v4396_v30 = vmax.f32 %v4391_v27, 0.0  ;;  %v7109_v33 = vpop.f32.mrb[151].mxu1 }
0x42fd   :  { %v4397_v31 = vpack.c.bf16 %v4396_v30, %v4396_v30 }
0x42ff   :  { %7115 = vmatmul.mubr.msk.bf16.vlgmr.msra.gmra.mrb[152].mxu0 %vm457_vm2, %v4397_v31 }
0x4300   :  { %v4486_v19 = vpop.f32.mrb[152].mxu1  ;;  %7127 = vmatpush3.bf16.msra.mxu0 %v8828_v44  ;;  %7130 = vmatprep.mubr.msk.bf16.mxu0 %vm7620_vm1, %v7619_v1 }
0x4301   :  { %v4492_v39 = vadd.f32 %v4486_v19, %v363_v35  ;;  %v7124_v51 = vpop.f32.mrb[153].mxu1  ;;  %7128 = vmatprep.subr.bf16.mxu0 %v7619_v1 }
0x4302   :  { %v4489_v25 = vpop.f32.mrb[154].mxu1 }
0x4303   :  { %7502 = vtanh.f32 %v4492_v39  ;;  %v7125_v63 = vpop.f32.mrb[155].mxu1  ;;  %v4493_v32 = vmul.f32 0.5, %v4492_v39 }
0x4304   :  { %7129 = vmatpush3.bf16.msra.mxu0 %v8837_v46  ;;  %v8898_v63 = vld [vmem:[%s9195_s9] ss:$0 sm:$0xff]  ;;  %s6180_s9 = sld [smem:[#allocation3 + $0x18]] }
0x4305   :  { %7142 = vmatprep.subr.bf16.mxu0 %v7619_v1  ;;  %7504 = vtanh.f32 %v4493_v32 }
0x430d   :  { %v7503_v48 = vpop.eup %7502 }
0x430e   :  { %4500 = vrot.lane.b32.xlu1 %v7503_v48, %s7622_s12 }
0x430f   :  { %v7505_v54 = vpop.eup %7504 }
0x4310   :  { %v4495_v20 = vmul.f32 0.5, %v7505_v54 }
0x4312   :  { %v4496_v16 = vadd.f32 0.5, %v4495_v20 }
0x4314   :  { %v4498_v41 = vmul.f32 %v4496_v16, %v8791_v23 }
0x4380   :  { %v4501_v38 = vpop.permute.xlu1 %4500 }
0x4381   :  { %v4503_v17 = vmul.f32 %v4501_v38, %v4496_v16 }
0x4383   :  { %4505 = vrot.lane.b32.xlu0 %v4503_v17, %s7622_s12 }
0x43d2   :  { %v4435_v18 = vpop.f32.mrb[152].mxu0 }
0x43d3   :  { %v4436_v29 = vadd.f32 %v8557_v34, %v4435_v18  ;;  %v7116_v50 = vpop.f32.mrb[153].mxu0  ;;  %v4516_v34 = vstv %s6174_s17  ;;  %s6198_s17 = sld [smem:[#allocation3 + $0x1b]] }
0x43d4   :  { %v4438_v61 = vpop.f32.mrb[154].mxu0 }
0x43d5   :  { %6172 = vst [vmem:[%s9196_s10 + $0xb0] sm:$0xff] %v4436_v29  ;;  %v7117_v21 = vpop.f32.mrb[155].mxu0  ;;  %v4688_v29 = vstv %s6180_s9 }
0x43d6   :  { %v4691_v21 = vstv %s6181_s26 }
0x43f5   :  { %v4506_v58 = vpop.permute.xlu0 %4505 }
0x43f6   :  { %v8848_v24 = vadd.f32 %v4506_v58, %v4498_v41 }
0x43f8   :  { %7506 = vtanh.f32 %v8848_v24 }
0x4402   :  { %v7507_v36 = vpop.eup %7506 }
0x4403   :  { %4511 = vrot.lane.b32.xlu1 %v7507_v36, %s7622_s12 }
0x4475   :  { %v4512_v47 = vpop.permute.xlu1 %4511 }
0x4476   :  { %v4514_v37 = vmul.f32 %v4512_v47, %v4496_v16 }
0x4478   :  { %v4517_v0 = vmul.f32 %v4516_v34, %v4514_v37  ;;  %v4617_v22 = vpack.c.bf16 %v4514_v37, %v4514_v37 }
0x447a   :  { %v4520_v45 = vadd.f32 %v4519_v28, %v4517_v0  ;;  %4619 = vrot.lane.b32.xlu1 %v4617_v22, %s7623_s21 }
0x447c   :  { %v4521_v43 = vpack.c.bf16 %v4520_v45, %v4520_v45 }
0x447e   :  { %4523 = vrot.lane.b32.xlu0 %v4521_v43, %s7623_s21 }
0x44ec   :  { %v4620_v23 = vpop.permute.xlu1 %4619 }
0x44f0   :  { %v4524_v49 = vpop.permute.xlu0 %4523 }
0x44f1   :  { %7131 = vmatmul.mubr.msk.bf16.vlgmr.msra.gmra.mrb[156].mxu0 %vm457_vm2, %v4524_v49 }
0x44f2   :  { %7143 = vmatpush3.bf16.msra.mxu0 %v8759_v15  ;;  %7146 = vmatprep.mubr.msk.bf16.mxu0 %vm7620_vm1, %v7619_v1 }
0x44f3   :  { %7144 = vmatprep.subr.bf16.mxu0 %v7619_v1 }
0x44f6   :  { %7145 = vmatpush3.bf16.msra.mxu0 %v8805_v60 }
0x44f7   :  { %7158 = vmatprep.subr.bf16.mxu0 %v7619_v1 }
0x44f9   :  { %7147 = vmatmul.mubr.msk.bf16.vlgmr.msra.gmra.mrb[160].mxu0 %vm457_vm2, %v4620_v23  ;;  %v371_v23 = vadd.f32 %v8820_v40, %v7977_v9 }
0x44fa   :  { %7159 = vmatpush3.bf16.msra.mxu0 %v8865_v11  ;;  %7162 = vmatprep.mubr.msk.bf16.mxu0 %vm7620_vm1, %v7619_v1 }
0x44fb   :  { %7160 = vmatprep.subr.bf16.mxu0 %v7619_v1 }
0x44fe   :  { %7161 = vmatpush3.bf16.msra.mxu0 %v8874_v62 }
0x44ff   :  { %7174 = vmatprep.subr.bf16.mxu0 %v7619_v1 }
0x45c4   :  { %v4562_v5 = vpop.f32.mrb[156].mxu0 }
0x45c5   :  { %v4563_v2 = vadd.f32 %v8881_v7, %v4562_v5  ;;  %v7132_v59 = vpop.f32.mrb[157].mxu0 }
0x45c6   :  { %v4565_v53 = vpop.f32.mrb[158].mxu0 }
0x45c7   :  { %v4568_v26 = vmax.f32 %v4563_v2, 0.0  ;;  %v7133_v8 = vpop.f32.mrb[159].mxu0 }
0x45c9   :  { %v4569_v55 = vpack.c.bf16 %v4568_v26, %v4568_v26 }
0x45cb   :  { %7139 = vmatmul.mubr.msk.bf16.vlgmr.msra.gmra.mrb[156].mxu1 %vm457_vm2, %v4569_v55 }
0x45cc   :  { %v4658_v56 = vpop.f32.mrb[160].mxu0  ;;  %7151 = vmatpush3.bf16.msra.mxu1 %v8828_v44  ;;  %7154 = vmatprep.mubr.msk.bf16.mxu1 %vm7620_vm1, %v7619_v1 }
0x45cd   :  { %v4664_v27 = vadd.f32 %v4658_v56, %v368_v57  ;;  %v7148_v52 = vpop.f32.mrb[161].mxu0  ;;  %7152 = vmatprep.subr.bf16.mxu1 %v7619_v1 }
0x45ce   :  { %v4661_v42 = vpop.f32.mrb[162].mxu0 }
0x45cf   :  { %7508 = vtanh.f32 %v4664_v27  ;;  %v7149_v30 = vpop.f32.mrb[163].mxu0  ;;  %v4665_v33 = vmul.f32 0.5, %v4664_v27 }
0x45d0   :  { %7153 = vmatpush3.bf16.msra.mxu1 %v8837_v46 }
0x45d1   :  { %7166 = vmatprep.subr.bf16.mxu1 %v7619_v1  ;;  %7510 = vtanh.f32 %v4665_v33 }
0x45d9   :  { %v7509_v4 = vpop.eup %7508 }
0x45da   :  { %4672 = vrot.lane.b32.xlu0 %v7509_v4, %s7622_s12 }
0x45db   :  { %v7511_v31 = vpop.eup %7510 }
0x45dc   :  { %v4667_v35 = vmul.f32 0.5, %v7511_v31 }
0x45de   :  { %v4668_v19 = vadd.f32 0.5, %v4667_v35 }
0x45e0   :  { %v4670_v16 = vmul.f32 %v4668_v19, %v8848_v24 }
0x464c   :  { %v4673_v39 = vpop.permute.xlu0 %4672 }
0x464d   :  { %v4675_v51 = vmul.f32 %v4673_v39, %v4668_v19 }
0x464f   :  { %4677 = vrot.lane.b32.xlu1 %v4675_v51, %s7622_s12 }
0x469e   :  { %v4607_v25 = vpop.f32.mrb[156].mxu1 }
0x469f   :  { %v4608_v48 = vadd.f32 %v8898_v63, %v4607_v25  ;;  %v7140_v32 = vpop.f32.mrb[157].mxu1  ;;  %v4860_v25 = vstv %s6186_s1 }
0x46a0   :  { %v4610_v54 = vpop.f32.mrb[158].mxu1 }
0x46a1   :  { %6178 = vst [vmem:[%s9196_s10 + $0xb8] sm:$0xff] %v4608_v48  ;;  %v7141_v20 = vpop.f32.mrb[159].mxu1  ;;  %v4863_v54 = vstv %s6187_s29 }
0x46c1   :  { %v4678_v38 = vpop.permute.xlu1 %4677 }
0x46c2   :  { %v8905_v17 = vadd.f32 %v4678_v38, %v4670_v16 }
0x46c4   :  { %7512 = vtanh.f32 %v8905_v17 }
0x46ce   :  { %v7513_v18 = vpop.eup %7512 }
0x46cf   :  { %4683 = vrot.lane.b32.xlu0 %v7513_v18, %s7622_s12 }
0x4741   :  { %v4684_v50 = vpop.permute.xlu0 %4683 }
0x4742   :  { %v4686_v61 = vmul.f32 %v4684_v50, %v4668_v19 }
0x4744   :  { %v4689_v41 = vmul.f32 %v4688_v29, %v4686_v61  ;;  %v4789_v58 = vpack.c.bf16 %v4686_v61, %v4686_v61 }
0x4746   :  { %v4692_v36 = vadd.f32 %v4691_v21, %v4689_v41  ;;  %4791 = vrot.lane.b32.xlu0 %v4789_v58, %s7623_s21 }
0x4748   :  { %v4693_v24 = vpack.c.bf16 %v4692_v36, %v4692_v36 }
0x474a   :  { %4695 = vrot.lane.b32.xlu1 %v4693_v24, %s7623_s21 }
0x47b8   :  { %v4792_v47 = vpop.permute.xlu0 %4791 }
0x47bc   :  { %v4696_v34 = vpop.permute.xlu1 %4695 }
0x47bd   :  { %7155 = vmatmul.mubr.msk.bf16.vlgmr.msra.gmra.mrb[160].mxu1 %vm457_vm2, %v4696_v34  ;;  %v376_v34 = vadd.f32 %v8820_v40, %v7971_v3 }
0x47be   :  { %7167 = vmatpush3.bf16.msra.mxu1 %v8759_v15  ;;  %7170 = vmatprep.mubr.msk.bf16.mxu1 %vm7620_vm1, %v7619_v1 }
0x47bf   :  { %7168 = vmatprep.subr.bf16.mxu1 %v7619_v1 }
0x47c2   :  { %7169 = vmatpush3.bf16.msra.mxu1 %v8805_v60 }
0x47c3   :  { %7182 = vmatprep.subr.bf16.mxu1 %v7619_v1 }
0x47c5   :  { %7171 = vmatmul.mubr.msk.bf16.vlgmr.msra.gmra.mrb[164].mxu1 %vm457_vm2, %v4792_v47 }
0x47c6   :  { %7183 = vmatpush3.bf16.msra.mxu1 %v8865_v11  ;;  %7186 = vmatprep.mubr.msk.bf16.mxu1 %vm7620_vm1, %v7619_v1 }
0x47c7   :  { %7184 = vmatprep.subr.bf16.mxu1 %v7619_v1 }
0x47ca   :  { %7185 = vmatpush3.bf16.msra.mxu1 %v8874_v62 }
0x47cb   :  { %7198 = vmatprep.subr.bf16.mxu1 %v7619_v1 }
0x4890   :  { %v4734_v37 = vpop.f32.mrb[160].mxu1 }
0x4891   :  { %v4735_v28 = vadd.f32 %v8881_v7, %v4734_v37  ;;  %v7156_v0 = vpop.f32.mrb[161].mxu1 }
0x4892   :  { %v4737_v22 = vpop.f32.mrb[162].mxu1 }
0x4893   :  { %v4740_v45 = vmax.f32 %v4735_v28, 0.0  ;;  %v7157_v43 = vpop.f32.mrb[163].mxu1 }
0x4895   :  { %v4741_v49 = vpack.c.bf16 %v4740_v45, %v4740_v45 }
0x4897   :  { %7163 = vmatmul.mubr.msk.bf16.vlgmr.msra.gmra.mrb[164].mxu0 %vm457_vm2, %v4741_v49 }
0x4898   :  { %v4830_v5 = vpop.f32.mrb[164].mxu1  ;;  %7175 = vmatpush3.bf16.msra.mxu0 %v8828_v44  ;;  %7178 = vmatprep.mubr.msk.bf16.mxu0 %vm7620_vm1, %v7619_v1 }
0x4899   :  { %v4836_v2 = vadd.f32 %v4830_v5, %v371_v23  ;;  %v7172_v59 = vpop.f32.mrb[165].mxu1  ;;  %7176 = vmatprep.subr.bf16.mxu0 %v7619_v1 }
0x489a   :  { %v4833_v53 = vpop.f32.mrb[166].mxu1 }
0x489b   :  { %7514 = vtanh.f32 %v4836_v2  ;;  %v7173_v26 = vpop.f32.mrb[167].mxu1  ;;  %v4837_v8 = vmul.f32 0.5, %v4836_v2 }
0x489c   :  { %7177 = vmatpush3.bf16.msra.mxu0 %v8837_v46 }
0x489d   :  { %7190 = vmatprep.subr.bf16.mxu0 %v7619_v1  ;;  %7516 = vtanh.f32 %v4837_v8 }
0x48a5   :  { %v7515_v9 = vpop.eup %7514 }
0x48a6   :  { %4844 = vrot.lane.b32.xlu1 %v7515_v9, %s7622_s12 }
0x48a7   :  { %v7517_v55 = vpop.eup %7516 }
0x48a8   :  { %v4839_v57 = vmul.f32 0.5, %v7517_v55 }
0x48aa   :  { %v4840_v56 = vadd.f32 0.5, %v4839_v57 }
0x48ac   :  { %v4842_v35 = vmul.f32 %v4840_v56, %v8905_v17 }
0x4918   :  { %v4845_v27 = vpop.permute.xlu1 %4844 }
0x4919   :  { %v4847_v52 = vmul.f32 %v4845_v27, %v4840_v56 }
0x491b   :  { %4849 = vrot.lane.b32.xlu0 %v4847_v52, %s7622_s12  ;;  %v5032_v52 = vstv %s6192_s13 }
0x496a   :  { %v4779_v42 = vpop.f32.mrb[164].mxu0 }
0x496b   :  { %v4780_v30 = vadd.f32 %v8898_v63, %v4779_v42  ;;  %v7164_v4 = vpop.f32.mrb[165].mxu0 }
0x496c   :  { %v4782_v33 = vpop.f32.mrb[166].mxu0  ;;  %v5035_v4 = vstv %s6193_s14 }
0x496d   :  { %6184 = vst [vmem:[%s9196_s10 + $0xc0] sm:$0xff] %v4780_v30  ;;  %v7165_v31 = vpop.f32.mrb[167].mxu0 }
0x498d   :  { %v4850_v19 = vpop.permute.xlu0 %4849 }
0x498e   :  { %v8942_v39 = vadd.f32 %v4850_v19, %v4842_v35 }
0x4990   :  { %7518 = vtanh.f32 %v8942_v39 }
0x499a   :  { %v7519_v51 = vpop.eup %7518 }
0x499b   :  { %4855 = vrot.lane.b32.xlu1 %v7519_v51, %s7622_s12 }
0x4a0d   :  { %v4856_v48 = vpop.permute.xlu1 %4855 }
0x4a0e   :  { %v4858_v32 = vmul.f32 %v4856_v48, %v4840_v56 }
0x4a10   :  { %v4861_v20 = vmul.f32 %v4860_v25, %v4858_v32  ;;  %v4961_v16 = vpack.c.bf16 %v4858_v32, %v4858_v32 }
0x4a12   :  { %v4864_v38 = vadd.f32 %v4863_v54, %v4861_v20  ;;  %4963 = vrot.lane.b32.xlu1 %v4961_v16, %s7623_s21 }
0x4a14   :  { %v4865_v17 = vpack.c.bf16 %v4864_v38, %v4864_v38 }
0x4a16   :  { %4867 = vrot.lane.b32.xlu0 %v4865_v17, %s7623_s21  ;;  %v379_v17 = vadd.f32 %v8820_v40, %v7975_v6 }
0x4a84   :  { %v4964_v29 = vpop.permute.xlu1 %4963 }
0x4a88   :  { %v4868_v18 = vpop.permute.xlu0 %4867 }
0x4a89   :  { %7179 = vmatmul.mubr.msk.bf16.vlgmr.msra.gmra.mrb[168].mxu0 %vm457_vm2, %v4868_v18 }
0x4a8a   :  { %7191 = vmatpush3.bf16.msra.mxu0 %v8759_v15  ;;  %7194 = vmatprep.mubr.msk.bf16.mxu0 %vm7620_vm1, %v7619_v1 }
0x4a8b   :  { %7192 = vmatprep.subr.bf16.mxu0 %v7619_v1 }
0x4a8e   :  { %7193 = vmatpush3.bf16.msra.mxu0 %v8805_v60 }
0x4a8f   :  { %7206 = vmatprep.subr.bf16.mxu0 %v7619_v1 }
0x4a91   :  { %7195 = vmatmul.mubr.msk.bf16.vlgmr.msra.gmra.mrb[172].mxu0 %vm457_vm2, %v4964_v29 }
0x4a92   :  { %7207 = vmatpush3.bf16.msra.mxu0 %v8865_v11  ;;  %7210 = vmatprep.mubr.msk.bf16.mxu0 %vm7620_vm1, %v7619_v1 }
0x4a93   :  { %7208 = vmatprep.subr.bf16.mxu0 %v7619_v1 }
0x4a96   :  { %7209 = vmatpush3.bf16.msra.mxu0 %v8874_v62 }
0x4a97   :  { %7222 = vmatprep.subr.bf16.mxu0 %v7619_v1 }
0x4b5c   :  { %v4906_v50 = vpop.f32.mrb[168].mxu0 }
0x4b5d   :  { %v4907_v61 = vadd.f32 %v8881_v7, %v4906_v50  ;;  %v7180_v21 = vpop.f32.mrb[169].mxu0 }
0x4b5e   :  { %v4909_v41 = vpop.f32.mrb[170].mxu0 }
0x4b5f   :  { %v4912_v58 = vmax.f32 %v4907_v61, 0.0  ;;  %v7181_v36 = vpop.f32.mrb[171].mxu0 }
0x4b61   :  { %v4913_v24 = vpack.c.bf16 %v4912_v58, %v4912_v58 }
0x4b63   :  { %7187 = vmatmul.mubr.msk.bf16.vlgmr.msra.gmra.mrb[168].mxu1 %vm457_vm2, %v4913_v24 }
0x4b64   :  { %v5002_v47 = vpop.f32.mrb[172].mxu0  ;;  %7199 = vmatpush3.bf16.msra.mxu1 %v8828_v44  ;;  %7202 = vmatprep.mubr.msk.bf16.mxu1 %vm7620_vm1, %v7619_v1 }
0x4b65   :  { %v5008_v37 = vadd.f32 %v5002_v47, %v376_v34  ;;  %v7196_v28 = vpop.f32.mrb[173].mxu0  ;;  %7200 = vmatprep.subr.bf16.mxu1 %v7619_v1 }
0x4b66   :  { %v5005_v0 = vpop.f32.mrb[174].mxu0 }
0x4b67   :  { %7520 = vtanh.f32 %v5008_v37  ;;  %v7197_v22 = vpop.f32.mrb[175].mxu0  ;;  %v5009_v45 = vmul.f32 0.5, %v5008_v37 }
0x4b68   :  { %7201 = vmatpush3.bf16.msra.mxu1 %v8837_v46 }
0x4b69   :  { %7214 = vmatprep.subr.bf16.mxu1 %v7619_v1  ;;  %7522 = vtanh.f32 %v5009_v45 }
0x4b71   :  { %v7521_v3 = vpop.eup %7520 }
0x4b72   :  { %5016 = vrot.lane.b32.xlu0 %v7521_v3, %s7622_s12 }
0x4b73   :  { %v7523_v43 = vpop.eup %7522 }
0x4b74   :  { %v5011_v49 = vmul.f32 0.5, %v7523_v43 }
0x4b76   :  { %v5012_v23 = vadd.f32 0.5, %v5011_v49 }
0x4b78   :  { %v5014_v55 = vmul.f32 %v5012_v23, %v8942_v39 }
0x4be4   :  { %v5017_v5 = vpop.permute.xlu0 %5016 }
0x4be5   :  { %v5019_v2 = vmul.f32 %v5017_v5, %v5012_v23  ;;  %v5204_v5 = vstv %s6198_s17  ;;  %s6223_s17 = sld [smem:[#allocation5 + $0x1f]] }
0x4be7   :  { %5021 = vrot.lane.b32.xlu1 %v5019_v2, %s7622_s12 }
0x4c36   :  { %v4951_v59 = vpop.f32.mrb[168].mxu1 }
0x4c37   :  { %v4952_v53 = vadd.f32 %v8898_v63, %v4951_v59  ;;  %v7188_v26 = vpop.f32.mrb[169].mxu1 }
0x4c38   :  { %v4954_v9 = vpop.f32.mrb[170].mxu1 }
0x4c39   :  { %6190 = vst [vmem:[%s9196_s10 + $0xc8] sm:$0xff] %v4952_v53  ;;  %v7189_v8 = vpop.f32.mrb[171].mxu1  ;;  %v5207_v53 = vstv %s6199_s18 }
0x4c59   :  { %v5022_v57 = vpop.permute.xlu1 %5021 }
0x4c5a   :  { %v8979_v56 = vadd.f32 %v5022_v57, %v5014_v55 }
0x4c5c   :  { %7524 = vtanh.f32 %v8979_v56 }
0x4c66   :  { %v7525_v27 = vpop.eup %7524 }
0x4c67   :  { %5027 = vrot.lane.b32.xlu0 %v7525_v27, %s7622_s12 }
0x4cd9   :  { %v5028_v42 = vpop.permute.xlu0 %5027 }
0x4cda   :  { %v5030_v30 = vmul.f32 %v5028_v42, %v5012_v23 }
0x4cdc   :  { %v5033_v33 = vmul.f32 %v5032_v52, %v5030_v30  ;;  %v5133_v31 = vpack.c.bf16 %v5030_v30, %v5030_v30 }
0x4cde   :  { %v5036_v35 = vadd.f32 %v5035_v4, %v5033_v33  ;;  %5135 = vrot.lane.b32.xlu0 %v5133_v31, %s7623_s21 }
0x4ce0   :  { %v5037_v19 = vpack.c.bf16 %v5036_v35, %v5036_v35  ;;  %v384_v35 = vadd.f32 %v8820_v40, %v7981_v12 }
0x4ce2   :  { %5039 = vrot.lane.b32.xlu1 %v5037_v19, %s7623_s21 }
0x4d50   :  { %v5136_v51 = vpop.permute.xlu0 %5135 }
0x4d54   :  { %v5040_v39 = vpop.permute.xlu1 %5039 }
0x4d55   :  { %7203 = vmatmul.mubr.msk.bf16.vlgmr.msra.gmra.mrb[172].mxu1 %vm457_vm2, %v5040_v39 }
0x4d56   :  { %7215 = vmatpush3.bf16.msra.mxu1 %v8759_v15  ;;  %7218 = vmatprep.mubr.msk.bf16.mxu1 %vm7620_vm1, %v7619_v1 }
0x4d57   :  { %7216 = vmatprep.subr.bf16.mxu1 %v7619_v1 }
0x4d5a   :  { %7217 = vmatpush3.bf16.msra.mxu1 %v8805_v60 }
0x4d5b   :  { %7230 = vmatprep.subr.bf16.mxu1 %v7619_v1 }
0x4d5d   :  { %7219 = vmatmul.mubr.msk.bf16.vlgmr.msra.gmra.mrb[176].mxu1 %vm457_vm2, %v5136_v51 }
0x4d5e   :  { %7231 = vmatpush3.bf16.msra.mxu1 %v8865_v11  ;;  %7234 = vmatprep.mubr.msk.bf16.mxu1 %vm7620_vm1, %v7619_v1 }
0x4d5f   :  { %7232 = vmatprep.subr.bf16.mxu1 %v7619_v1 }
0x4d62   :  { %7233 = vmatpush3.bf16.msra.mxu1 %v8874_v62 }
0x4d63   :  { %7246 = vmatprep.subr.bf16.mxu1 %v7619_v1 }
0x4e28   :  { %v5078_v25 = vpop.f32.mrb[172].mxu1 }
0x4e29   :  { %v5079_v48 = vadd.f32 %v8881_v7, %v5078_v25  ;;  %v7204_v32 = vpop.f32.mrb[173].mxu1 }
0x4e2a   :  { %v5081_v54 = vpop.f32.mrb[174].mxu1 }
0x4e2b   :  { %v5084_v20 = vmax.f32 %v5079_v48, 0.0  ;;  %v7205_v16 = vpop.f32.mrb[175].mxu1 }
0x4e2d   :  { %v5085_v38 = vpack.c.bf16 %v5084_v20, %v5084_v20 }
0x4e2f   :  { %7211 = vmatmul.mubr.msk.bf16.vlgmr.msra.gmra.mrb[176].mxu0 %vm457_vm2, %v5085_v38 }
0x4e30   :  { %v5174_v18 = vpop.f32.mrb[176].mxu1  ;;  %7223 = vmatpush3.bf16.msra.mxu0 %v8828_v44  ;;  %7226 = vmatprep.mubr.msk.bf16.mxu0 %vm7620_vm1, %v7619_v1 }
0x4e31   :  { %v5180_v29 = vadd.f32 %v5174_v18, %v379_v17  ;;  %v7220_v50 = vpop.f32.mrb[177].mxu1  ;;  %7224 = vmatprep.subr.bf16.mxu0 %v7619_v1 }
0x4e32   :  { %v5177_v61 = vpop.f32.mrb[178].mxu1 }
0x4e33   :  { %7526 = vtanh.f32 %v5180_v29  ;;  %v7221_v21 = vpop.f32.mrb[179].mxu1  ;;  %v5181_v41 = vmul.f32 0.5, %v5180_v29 }
0x4e34   :  { %7225 = vmatpush3.bf16.msra.mxu0 %v8837_v46 }
0x4e35   :  { %7238 = vmatprep.subr.bf16.mxu0 %v7619_v1  ;;  %7528 = vtanh.f32 %v5181_v41 }
0x4e3d   :  { %v7527_v6 = vpop.eup %7526 }
0x4e3e   :  { %5188 = vrot.lane.b32.xlu1 %v7527_v6, %s7622_s12 }
0x4e3f   :  { %v7529_v58 = vpop.eup %7528 }
0x4e40   :  { %v5183_v36 = vmul.f32 0.5, %v7529_v58 }
0x4e42   :  { %v5184_v24 = vadd.f32 0.5, %v5183_v36 }
0x4e44   :  { %v5186_v45 = vmul.f32 %v5184_v24, %v8979_v56 }
0x4eb0   :  { %v5189_v34 = vpop.permute.xlu1 %5188 }
0x4eb1   :  { %v5191_v47 = vmul.f32 %v5189_v34, %v5184_v24 }
0x4eb3   :  { %5193 = vrot.lane.b32.xlu0 %v5191_v47, %s7622_s12 }
0x4f02   :  { %v5123_v37 = vpop.f32.mrb[176].mxu0 }
0x4f03   :  { %v5124_v28 = vadd.f32 %v8898_v63, %v5123_v37  ;;  %v7212_v0 = vpop.f32.mrb[177].mxu0  ;;  %v5379_v37 = vstv %s6205_s4 }
0x4f04   :  { %v5126_v22 = vpop.f32.mrb[178].mxu0 }
0x4f05   :  { %6196 = vst [vmem:[%s9196_s10 + $0xd0] sm:$0xff] %v5124_v28  ;;  %v7213_v3 = vpop.f32.mrb[179].mxu0 }
0x4f25   :  { %v5194_v43 = vpop.permute.xlu0 %5193 }
0x4f26   :  { %v9016_v49 = vadd.f32 %v5194_v43, %v5186_v45 }
0x4f28   :  { %7530 = vtanh.f32 %v9016_v49 }
0x4f32   :  { %v7531_v23 = vpop.eup %7530 }
0x4f33   :  { %5199 = vrot.lane.b32.xlu1 %v7531_v23, %s7622_s12 }
0x4fa5   :  { %v5200_v2 = vpop.permute.xlu1 %5199 }
0x4fa6   :  { %v5202_v59 = vmul.f32 %v5200_v2, %v5184_v24  ;;  %v5376_v24 = vstv %s6204_s0 }
0x4fa8   :  { %v5205_v26 = vmul.f32 %v5204_v5, %v5202_v59  ;;  %v5305_v9 = vpack.c.bf16 %v5202_v59, %v5202_v59 }
0x4faa   :  { %v5208_v8 = vadd.f32 %v5207_v53, %v5205_v26  ;;  %5307 = vrot.lane.b32.xlu1 %v5305_v9, %s7623_s21  ;;  %v387_v26 = vadd.f32 %v8820_v40, %v7985_v14 }
0x4fac   :  { %v5209_v55 = vpack.c.bf16 %v5208_v8, %v5208_v8 }
0x4fae   :  { %5211 = vrot.lane.b32.xlu0 %v5209_v55, %s7623_s21 }
0x501c   :  { %v5308_v56 = vpop.permute.xlu1 %5307 }
0x5020   :  { %v5212_v57 = vpop.permute.xlu0 %5211 }
0x5021   :  { %7227 = vmatmul.mubr.msk.bf16.vlgmr.msra.gmra.mrb[180].mxu0 %vm457_vm2, %v5212_v57 }
0x5022   :  { %7239 = vmatpush3.bf16.msra.mxu0 %v8759_v15  ;;  %7242 = vmatprep.mubr.msk.bf16.mxu0 %vm7620_vm1, %v7619_v1 }
0x5023   :  { %7240 = vmatprep.subr.bf16.mxu0 %v7619_v1 }
0x5026   :  { %7241 = vmatpush3.bf16.msra.mxu0 %v8805_v60 }
0x5027   :  { %7254 = vmatprep.subr.bf16.mxu0 %v7619_v1 }
0x5029   :  { %7243 = vmatmul.mubr.msk.bf16.vlgmr.msra.gmra.mrb[184].mxu0 %vm457_vm2, %v5308_v56 }
0x502a   :  { %7255 = vmatpush3.bf16.msra.mxu0 %v8865_v11  ;;  %7258 = vmatprep.mubr.msk.bf16.mxu0 %vm7620_vm1, %v7619_v1 }
0x502b   :  { %7256 = vmatprep.subr.bf16.mxu0 %v7619_v1 }
0x502e   :  { %7257 = vmatpush3.bf16.msra.mxu0 %v8874_v62 }
0x502f   :  { %7270 = vmatprep.subr.bf16.mxu0 %v7619_v1 }
0x50f4   :  { %v5250_v27 = vpop.f32.mrb[180].mxu0 }
0x50f5   :  { %v5251_v52 = vadd.f32 %v8881_v7, %v5250_v27  ;;  %v7228_v42 = vpop.f32.mrb[181].mxu0 }
0x50f6   :  { %v5253_v30 = vpop.f32.mrb[182].mxu0 }
0x50f7   :  { %v5256_v4 = vmax.f32 %v5251_v52, 0.0  ;;  %v7229_v33 = vpop.f32.mrb[183].mxu0 }
0x50f9   :  { %v5257_v31 = vpack.c.bf16 %v5256_v4, %v5256_v4 }
0x50fb   :  { %7235 = vmatmul.mubr.msk.bf16.vlgmr.msra.gmra.mrb[180].mxu1 %vm457_vm2, %v5257_v31 }
0x50fc   :  { %v5346_v19 = vpop.f32.mrb[184].mxu0  ;;  %7247 = vmatpush3.bf16.msra.mxu1 %v8828_v44  ;;  %7250 = vmatprep.mubr.msk.bf16.mxu1 %vm7620_vm1, %v7619_v1 }
0x50fd   :  { %v5352_v39 = vadd.f32 %v5346_v19, %v384_v35  ;;  %v7244_v51 = vpop.f32.mrb[185].mxu0  ;;  %7248 = vmatprep.subr.bf16.mxu1 %v7619_v1 }
0x50fe   :  { %v5349_v25 = vpop.f32.mrb[186].mxu0 }
0x50ff   :  { %7532 = vtanh.f32 %v5352_v39  ;;  %v7245_v48 = vpop.f32.mrb[187].mxu0  ;;  %v5353_v32 = vmul.f32 0.5, %v5352_v39 }
0x5100   :  { %7249 = vmatpush3.bf16.msra.mxu1 %v8837_v46 }
0x5101   :  { %7262 = vmatprep.subr.bf16.mxu1 %v7619_v1  ;;  %7534 = vtanh.f32 %v5353_v32 }
0x5109   :  { %v7533_v12 = vpop.eup %7532 }
0x510a   :  { %5360 = vrot.lane.b32.xlu0 %v7533_v12, %s7622_s12 }
0x510b   :  { %v7535_v54 = vpop.eup %7534 }
0x510c   :  { %v5355_v20 = vmul.f32 0.5, %v7535_v54  ;;  %v5548_v54 = vstv %s6210_s8 }
0x510e   :  { %v5356_v16 = vadd.f32 0.5, %v5355_v20 }
0x5110   :  { %v5358_v6 = vmul.f32 %v5356_v16, %v9016_v49 }
0x517c   :  { %v5361_v38 = vpop.permute.xlu0 %5360 }
0x517d   :  { %v5363_v17 = vmul.f32 %v5361_v38, %v5356_v16  ;;  %v5551_v38 = vstv %s6211_s23 }
0x517f   :  { %5365 = vrot.lane.b32.xlu1 %v5363_v17, %s7622_s12 }
0x51ce   :  { %v5295_v18 = vpop.f32.mrb[180].mxu1 }
0x51cf   :  { %v5296_v29 = vadd.f32 %v8898_v63, %v5295_v18  ;;  %v7236_v50 = vpop.f32.mrb[181].mxu1 }
0x51d0   :  { %v5298_v61 = vpop.f32.mrb[182].mxu1 }
0x51d1   :  { %6202 = vst [vmem:[%s9196_s10 + $0xd8] sm:$0xff] %v5296_v29  ;;  %v7237_v21 = vpop.f32.mrb[183].mxu1 }
0x51d2   :  { %v9100_v21 = vld [vmem:[%s9188_s2] sm:$0xff]  }
0x51f1   :  { %v5366_v41 = vpop.permute.xlu1 %5365 }
0x51f2   :  { %v9053_v58 = vadd.f32 %v5366_v41, %v5358_v6 }
0x51f4   :  { %7536 = vtanh.f32 %v9053_v58 }
0x51fe   :  { %v7537_v36 = vpop.eup %7536 }
0x51ff   :  { %5371 = vrot.lane.b32.xlu0 %v7537_v36, %s7622_s12 }
0x5271   :  { %v5372_v34 = vpop.permute.xlu0 %5371 }
0x5272   :  { %v5374_v47 = vmul.f32 %v5372_v34, %v5356_v16 }
0x5274   :  { %v5377_v28 = vmul.f32 %v5376_v24, %v5374_v47  ;;  %v5477_v0 = vpack.c.bf16 %v5374_v47, %v5374_v47 }
0x5276   :  { %v5380_v22 = vadd.f32 %v5379_v37, %v5377_v28  ;;  %5479 = vrot.lane.b32.xlu0 %v5477_v0, %s7623_s21  ;;  %v392_v37 = vadd.f32 %v8820_v40, %v7979_v10 }
0x5278   :  { %v5381_v3 = vpack.c.bf16 %v5380_v22, %v5380_v22 }
0x527a   :  { %5383 = vrot.lane.b32.xlu1 %v5381_v3, %s7623_s21 }
0x52e8   :  { %v5480_v43 = vpop.permute.xlu0 %5479 }
0x52ec   :  { %v5384_v45 = vpop.permute.xlu1 %5383 }
0x52ed   :  { %7251 = vmatmul.mubr.msk.bf16.vlgmr.msra.gmra.mrb[184].mxu1 %vm457_vm2, %v5384_v45 }
0x52ee   :  { %7263 = vmatpush3.bf16.msra.mxu1 %v8759_v15  ;;  %7266 = vmatprep.mubr.msk.bf16.mxu1 %vm7620_vm1, %v7619_v1 }
0x52ef   :  { %7264 = vmatprep.subr.bf16.mxu1 %v7619_v1 }
0x52f2   :  { %7265 = vmatpush3.bf16.msra.mxu1 %v8805_v60 }
0x52f3   :  { %7278 = vmatprep.subr.bf16.mxu1 %v7619_v1 }
0x52f5   :  { %7267 = vmatmul.mubr.msk.bf16.vlgmr.msra.gmra.mrb[188].mxu1 %vm457_vm2, %v5480_v43 }
0x52f6   :  { %7279 = vmatpush3.bf16.msra.mxu1 %v8865_v11  ;;  %7282 = vmatprep.mubr.msk.bf16.mxu1 %vm7620_vm1, %v7619_v1 }
0x52f7   :  { %7280 = vmatprep.subr.bf16.mxu1 %v7619_v1 }
0x52fa   :  { %7281 = vmatpush3.bf16.msra.mxu1 %v8874_v62 }
0x52fb   :  { %7294 = vmatprep.subr.bf16.mxu1 %v7619_v1 }
0x53c0   :  { %v5422_v15 = vpop.f32.mrb[184].mxu1 }
0x53c1   :  { %v5423_v49 = vadd.f32 %v8881_v7, %v5422_v15  ;;  %v7252_v23 = vpop.f32.mrb[185].mxu1 }
0x53c2   :  { %v5425_v5 = vpop.f32.mrb[186].mxu1 }
0x53c3   :  { %v5428_v2 = vmax.f32 %v5423_v49, 0.0  ;;  %v7253_v59 = vpop.f32.mrb[187].mxu1 }
0x53c5   :  { %v5429_v53 = vpack.c.bf16 %v5428_v2, %v5428_v2 }
0x53c7   :  { %7259 = vmatmul.mubr.msk.bf16.vlgmr.msra.gmra.mrb[188].mxu0 %vm457_vm2, %v5429_v53 }
0x53c8   :  { %v5518_v9 = vpop.f32.mrb[188].mxu1  ;;  %7271 = vmatpush3.bf16.msra.mxu0 %v8828_v44  ;;  %7274 = vmatprep.mubr.msk.bf16.mxu0 %vm7620_vm1, %v7619_v1 }
0x53c9   :  { %v5524_v8 = vadd.f32 %v5518_v9, %v387_v26  ;;  %v7268_v55 = vpop.f32.mrb[189].mxu1  ;;  %7272 = vmatprep.subr.bf16.mxu0 %v7619_v1 }
0x53ca   :  { %v5521_v57 = vpop.f32.mrb[190].mxu1 }
0x53cb   :  { %7538 = vtanh.f32 %v5524_v8  ;;  %v7269_v56 = vpop.f32.mrb[191].mxu1  ;;  %v5525_v27 = vmul.f32 0.5, %v5524_v8  ;;  %v5720_v57 = vstv %s6216_s27 }
0x53cc   :  { %7273 = vmatpush3.bf16.msra.mxu0 %v8837_v46 }
0x53cd   :  { %7286 = vmatprep.subr.bf16.mxu0 %v7619_v1  ;;  %7540 = vtanh.f32 %v5525_v27  ;;  %v5723_v27 = vstv %s6217_s28 }
0x53d5   :  { %v7539_v14 = vpop.eup %7538 }
0x53d6   :  { %5532 = vrot.lane.b32.xlu1 %v7539_v14, %s7622_s12 }
0x53d7   :  { %v7541_v52 = vpop.eup %7540 }
0x53d8   :  { %v5527_v42 = vmul.f32 0.5, %v7541_v52 }
0x53da   :  { %v5528_v30 = vadd.f32 0.5, %v5527_v42 }
0x53dc   :  { %v5530_v25 = vmul.f32 %v5528_v30, %v9053_v58 }
0x5448   :  { %v5533_v4 = vpop.permute.xlu1 %5532 }
0x5449   :  { %v5535_v33 = vmul.f32 %v5533_v4, %v5528_v30 }
0x544b   :  { %5537 = vrot.lane.b32.xlu0 %v5535_v33, %s7622_s12 }
0x549a   :  { %v5467_v31 = vpop.f32.mrb[188].mxu0 }
0x549b   :  { %v5468_v35 = vadd.f32 %v8898_v63, %v5467_v31  ;;  %v7260_v19 = vpop.f32.mrb[189].mxu0  ;;  %v7584_v31 = vld [vmem:[%s9188_s2 + $0x8] sm:$0xff]  }
0x549c   :  { %v5470_v39 = vpop.f32.mrb[190].mxu0 }
0x549d   :  { %6208 = vst [vmem:[%s9196_s10 + $0xe0] sm:$0xff] %v5468_v35  ;;  %v7261_v51 = vpop.f32.mrb[191].mxu0 }
0x54bd   :  { %v5538_v48 = vpop.permute.xlu0 %5537 }
0x54be   :  { %v9090_v12 = vadd.f32 %v5538_v48, %v5530_v25 }
0x54c0   :  { %7542 = vtanh.f32 %v9090_v12 }
0x54ca   :  { %v7543_v32 = vpop.eup %7542 }
0x54cb   :  { %5543 = vrot.lane.b32.xlu1 %v7543_v32, %s7622_s12 }
0x553d   :  { %v5544_v20 = vpop.permute.xlu1 %5543 }
0x553e   :  { %v5546_v16 = vmul.f32 %v5544_v20, %v5528_v30 }
0x5540   :  { %v5549_v17 = vmul.f32 %v5548_v54, %v5546_v16  ;;  %v5649_v18 = vpack.c.bf16 %v5546_v16, %v5546_v16  ;;  %v7585_v54 = vld [vmem:[%s9189_s3] ss:$0 sm:$0xff] }
0x5542   :  { %v5552_v29 = vadd.f32 %v5551_v38, %v5549_v17  ;;  %5651 = vrot.lane.b32.xlu1 %v5649_v18, %s7623_s21 }
0x5544   :  { %v5553_v50 = vpack.c.bf16 %v5552_v29, %v5552_v29 }
0x5546   :  { %5555 = vrot.lane.b32.xlu0 %v5553_v50, %s7623_s21 }
0x55b4   :  { %v5652_v6 = vpop.permute.xlu1 %5651 }
0x55b8   :  { %v5556_v61 = vpop.permute.xlu0 %5555 }
0x55b9   :  { %7275 = vmatmul.mubr.msk.bf16.vlgmr.msra.gmra.mrb[192].mxu0 %vm457_vm2, %v5556_v61 }
0x55ba   :  { %7287 = vmatpush3.bf16.msra.mxu0 %v9100_v21  ;;  %7290 = vmatprep.mubr.msk.bf16.mxu0 %vm7620_vm1, %v7619_v1 }
0x55bb   :  { %7288 = vmatprep.subr.bf16.mxu0 %v7619_v1 }
0x55be   :  { %7289 = vmatpush3.bf16.msra.mxu0 %v8805_v60 }
0x55bf   :  { %7302 = vmatprep.subr.bf16.mxu0 %v7619_v1 }
0x55c1   :  { %7291 = vmatmul.mubr.msk.bf16.vlgmr.msra.gmra.mrb[196].mxu0 %vm457_vm2, %v5652_v6 }
0x55c2   :  { %7303 = vmatpush3.bf16.msra.mxu0 %v8865_v11  ;;  %7306 = vmatprep.mubr.msk.bf16.mxu0 %vm7620_vm1, %v7619_v1 }
0x55c3   :  { %7304 = vmatprep.subr.bf16.mxu0 %v7619_v1 }
0x55c6   :  { %7305 = vmatpush3.bf16.msra.mxu0 %v8874_v62 }
0x55c7   :  { %7318 = vmatprep.subr.bf16.mxu0 %v7619_v1 }
0x568c   :  { %v5594_v41 = vpop.f32.mrb[192].mxu0 }
0x568d   :  { %v5595_v58 = vadd.f32 %v8881_v7, %v5594_v41  ;;  %v7276_v60 = vpop.f32.mrb[193].mxu0 }
0x568e   :  { %v5597_v36 = vpop.f32.mrb[194].mxu0 }
0x568f   :  { %v5600_v24 = vmax.f32 %v5595_v58, 0.0  ;;  %v7277_v34 = vpop.f32.mrb[195].mxu0 }
0x5691   :  { %v5601_v47 = vpack.c.bf16 %v5600_v24, %v5600_v24 }
0x5693   :  { %7283 = vmatmul.mubr.msk.bf16.vlgmr.msra.gmra.mrb[192].mxu1 %vm457_vm2, %v5601_v47 }
0x5694   :  { %v5690_v28 = vpop.f32.mrb[196].mxu0  ;;  %7295 = vmatpush3.bf16.msra.mxu1 %v8828_v44  ;;  %7298 = vmatprep.mubr.msk.bf16.mxu1 %vm7620_vm1, %v7619_v1 }
0x5695   :  { %v5696_v0 = vadd.f32 %v5690_v28, %v392_v37  ;;  %v7292_v22 = vpop.f32.mrb[197].mxu0  ;;  %7296 = vmatprep.subr.bf16.mxu1 %v7619_v1 }
0x5696   :  { %v5693_v3 = vpop.f32.mrb[198].mxu0 }
0x5697   :  { %7544 = vtanh.f32 %v5696_v0  ;;  %v7293_v45 = vpop.f32.mrb[199].mxu0  ;;  %v5697_v40 = vmul.f32 0.5, %v5696_v0  ;;  %v5892_v0 = vstv %s6222_s16 }
0x5698   :  { %7297 = vmatpush3.bf16.msra.mxu1 %v8837_v46  ;;  %v5895_v45 = vstv %s6223_s17 }
0x5699   :  { %7310 = vmatprep.subr.bf16.mxu1 %v7619_v1  ;;  %7546 = vtanh.f32 %v5697_v40 }
0x56a1   :  { %v7545_v10 = vpop.eup %7544 }
0x56a2   :  { %5704 = vrot.lane.b32.xlu0 %v7545_v10, %s7622_s12 }
0x56a3   :  { %v7547_v44 = vpop.eup %7546 }
0x56a4   :  { %v5699_v43 = vmul.f32 0.5, %v7547_v44 }
0x56a6   :  { %v5700_v15 = vadd.f32 0.5, %v5699_v43 }
0x56a8   :  { %v5702_v26 = vmul.f32 %v5700_v15, %v9090_v12 }
0x5714   :  { %v5705_v49 = vpop.permute.xlu0 %5704 }
0x5715   :  { %v5707_v23 = vmul.f32 %v5705_v49, %v5700_v15  ;;  %v7588_v49 = vld [vmem:[%s9193_s7] ss:$0 sm:$0xff] }
0x5717   :  { %5709 = vrot.lane.b32.xlu1 %v5707_v23, %s7622_s12 }
0x5766   :  { %v5639_v5 = vpop.f32.mrb[192].mxu1 }
0x5767   :  { %v5640_v2 = vadd.f32 %v8898_v63, %v5639_v5  ;;  %v7284_v59 = vpop.f32.mrb[193].mxu1 }
0x5768   :  { %v5642_v53 = vpop.f32.mrb[194].mxu1 }
0x5769   :  { %6214 = vst [vmem:[%s9196_s10 + $0xe8] sm:$0xff] %v5640_v2  ;;  %v7285_v46 = vpop.f32.mrb[195].mxu1 }
0x5789   :  { %v5710_v9 = vpop.permute.xlu1 %5709 }
0x578a   :  { %v9132_v8 = vadd.f32 %v5710_v9, %v5702_v26 }
0x578c   :  { %7548 = vtanh.f32 %v9132_v8 }
0x5796   :  { %v7549_v55 = vpop.eup %7548 }
0x5797   :  { %5715 = vrot.lane.b32.xlu0 %v7549_v55, %s7622_s12 }
0x5809   :  { %v5716_v56 = vpop.permute.xlu0 %5715 }
0x580a   :  { %v5718_v14 = vmul.f32 %v5716_v56, %v5700_v15 }
0x580c   :  { %v5721_v52 = vmul.f32 %v5720_v57, %v5718_v14  ;;  %v5821_v42 = vpack.c.bf16 %v5718_v14, %v5718_v14 }
0x580e   :  { %v5724_v30 = vadd.f32 %v5723_v27, %v5721_v52  ;;  %5823 = vrot.lane.b32.xlu0 %v5821_v42, %s7623_s21 }
0x5810   :  { %v5725_v4 = vpack.c.bf16 %v5724_v30, %v5724_v30 }
0x5812   :  { %5727 = vrot.lane.b32.xlu1 %v5725_v4, %s7623_s21 }
0x5880   :  { %v5824_v35 = vpop.permute.xlu0 %5823 }
0x5884   :  { %v5728_v33 = vpop.permute.xlu1 %5727 }
0x5885   :  { %7299 = vmatmul.mubr.msk.bf16.vlgmr.msra.gmra.mrb[196].mxu1 %vm457_vm2, %v5728_v33 }
0x5886   :  { %7311 = vmatpush3.bf16.msra.mxu1 %v9100_v21  ;;  %7314 = vmatprep.mubr.msk.bf16.mxu1 %vm7620_vm1, %v7619_v1 }
0x5887   :  { %7312 = vmatprep.subr.bf16.mxu1 %v7619_v1 }
0x588a   :  { %7313 = vmatpush3.bf16.msra.mxu1 %v7584_v31 }
0x588b   :  { %7326 = vmatprep.subr.bf16.mxu1 %v7619_v1 }
0x588d   :  { %7315 = vmatmul.mubr.msk.bf16.vlgmr.msra.gmra.mrb[200].mxu1 %vm457_vm2, %v5824_v35 }
0x588e   :  { %7327 = vmatpush3.bf16.msra.mxu1 %v8865_v11  ;;  %7330 = vmatprep.mubr.msk.bf16.mxu1 %vm7620_vm1, %v7619_v1  ;;  %v395_v11 = vadd.f32 %v7585_v54, %v7983_v13  ;;  %v7587_v13 = vld [vmem:[%s9192_s6 + $0x8] sm:$0xff]  }
0x588f   :  { %7328 = vmatprep.subr.bf16.mxu1 %v7619_v1 }
0x5892   :  { %7329 = vmatpush3.bf16.msra.mxu1 %v8874_v62  ;;  %v7586_v62 = vld [vmem:[%s9192_s6] sm:$0xff]  }
0x5958   :  { %v5766_v19 = vpop.f32.mrb[196].mxu1 }
0x5959   :  { %v5767_v39 = vadd.f32 %v8881_v7, %v5766_v19  ;;  %v7300_v51 = vpop.f32.mrb[197].mxu1 }
0x595a   :  { %v5769_v25 = vpop.f32.mrb[198].mxu1 }
0x595b   :  { %v5772_v48 = vmax.f32 %v5767_v39, 0.0  ;;  %v7301_v12 = vpop.f32.mrb[199].mxu1 }
0x595d   :  { %v5773_v32 = vpack.c.bf16 %v5772_v48, %v5772_v48 }
0x595f   :  { %7307 = vmatmul.mubr.msk.bf16.vlgmr.msra.gmra.mrb[200].mxu0 %vm457_vm2, %v5773_v32 }
0x5960   :  { %v5862_v20 = vpop.f32.mrb[200].mxu1  ;;  %7319 = vmatpush3.bf16.msra.mxu0 %v7586_v62  ;;  %7322 = vmatprep.mubr.msk.bf16.mxu0 %vm7620_vm1, %v7619_v1 }
0x5961   :  { %v5868_v7 = vadd.f32 %v5862_v20, %v395_v11  ;;  %v7316_v16 = vpop.f32.mrb[201].mxu1  ;;  %7320 = vmatprep.subr.bf16.mxu0 %v7619_v1 }
0x5962   :  { %v5865_v38 = vpop.f32.mrb[202].mxu1 }
0x5963   :  { %7550 = vtanh.f32 %v5868_v7  ;;  %v7317_v17 = vpop.f32.mrb[203].mxu1  ;;  %v5869_v29 = vmul.f32 0.5, %v5868_v7 }
0x5964   :  { %7321 = vmatpush3.bf16.msra.mxu0 %v7587_v13 }
0x5965   :  { %7552 = vtanh.f32 %v5869_v29 }
0x596d   :  { %v7551_v18 = vpop.eup %7550 }
0x596e   :  { %5876 = vrot.lane.b32.xlu1 %v7551_v18, %s7622_s12 }
0x596f   :  { %v7553_v50 = vpop.eup %7552 }
0x5970   :  { %v5871_v61 = vmul.f32 0.5, %v7553_v50 }
0x5972   :  { %v5872_v21 = vadd.f32 0.5, %v5871_v61 }
0x5974   :  { %v5874_v34 = vmul.f32 %v5872_v21, %v9132_v8 }
0x59e0   :  { %v5877_v6 = vpop.permute.xlu1 %5876 }
0x59e1   :  { %v5879_v41 = vmul.f32 %v5877_v6, %v5872_v21 }
0x59e3   :  { %5881 = vrot.lane.b32.xlu0 %v5879_v41, %s7622_s12 }
0x5a32   :  { %v5811_v1 = vpop.f32.mrb[200].mxu0 }
0x5a33   :  { %v5812_v58 = vadd.f32 %v8898_v63, %v5811_v1  ;;  %v7308_v60 = vpop.f32.mrb[201].mxu0 }
0x5a34   :  { %v5814_v36 = vpop.f32.mrb[202].mxu0 }
0x5a35   :  { %6220 = vst [vmem:[%s9196_s10 + $0xf0] sm:$0xff] %v5812_v58  ;;  %v7309_v24 = vpop.f32.mrb[203].mxu0 }
0x5a55   :  { %v5882_v47 = vpop.permute.xlu0 %5881 }
0x5a56   :  { %v5884_v37 = vadd.f32 %v5882_v47, %v5874_v34 }
0x5a58   :  { %7554 = vtanh.f32 %v5884_v37 }
0x5a62   :  { %v7555_v28 = vpop.eup %7554 }
0x5a63   :  { %5887 = vrot.lane.b32.xlu1 %v7555_v28, %s7622_s12 }
0x5ad5   :  { %v5888_v22 = vpop.permute.xlu1 %5887 }
0x5ad6   :  { %v5890_v3 = vmul.f32 %v5888_v22, %v5872_v21 }
0x5ad8   :  { %v5893_v10 = vmul.f32 %v5892_v0, %v5890_v3 }
0x5ada   :  { %v5896_v40 = vadd.f32 %v5895_v45, %v5893_v10 }
0x5adc   :  { %v5897_v44 = vpack.c.bf16 %v5896_v40, %v5896_v40 }
0x5ade   :  { %5899 = vrot.lane.b32.xlu0 %v5897_v44, %s7623_s21 }
0x5b50   :  { %v5900_v43 = vpop.permute.xlu0 %5899 }
0x5b51   :  { %7323 = vmatmul.mubr.msk.bf16.vlgmr.msra.gmra.mrb[204].mxu0 %vm457_vm2, %v5900_v43 }
0x5c24   :  { %v5938_v15 = vpop.f32.mrb[204].mxu0 }
0x5c25   :  { %v5939_v23 = vadd.f32 %v7588_v49, %v5938_v15  ;;  %v7324_v5 = vpop.f32.mrb[205].mxu0 }
0x5c26   :  { %v5941_v2 = vpop.f32.mrb[206].mxu0 }
0x5c27   :  { %v5944_v59 = vmax.f32 %v5939_v23, 0.0  ;;  %v7325_v53 = vpop.f32.mrb[207].mxu0 }
0x5c29   :  { %v5945_v46 = vpack.c.bf16 %v5944_v59, %v5944_v59 }
0x5c2b   :  { %7331 = vmatmul.mubr.msk.bf16.vlgmr.msra.gmra.mrb[204].mxu1 %vm457_vm2, %v5945_v46 }
0x5cfe   :  { %v5983_v26 = vpop.f32.mrb[204].mxu1 }
0x5cff   :  { %v5984_v9 = vadd.f32 %v8898_v63, %v5983_v26  ;;  %v7332_v8 = vpop.f32.mrb[205].mxu1 }
0x5d00   :  { %v5986_v55 = vpop.f32.mrb[206].mxu1 }
0x5d01   :  { %6226 = vst [vmem:[%s9196_s10 + $0xf8] sm:$0xff] %v5984_v9  ;;  %v7333_v57 = vpop.f32.mrb[207].mxu1 }
0x5d02   :  { %5995 = vsyncpa [#allocation4], 1 }
0x5d03   :  { %5996 = vsyncpa [#allocation6], 1 }

</bundles_post_ra>
